<compile_context>
chip_gen: v5e
topology: v5e:2x2
jax: 0.10.0
libtpu: 0.0.40
codegen_flags: <defaults>
</compile_context>

<pallas_src>
import math
from functools import partial

import jax
import jax.numpy as jnp
from jax.experimental import pallas as pl
from jax.experimental.pallas import tpu as pltpu


# ----------------------------------------------------------------------------
# Kernel: whole TransformerBlock for one (batch, layer) grid step
# ----------------------------------------------------------------------------
def _transformer_block_kernel(num_heads,
                              x_ref, lin_wt_ref, lin_b_ref,
                              wq_ref, bq_ref, wk_ref, wv_ref, bv_ref,
                              wo_ref, bo_ref, wffn_ref,
                              o_ref, act_ref):
    l = pl.program_id(1)

    # Layer 0: fuse the `p + self.linear(p)` front-end; the batch element is
    # read from HBM exactly once and seeds the resident activation scratch.
    @pl.when(l == 0)
    def _():
        x = x_ref[0]                                                   # (S, C) f32
        y = jnp.dot(x.astype(jnp.bfloat16), lin_wt_ref[...],
                    preferred_element_type=jnp.float32) + lin_b_ref[...]
        act_ref[...] = x + y

    act = act_ref[...]                                                 # (S, C) f32
    S, C = act.shape
    d = C // num_heads
    act_b = act.astype(jnp.bfloat16)

    # Folded projections: one (S,C)@(C,C) bf16 MXU matmul each, computed once
    # per (batch, layer).  q already carries 1/sqrt(d); K bias is dropped
    # (softmax-invariant, exact).
    q = jnp.dot(act_b, wq_ref[0], preferred_element_type=jnp.float32) + bq_ref[0]
    k = jnp.dot(act_b, wk_ref[0], preferred_element_type=jnp.float32)
    v = jnp.dot(act_b, wv_ref[0], preferred_element_type=jnp.float32) + bv_ref[0]
    q_b = q.astype(jnp.bfloat16)
    k_b = k.astype(jnp.bfloat16)
    v_b = v.astype(jnp.bfloat16)
    wo = wo_ref[0]                                                     # (C, C) bf16

    # Per-head attention, accumulated straight into the out-projection so no
    # lane-concatenated (S, C) head slab is ever materialised.
    # TODO(synk): for d not a multiple of 128 the head slices are not
    # lane-aligned (correct but slower); pad C/heads for such configs.
    attn = None
    for h in range(num_heads):                                         # static unroll
        sl = slice(h * d, (h + 1) * d)
        s = jax.lax.dot_general(q_b[:, sl], k_b[:, sl],
                                (((1,), (1,)), ((), ())),
                                preferred_element_type=jnp.float32)    # (S, S)
        m = jnp.max(s, axis=-1, keepdims=True)
        e = jnp.exp(s - m)
        p = e * pl.reciprocal(jnp.sum(e, axis=-1, keepdims=True), approx=True)
        head = jnp.dot(p.astype(jnp.bfloat16), v_b[:, sl],
                       preferred_element_type=jnp.float32)             # (S, d)
        contrib = jnp.dot(head.astype(jnp.bfloat16), wo[sl, :],
                          preferred_element_type=jnp.float32)          # (S, C)
        attn = contrib if attn is None else attn + contrib
    attn = attn + bo_ref[0]

    x1 = attn + act                                                    # residual 1 (f32)
    ffn = jnp.dot(x1.astype(jnp.bfloat16), wffn_ref[0],
                  preferred_element_type=jnp.float32)                  # fc2(fc1(.)) folded
    new_act = ffn + x1                                                 # residual 2
    act_ref[...] = new_act

    @pl.when(l == pl.num_programs(1) - 1)
    def _():
        o_ref[0] = new_act.astype(o_ref.dtype)


# ----------------------------------------------------------------------------
# pallas_call wrapper
# ----------------------------------------------------------------------------
def _transformer_block_pallas(x_bsc, prep, num_heads, num_layers):
    B, S, C = x_bsc.shape
    kern = partial(_transformer_block_kernel, num_heads)

    def layer_w():   # per-layer (C,C) weight stack, indexed by the layer axis
        return pl.BlockSpec((1, C, C), lambda b, l: (l, 0, 0))

    def layer_b():   # per-layer (1,C) bias stack
        return pl.BlockSpec((1, 1, C), lambda b, l: (l, 0, 0))

    # Above the 16 MiB v5e scoped default; safe on v6e/v7x (<= their 32 MiB default).
    vmem_limit = 32 * 1024 * 1024

    return pl.pallas_call(
        kern,
        out_shape=jax.ShapeDtypeStruct((B, S, C), jnp.float32),
        grid_spec=pltpu.PrefetchScalarGridSpec(
            num_scalar_prefetch=0,
            grid=(B, num_layers),
            in_specs=[
                pl.BlockSpec((1, S, C), lambda b, l: (b, 0, 0)),   # x (fetched once per b)
                pl.BlockSpec((C, C), lambda b, l: (0, 0)),         # linear W^T (grid-constant)
                pl.BlockSpec((1, C), lambda b, l: (0, 0)),         # linear bias
                layer_w(), layer_b(),                              # q-chain (folded + scaled)
                layer_w(),                                         # k-chain (folded, no bias)
                layer_w(), layer_b(),                              # v-chain (folded)
                layer_w(), layer_b(),                              # out_proj
                layer_w(),                                         # fc1@fc2 (folded)
            ],
            out_specs=pl.BlockSpec((1, S, C), lambda b, l: (b, 0, 0)),
            scratch_shapes=[pltpu.VMEM((S, C), jnp.float32)],      # resident activation
        ),
        compiler_params=pltpu.CompilerParams(
            dimension_semantics=("parallel", "arbitrary"),
            vmem_limit_bytes=vmem_limit),
    )(x_bsc,
      prep["lin_wt"], prep["lin_b"],
      prep["wq"], prep["bq"], prep["wk"], prep["wv"], prep["bv"],
      prep["wo"], prep["bo"], prep["wffn"])


# ----------------------------------------------------------------------------
# Parameter setup (torch convention: weight (out, in), bias (out,)) + folding
# ----------------------------------------------------------------------------
def init_params(key, c, num_layers):
    std = 1.0 / math.sqrt(c)

    def rnd(k, shape):
        return jax.random.normal(k, shape, jnp.float32) * std

    names2d = ["wq", "wk", "wv", "wqi", "wki", "wvi", "wo", "fc1", "fc2"]
    names1d = ["bqi", "bki", "bvi", "bo"]
    keys = jax.random.split(key, 2 + (len(names2d) + len(names1d)) * num_layers)
    params = {"lin_w": rnd(keys[0], (c, c)), "lin_b": rnd(keys[1], (c,)), "layers": []}
    idx = 2
    for _ in range(num_layers):
        L = {}
        for n in names2d:
            L[n] = rnd(keys[idx], (c, c)); idx += 1
        for n in names1d:
            L[n] = rnd(keys[idx], (c,)); idx += 1
        params["layers"].append(L)
    return params


def _prep_params(params, c, num_heads):
    """Host-side weight folding (pure glue, f32 matmuls then cast to bf16)."""
    d = c // num_heads
    scale = 1.0 / math.sqrt(d)
    bf = jnp.bfloat16

    wq, bq, wk, wv, bv, wo, bo, wffn = [], [], [], [], [], [], [], []
    for L in params["layers"]:
        wq.append(((L["wq"].T @ L["wqi"].T) * scale).astype(bf))
        bq.append((L["bqi"] * scale).reshape(1, c))
        wk.append((L["wk"].T @ L["wki"].T).astype(bf))
        # NOTE: bki is intentionally dropped — a constant K bias only adds a
        # per-row constant to the scores, which the softmax removes exactly.
        wv.append((L["wv"].T @ L["wvi"].T).astype(bf))
        bv.append(L["bvi"].reshape(1, c))
        wo.append(L["wo"].T.astype(bf))
        bo.append(L["bo"].reshape(1, c))
        wffn.append((L["fc1"].T @ L["fc2"].T).astype(bf))

    return {
        "lin_wt": params["lin_w"].T.astype(bf),
        "lin_b": params["lin_b"].reshape(1, c),
        "wq": jnp.stack(wq), "bq": jnp.stack(bq),
        "wk": jnp.stack(wk),
        "wv": jnp.stack(wv), "bv": jnp.stack(bv),
        "wo": jnp.stack(wo), "bo": jnp.stack(bo),
        "wffn": jnp.stack(wffn),
    }


def transformer_block_forward(x_nchw, params, num_heads):
    """Pallas implementation of TransformerBlock.forward (c1 == c2 case)."""
    # TODO(synk): the optional Conv(c1, c2) (conv2d+BN+SiLU) front-end is only
    # active when c1 != c2; this example uses c1 == c2 so self.conv is None.
    B, C, W, H = x_nchw.shape
    assert C % num_heads == 0
    S = W * H
    num_layers = len(params["layers"])
    p = x_nchw.reshape(B, C, S).transpose(0, 2, 1)                    # (B, S, C)
    prep = _prep_params(params, C, num_heads)
    out = _transformer_block_pallas(p, prep, num_heads, num_layers)
    return out.transpose(0, 2, 1).reshape(B, C, W, H)


# ----------------------------------------------------------------------------
# Pure-JAX reference (mirrors PyTorch semantics, f32) for correctness check
# ----------------------------------------------------------------------------
def reference_forward(x_nchw, params, num_heads):
    B, C, W, H = x_nchw.shape
    S = W * H
    d = C // num_heads
    p = x_nchw.reshape(B, C, S).transpose(0, 2, 1)                    # (B, S, C)
    p = p + (p @ params["lin_w"].T + params["lin_b"])
    for L in params["layers"]:
        q = p @ L["wq"].T
        k = p @ L["wk"].T
        v = p @ L["wv"].T
        qp = q @ L["wqi"].T + L["bqi"]
        kp = k @ L["wki"].T + L["bki"]
        vp = v @ L["wvi"].T + L["bvi"]
        qh = qp.reshape(B, S, num_heads, d).transpose(0, 2, 1, 3)
        kh = kp.reshape(B, S, num_heads, d).transpose(0, 2, 1, 3)
        vh = vp.reshape(B, S, num_heads, d).transpose(0, 2, 1, 3)
        s = jnp.einsum("bhqd,bhkd->bhqk", qh, kh) / math.sqrt(d)
        a = jax.nn.softmax(s, axis=-1)
        o = jnp.einsum("bhqk,bhkd->bhqd", a, vh)
        o = o.transpose(0, 2, 1, 3).reshape(B, S, C)
        attn = o @ L["wo"].T + L["bo"]
        x1 = attn + p
        p = (x1 @ L["fc1"].T) @ L["fc2"].T + x1
    return p.transpose(0, 2, 1).reshape(B, C, W, H)


# ----------------------------------------------------------------------------
if __name__ == "__main__":
    # Lane-friendly config: C multiple of 128 (lane-dense, unmasked stores),
    # d = C/heads = 128 (aligned head slices), S = 16*16 = 256 so the per-step
    # LHS fills the 256^2 MXU on v6e/v7x; B=2 keeps both v7x TensorCores busy
    # via the "parallel" batch axis.
    B, C, W, H = 2, 256, 16, 16
    num_heads, num_layers = 2, 2

    key = jax.random.PRNGKey(0)
    kx, kp = jax.random.split(key)
    x = jax.random.normal(kx, (B, C, W, H), jnp.float32)
    params = init_params(kp, C, num_layers)

    out = transformer_block_forward(x, params, num_heads)
    out = jax.block_until_ready(out)

    ref = reference_forward(x, params, num_heads)
    assert out.shape == (B, C, W, H)
    # bf16 MXU inputs + approx-reciprocal softmax => compare with a relative bound.
    max_err = float(jnp.max(jnp.abs(out - ref)))
    ref_mag = float(jnp.max(jnp.abs(ref)))
    assert max_err <= 5e-2 * max(ref_mag, 1.0), \
        f"mismatch vs reference: {max_err} (|ref|max={ref_mag})"

    print("KERNEL_OK")
</pallas_src>

<mosaic_0001>
module attributes {stable_mosaic.version = 11 : i64} {
  func.func @_transformer_block_kernel(%arg0: i32, %arg1: i32, %arg2: memref<1x256x256xf32, #tpu.memory_space<vmem>>, %arg3: memref<256x256xbf16, #tpu.memory_space<vmem>>, %arg4: memref<1x256xf32, #tpu.memory_space<vmem>>, %arg5: memref<1x256x256xbf16, #tpu.memory_space<vmem>>, %arg6: memref<1x1x256xf32, #tpu.memory_space<vmem>>, %arg7: memref<1x256x256xbf16, #tpu.memory_space<vmem>>, %arg8: memref<1x256x256xbf16, #tpu.memory_space<vmem>>, %arg9: memref<1x1x256xf32, #tpu.memory_space<vmem>>, %arg10: memref<1x256x256xbf16, #tpu.memory_space<vmem>>, %arg11: memref<1x1x256xf32, #tpu.memory_space<vmem>>, %arg12: memref<1x256x256xbf16, #tpu.memory_space<vmem>>, %arg13: memref<1x256x256xf32, #tpu.memory_space<vmem>>, %arg14: memref<256x256xf32, #tpu.memory_space<vmem>>) attributes {dimension_semantics = [#tpu.dimension_semantics<parallel>, #tpu.dimension_semantics<arbitrary>], iteration_bounds = array<i64: 2, 2>, scalar_prefetch = 0 : i64, scratch_operands = 1 : i64, tpu.core_type = #tpu.core_type<tc>, window_params = [{transform_indices = @transform_0, window_bounds = array<i64: 1, 256, 256>}, {pipeline_mode = #tpu.pipeline_mode<synchronous>, transform_indices = @transform_1, window_bounds = array<i64: 256, 256>}, {pipeline_mode = #tpu.pipeline_mode<synchronous>, transform_indices = @transform_2, window_bounds = array<i64: 1, 256>}, {transform_indices = @transform_3, window_bounds = array<i64: 1, 256, 256>}, {transform_indices = @transform_4, window_bounds = array<i64: 1, 1, 256>}, {transform_indices = @transform_5, window_bounds = array<i64: 1, 256, 256>}, {transform_indices = @transform_6, window_bounds = array<i64: 1, 256, 256>}, {transform_indices = @transform_7, window_bounds = array<i64: 1, 1, 256>}, {transform_indices = @transform_8, window_bounds = array<i64: 1, 256, 256>}, {transform_indices = @transform_9, window_bounds = array<i64: 1, 1, 256>}, {transform_indices = @transform_10, window_bounds = array<i64: 1, 256, 256>}, {transform_indices = @transform_11, window_bounds = array<i64: 1, 256, 256>}]} {
    %c0_i32 = arith.constant 0 : i32
    %0 = arith.cmpi eq, %arg1, %c0_i32 : i32
    %1 = arith.extui %0 : i1 to i32
    %c0_i32_0 = arith.constant 0 : i32
    %2 = arith.cmpi ne, %1, %c0_i32_0 : i32
    scf.if %2 {
      %c0_42 = arith.constant 0 : index
      %c0_43 = arith.constant 0 : index
      %c0_44 = arith.constant 0 : index
      %80 = vector.load %arg2[%c0_42, %c0_43, %c0_44] : memref<1x256x256xf32, #tpu.memory_space<vmem>>, vector<1x256x256xf32>
      %81 = vector.shape_cast %80 : vector<1x256x256xf32> to vector<256x256xf32>
      %82 = arith.truncf %81 : vector<256x256xf32> to vector<256x256xbf16>
      %c0_45 = arith.constant 0 : index
      %c0_46 = arith.constant 0 : index
      %83 = vector.load %arg3[%c0_45, %c0_46] : memref<256x256xbf16, #tpu.memory_space<vmem>>, vector<256x256xbf16>
      %cst_47 = arith.constant dense<0.000000e+00> : vector<256x256xf32>
      %84 = tpu.matmul %82, %83, %cst_47 {dimension_numbers = #tpu.dot_dimension_numbers<[1], [0], [0], [1], [0, 0, 1, 1], [], []>} : vector<256x256xbf16>, vector<256x256xbf16>, vector<256x256xf32> -> vector<256x256xf32>
      %c0_48 = arith.constant 0 : index
      %c0_49 = arith.constant 0 : index
      %85 = vector.load %arg4[%c0_48, %c0_49] : memref<1x256xf32, #tpu.memory_space<vmem>>, vector<1x256xf32>
      %86 = vector.broadcast %85 : vector<1x256xf32> to vector<256x256xf32>
      %87 = arith.addf %84, %86 : vector<256x256xf32>
      %88 = arith.addf %81, %87 : vector<256x256xf32>
      %c0_50 = arith.constant 0 : index
      %c0_51 = arith.constant 0 : index
      %89 = vector.load %arg14[%c0_50, %c0_51] : memref<256x256xf32, #tpu.memory_space<vmem>>, vector<256x256xf32>
      tpu.vector_store %arg14[%c0_50, %c0_51], %88 {strides = array<i32>} : memref<256x256xf32, #tpu.memory_space<vmem>>, vector<256x256xf32>,
    } else {
    }
    %c0 = arith.constant 0 : index
    %c0_1 = arith.constant 0 : index
    %3 = vector.load %arg14[%c0, %c0_1] : memref<256x256xf32, #tpu.memory_space<vmem>>, vector<256x256xf32>
    %4 = arith.truncf %3 : vector<256x256xf32> to vector<256x256xbf16>
    %c0_2 = arith.constant 0 : index
    %c0_3 = arith.constant 0 : index
    %c0_4 = arith.constant 0 : index
    %5 = vector.load %arg5[%c0_2, %c0_3, %c0_4] : memref<1x256x256xbf16, #tpu.memory_space<vmem>>, vector<1x256x256xbf16>
    %6 = vector.shape_cast %5 : vector<1x256x256xbf16> to vector<256x256xbf16>
    %cst = arith.constant dense<0.000000e+00> : vector<256x256xf32>
    %7 = tpu.matmul %4, %6, %cst {dimension_numbers = #tpu.dot_dimension_numbers<[1], [0], [0], [1], [0, 0, 1, 1], [], []>} : vector<256x256xbf16>, vector<256x256xbf16>, vector<256x256xf32> -> vector<256x256xf32>
    %c0_5 = arith.constant 0 : index
    %c0_6 = arith.constant 0 : index
    %c0_7 = arith.constant 0 : index
    %8 = vector.load %arg6[%c0_5, %c0_6, %c0_7] : memref<1x1x256xf32, #tpu.memory_space<vmem>>, vector<1x1x256xf32>
    %9 = vector.shape_cast %8 : vector<1x1x256xf32> to vector<1x256xf32>
    %10 = vector.broadcast %9 : vector<1x256xf32> to vector<256x256xf32>
    %11 = arith.addf %7, %10 : vector<256x256xf32>
    %c0_8 = arith.constant 0 : index
    %c0_9 = arith.constant 0 : index
    %c0_10 = arith.constant 0 : index
    %12 = vector.load %arg7[%c0_8, %c0_9, %c0_10] : memref<1x256x256xbf16, #tpu.memory_space<vmem>>, vector<1x256x256xbf16>
    %13 = vector.shape_cast %12 : vector<1x256x256xbf16> to vector<256x256xbf16>
    %cst_11 = arith.constant dense<0.000000e+00> : vector<256x256xf32>
    %14 = tpu.matmul %4, %13, %cst_11 {dimension_numbers = #tpu.dot_dimension_numbers<[1], [0], [0], [1], [0, 0, 1, 1], [], []>} : vector<256x256xbf16>, vector<256x256xbf16>, vector<256x256xf32> -> vector<256x256xf32>
    %c0_12 = arith.constant 0 : index
    %c0_13 = arith.constant 0 : index
    %c0_14 = arith.constant 0 : index
    %15 = vector.load %arg8[%c0_12, %c0_13, %c0_14] : memref<1x256x256xbf16, #tpu.memory_space<vmem>>, vector<1x256x256xbf16>
    %16 = vector.shape_cast %15 : vector<1x256x256xbf16> to vector<256x256xbf16>
    %cst_15 = arith.constant dense<0.000000e+00> : vector<256x256xf32>
    %17 = tpu.matmul %4, %16, %cst_15 {dimension_numbers = #tpu.dot_dimension_numbers<[1], [0], [0], [1], [0, 0, 1, 1], [], []>} : vector<256x256xbf16>, vector<256x256xbf16>, vector<256x256xf32> -> vector<256x256xf32>
    %c0_16 = arith.constant 0 : index
    %c0_17 = arith.constant 0 : index
    %c0_18 = arith.constant 0 : index
    %18 = vector.load %arg9[%c0_16, %c0_17, %c0_18] : memref<1x1x256xf32, #tpu.memory_space<vmem>>, vector<1x1x256xf32>
    %19 = vector.shape_cast %18 : vector<1x1x256xf32> to vector<1x256xf32>
    %20 = vector.broadcast %19 : vector<1x256xf32> to vector<256x256xf32>
    %21 = arith.addf %17, %20 : vector<256x256xf32>
    %22 = arith.truncf %11 : vector<256x256xf32> to vector<256x256xbf16>
    %23 = arith.truncf %14 : vector<256x256xf32> to vector<256x256xbf16>
    %24 = arith.truncf %21 : vector<256x256xf32> to vector<256x256xbf16>
    %c0_19 = arith.constant 0 : index
    %c0_20 = arith.constant 0 : index
    %c0_21 = arith.constant 0 : index
    %25 = vector.load %arg10[%c0_19, %c0_20, %c0_21] : memref<1x256x256xbf16, #tpu.memory_space<vmem>>, vector<1x256x256xbf16>
    %26 = vector.shape_cast %25 : vector<1x256x256xbf16> to vector<256x256xbf16>
    %27 = vector.extract_strided_slice %22 {offsets = [0, 0], sizes = [256, 128], strides = [1, 1]} : vector<256x256xbf16> to vector<256x128xbf16>
    %28 = vector.extract_strided_slice %23 {offsets = [0, 0], sizes = [256, 128], strides = [1, 1]} : vector<256x256xbf16> to vector<256x128xbf16>
    %cst_22 = arith.constant dense<0.000000e+00> : vector<256x256xf32>
    %29 = tpu.matmul %27, %28, %cst_22 {dimension_numbers = #tpu.dot_dimension_numbers<[1], [1], [0], [0], [0, 0, 1, 0], [], []>} : vector<256x128xbf16>, vector<256x128xbf16>, vector<256x256xf32> -> vector<256x256xf32>
    %cst_23 = arith.constant dense<0xFF800000> : vector<256xf32>
    %30 = vector.multi_reduction <maximumf>, %29, %cst_23 [1] : vector<256x256xf32> to vector<256xf32>
    %31 = vector.shape_cast %30 : vector<256xf32> to vector<256x1xf32>
    %32 = vector.broadcast %31 : vector<256x1xf32> to vector<256x256xf32>
    %33 = arith.subf %29, %32 : vector<256x256xf32>
    %34 = math.exp %33 : vector<256x256xf32>
    %cst_24 = arith.constant dense<0.000000e+00> : vector<256xf32>
    %35 = vector.multi_reduction <add>, %34, %cst_24 [1] : vector<256x256xf32> to vector<256xf32>
    %36 = vector.shape_cast %35 : vector<256xf32> to vector<256x1xf32>
    %37 = tpu.reciprocal %36 {approx = true} : vector<256x1xf32> -> vector<256x1xf32>
    %38 = vector.broadcast %37 : vector<256x1xf32> to vector<256x256xf32>
    %39 = arith.mulf %34, %38 : vector<256x256xf32>
    %40 = arith.truncf %39 : vector<256x256xf32> to vector<256x256xbf16>
    %41 = vector.extract_strided_slice %24 {offsets = [0, 0], sizes = [256, 128], strides = [1, 1]} : vector<256x256xbf16> to vector<256x128xbf16>
    %cst_25 = arith.constant dense<0.000000e+00> : vector<256x128xf32>
    %42 = tpu.matmul %40, %41, %cst_25 {dimension_numbers = #tpu.dot_dimension_numbers<[1], [0], [0], [1], [0, 0, 1, 1], [], []>} : vector<256x256xbf16>, vector<256x128xbf16>, vector<256x128xf32> -> vector<256x128xf32>
    %43 = arith.truncf %42 : vector<256x128xf32> to vector<256x128xbf16>
    %44 = vector.extract_strided_slice %26 {offsets = [0, 0], sizes = [128, 256], strides = [1, 1]} : vector<256x256xbf16> to vector<128x256xbf16>
    %cst_26 = arith.constant dense<0.000000e+00> : vector<256x256xf32>
    %45 = tpu.matmul %43, %44, %cst_26 {dimension_numbers = #tpu.dot_dimension_numbers<[1], [0], [0], [1], [0, 0, 1, 1], [], []>} : vector<256x128xbf16>, vector<128x256xbf16>, vector<256x256xf32> -> vector<256x256xf32>
    %46 = vector.extract_strided_slice %22 {offsets = [0, 128], sizes = [256, 128], strides = [1, 1]} : vector<256x256xbf16> to vector<256x128xbf16>
    %47 = vector.extract_strided_slice %23 {offsets = [0, 128], sizes = [256, 128], strides = [1, 1]} : vector<256x256xbf16> to vector<256x128xbf16>
    %cst_27 = arith.constant dense<0.000000e+00> : vector<256x256xf32>
    %48 = tpu.matmul %46, %47, %cst_27 {dimension_numbers = #tpu.dot_dimension_numbers<[1], [1], [0], [0], [0, 0, 1, 0], [], []>} : vector<256x128xbf16>, vector<256x128xbf16>, vector<256x256xf32> -> vector<256x256xf32>
    %cst_28 = arith.constant dense<0xFF800000> : vector<256xf32>
    %49 = vector.multi_reduction <maximumf>, %48, %cst_28 [1] : vector<256x256xf32> to vector<256xf32>
    %50 = vector.shape_cast %49 : vector<256xf32> to vector<256x1xf32>
    %51 = vector.broadcast %50 : vector<256x1xf32> to vector<256x256xf32>
    %52 = arith.subf %48, %51 : vector<256x256xf32>
    %53 = math.exp %52 : vector<256x256xf32>
    %cst_29 = arith.constant dense<0.000000e+00> : vector<256xf32>
    %54 = vector.multi_reduction <add>, %53, %cst_29 [1] : vector<256x256xf32> to vector<256xf32>
    %55 = vector.shape_cast %54 : vector<256xf32> to vector<256x1xf32>
    %56 = tpu.reciprocal %55 {approx = true} : vector<256x1xf32> -> vector<256x1xf32>
    %57 = vector.broadcast %56 : vector<256x1xf32> to vector<256x256xf32>
    %58 = arith.mulf %53, %57 : vector<256x256xf32>
    %59 = arith.truncf %58 : vector<256x256xf32> to vector<256x256xbf16>
    %60 = vector.extract_strided_slice %24 {offsets = [0, 128], sizes = [256, 128], strides = [1, 1]} : vector<256x256xbf16> to vector<256x128xbf16>
    %cst_30 = arith.constant dense<0.000000e+00> : vector<256x128xf32>
    %61 = tpu.matmul %59, %60, %cst_30 {dimension_numbers = #tpu.dot_dimension_numbers<[1], [0], [0], [1], [0, 0, 1, 1], [], []>} : vector<256x256xbf16>, vector<256x128xbf16>, vector<256x128xf32> -> vector<256x128xf32>
    %62 = arith.truncf %61 : vector<256x128xf32> to vector<256x128xbf16>
    %63 = vector.extract_strided_slice %26 {offsets = [128, 0], sizes = [128, 256], strides = [1, 1]} : vector<256x256xbf16> to vector<128x256xbf16>
    %cst_31 = arith.constant dense<0.000000e+00> : vector<256x256xf32>
    %64 = tpu.matmul %62, %63, %cst_31 {dimension_numbers = #tpu.dot_dimension_numbers<[1], [0], [0], [1], [0, 0, 1, 1], [], []>} : vector<256x128xbf16>, vector<128x256xbf16>, vector<256x256xf32> -> vector<256x256xf32>
    %65 = arith.addf %45, %64 : vector<256x256xf32>
    %c0_32 = arith.constant 0 : index
    %c0_33 = arith.constant 0 : index
    %c0_34 = arith.constant 0 : index
    %66 = vector.load %arg11[%c0_32, %c0_33, %c0_34] : memref<1x1x256xf32, #tpu.memory_space<vmem>>, vector<1x1x256xf32>
    %67 = vector.shape_cast %66 : vector<1x1x256xf32> to vector<1x256xf32>
    %68 = vector.broadcast %67 : vector<1x256xf32> to vector<256x256xf32>
    %69 = arith.addf %65, %68 : vector<256x256xf32>
    %70 = arith.addf %69, %3 : vector<256x256xf32>
    %71 = arith.truncf %70 : vector<256x256xf32> to vector<256x256xbf16>
    %c0_35 = arith.constant 0 : index
    %c0_36 = arith.constant 0 : index
    %c0_37 = arith.constant 0 : index
    %72 = vector.load %arg12[%c0_35, %c0_36, %c0_37] : memref<1x256x256xbf16, #tpu.memory_space<vmem>>, vector<1x256x256xbf16>
    %73 = vector.shape_cast %72 : vector<1x256x256xbf16> to vector<256x256xbf16>
    %cst_38 = arith.constant dense<0.000000e+00> : vector<256x256xf32>
    %74 = tpu.matmul %71, %73, %cst_38 {dimension_numbers = #tpu.dot_dimension_numbers<[1], [0], [0], [1], [0, 0, 1, 1], [], []>} : vector<256x256xbf16>, vector<256x256xbf16>, vector<256x256xf32> -> vector<256x256xf32>
    %75 = arith.addf %74, %70 : vector<256x256xf32>
    %c0_39 = arith.constant 0 : index
    %c0_40 = arith.constant 0 : index
    %76 = vector.load %arg14[%c0_39, %c0_40] : memref<256x256xf32, #tpu.memory_space<vmem>>, vector<256x256xf32>
    tpu.vector_store %arg14[%c0_39, %c0_40], %75 {strides = array<i32>} : memref<256x256xf32, #tpu.memory_space<vmem>>, vector<256x256xf32>,
    %c1_i32 = arith.constant 1 : i32
    %77 = arith.cmpi eq, %arg1, %c1_i32 : i32
    %78 = arith.extui %77 : i1 to i32
    %c0_i32_41 = arith.constant 0 : i32
    %79 = arith.cmpi ne, %78, %c0_i32_41 : i32
    scf.if %79 {
      %c0_42 = arith.constant 0 : index
      %c0_43 = arith.constant 0 : index
      %c0_44 = arith.constant 0 : index
      %80 = vector.load %arg13[%c0_42, %c0_43, %c0_44] : memref<1x256x256xf32, #tpu.memory_space<vmem>>, vector<1x256x256xf32>
      %81 = vector.shape_cast %80 : vector<1x256x256xf32> to vector<256x256xf32>
      %82 = vector.shape_cast %75 : vector<256x256xf32> to vector<1x256x256xf32>
      tpu.vector_store %arg13[%c0_42, %c0_43, %c0_44], %82 {strides = array<i32>} : memref<1x256x256xf32, #tpu.memory_space<vmem>>, vector<1x256x256xf32>,
    } else {
    }
    return
  }
  func.func @transform_0(%arg0: i32, %arg1: i32) -> (i32, i32, i32) {
    %c0_i32 = arith.constant 0 : i32
    %c0_i32_0 = arith.constant 0 : i32
    %c0_i32_1 = arith.constant 0 : i32
    return %arg0, %c0_i32, %c0_i32_0 : i32, i32, i32
  }
  func.func @transform_1(%arg0: i32, %arg1: i32) -> (i32, i32) {
    %c0_i32 = arith.constant 0 : i32
    %c0_i32_0 = arith.constant 0 : i32
    %c0_i32_1 = arith.constant 0 : i32
    return %c0_i32, %c0_i32_0 : i32, i32
  }
  func.func @transform_2(%arg0: i32, %arg1: i32) -> (i32, i32) {
    %c0_i32 = arith.constant 0 : i32
    %c0_i32_0 = arith.constant 0 : i32
    %c0_i32_1 = arith.constant 0 : i32
    return %c0_i32, %c0_i32_0 : i32, i32
  }
  func.func @transform_3(%arg0: i32, %arg1: i32) -> (i32, i32, i32) {
    %c0_i32 = arith.constant 0 : i32
    %c0_i32_0 = arith.constant 0 : i32
    %c0_i32_1 = arith.constant 0 : i32
    return %arg1, %c0_i32, %c0_i32_0 : i32, i32, i32
  }
  func.func @transform_4(%arg0: i32, %arg1: i32) -> (i32, i32, i32) {
    %c0_i32 = arith.constant 0 : i32
    %c0_i32_0 = arith.constant 0 : i32
    %c0_i32_1 = arith.constant 0 : i32
    return %arg1, %c0_i32, %c0_i32_0 : i32, i32, i32
  }
  func.func @transform_5(%arg0: i32, %arg1: i32) -> (i32, i32, i32) {
    %c0_i32 = arith.constant 0 : i32
    %c0_i32_0 = arith.constant 0 : i32
    %c0_i32_1 = arith.constant 0 : i32
    return %arg1, %c0_i32, %c0_i32_0 : i32, i32, i32
  }
  func.func @transform_6(%arg0: i32, %arg1: i32) -> (i32, i32, i32) {
    %c0_i32 = arith.constant 0 : i32
    %c0_i32_0 = arith.constant 0 : i32
    %c0_i32_1 = arith.constant 0 : i32
    return %arg1, %c0_i32, %c0_i32_0 : i32, i32, i32
  }
  func.func @transform_7(%arg0: i32, %arg1: i32) -> (i32, i32, i32) {
    %c0_i32 = arith.constant 0 : i32
    %c0_i32_0 = arith.constant 0 : i32
    %c0_i32_1 = arith.constant 0 : i32
    return %arg1, %c0_i32, %c0_i32_0 : i32, i32, i32
  }
  func.func @transform_8(%arg0: i32, %arg1: i32) -> (i32, i32, i32) {
    %c0_i32 = arith.constant 0 : i32
    %c0_i32_0 = arith.constant 0 : i32
    %c0_i32_1 = arith.constant 0 : i32
    return %arg1, %c0_i32, %c0_i32_0 : i32, i32, i32
  }
  func.func @transform_9(%arg0: i32, %arg1: i32) -> (i32, i32, i32) {
    %c0_i32 = arith.constant 0 : i32
    %c0_i32_0 = arith.constant 0 : i32
    %c0_i32_1 = arith.constant 0 : i32
    return %arg1, %c0_i32, %c0_i32_0 : i32, i32, i32
  }
  func.func @transform_10(%arg0: i32, %arg1: i32) -> (i32, i32, i32) {
    %c0_i32 = arith.constant 0 : i32
    %c0_i32_0 = arith.constant 0 : i32
    %c0_i32_1 = arith.constant 0 : i32
    return %arg1, %c0_i32, %c0_i32_0 : i32, i32, i32
  }
  func.func @transform_11(%arg0: i32, %arg1: i32) -> (i32, i32, i32) {
    %c0_i32 = arith.constant 0 : i32
    %c0_i32_0 = arith.constant 0 : i32
    %c0_i32_1 = arith.constant 0 : i32
    return %arg0, %c0_i32, %c0_i32_0 : i32, i32, i32
  }
}

</mosaic_0001>

<bundles_post_ra>
// kernel: tpu_custom_call.1
= control target key start
LH: loop header
LB: loop body
LE: loop exit
PB: predicated region body
PF: predicated region fallthrough
CT: control target
= control target key end

     0   :  { %s13369_s0 = inlined_call_operand.hbm [shape: f32[2,256,256], index: 0, kind: input, shape index: {}]   ;;  %s13370_s1 = inlined_call_operand.hbm [shape: bf16[256,256], index: 1, kind: input, shape index: {}]   ;;  %s13371_s2 = inlined_call_operand.hbm [shape: f32[1,256], index: 2, kind: input, shape index: {}]   ;;  %s13372_s3 = inlined_call_operand.hbm [shape: bf16[2,256,256], index: 3, kind: input, shape index: {}]   ;;  %s13373_s4 = inlined_call_operand.hbm [shape: f32[2,1,256], index: 4, kind: input, shape index: {}]   ;;  %s13374_s5 = inlined_call_operand.hbm [shape: bf16[2,256,256], index: 5, kind: input, shape index: {}]   ;;  %s13375_s6 = inlined_call_operand.hbm [shape: bf16[2,256,256], index: 6, kind: input, shape index: {}]   ;;  %s13376_s7 = inlined_call_operand.vmem [shape: f32[2,1,256], index: 7, kind: input, shape index: {}]   ;;  %s13377_s8 = inlined_call_operand.hbm [shape: bf16[2,256,256], index: 8, kind: input, shape index: {}]   ;;  %s13378_s9 = inlined_call_operand.vmem [shape: f32[2,1,256], index: 9, kind: input, shape index: {}]   ;;  %s13379_s10 = inlined_call_operand.hbm [shape: bf16[2,256,256], index: 10, kind: input, shape index: {}]   ;;  %s13380_s11 = inlined_call_operand.hbm [shape: f32[2,256,256], index: 11, kind: output, shape index: {}]  }
   0x1   :  { %13521 = sst [smem:[#allocation82_spill]] %s13369_s0 }
   0x2   :  { %13522 = sst [smem:[#allocation83_spill]] %s13370_s1 }
   0x3   :  { %13523 = sst [smem:[#allocation84_spill]] %s13371_s2 }
   0x4   :  { %13524 = sst [smem:[#allocation85_spill]] %s13372_s3 }
   0x5   :  { %13525 = sst [smem:[#allocation86_spill]] %s13374_s5 }
   0x6   :  { %13526 = sst [smem:[#allocation87_spill]] %s13376_s7 }
   0x7   :  { %13527 = sst [smem:[#allocation88_spill]] %s13377_s8 }
   0x8   :  { %13528 = sst [smem:[#allocation89_spill]] %s13378_s9 }
   0x9   :  { %13529 = sst [smem:[#allocation90_spill]] %s13379_s10 }
   0xa   :  { %13530 = sst [smem:[#allocation91_spill]] %s13380_s11 }
   0xb   :  { %16 = vsyncpa [#allocation4], 0 }
   0xc   :  { %18 = vsyncpa [#allocation4 + $0x1], 0 }
   0xd   :  { %19 = vsyncpa [#allocation7], 0 }
   0xe   :  { %20 = vsyncpa [#allocation10], 0 }
   0xf   :  { %22 = vsyncpa [#allocation10 + $0x1], 0 }
  0x10   :  { %23 = vsyncpa [#allocation13], 0 }
  0x11   :  { %25 = vsyncpa [#allocation13 + $0x1], 0 }
  0x12   :  { %26 = vsyncpa [#allocation16], 0 }
  0x13   :  { %28 = vsyncpa [#allocation16 + $0x1], 0 }
  0x14   :  { %29 = vsyncpa [#allocation5], 0 }
  0x15   :  { %31 = vsyncpa [#allocation5 + $0x1], 0  ;;  %s9366_s17 = smov 0   ;;  %s9368_s18 = smov 0  }
  0x16   :  { %s9370_s19 = smov 0   ;;  %s9372_s20 = smov 0  }
  0x17   :  { %s9374_s21 = smov 0   ;;  %s9376_s22 = smov 0  }
  0x18   :  { %s9378_s23 = smov 0   ;;  %s9380_s24 = smov 0  }
  0x19   :  { %s9382_s25 = smov 0   ;;  %s9384_s26 = smov 0  }
  0x1a   :  { %s9386_s27 = smov 0  }
  0x1b LB: > { %13531 = sst [smem:[#allocation25_spill]] %s9260_s18  ;;  %s9420_s28 = sadd.s32 4294967295, %s9296_s27   ;;  %s9296_s27 = sphi %s9386_s27, %s37_s27   ;;  %s9292_s26 = sphi %s9384_s26, %s13892_s26   ;;  %s9288_s25 = sphi %s9382_s25, %s13899_s25   ;;  %s9284_s24 = sphi %s9380_s24, %s13890_s24   ;;  %s9280_s23 = sphi %s9378_s23, %s13898_s23   ;;  %s9276_s22 = sphi %s9376_s22, %s13897_s22   ;;  %s9272_s21 = sphi %s9374_s21, %s13896_s21   ;;  %s9268_s20 = sphi %s9372_s20, %s13895_s20   ;;  %s9264_s19 = sphi %s9370_s19, %s13894_s19   ;;  %s9260_s18 = sphi %s9368_s18, %s13893_s18   ;;  %s9256_s17 = sphi %s9366_s17, %s13887_s17  }
  0x1c   : > { %13532 = sst [smem:[#allocation26_spill]] %s9280_s23  ;;  %p137_p0 = scmp.ne.s32.totalorder %s9260_s18, %s9256_s17 }
  0x1d   : > { %13533 = sst [smem:[#allocation27_spill]] %s9284_s24  ;;  %p13396_p1 = scmp.eq.s32.totalorder %s9420_s28, 0 }
  0x1e   : > { %13534 = sst [smem:[#allocation28_spill]] %s9292_s26  ;;  %p343_p2 = scmp.eq.s32.totalorder %s9420_s28, 3 }
  0x1f   : > { %13535 = sst [smem:[#allocation29_spill]] %s9420_s28  ;;  %p7270_p3 = scmp.ge.s32.totalorder %s9296_s27, 1 }
  0x20   : > { %p356_p4 = scmp.lt.s32.totalorder %s9296_s27, 5  ;;  %p9429_p5 = por %p137_p0, %p13396_p1 }
  0x21   : > { %s13540_s1 = sld [smem:[#allocation83_spill]]  ;;  %s9298_s15 = smov [#allocation6]  }
  0x22   : > { %s13536_s29 = scalar_select %p9429_p5, 1, 0 }
  0x23   : > { %p9433_p6 = pnand %p7270_p3, %p356_p4  ;;  %s369_s16 = sshll.u32 %s9298_s15, 4  ;;  %s370_s16 = int_to_ptr.vmem [resolvable:$true] %s369_s16 }
  0x24   : > { %13537 = sst [smem:[#allocation30_spill]] %s13536_s29  ;;  %s13382_s11 = smov 128  }
  0x25   : > { %s13538_s30 = scalar_select %p9433_p6, 1, 0 }
  0x26   : > { %p8305_p7 = pneg %p9433_p6  ;;  %s13384_s12 = smov 8  }
  0x27   : > { %13539 = sst [smem:[#allocation31_spill]] %s13538_s30  ;;  %s367_s14 = sshll.u32 %s13540_s1, 4  ;;  %s368_s14 = int_to_ptr.hbm [resolvable:$true] %s367_s14 }
  0x28   : > { %p9444_p8 = pnand %p8305_p7, %p13396_p1  ;;  %p64_p9 = scmp.eq.s32.totalorder %s9296_s27, 0 }
  0x29   : > { %p131_p10 = scmp.ne.s32.totalorder %s9264_s19, %s9260_s18  ;;  %p13393_p11 = scmp.lt.s32.totalorder %s9296_s27, 4 }
  0x2a   : > { %8308 = dma.hbm_to_vmem [thread:$0]  (!%p9444_p8), %s368_s14, 4096, %s370_s16, [#allocation7], %s13382_s11, %s13382_s11, %s13384_s12  }
  0x2b   : > { %s9459_s15 = sand.u32 1, %s9296_s27   ;;  %s13386_s1 = sand.u32 1, %s9264_s19  }
  0x2c   : > { %p133_p12 = por %p131_p10, %p64_p9  ;;  %s9466_s24 = sshll.u32 %s13386_s1, 8 }
  0x2d   : > { %s9469_s9 = sshll.u32 %s9288_s25, 8  ;;  %s13542_s3 = sld [smem:[#allocation85_spill]] }
  0x2e   : > { %s421_s12 = scalar_lea.vmem [#allocation9], %s9466_s24  ;;  %p9478_p13 = pnand %p13393_p11, %p133_p12 }
  0x2f   : > { %s429_s7 = sshll.u32 %s421_s12, 4  ;;  %s13544_s5 = sld [smem:[#allocation86_spill]]  ;;  %s430_s7 = int_to_ptr.vmem [resolvable:$true] %s429_s7 }
  0x30   : > { %s13545_s12 = smov 8   ;;  %s462_s18 = scalar_lea.vmem [#allocation12], %s9466_s24 }
  0x31   : > { %s470_s30 = sshll.u32 %s462_s18, 4  ;;  %s13395_s23 = scalar_lea.sflag [#allocation13], %s9459_s15  ;;  %s471_s30 = int_to_ptr.vmem [resolvable:$true] %s470_s30 }
  0x32   : > { %s13547_s8 = sld [smem:[#allocation88_spill]]  ;;  %s9301_s29 = smov [#allocation8]  }
  0x33   : > { %s426_s13 = scalar_lea.hbm %s13542_s3, %s9469_s9  ;;  %s13546_s3 = smov 128  }
  0x34   : > { %s427_s11 = sshll.u32 %s426_s13, 4  ;;  %s13392_s13 = scalar_lea.sflag [#allocation10], %s9459_s15  ;;  %s428_s11 = int_to_ptr.hbm [resolvable:$true] %s427_s11 }
  0x35   : > { %s467_s14 = scalar_lea.hbm %s13544_s5, %s9469_s9  ;;  %s13548_s2 = sld [smem:[#allocation84_spill]] }
  0x36   : > { %s468_s16 = sshll.u32 %s467_s14, 4  ;;  %s384_s14 = sshll.u32 %s9301_s29, 4  ;;  %s469_s16 = int_to_ptr.hbm [resolvable:$true] %s468_s16  ;;  %s385_s14 = int_to_ptr.vmem [resolvable:$true] %s384_s14 }
  0x37   : > { %8318 = dma.hbm_to_vmem [thread:$0]  (!%p9478_p13), %s428_s11, 4096, %s430_s7, %s13392_s13, %s13546_s3, %s13546_s3, %s13545_s12  }
  0x38   : > { %8324 = dma.hbm_to_vmem [thread:$0]  (!%p9478_p13), %s469_s16, 4096, %s471_s30, %s13395_s23, %s13546_s3, %s13546_s3, %s13545_s12  }
  0x39   : > { %s518_s5 = scalar_lea.hbm %s13547_s8, %s9469_s9  ;;  %s513_s11 = scalar_lea.vmem [#allocation15], %s9466_s24 }
  0x3a   : > { %s519_s7 = sshll.u32 %s518_s5, 4  ;;  %s521_s18 = sshll.u32 %s513_s11, 4  ;;  %s520_s7 = int_to_ptr.hbm [resolvable:$true] %s519_s7  ;;  %s522_s18 = int_to_ptr.vmem [resolvable:$true] %s521_s18 }
  0x3b   : > { %s13394_s13 = scalar_lea.sflag [#allocation16], %s9459_s15  ;;  %s382_s5 = sshll.u32 %s13548_s2, 4  ;;  %s383_s5 = int_to_ptr.hbm [resolvable:$true] %s382_s5 }
  0x3c   : > { %8330 = dma.hbm_to_vmem [thread:$0]  (!%p9478_p13), %s520_s7, 4096, %s522_s18, %s13394_s13, %s13546_s3, %s13546_s3, %s13545_s12  }
  0x3d   : > { %8311 = dma.hbm_to_vmem [thread:$0]  (!%p9444_p8), %s383_s5, 32, %s385_s14, [#allocation7]  }
  0x3e   : > { %s7269_s11 = sadd.s32 4294967294, %s9296_s27   ;;  %s46_s7 = sadd.s32 1, %s9288_s25 }
  0x3f   : > { %s49_s18 = sadd.s32 1, %s9292_s26  ;;  %p47_p0 = scmp.ge.s32.totalorder %s46_s7, 2 }
  0x40   : > { %s56_s30 = sadd.s32 1, %s9276_s22  ;;  %p63_p3 = scmp.ne.s32.totalorder %s9276_s22, %s9272_s21 }
  0x41   : > { %p69_p4 = scmp.ne.s32.totalorder %s9272_s21, %s9268_s20  ;;  %s13901_s7 = smov (%p47_p0, %s46_s7), 0 }
  0x42   : > { %13549 = sst [smem:[#allocation32_spill]] %s13901_s7  ;;  %s13903_s18 = smov (!%p47_p0, %s49_s18), %s9292_s26 }
  0x43   : > { %p9534_p7 = por %p64_p9, %p63_p3  ;;  %p9543_p8 = por %p13396_p1, %p69_p4 }
  0x44   : > { %p51_p10 = scmp.ge.s32.totalorder %s13903_s18, 2  ;;  %s121_s5 = ssub.s32 %s9288_s25, %s13901_s7 }
  0x45   : > { %s13551_s16 = scalar_select %p9543_p8, 1, 0 }
  0x46   : > { %p122_p12 = scmp.eq.s32.totalorder %s121_s5, 0  ;;  %p9551_p11 = por %p343_p2, %p63_p3 }
  0x47   : > { %13552 = sst [smem:[#allocation33_spill]] %s13551_s16  ;;  %s13905_s18 = smov (%p51_p10, %s13903_s18), 0 }
  0x48   : > { %s13553_s29 = scalar_select %p9551_p11, 1, 0 }
  0x49   : > { %13555 = sst [smem:[#allocation35_spill]] %s13905_s18  ;;  %s13556_s14 = sadd.s32 1, %s9264_s19 }
  0x4a   : > { %13554 = sst [smem:[#allocation34_spill]] %s13553_s29  ;;  %s53_s23 = ssub.s32 %s9292_s26, %s13905_s18 }
  0x4b   : > { %s9560_s13 = scalar_select %p122_p12, %s9264_s19, %s13556_s14  }
  0x4c   : > { %p349_p9 = scmp.eq.s32.totalorder %s7269_s11, 3  ;;  %p54_p0 = scmp.eq.s32.totalorder %s53_s23, 0 }
  0x4d   : > { %13557 = sst [smem:[#allocation36_spill]] %s9560_s13  ;;  %s395_s2 = sand.u32 1, %s9276_s22  }
  0x4e   : > { %p9568_p1 = por %p349_p9, %p69_p4  ;;  %s7274_s7 = sshll.u32 %s395_s2, 9 }
  0x4f   : > { %s9573_s8 = scalar_select %p54_p0, %s9276_s22, %s56_s30  }
  0x50   : > { %s8082_s29 = sshll.u32 %s9292_s26, 9  ;;  %s13560_s0 = sld [smem:[#allocation82_spill]] }
  0x51   : > { %13559 = sst [smem:[#allocation37_spill]] %s9573_s8  ;;  %s399_s10 = scalar_lea.vmem [#allocation3], %s7274_s7 }
  0x52   : > { %s407_s18 = sshll.u32 %s399_s10, 4  ;;  %p13561_p2 = scmp.lt.s32.totalorder %s9296_s27, 4  ;;  %s408_s18 = int_to_ptr.vmem [resolvable:$true] %s407_s18 }
  0x53   : > { %s13562_s23 = sand.u32 1, %s9264_s19   ;;  %s396_s30 = scalar_lea.sflag [#allocation4], %s395_s2 }
  0x54   : > { %p8313_p3 = pnand %p13561_p2, %p9534_p7  ;;  %s7280_s11 = sshll.u32 %s13562_s23, 1 }
  0x55   : > { %s9302_s26 = smov 256   ;;  %s9303_s8 = smov 16  }
  0x56   : > { %s404_s14 = scalar_lea.hbm %s13560_s0, %s8082_s29  ;;  %s7281_s28 = sshll.u32 %s9288_s25, 1 }
  0x57   : > { %s405_s13 = sshll.u32 %s404_s14, 4  ;;  %s443_s10 = scalar_lea.vmem [#allocation11], %s7280_s11  ;;  %s406_s13 = int_to_ptr.hbm [resolvable:$true] %s405_s13 }
  0x58   : > { %8315 = dma.hbm_to_vmem [thread:$0]  (!%p8313_p3), %s406_s13, 8192, %s408_s18, %s396_s30, %s9302_s26, %s9302_s26, %s9303_s8  }
  0x59   : > { %s451_s7 = sshll.u32 %s443_s10, 4  ;;  %s447_s17 = scalar_lea.hbm %s13373_s4, %s7281_s28  ;;  %s452_s7 = int_to_ptr.vmem [resolvable:$true] %s451_s7 }
  0x5a   : > { %s449_s14 = sshll.u32 %s447_s17, 4  ;;  %s489_s0 = scalar_lea.hbm %s13375_s6, %s9469_s9  ;;  %s450_s14 = int_to_ptr.hbm [resolvable:$true] %s449_s14 }
  0x5b   : > { %s13563_s8 = scalar_lea.sflag [#allocation10], %s9459_s15  ;;  %s490_s26 = sshll.u32 %s489_s0, 4  ;;  %s491_s26 = int_to_ptr.hbm [resolvable:$true] %s490_s26 }
  0x5c   : > { %8321 = dma.hbm_to_vmem [thread:$0]  (!%p9478_p13), %s450_s14, 32, %s452_s7, %s13563_s8  }
  0x5d   : > { %s484_s13 = scalar_lea.vmem [#allocation14], %s9466_s24  ;;  %s13564_s11 = scalar_lea.sflag [#allocation13], %s9459_s15 }
  0x5e   : > { %s492_s18 = sshll.u32 %s484_s13, 4  ;;  %s13565_s10 = sld [smem:[#allocation90_spill]]  ;;  %s493_s18 = int_to_ptr.vmem [resolvable:$true] %s492_s18 }
  0x5f   : > { %8327 = dma.hbm_to_vmem [thread:$0]  (!%p9478_p13), %s491_s26, 4096, %s493_s18, %s13564_s11, %s13546_s3, %s13546_s3, %s13545_s12  }
  0x60   : > { %s542_s17 = scalar_lea.vmem [#allocation17], %s9466_s24  ;;  %s13566_s0 = scalar_lea.sflag [#allocation16], %s9459_s15 }
  0x61   : > { %s550_s2 = sshll.u32 %s542_s17, 4  ;;  %s551_s2 = int_to_ptr.vmem [resolvable:$true] %s550_s2 }
  0x62   : > { %562 = sbr.rel (%p9433_p6) target bundleno = 3400 (0xd48), region = 64 }
  0x64   : > { %s547_s16 = scalar_lea.hbm %s13565_s10, %s9469_s9 }
  0x65   : > { %s548_s29 = sshll.u32 %s547_s16, 4  ;;  %s549_s29 = int_to_ptr.hbm [resolvable:$true] %s548_s29 }
  0x66   : > { %8333 = dma.hbm_to_vmem [thread:$0]  (!%p9478_p13), %s549_s29, 4096, %s551_s2, %s13566_s0, %s13546_s3, %s13546_s3, %s13545_s12  }
  0x67   : > { %s9620_s23 = sand.u32 1, %s9272_s21  }
  0x68   : > { %s13406_s9 = sshll.u32 %s9620_s23, 9  ;;  %s565_s24 = scalar_lea.sflag [#allocation4], %s9620_s23 }
  0x69   : > { %s9626_s8 = scalar_lea.vmem [#allocation3], %s13406_s9 }
  0x6a   : > { %9231 = dma.done.wait (%p9543_p8), %s565_s24, 8192  }
  0x6b   : > { %9233 = vsyncadd (%p9543_p8), %s565_s24, 4294959104  ;;  %s13569_s1 = sld [smem:[#allocation29_spill]] }
  0x71   : > { %p13570_p13 = scmp.eq.s32.totalorder %s13569_s1, 0 }
  0x73   : > { %9235 = dma.done.wait (%p13570_p13), [#allocation7], 4128   ;;  %p13571_p6 = pmov %p13570_p13 }
  0x74   : > { %s13572_s3 = sld [smem:[#allocation25_spill]]  ;;  %s584_s12 = sand.u32 1, %s13569_s1  }
  0x75   : > { %9237 = vsyncadd (%p13571_p6), [#allocation7], 4294963168  ;;  %s585_s18 = scalar_lea.sflag [#allocation10], %s584_s12 }
  0x7a   : > { %s586_s26 = sand.u32 1, %s13572_s3  }
  0x7b   : > { %s7298_s13 = sshll.u32 %s586_s26, 8 }
  0x7c   : > { %s9638_s11 = scalar_lea.vmem [#allocation9], %s7298_s13 }
  0x7d   : > { %9239 = dma.done.wait (%p9429_p5), %s585_s18, 4128  }
  0x7e   : > { %9241 = vsyncadd (%p9429_p5), %s585_s18, 4294963168  ;;  %s9644_s30 = sshll.u32 %s586_s26, 1  ;;  %s605_s10 = scalar_lea.sflag [#allocation13], %s584_s12 }
  0x7f   : > { %s9647_s16 = scalar_lea.vmem [#allocation12], %s7298_s13 }
  0x80   : > { %9243 = dma.done.wait (%p9429_p5), %s605_s10, 8192  }
  0x81   : > { %9245 = vsyncadd (%p9429_p5), %s605_s10, 4294959104  ;;  %s9653_s29 = scalar_lea.vmem [#allocation14], %s7298_s13  ;;  %s625_s17 = scalar_lea.sflag [#allocation16], %s584_s12 }
  0x82   : > { %s9655_s2 = scalar_lea.vmem [#allocation15], %s7298_s13 }
  0x83   : > { %9247 = dma.done.wait (%p9429_p5), %s625_s17, 8192  }
  0x84   : > { %9249 = vsyncadd (%p9429_p5), %s625_s17, 4294959104  ;;  %s13574_s0 = sld [smem:[#allocation26_spill]]  ;;  %s9673_s9 = scalar_lea.vmem [#allocation17], %s7298_s13 }
  0x85   : > { %s13575_s3 = sld [smem:[#allocation87_spill]]  ;;  %s13577_s15 = sshll.u32 %s9620_s23, 9 }
  0x86   : > { %s13576_s10 = sld [smem:[#allocation89_spill]]  ;;  %s9677_s17 = scalar_lea.vmem [#allocation18], %s13577_s15 }
  0x8a   : > { %p716_p4 = scmp.lt.s32.totalorder %s13574_s0, 1  ;;  %p7307_p5 = scmp.ne.s32.totalorder %s13574_s0, 0 }
  0x8c   : > { %s717_s7 = scalar_select %p716_p4, %s13574_s0, 1 }
  0x8d   : > { %727 = sbr.rel (%p7307_p5) target bundleno = 568 (0x238), region = 104 }
  0x8e   : > { %s7305_s14 = sshll.u32 %s717_s7, 1 }
  0x8f   : > { %s9666_s26 = scalar_lea.vmem %s13575_s3, %s7305_s14  ;;  %s9671_s28 = scalar_lea.vmem %s13576_s10, %s7305_s14 }
  0x92   : > { %v7366_v0 = vld [vmem:[#allocation6 + $0x70] sm:$0xf]  ;;  %v8103_v1 = vld [vmem:[#allocation6 + $0x74] sm:$0xf0]  ;;  %v8102_v5 = vld [vmem:[#allocation6 + $0x74] sm:$0xf] }
  0x93   : > { %v7430_v2 = vld [vmem:[#allocation6 + $0xf0] sm:$0xf]  ;;  %v7367_v3 = vor.u32 %v8103_v1, %v7366_v0  ;;  %v8119_v4 = vld [vmem:[#allocation6 + $0xf4] sm:$0xf0]  ;;  %v7368_v6 = vld [vmem:[#allocation6 + $0x78] sm:$0xf0] }
  0x94   : > { %v7431_v7 = vor.u32 %v8119_v4, %v7430_v2  ;;  %v7371_v8 = vor.u32 %v8102_v5, %v7368_v6  ;;  %v8118_v9 = vld [vmem:[#allocation6 + $0xf4] sm:$0xf]  ;;  %v7432_v10 = vld [vmem:[#allocation6 + $0xf8] sm:$0xf0]  ;;  %v7358_v11 = vld [vmem:[#allocation6 + $0x60] sm:$0xf] }
  0x95   : > { %1022 = vmatpush.bf16.msra.mxu0 %v7367_v3  ;;  %v7435_v12 = vor.u32 %v8118_v9, %v7432_v10  ;;  %v8101_v13 = vld [vmem:[#allocation6 + $0x64] sm:$0xf0]  ;;  %v7422_v14 = vld [vmem:[#allocation6 + $0xe0] sm:$0xf]  ;;  %v8100_v18 = vld [vmem:[#allocation6 + $0x64] sm:$0xf] }
  0x96   : > { %v8117_v15 = vld [vmem:[#allocation6 + $0xe4] sm:$0xf0]  ;;  %1111 = vmatpush.bf16.msra.mxu1 %v7431_v7  ;;  %1200 = vmatpush.bf16.msra.mxu2 %v7371_v8  ;;  %v7359_v16 = vor.u32 %v8101_v13, %v7358_v11  ;;  %v7360_v19 = vld [vmem:[#allocation6 + $0x68] sm:$0xf0]  ;;  %v8116_v20 = vld [vmem:[#allocation6 + $0xe4] sm:$0xf] }
  0x97   : > { %v7423_v17 = vor.u32 %v8117_v15, %v7422_v14  ;;  %1289 = vmatpush.bf16.msra.mxu3 %v7435_v12  ;;  %v7363_v21 = vor.u32 %v8100_v18, %v7360_v19  ;;  %v7424_v22 = vld [vmem:[#allocation6 + $0xe8] sm:$0xf0]  ;;  %v7350_v23 = vld [vmem:[#allocation6 + $0x50] sm:$0xf]  ;;  %v8099_v24 = vld [vmem:[#allocation6 + $0x54] sm:$0xf0] }
  0x98   : > { %v7427_v25 = vor.u32 %v8116_v20, %v7424_v22  ;;  %v7414_v26 = vld [vmem:[#allocation6 + $0xd0] sm:$0xf]  ;;  %v8115_v27 = vld [vmem:[#allocation6 + $0xd4] sm:$0xf0]  ;;  %v8098_v28 = vld [vmem:[#allocation6 + $0x54] sm:$0xf]  ;;  %v7351_v29 = vor.u32 %v8099_v24, %v7350_v23 }
  0x99   : > { %1023 = vmatpush.bf16.msra.mxu0 %v7359_v16  ;;  %v7352_v30 = vld [vmem:[#allocation6 + $0x58] sm:$0xf0]  ;;  %v8114_v31 = vld [vmem:[#allocation6 + $0xd4] sm:$0xf]  ;;  %v7415_v33 = vor.u32 %v8115_v27, %v7414_v26  ;;  %v7342_v35 = vld [vmem:[#allocation6 + $0x40] sm:$0xf] }
  0x9a   : > { %v7416_v32 = vld [vmem:[#allocation6 + $0xd8] sm:$0xf0]  ;;  %1112 = vmatpush.bf16.msra.mxu1 %v7423_v17  ;;  %1201 = vmatpush.bf16.msra.mxu2 %v7363_v21  ;;  %v7355_v34 = vor.u32 %v8098_v28, %v7352_v30  ;;  %v8097_v36 = vld [vmem:[#allocation6 + $0x44] sm:$0xf0]  ;;  %v7406_v37 = vld [vmem:[#allocation6 + $0xc0] sm:$0xf] }
  0x9b   : > { %1290 = vmatpush.bf16.msra.mxu3 %v7427_v25  ;;  %v7419_v38 = vor.u32 %v8114_v31, %v7416_v32  ;;  %v8113_v39 = vld [vmem:[#allocation6 + $0xc4] sm:$0xf0]  ;;  %v8096_v40 = vld [vmem:[#allocation6 + $0x44] sm:$0xf]  ;;  %v7344_v41 = vld [vmem:[#allocation6 + $0x48] sm:$0xf0]  ;;  %v7343_v44 = vor.u32 %v8097_v36, %v7342_v35 }
  0x9c   : > { %v8112_v42 = vld [vmem:[#allocation6 + $0xc4] sm:$0xf]  ;;  %v7408_v43 = vld [vmem:[#allocation6 + $0xc8] sm:$0xf0]  ;;  %v7407_v45 = vor.u32 %v8113_v39, %v7406_v37  ;;  %v7347_v46 = vor.u32 %v8096_v40, %v7344_v41  ;;  %v7334_v47 = vld [vmem:[#allocation6 + $0x30] sm:$0xf] }
  0x9d   : > { %1024 = vmatpush.bf16.msra.mxu0 %v7351_v29  ;;  %v8095_v48 = vld [vmem:[#allocation6 + $0x34] sm:$0xf0]  ;;  %v7398_v49 = vld [vmem:[#allocation6 + $0xb0] sm:$0xf]  ;;  %v7411_v50 = vor.u32 %v8112_v42, %v7408_v43  ;;  %v8094_v52 = vld [vmem:[#allocation6 + $0x34] sm:$0xf] }
  0x9e   : > { %1113 = vmatpush.bf16.msra.mxu1 %v7415_v33  ;;  %1202 = vmatpush.bf16.msra.mxu2 %v7355_v34  ;;  %v8111_v51 = vld [vmem:[#allocation6 + $0xb4] sm:$0xf0]  ;;  %v7336_v53 = vld [vmem:[#allocation6 + $0x38] sm:$0xf0]  ;;  %v8110_v54 = vld [vmem:[#allocation6 + $0xb4] sm:$0xf]  ;;  %v7335_v56 = vor.u32 %v8095_v48, %v7334_v47 }
  0x9f   : > { %1291 = vmatpush.bf16.msra.mxu3 %v7419_v38  ;;  %v7400_v55 = vld [vmem:[#allocation6 + $0xb8] sm:$0xf0]  ;;  %v7399_v57 = vor.u32 %v8111_v51, %v7398_v49  ;;  %v7339_v58 = vor.u32 %v8094_v52, %v7336_v53  ;;  %v7326_v59 = vld [vmem:[#allocation6 + $0x20] sm:$0xf]  ;;  %v8093_v60 = vld [vmem:[#allocation6 + $0x24] sm:$0xf0] }
  0xa0   : > { %v7390_v61 = vld [vmem:[#allocation6 + $0xa0] sm:$0xf]  ;;  %v7403_v62 = vor.u32 %v8110_v54, %v7400_v55  ;;  %v8109_v63 = vld [vmem:[#allocation6 + $0xa4] sm:$0xf0]  ;;  %v8092_v0 = vld [vmem:[#allocation6 + $0x24] sm:$0xf]  ;;  %v7327_v4 = vor.u32 %v8093_v60, %v7326_v59 }
  0xa1   : > { %1025 = vmatpush.bf16.msra.mxu0 %v7343_v44  ;;  %v7328_v1 = vld [vmem:[#allocation6 + $0x28] sm:$0xf0]  ;;  %v8108_v2 = vld [vmem:[#allocation6 + $0xa4] sm:$0xf]  ;;  %v7391_v5 = vor.u32 %v8109_v63, %v7390_v61  ;;  %v7318_v7 = vld [vmem:[#allocation6 + $0x10] sm:$0xf] }
  0xa2   : > { %1114 = vmatpush.bf16.msra.mxu1 %v7407_v45  ;;  %1203 = vmatpush.bf16.msra.mxu2 %v7347_v46  ;;  %v7392_v3 = vld [vmem:[#allocation6 + $0xa8] sm:$0xf0]  ;;  %v7331_v6 = vor.u32 %v8092_v0, %v7328_v1  ;;  %v8091_v8 = vld [vmem:[#allocation6 + $0x14] sm:$0xf0]  ;;  %v7382_v9 = vld [vmem:[#allocation6 + $0x90] sm:$0xf] }
  0xa3   : > { %1292 = vmatpush.bf16.msra.mxu3 %v7411_v50  ;;  %v7395_v10 = vor.u32 %v8108_v2, %v7392_v3  ;;  %v8107_v11 = vld [vmem:[#allocation6 + $0x94] sm:$0xf0]  ;;  %v8090_v12 = vld [vmem:[#allocation6 + $0x14] sm:$0xf]  ;;  %v7320_v13 = vld [vmem:[#allocation6 + $0x18] sm:$0xf0]  ;;  %v7319_v16 = vor.u32 %v8091_v8, %v7318_v7 }
  0xa4   : > { %v8106_v14 = vld [vmem:[#allocation6 + $0x94] sm:$0xf]  ;;  %v7384_v15 = vld [vmem:[#allocation6 + $0x98] sm:$0xf0]  ;;  %v7383_v17 = vor.u32 %v8107_v11, %v7382_v9  ;;  %v7323_v18 = vor.u32 %v8090_v12, %v7320_v13  ;;  %v7310_v19 = vld [vmem:[#allocation6] sm:$0xf] }
  0xa5   : > { %1026 = vmatpush.bf16.msra.mxu0 %v7335_v56  ;;  %v8089_v20 = vld [vmem:[#allocation6 + $0x4] sm:$0xf0]  ;;  %v7374_v21 = vld [vmem:[#allocation6 + $0x80] sm:$0xf]  ;;  %v7387_v22 = vor.u32 %v8106_v14, %v7384_v15  ;;  %v8088_v24 = vld [vmem:[#allocation6 + $0x4] sm:$0xf] }
  0xa6   : > { %1115 = vmatpush.bf16.msra.mxu1 %v7399_v57  ;;  %1204 = vmatpush.bf16.msra.mxu2 %v7339_v58  ;;  %v8105_v23 = vld [vmem:[#allocation6 + $0x84] sm:$0xf0]  ;;  %v7312_v25 = vld [vmem:[#allocation6 + $0x8] sm:$0xf0]  ;;  %v8104_v26 = vld [vmem:[#allocation6 + $0x84] sm:$0xf]  ;;  %v7311_v28 = vor.u32 %v8089_v20, %v7310_v19 }
  0xa7   : > { %1293 = vmatpush.bf16.msra.mxu3 %v7403_v62  ;;  %v7376_v27 = vld [vmem:[#allocation6 + $0x88] sm:$0xf0]  ;;  %v9681_v29 = vld [vmem:[%s9626_s8] sm:$0xff]  ;;  %v9684_v30 = vld [vmem:[%s9626_s8 + $0x10] sm:$0xff]  ;;  %v7375_v31 = vor.u32 %v8105_v23, %v7374_v21  ;;  %v7315_v32 = vor.u32 %v8088_v24, %v7312_v25 }
  0xa8   : > { %v9687_v33 = vld [vmem:[%s9626_s8 + $0x8] sm:$0xff]  ;;  %v9690_v34 = vld [vmem:[%s9626_s8 + $0x18] sm:$0xff]  ;;  %v7379_v35 = vor.u32 %v8104_v26, %v7376_v27  ;;  %v792_v36 = vpack.c.bf16 %v9684_v30, %v9681_v29  ;;  %v9697_v38 = vld [vmem:[%s9626_s8 + $0x20] sm:$0xff] }
  0xa9   : > { %1027 = vmatpush.bf16.msra.mxu0 %v7327_v4  ;;  %v793_v37 = vpack.c.bf16 %v9690_v34, %v9687_v33  ;;  %v9700_v39 = vld [vmem:[%s9626_s8 + $0x30] sm:$0xff]  ;;  %v9703_v40 = vld [vmem:[%s9626_s8 + $0x28] sm:$0xff]  ;;  %v9706_v41 = vld [vmem:[%s9626_s8 + $0x38] sm:$0xff] }
  0xaa   : > { %1116 = vmatpush.bf16.msra.mxu1 %v7391_v5  ;;  %1205 = vmatpush.bf16.msra.mxu2 %v7331_v6  ;;  %v794_v42 = vpack.c.bf16 %v9700_v39, %v9697_v38  ;;  %v795_v43 = vpack.c.bf16 %v9706_v41, %v9703_v40  ;;  %v9713_v44 = vld [vmem:[%s9626_s8 + $0x40] sm:$0xff]  ;;  %v9716_v45 = vld [vmem:[%s9626_s8 + $0x50] sm:$0xff]  ;;  %v9719_v46 = vld [vmem:[%s9626_s8 + $0x48] sm:$0xff] }
  0xab   : > { %1294 = vmatpush.bf16.msra.mxu3 %v7395_v10  ;;  %v9722_v47 = vld [vmem:[%s9626_s8 + $0x58] sm:$0xff]  ;;  %v796_v48 = vpack.c.bf16 %v9716_v45, %v9713_v44  ;;  %v9729_v50 = vld [vmem:[%s9626_s8 + $0x60] sm:$0xff]  ;;  %v9732_v51 = vld [vmem:[%s9626_s8 + $0x70] sm:$0xff] }
  0xac   : > { %v797_v49 = vpack.c.bf16 %v9722_v47, %v9719_v46  ;;  %v9735_v52 = vld [vmem:[%s9626_s8 + $0x68] sm:$0xff]  ;;  %v9738_v53 = vld [vmem:[%s9626_s8 + $0x78] sm:$0xff]  ;;  %v798_v54 = vpack.c.bf16 %v9732_v51, %v9729_v50  ;;  %v9745_v56 = vld [vmem:[%s9626_s8 + $0x80] sm:$0xff] }
  0xad   : > { %1028 = vmatpush.bf16.msra.mxu0 %v7319_v16  ;;  %v799_v55 = vpack.c.bf16 %v9738_v53, %v9735_v52  ;;  %v9748_v57 = vld [vmem:[%s9626_s8 + $0x90] sm:$0xff]  ;;  %v9751_v58 = vld [vmem:[%s9626_s8 + $0x88] sm:$0xff]  ;;  %v9754_v59 = vld [vmem:[%s9626_s8 + $0x98] sm:$0xff] }
  0xae   : > { %1117 = vmatpush.bf16.msra.mxu1 %v7383_v17  ;;  %1206 = vmatpush.bf16.msra.mxu2 %v7323_v18  ;;  %v800_v60 = vpack.c.bf16 %v9748_v57, %v9745_v56  ;;  %v801_v61 = vpack.c.bf16 %v9754_v59, %v9751_v58  ;;  %v9761_v62 = vld [vmem:[%s9626_s8 + $0xa0] sm:$0xff]  ;;  %v9764_v63 = vld [vmem:[%s9626_s8 + $0xb0] sm:$0xff]  ;;  %v9767_v0 = vld [vmem:[%s9626_s8 + $0xa8] sm:$0xff] }
  0xaf   : > { %1295 = vmatpush.bf16.msra.mxu3 %v7387_v22  ;;  %v9770_v1 = vld [vmem:[%s9626_s8 + $0xb8] sm:$0xff]  ;;  %v802_v2 = vpack.c.bf16 %v9764_v63, %v9761_v62  ;;  %v9777_v4 = vld [vmem:[%s9626_s8 + $0xc0] sm:$0xff]  ;;  %v9780_v5 = vld [vmem:[%s9626_s8 + $0xd0] sm:$0xff] }
  0xb0   : > { %v803_v3 = vpack.c.bf16 %v9770_v1, %v9767_v0  ;;  %v9783_v6 = vld [vmem:[%s9626_s8 + $0xc8] sm:$0xff]  ;;  %v9786_v7 = vld [vmem:[%s9626_s8 + $0xd8] sm:$0xff]  ;;  %v804_v8 = vpack.c.bf16 %v9780_v5, %v9777_v4  ;;  %v9793_v10 = vld [vmem:[%s9626_s8 + $0xe0] sm:$0xff] }
  0xb1   : > { %1029 = vmatpush.bf16.msra.mxu0 %v7311_v28  ;;  %v805_v9 = vpack.c.bf16 %v9786_v7, %v9783_v6  ;;  %v9796_v11 = vld [vmem:[%s9626_s8 + $0xf0] sm:$0xff]  ;;  %v9799_v12 = vld [vmem:[%s9626_s8 + $0xe8] sm:$0xff]  ;;  %v9802_v13 = vld [vmem:[%s9626_s8 + $0xf8] sm:$0xff] }
  0xb2   : > { %1118 = vmatpush.bf16.msra.mxu1 %v7375_v31  ;;  %1207 = vmatpush.bf16.msra.mxu2 %v7315_v32  ;;  %v806_v14 = vpack.c.bf16 %v9796_v11, %v9793_v10  ;;  %v807_v15 = vpack.c.bf16 %v9802_v13, %v9799_v12  ;;  %v856_v16 = vld [vmem:[#allocation8] sm:$0x3]  ;;  %v9812_v18 = vld [vmem:[%s9626_s8 + $0x110] sm:$0xff]  ;;  %v9817_v20 = vld [vmem:[%s9626_s8 + $0x108] sm:$0xff] }
  0xb3   : > { %1296 = vmatpush.bf16.msra.mxu3 %v7379_v35  ;;  %v9809_v17 = vld [vmem:[%s9626_s8 + $0x100] sm:$0xff]  ;;  %v9814_v19 = vperm.slane %v856_v16, 0  ;;  %v9820_v21 = vld [vmem:[%s9626_s8 + $0x118] sm:$0xff]  ;;  %v9827_v28 = vperm.slane %v856_v16, 1 }
  0xb4   : > { %1030 = vmatmul.bf16.vlgmr.msra.gmra.mxu0 %v792_v36  ;;  %v808_v22 = vpack.c.bf16 %v9812_v18, %v9809_v17  ;;  %v809_v24 = vpack.c.bf16 %v9820_v21, %v9817_v20 }
  0xb5   : > { %1119 = vmatmul.bf16.vlgmr.msra.gmra.mxu1 %v793_v37  ;;  %1208 = vmatmul.bf16.vlgmr.msra.gmra.mxu2 %v792_v36 }
  0xb6   : > { %1297 = vmatmul.bf16.vlgmr.msra.gmra.mxu3 %v793_v37 }
  0xc4   : > { %1035 = vmatmul.bf16.gmra.mxu0 %v794_v42 }
  0xc5   : > { %1124 = vmatmul.bf16.gmra.mxu1 %v795_v43  ;;  %1213 = vmatmul.bf16.gmra.mxu2 %v794_v42 }
  0xc6   : > { %1302 = vmatmul.bf16.gmra.mxu3 %v795_v43 }
  0xd4   : > { %1040 = vmatmul.bf16.gmra.mxu0 %v796_v48 }
  0xd5   : > { %1129 = vmatmul.bf16.gmra.mxu1 %v797_v49  ;;  %1218 = vmatmul.bf16.gmra.mxu2 %v796_v48 }
  0xd6   : > { %1307 = vmatmul.bf16.gmra.mxu3 %v797_v49 }
  0xe4   : > { %1045 = vmatmul.bf16.gmra.mxu0 %v798_v54 }
  0xe5   : > { %1134 = vmatmul.bf16.gmra.mxu1 %v799_v55  ;;  %1223 = vmatmul.bf16.gmra.mxu2 %v798_v54 }
  0xe6   : > { %1312 = vmatmul.bf16.gmra.mxu3 %v799_v55  ;;  %v9834_v55 = vld [vmem:[%s9626_s8 + $0x120] sm:$0xff] }
  0xf4   : > { %1050 = vmatmul.bf16.gmra.mxu0 %v800_v60 }
  0xf5   : > { %1139 = vmatmul.bf16.gmra.mxu1 %v801_v61  ;;  %1228 = vmatmul.bf16.gmra.mxu2 %v800_v60  ;;  %v9837_v60 = vld [vmem:[%s9626_s8 + $0x130] sm:$0xff] }
  0xf6   : > { %1317 = vmatmul.bf16.gmra.mxu3 %v801_v61  ;;  %v9841_v61 = vld [vmem:[%s9626_s8 + $0x128] sm:$0xff] }
 0x104   : > { %1055 = vmatmul.bf16.gmra.mxu0 %v802_v2 }
 0x105   : > { %1144 = vmatmul.bf16.gmra.mxu1 %v803_v3  ;;  %1233 = vmatmul.bf16.gmra.mxu2 %v802_v2  ;;  %v9844_v2 = vld [vmem:[%s9626_s8 + $0x138] sm:$0xff] }
 0x106   : > { %1322 = vmatmul.bf16.gmra.mxu3 %v803_v3 }
 0x114   : > { %1060 = vmatmul.bf16.gmra.mxu0 %v804_v8 }
 0x115   : > { %1149 = vmatmul.bf16.gmra.mxu1 %v805_v9  ;;  %1238 = vmatmul.bf16.gmra.mxu2 %v804_v8  ;;  %v810_v8 = vpack.c.bf16 %v9837_v60, %v9834_v55 }
 0x116   : > { %1327 = vmatmul.bf16.gmra.mxu3 %v805_v9 }
 0x124   : > { %1065 = vmatmul.bf16.gmra.mxu0 %v806_v14 }
 0x125   : > { %1154 = vmatmul.bf16.gmra.mxu1 %v807_v15  ;;  %1243 = vmatmul.bf16.gmra.mxu2 %v806_v14 }
 0x126   : > { %1332 = vmatmul.bf16.gmra.mxu3 %v807_v15  ;;  %v811_v15 = vpack.c.bf16 %v9844_v2, %v9841_v61 }
 0x131   : > { %v1031_v23 = vpop.f32.mrf.mxu0 }
 0x132   : > { %v1032_v25 = vadd.f32 %v1031_v23, %v9814_v19  ;;  %v1120_v26 = vpop.f32.mrf.mxu1 }
 0x134   : > { %v1121_v27 = vadd.f32 %v1120_v26, %v1032_v25  ;;  %1070 = vmatmul.bf16.gmra.mxu0 %v808_v22 }
 0x135   : > { %1159 = vmatmul.bf16.gmra.mxu1 %v809_v24  ;;  %1248 = vmatmul.bf16.gmra.mxu2 %v808_v22 }
 0x136   : > { %v1378_v31 = vadd.f32 %v1121_v27, %v9681_v29  ;;  %1337 = vmatmul.bf16.gmra.mxu3 %v809_v24 }
 0x138   : > { %1442 = vst [vmem:[#allocation2 + $0xb0] sm:$0xff] %v1378_v31  ;;  %v1209_v32 = vpop.f32.mrf.mxu2 }
 0x139   : > { %v1210_v35 = vadd.f32 %v1209_v32, %v9827_v28  ;;  %v1298_v36 = vpop.f32.mrf.mxu3  ;;  %v1033_v37 = vpop.f32.mrf.mxu0 }
 0x13a   : > { %v1034_v42 = vadd.f32 %v1033_v37, %v9814_v19  ;;  %v1122_v43 = vpop.f32.mrf.mxu1 }
 0x13b   : > { %v1299_v48 = vadd.f32 %v1298_v36, %v1210_v35 }
 0x13c   : > { %v1123_v49 = vadd.f32 %v1122_v43, %v1034_v42  ;;  %v9858_v43 = vld [vmem:[%s9626_s8 + $0x140] sm:$0xff] }
 0x13d   : > { %v1379_v54 = vadd.f32 %v1299_v48, %v9687_v33 }
 0x13e   : > { %v1380_v29 = vadd.f32 %v1123_v49, %v9684_v30  ;;  %v9865_v49 = vld [vmem:[%s9626_s8 + $0x148] sm:$0xff] }
 0x13f   : > { %1443 = vst [vmem:[#allocation2 + $0x1b0] sm:$0xff] %v1379_v54  ;;  %v9868_v54 = vld [vmem:[%s9626_s8 + $0x158] sm:$0xff] }
 0x140   : > { %1444 = vst [vmem:[#allocation2 + $0xd8] sm:$0xff] %v1380_v29  ;;  %v1211_v3 = vpop.f32.mrf.mxu2 }
 0x141   : > { %v1212_v9 = vadd.f32 %v1211_v3, %v9827_v28  ;;  %v1300_v14 = vpop.f32.mrf.mxu3  ;;  %v1036_v33 = vpop.f32.mrf.mxu0 }
 0x142   : > { %v1037_v16 = vadd.f32 %v1036_v33, %v9814_v19  ;;  %v1125_v30 = vpop.f32.mrf.mxu1 }
 0x143   : > { %v1301_v22 = vadd.f32 %v1300_v14, %v1212_v9  ;;  %v813_v14 = vpack.c.bf16 %v9868_v54, %v9865_v49 }
 0x144   : > { %v1126_v23 = vadd.f32 %v1125_v30, %v1037_v16  ;;  %1075 = vmatmul.bf16.gmra.mxu0 %v810_v8 }
 0x145   : > { %v1381_v24 = vadd.f32 %v1301_v22, %v9690_v34  ;;  %1164 = vmatmul.bf16.gmra.mxu1 %v811_v15  ;;  %1253 = vmatmul.bf16.gmra.mxu2 %v810_v8 }
 0x146   : > { %v1382_v25 = vadd.f32 %v1126_v23, %v9697_v38  ;;  %1342 = vmatmul.bf16.gmra.mxu3 %v811_v15  ;;  %v9861_v38 = vld [vmem:[%s9626_s8 + $0x150] sm:$0xff] }
 0x147   : > { %1445 = vst [vmem:[#allocation2 + $0x18] sm:$0xff] %v1381_v24  ;;  %v812_v3 = vpack.c.bf16 %v9861_v38, %v9858_v43 }
 0x148   : > { %1446 = vst [vmem:[#allocation2 + $0x50] sm:$0xff] %v1382_v25  ;;  %v1214_v26 = vpop.f32.mrf.mxu2 }
 0x149   : > { %v1215_v27 = vadd.f32 %v1214_v26, %v9827_v28  ;;  %v1303_v31 = vpop.f32.mrf.mxu3  ;;  %v1038_v32 = vpop.f32.mrf.mxu0 }
 0x14a   : > { %v1039_v35 = vadd.f32 %v1038_v32, %v9814_v19  ;;  %v1127_v36 = vpop.f32.mrf.mxu1 }
 0x14b   : > { %v1304_v34 = vadd.f32 %v1303_v31, %v1215_v27 }
 0x14c   : > { %v1128_v37 = vadd.f32 %v1127_v36, %v1039_v35  ;;  %v9882_v36 = vld [vmem:[%s9626_s8 + $0x160] sm:$0xff] }
 0x14d   : > { %v1383_v42 = vadd.f32 %v1304_v34, %v9703_v40 }
 0x14e   : > { %v1384_v48 = vadd.f32 %v1128_v37, %v9700_v39  ;;  %v9889_v37 = vld [vmem:[%s9626_s8 + $0x168] sm:$0xff] }
 0x14f   : > { %1447 = vst [vmem:[#allocation2 + $0x168] sm:$0xff] %v1383_v42  ;;  %v9892_v42 = vld [vmem:[%s9626_s8 + $0x178] sm:$0xff] }
 0x150   : > { %1448 = vst [vmem:[#allocation2 + $0x130] sm:$0xff] %v1384_v48  ;;  %v1216_v29 = vpop.f32.mrf.mxu2 }
 0x151   : > { %v1217_v8 = vadd.f32 %v1216_v29, %v9827_v28  ;;  %v1305_v9 = vpop.f32.mrf.mxu3  ;;  %v1041_v40 = vpop.f32.mrf.mxu0 }
 0x152   : > { %v1042_v33 = vadd.f32 %v1041_v40, %v9814_v19  ;;  %v1130_v39 = vpop.f32.mrf.mxu1 }
 0x153   : > { %v1306_v15 = vadd.f32 %v1305_v9, %v1217_v8  ;;  %v815_v9 = vpack.c.bf16 %v9892_v42, %v9889_v37 }
 0x154   : > { %v1131_v16 = vadd.f32 %v1130_v39, %v1042_v33  ;;  %1080 = vmatmul.bf16.gmra.mxu0 %v812_v3 }
 0x155   : > { %v1385_v30 = vadd.f32 %v1306_v15, %v9706_v41  ;;  %1169 = vmatmul.bf16.gmra.mxu1 %v813_v14  ;;  %1258 = vmatmul.bf16.gmra.mxu2 %v812_v3 }
 0x156   : > { %v1386_v22 = vadd.f32 %v1131_v16, %v9713_v44  ;;  %1347 = vmatmul.bf16.gmra.mxu3 %v813_v14  ;;  %v9885_v44 = vld [vmem:[%s9626_s8 + $0x170] sm:$0xff] }
 0x157   : > { %1449 = vst [vmem:[#allocation2 + $0x48] sm:$0xff] %v1385_v30  ;;  %v814_v29 = vpack.c.bf16 %v9885_v44, %v9882_v36 }
 0x158   : > { %1450 = vst [vmem:[#allocation2 + $0x180] sm:$0xff] %v1386_v22  ;;  %v1219_v23 = vpop.f32.mrf.mxu2 }
 0x159   : > { %v1220_v24 = vadd.f32 %v1219_v23, %v9827_v28  ;;  %v1308_v25 = vpop.f32.mrf.mxu3  ;;  %v1043_v26 = vpop.f32.mrf.mxu0 }
 0x15a   : > { %v1044_v27 = vadd.f32 %v1043_v26, %v9814_v19  ;;  %v1132_v31 = vpop.f32.mrf.mxu1 }
 0x15b   : > { %v1309_v41 = vadd.f32 %v1308_v25, %v1220_v24 }
 0x15c   : > { %v1133_v32 = vadd.f32 %v1132_v31, %v1044_v27  ;;  %v9906_v31 = vld [vmem:[%s9626_s8 + $0x180] sm:$0xff] }
 0x15d   : > { %v1387_v35 = vadd.f32 %v1309_v41, %v9719_v46 }
 0x15e   : > { %v1388_v34 = vadd.f32 %v1133_v32, %v9716_v45  ;;  %v9913_v32 = vld [vmem:[%s9626_s8 + $0x188] sm:$0xff] }
 0x15f   : > { %1451 = vst [vmem:[#allocation2 + $0x110] sm:$0xff] %v1387_v35  ;;  %v9916_v35 = vld [vmem:[%s9626_s8 + $0x198] sm:$0xff] }
 0x160   : > { %1452 = vst [vmem:[#allocation2 + $0x118] sm:$0xff] %v1388_v34  ;;  %v1221_v48 = vpop.f32.mrf.mxu2 }
 0x161   : > { %v1222_v3 = vadd.f32 %v1221_v48, %v9827_v28  ;;  %v1310_v8 = vpop.f32.mrf.mxu3  ;;  %v1046_v46 = vpop.f32.mrf.mxu0 }
 0x162   : > { %v1047_v40 = vadd.f32 %v1046_v46, %v9814_v19  ;;  %v1135_v45 = vpop.f32.mrf.mxu1 }
 0x163   : > { %v1311_v14 = vadd.f32 %v1310_v8, %v1222_v3  ;;  %v817_v8 = vpack.c.bf16 %v9916_v35, %v9913_v32 }
 0x164   : > { %v1136_v33 = vadd.f32 %v1135_v45, %v1047_v40  ;;  %1085 = vmatmul.bf16.gmra.mxu0 %v814_v29 }
 0x165   : > { %v1389_v39 = vadd.f32 %v1311_v14, %v9722_v47  ;;  %1174 = vmatmul.bf16.gmra.mxu1 %v815_v9  ;;  %1263 = vmatmul.bf16.gmra.mxu2 %v814_v29 }
 0x166   : > { %v1390_v15 = vadd.f32 %v1136_v33, %v9729_v50  ;;  %1352 = vmatmul.bf16.gmra.mxu3 %v815_v9  ;;  %v9909_v50 = vld [vmem:[%s9626_s8 + $0x190] sm:$0xff] }
 0x167   : > { %1453 = vst [vmem:[#allocation2 + $0x98] sm:$0xff] %v1389_v39  ;;  %v816_v48 = vpack.c.bf16 %v9909_v50, %v9906_v31 }
 0x168   : > { %1454 = vst [vmem:[#allocation2 + $0x120] sm:$0xff] %v1390_v15  ;;  %v1224_v16 = vpop.f32.mrf.mxu2 }
 0x169   : > { %v1225_v30 = vadd.f32 %v1224_v16, %v9827_v28  ;;  %v1313_v22 = vpop.f32.mrf.mxu3  ;;  %v1048_v23 = vpop.f32.mrf.mxu0 }
 0x16a   : > { %v1049_v24 = vadd.f32 %v1048_v23, %v9814_v19  ;;  %v1137_v25 = vpop.f32.mrf.mxu1 }
 0x16b   : > { %v1314_v47 = vadd.f32 %v1313_v22, %v1225_v30 }
 0x16c   : > { %v1138_v26 = vadd.f32 %v1137_v25, %v1049_v24  ;;  %v9930_v25 = vld [vmem:[%s9626_s8 + $0x1a0] sm:$0xff] }
 0x16d   : > { %v1391_v27 = vadd.f32 %v1314_v47, %v9735_v52 }
 0x16e   : > { %v1392_v41 = vadd.f32 %v1138_v26, %v9732_v51  ;;  %v9937_v26 = vld [vmem:[%s9626_s8 + $0x1a8] sm:$0xff] }
 0x16f   : > { %1455 = vst [vmem:[#allocation2 + $0x150] sm:$0xff] %v1391_v27  ;;  %v9940_v27 = vld [vmem:[%s9626_s8 + $0x1b8] sm:$0xff] }
 0x170   : > { %1456 = vst [vmem:[#allocation2 + $0x108] sm:$0xff] %v1392_v41  ;;  %v1226_v34 = vpop.f32.mrf.mxu2 }
 0x171   : > { %v1227_v29 = vadd.f32 %v1226_v34, %v9827_v28  ;;  %v1315_v3 = vpop.f32.mrf.mxu3  ;;  %v1051_v52 = vpop.f32.mrf.mxu0 }
 0x172   : > { %v1052_v46 = vadd.f32 %v1051_v52, %v9814_v19  ;;  %v1140_v51 = vpop.f32.mrf.mxu1 }
 0x173   : > { %v1316_v9 = vadd.f32 %v1315_v3, %v1227_v29  ;;  %v819_v3 = vpack.c.bf16 %v9940_v27, %v9937_v26 }
 0x174   : > { %v1141_v40 = vadd.f32 %v1140_v51, %v1052_v46  ;;  %1090 = vmatmul.bf16.gmra.mxu0 %v816_v48 }
 0x175   : > { %v1393_v45 = vadd.f32 %v1316_v9, %v9738_v53  ;;  %1179 = vmatmul.bf16.gmra.mxu1 %v817_v8  ;;  %1268 = vmatmul.bf16.gmra.mxu2 %v816_v48 }
 0x176   : > { %v1394_v14 = vadd.f32 %v1141_v40, %v9745_v56  ;;  %1357 = vmatmul.bf16.gmra.mxu3 %v817_v8  ;;  %v9933_v56 = vld [vmem:[%s9626_s8 + $0x1b0] sm:$0xff] }
 0x177   : > { %1457 = vst [vmem:[#allocation2 + $0x60] sm:$0xff] %v1393_v45  ;;  %v818_v34 = vpack.c.bf16 %v9933_v56, %v9930_v25 }
 0x178   : > { %1458 = vst [vmem:[#allocation2 + $0xe0] sm:$0xff] %v1394_v14  ;;  %v1229_v33 = vpop.f32.mrf.mxu2 }
 0x179   : > { %v1230_v39 = vadd.f32 %v1229_v33, %v9827_v28  ;;  %v1318_v15 = vpop.f32.mrf.mxu3  ;;  %v1053_v16 = vpop.f32.mrf.mxu0 }
 0x17a   : > { %v1054_v30 = vadd.f32 %v1053_v16, %v9814_v19  ;;  %v1142_v22 = vpop.f32.mrf.mxu1 }
 0x17b   : > { %v1319_v53 = vadd.f32 %v1318_v15, %v1230_v39 }
 0x17c   : > { %v1143_v23 = vadd.f32 %v1142_v22, %v1054_v30  ;;  %v9954_v22 = vld [vmem:[%s9626_s8 + $0x1c0] sm:$0xff] }
 0x17d   : > { %v1395_v24 = vadd.f32 %v1319_v53, %v9751_v58 }
 0x17e   : > { %v1396_v47 = vadd.f32 %v1143_v23, %v9748_v57  ;;  %v9961_v23 = vld [vmem:[%s9626_s8 + $0x1c8] sm:$0xff] }
 0x17f   : > { %1459 = vst [vmem:[#allocation2 + $0x188] sm:$0xff] %v1395_v24  ;;  %v9964_v24 = vld [vmem:[%s9626_s8 + $0x1d8] sm:$0xff] }
 0x180   : > { %1460 = vst [vmem:[#allocation2 + $0x138] sm:$0xff] %v1396_v47  ;;  %v1231_v41 = vpop.f32.mrf.mxu2 }
 0x181   : > { %v1232_v48 = vadd.f32 %v1231_v41, %v9827_v28  ;;  %v1320_v29 = vpop.f32.mrf.mxu3  ;;  %v1056_v58 = vpop.f32.mrf.mxu0 }
 0x182   : > { %v1057_v52 = vadd.f32 %v1056_v58, %v9814_v19  ;;  %v1145_v57 = vpop.f32.mrf.mxu1 }
 0x183   : > { %v1321_v8 = vadd.f32 %v1320_v29, %v1232_v48  ;;  %v821_v29 = vpack.c.bf16 %v9964_v24, %v9961_v23 }
 0x184   : > { %v1146_v46 = vadd.f32 %v1145_v57, %v1057_v52  ;;  %1095 = vmatmul.bf16.gmra.mxu0 %v818_v34 }
 0x185   : > { %v1397_v51 = vadd.f32 %v1321_v8, %v9754_v59  ;;  %1184 = vmatmul.bf16.gmra.mxu1 %v819_v3  ;;  %1273 = vmatmul.bf16.gmra.mxu2 %v818_v34 }
 0x186   : > { %v1398_v9 = vadd.f32 %v1146_v46, %v9761_v62  ;;  %1362 = vmatmul.bf16.gmra.mxu3 %v819_v3  ;;  %v9957_v62 = vld [vmem:[%s9626_s8 + $0x1d0] sm:$0xff] }
 0x187   : > { %1461 = vst [vmem:[#allocation2 + $0x140] sm:$0xff] %v1397_v51  ;;  %v820_v41 = vpack.c.bf16 %v9957_v62, %v9954_v22 }
 0x188   : > { %1462 = vst [vmem:[#allocation2 + $0x80] sm:$0xff] %v1398_v9  ;;  %v1234_v40 = vpop.f32.mrf.mxu2 }
 0x189   : > { %v1235_v45 = vadd.f32 %v1234_v40, %v9827_v28  ;;  %v1323_v14 = vpop.f32.mrf.mxu3  ;;  %v1058_v33 = vpop.f32.mrf.mxu0 }
 0x18a   : > { %v1059_v39 = vadd.f32 %v1058_v33, %v9814_v19  ;;  %v1147_v15 = vpop.f32.mrf.mxu1 }
 0x18b   : > { %v1324_v59 = vadd.f32 %v1323_v14, %v1235_v45 }
 0x18c   : > { %v1148_v16 = vadd.f32 %v1147_v15, %v1059_v39  ;;  %v9978_v15 = vld [vmem:[%s9626_s8 + $0x1e0] sm:$0xff] }
 0x18d   : > { %v1399_v30 = vadd.f32 %v1324_v59, %v9767_v0 }
 0x18e   : > { %v1400_v53 = vadd.f32 %v1148_v16, %v9764_v63  ;;  %v9985_v16 = vld [vmem:[%s9626_s8 + $0x1e8] sm:$0xff] }
 0x18f   : > { %1463 = vst [vmem:[#allocation2 + $0x1a8] sm:$0xff] %v1399_v30  ;;  %v9988_v30 = vld [vmem:[%s9626_s8 + $0x1f8] sm:$0xff] }
 0x190   : > { %1464 = vst [vmem:[#allocation2 + $0x1b8] sm:$0xff] %v1400_v53  ;;  %v1236_v47 = vpop.f32.mrf.mxu2 }
 0x191   : > { %v1237_v34 = vadd.f32 %v1236_v47, %v9827_v28  ;;  %v1325_v48 = vpop.f32.mrf.mxu3  ;;  %v1061_v0 = vpop.f32.mrf.mxu0 }
 0x192   : > { %v1062_v58 = vadd.f32 %v1061_v0, %v9814_v19  ;;  %v1150_v63 = vpop.f32.mrf.mxu1 }
 0x193   : > { %v1326_v3 = vadd.f32 %v1325_v48, %v1237_v34  ;;  %v823_v48 = vpack.c.bf16 %v9988_v30, %v9985_v16 }
 0x194   : > { %v1151_v52 = vadd.f32 %v1150_v63, %v1062_v58  ;;  %1100 = vmatmul.bf16.gmra.mxu0 %v820_v41 }
 0x195   : > { %v1401_v57 = vadd.f32 %v1326_v3, %v9770_v1  ;;  %1189 = vmatmul.bf16.gmra.mxu1 %v821_v29  ;;  %1278 = vmatmul.bf16.gmra.mxu2 %v820_v41 }
 0x196   : > { %v1402_v8 = vadd.f32 %v1151_v52, %v9777_v4  ;;  %1367 = vmatmul.bf16.gmra.mxu3 %v821_v29  ;;  %v9981_v4 = vld [vmem:[%s9626_s8 + $0x1f0] sm:$0xff] }
 0x197   : > { %1465 = vst [vmem:[#allocation2 + $0x28] sm:$0xff] %v1401_v57  ;;  %v822_v47 = vpack.c.bf16 %v9981_v4, %v9978_v15 }
 0x198   : > { %1466 = vst [vmem:[#allocation2 + $0x1e8] sm:$0xff] %v1402_v8  ;;  %v1239_v46 = vpop.f32.mrf.mxu2 }
 0x199   : > { %v1240_v51 = vadd.f32 %v1239_v46, %v9827_v28  ;;  %v1328_v9 = vpop.f32.mrf.mxu3  ;;  %v1063_v40 = vpop.f32.mrf.mxu0 }
 0x19a   : > { %v1064_v45 = vadd.f32 %v1063_v40, %v9814_v19  ;;  %v1152_v14 = vpop.f32.mrf.mxu1 }
 0x19b   : > { %v1329_v1 = vadd.f32 %v1328_v9, %v1240_v51 }
 0x19c   : > { %v1153_v33 = vadd.f32 %v1152_v14, %v1064_v45 }
 0x19d   : > { %v1403_v39 = vadd.f32 %v1329_v1, %v9783_v6 }
 0x19e   : > { %v1404_v59 = vadd.f32 %v1153_v33, %v9780_v5 }
 0x19f   : > { %1467 = vst [vmem:[#allocation2 + $0xf8] sm:$0xff] %v1403_v39 }
 0x1a0   : > { %1468 = vst [vmem:[#allocation2 + $0x160] sm:$0xff] %v1404_v59  ;;  %v1241_v53 = vpop.f32.mrf.mxu2 }
 0x1a1   : > { %v1242_v41 = vadd.f32 %v1241_v53, %v9827_v28  ;;  %v1330_v34 = vpop.f32.mrf.mxu3  ;;  %v1066_v6 = vpop.f32.mrf.mxu0 }
 0x1a2   : > { %v1067_v0 = vadd.f32 %v1066_v6, %v9814_v19  ;;  %v1155_v5 = vpop.f32.mrf.mxu1 }
 0x1a3   : > { %v1331_v29 = vadd.f32 %v1330_v34, %v1242_v41 }
 0x1a4   : > { %v1156_v58 = vadd.f32 %v1155_v5, %v1067_v0  ;;  %1105 = vmatmul.bf16.gmra.mxu0 %v822_v47 }
 0x1a5   : > { %v1405_v63 = vadd.f32 %v1331_v29, %v9786_v7  ;;  %1194 = vmatmul.bf16.gmra.mxu1 %v823_v48  ;;  %1283 = vmatmul.bf16.gmra.mxu2 %v822_v47 }
 0x1a6   : > { %v1406_v3 = vadd.f32 %v1156_v58, %v9793_v10  ;;  %1372 = vmatmul.bf16.gmra.mxu3 %v823_v48 }
 0x1a7   : > { %1469 = vst [vmem:[#allocation2 + $0x30] sm:$0xff] %v1405_v63 }
 0x1a8   : > { %1470 = vst [vmem:[#allocation2 + $0x1e0] sm:$0xff] %v1406_v3  ;;  %v1244_v52 = vpop.f32.mrf.mxu2 }
 0x1a9   : > { %v1245_v57 = vadd.f32 %v1244_v52, %v9827_v28  ;;  %v1333_v8 = vpop.f32.mrf.mxu3  ;;  %v1068_v46 = vpop.f32.mrf.mxu0 }
 0x1aa   : > { %v1069_v51 = vadd.f32 %v1068_v46, %v9814_v19  ;;  %v1157_v9 = vpop.f32.mrf.mxu1 }
 0x1ab   : > { %v1334_v40 = vadd.f32 %v1333_v8, %v1245_v57 }
 0x1ac   : > { %v1158_v45 = vadd.f32 %v1157_v9, %v1069_v51 }
 0x1ad   : > { %v1407_v14 = vadd.f32 %v1334_v40, %v9799_v12 }
 0x1ae   : > { %v1408_v7 = vadd.f32 %v1158_v45, %v9796_v11 }
 0x1af   : > { %1471 = vst [vmem:[#allocation2] sm:$0xff] %v1407_v14 }
 0x1b0   : > { %1472 = vst [vmem:[#allocation2 + $0xf0] sm:$0xff] %v1408_v7  ;;  %v1246_v10 = vpop.f32.mrf.mxu2 }
 0x1b1   : > { %v1247_v1 = vadd.f32 %v1246_v10, %v9827_v28  ;;  %v1335_v33 = vpop.f32.mrf.mxu3  ;;  %v1071_v39 = vpop.f32.mrf.mxu0 }
 0x1b2   : > { %v1072_v59 = vadd.f32 %v1071_v39, %v9814_v19  ;;  %v1160_v53 = vpop.f32.mrf.mxu1 }
 0x1b3   : > { %v1336_v47 = vadd.f32 %v1335_v33, %v1247_v1 }
 0x1b4   : > { %v1161_v41 = vadd.f32 %v1160_v53, %v1072_v59 }
 0x1b5   : > { %v1409_v34 = vadd.f32 %v1336_v47, %v9802_v13 }
 0x1b6   : > { %v1410_v6 = vadd.f32 %v1161_v41, %v9809_v17 }
 0x1b7   : > { %1473 = vst [vmem:[#allocation2 + $0x8] sm:$0xff] %v1409_v34 }
 0x1b8   : > { %1474 = vst [vmem:[#allocation2 + $0x148] sm:$0xff] %v1410_v6  ;;  %v1249_v12 = vpop.f32.mrf.mxu2 }
 0x1b9   : > { %v1250_v11 = vadd.f32 %v1249_v12, %v9827_v28  ;;  %v1338_v48 = vpop.f32.mrf.mxu3  ;;  %v1073_v0 = vpop.f32.mrf.mxu0 }
 0x1ba   : > { %v1074_v5 = vadd.f32 %v1073_v0, %v9814_v19  ;;  %v1162_v29 = vpop.f32.mrf.mxu1 }
 0x1bb   : > { %v1339_v58 = vadd.f32 %v1338_v48, %v1250_v11 }
 0x1bc   : > { %v1163_v63 = vadd.f32 %v1162_v29, %v1074_v5 }
 0x1bd   : > { %v1411_v3 = vadd.f32 %v1339_v58, %v9817_v20 }
 0x1be   : > { %v1412_v52 = vadd.f32 %v1163_v63, %v9812_v18 }
 0x1bf   : > { %1475 = vst [vmem:[#allocation2 + $0x1d0] sm:$0xff] %v1411_v3 }
 0x1c0   : > { %1476 = vst [vmem:[#allocation2 + $0x100] sm:$0xff] %v1412_v52  ;;  %v1251_v13 = vpop.f32.mrf.mxu2 }
 0x1c1   : > { %v1252_v17 = vadd.f32 %v1251_v13, %v9827_v28  ;;  %v1340_v57 = vpop.f32.mrf.mxu3  ;;  %v1076_v8 = vpop.f32.mrf.mxu0 }
 0x1c2   : > { %v1077_v46 = vadd.f32 %v1076_v8, %v9814_v19  ;;  %v1165_v51 = vpop.f32.mrf.mxu1 }
 0x1c3   : > { %v1341_v9 = vadd.f32 %v1340_v57, %v1252_v17 }
 0x1c4   : > { %v1166_v40 = vadd.f32 %v1165_v51, %v1077_v46 }
 0x1c5   : > { %v1413_v45 = vadd.f32 %v1341_v9, %v9820_v21 }
 0x1c6   : > { %v1414_v14 = vadd.f32 %v1166_v40, %v9834_v55 }
 0x1c7   : > { %1477 = vst [vmem:[#allocation2 + $0xc8] sm:$0xff] %v1413_v45 }
 0x1c8   : > { %1478 = vst [vmem:[#allocation2 + $0x40] sm:$0xff] %v1414_v14  ;;  %v1254_v20 = vpop.f32.mrf.mxu2 }
 0x1c9   : > { %v1255_v18 = vadd.f32 %v1254_v20, %v9827_v28  ;;  %v1343_v7 = vpop.f32.mrf.mxu3  ;;  %v1078_v10 = vpop.f32.mrf.mxu0 }
 0x1ca   : > { %v1079_v1 = vadd.f32 %v1078_v10, %v9814_v19  ;;  %v1167_v33 = vpop.f32.mrf.mxu1 }
 0x1cb   : > { %v1344_v39 = vadd.f32 %v1343_v7, %v1255_v18 }
 0x1cc   : > { %v1168_v59 = vadd.f32 %v1167_v33, %v1079_v1 }
 0x1cd   : > { %v1415_v53 = vadd.f32 %v1344_v39, %v9841_v61 }
 0x1ce   : > { %v1416_v47 = vadd.f32 %v1168_v59, %v9837_v60 }
 0x1cf   : > { %1479 = vst [vmem:[#allocation2 + $0x1f8] sm:$0xff] %v1415_v53 }
 0x1d0   : > { %1480 = vst [vmem:[#allocation2 + $0x20] sm:$0xff] %v1416_v47  ;;  %v1256_v21 = vpop.f32.mrf.mxu2 }
 0x1d1   : > { %v1257_v55 = vadd.f32 %v1256_v21, %v9827_v28  ;;  %v1345_v41 = vpop.f32.mrf.mxu3  ;;  %v1081_v34 = vpop.f32.mrf.mxu0 }
 0x1d2   : > { %v1082_v6 = vadd.f32 %v1081_v34, %v9814_v19  ;;  %v1170_v12 = vpop.f32.mrf.mxu1 }
 0x1d3   : > { %v1346_v11 = vadd.f32 %v1345_v41, %v1257_v55 }
 0x1d4   : > { %v1171_v48 = vadd.f32 %v1170_v12, %v1082_v6 }
 0x1d5   : > { %v1417_v0 = vadd.f32 %v1346_v11, %v9844_v2 }
 0x1d6   : > { %v1418_v5 = vadd.f32 %v1171_v48, %v9858_v43 }
 0x1d7   : > { %1481 = vst [vmem:[#allocation2 + $0x128] sm:$0xff] %v1417_v0 }
 0x1d8   : > { %1482 = vst [vmem:[#allocation2 + $0x1a0] sm:$0xff] %v1418_v5  ;;  %v1259_v61 = vpop.f32.mrf.mxu2 }
 0x1d9   : > { %v1260_v60 = vadd.f32 %v1259_v61, %v9827_v28  ;;  %v1348_v29 = vpop.f32.mrf.mxu3  ;;  %v1083_v58 = vpop.f32.mrf.mxu0 }
 0x1da   : > { %v1084_v63 = vadd.f32 %v1083_v58, %v9814_v19  ;;  %v1172_v3 = vpop.f32.mrf.mxu1 }
 0x1db   : > { %v1349_v52 = vadd.f32 %v1348_v29, %v1260_v60 }
 0x1dc   : > { %v1173_v13 = vadd.f32 %v1172_v3, %v1084_v63 }
 0x1dd   : > { %v1419_v17 = vadd.f32 %v1349_v52, %v9865_v49 }
 0x1de   : > { %v1420_v57 = vadd.f32 %v1173_v13, %v9861_v38 }
 0x1df   : > { %1483 = vst [vmem:[#allocation2 + $0x1f0] sm:$0xff] %v1419_v17 }
 0x1e0   : > { %1484 = vst [vmem:[#allocation2 + $0xe8] sm:$0xff] %v1420_v57  ;;  %v1261_v2 = vpop.f32.mrf.mxu2 }
 0x1e1   : > { %v1262_v43 = vadd.f32 %v1261_v2, %v9827_v28  ;;  %v1350_v8 = vpop.f32.mrf.mxu3  ;;  %v1086_v46 = vpop.f32.mrf.mxu0 }
 0x1e2   : > { %v1087_v51 = vadd.f32 %v1086_v46, %v9814_v19  ;;  %v1175_v9 = vpop.f32.mrf.mxu1 }
 0x1e3   : > { %v1351_v40 = vadd.f32 %v1350_v8, %v1262_v43 }
 0x1e4   : > { %v1176_v45 = vadd.f32 %v1175_v9, %v1087_v51 }
 0x1e5   : > { %v1421_v14 = vadd.f32 %v1351_v40, %v9868_v54 }
 0x1e6   : > { %v1422_v20 = vadd.f32 %v1176_v45, %v9882_v36 }
 0x1e7   : > { %1485 = vst [vmem:[#allocation2 + $0x78] sm:$0xff] %v1421_v14 }
 0x1e8   : > { %1486 = vst [vmem:[#allocation2 + $0x70] sm:$0xff] %v1422_v20  ;;  %v1264_v49 = vpop.f32.mrf.mxu2 }
 0x1e9   : > { %v1265_v38 = vadd.f32 %v1264_v49, %v9827_v28  ;;  %v1353_v18 = vpop.f32.mrf.mxu3  ;;  %v1088_v7 = vpop.f32.mrf.mxu0 }
 0x1ea   : > { %v1089_v10 = vadd.f32 %v1088_v7, %v9814_v19  ;;  %v1177_v1 = vpop.f32.mrf.mxu1 }
 0x1eb   : > { %v1354_v33 = vadd.f32 %v1353_v18, %v1265_v38 }
 0x1ec   : > { %v1178_v39 = vadd.f32 %v1177_v1, %v1089_v10 }
 0x1ed   : > { %v1423_v59 = vadd.f32 %v1354_v33, %v9889_v37 }
 0x1ee   : > { %v1424_v53 = vadd.f32 %v1178_v39, %v9885_v44 }
 0x1ef   : > { %1487 = vst [vmem:[#allocation2 + $0x90] sm:$0xff] %v1423_v59 }
 0x1f0   : > { %1488 = vst [vmem:[#allocation2 + $0x1d8] sm:$0xff] %v1424_v53  ;;  %v1266_v54 = vpop.f32.mrf.mxu2 }
 0x1f1   : > { %v1267_v36 = vadd.f32 %v1266_v54, %v9827_v28  ;;  %v1355_v47 = vpop.f32.mrf.mxu3  ;;  %v1091_v21 = vpop.f32.mrf.mxu0 }
 0x1f2   : > { %v1092_v55 = vadd.f32 %v1091_v21, %v9814_v19  ;;  %v1180_v41 = vpop.f32.mrf.mxu1 }
 0x1f3   : > { %v1356_v34 = vadd.f32 %v1355_v47, %v1267_v36 }
 0x1f4   : > { %v1181_v6 = vadd.f32 %v1180_v41, %v1092_v55 }
 0x1f5   : > { %v1425_v12 = vadd.f32 %v1356_v34, %v9892_v42 }
 0x1f6   : > { %v1426_v11 = vadd.f32 %v1181_v6, %v9906_v31 }
 0x1f7   : > { %1489 = vst [vmem:[#allocation2 + $0xd0] sm:$0xff] %v1425_v12 }
 0x1f8   : > { %1490 = vst [vmem:[#allocation2 + $0xb8] sm:$0xff] %v1426_v11  ;;  %v1269_v37 = vpop.f32.mrf.mxu2 }
 0x1f9   : > { %v1270_v44 = vadd.f32 %v1269_v37, %v9827_v28  ;;  %v1358_v48 = vpop.f32.mrf.mxu3  ;;  %v1093_v0 = vpop.f32.mrf.mxu0 }
 0x1fa   : > { %v1094_v5 = vadd.f32 %v1093_v0, %v9814_v19  ;;  %v1182_v61 = vpop.f32.mrf.mxu1 }
 0x1fb   : > { %v1359_v60 = vadd.f32 %v1358_v48, %v1270_v44 }
 0x1fc   : > { %v1183_v29 = vadd.f32 %v1182_v61, %v1094_v5 }
 0x1fd   : > { %v1427_v58 = vadd.f32 %v1359_v60, %v9913_v32 }
 0x1fe   : > { %v1428_v63 = vadd.f32 %v1183_v29, %v9909_v50 }
 0x1ff   : > { %1491 = vst [vmem:[#allocation2 + $0x88] sm:$0xff] %v1427_v58 }
 0x200   : > { %1492 = vst [vmem:[#allocation2 + $0xa8] sm:$0xff] %v1428_v63  ;;  %v1271_v42 = vpop.f32.mrf.mxu2 }
 0x201   : > { %v1272_v31 = vadd.f32 %v1271_v42, %v9827_v28  ;;  %v1360_v3 = vpop.f32.mrf.mxu3  ;;  %v1096_v52 = vpop.f32.mrf.mxu0 }
 0x202   : > { %v1097_v13 = vadd.f32 %v1096_v52, %v9814_v19  ;;  %v1185_v17 = vpop.f32.mrf.mxu1 }
 0x203   : > { %v1361_v57 = vadd.f32 %v1360_v3, %v1272_v31 }
 0x204   : > { %v1186_v2 = vadd.f32 %v1185_v17, %v1097_v13 }
 0x205   : > { %v1429_v43 = vadd.f32 %v1361_v57, %v9916_v35 }
 0x206   : > { %v1430_v8 = vadd.f32 %v1186_v2, %v9930_v25 }
 0x207   : > { %1493 = vst [vmem:[#allocation2 + $0x1c8] sm:$0xff] %v1429_v43 }
 0x208   : > { %1494 = vst [vmem:[#allocation2 + $0x170] sm:$0xff] %v1430_v8  ;;  %v1274_v32 = vpop.f32.mrf.mxu2 }
 0x209   : > { %v1275_v50 = vadd.f32 %v1274_v32, %v9827_v28  ;;  %v1363_v46 = vpop.f32.mrf.mxu3  ;;  %v1098_v51 = vpop.f32.mrf.mxu0 }
 0x20a   : > { %v1099_v9 = vadd.f32 %v1098_v51, %v9814_v19  ;;  %v1187_v40 = vpop.f32.mrf.mxu1 }
 0x20b   : > { %v1364_v45 = vadd.f32 %v1363_v46, %v1275_v50 }
 0x20c   : > { %v1188_v14 = vadd.f32 %v1187_v40, %v1099_v9 }
 0x20d   : > { %v1431_v20 = vadd.f32 %v1364_v45, %v9937_v26 }
 0x20e   : > { %v1432_v49 = vadd.f32 %v1188_v14, %v9933_v56 }
 0x20f   : > { %1495 = vst [vmem:[#allocation2 + $0x178] sm:$0xff] %v1431_v20 }
 0x210   : > { %1496 = vst [vmem:[#allocation2 + $0x68] sm:$0xff] %v1432_v49  ;;  %v1276_v35 = vpop.f32.mrf.mxu2 }
 0x211   : > { %v1277_v25 = vadd.f32 %v1276_v35, %v9827_v28  ;;  %v1365_v38 = vpop.f32.mrf.mxu3  ;;  %v1101_v18 = vpop.f32.mrf.mxu0 }
 0x212   : > { %v1102_v7 = vadd.f32 %v1101_v18, %v9814_v19  ;;  %v1190_v10 = vpop.f32.mrf.mxu1 }
 0x213   : > { %v1366_v1 = vadd.f32 %v1365_v38, %v1277_v25 }
 0x214   : > { %v1191_v33 = vadd.f32 %v1190_v10, %v1102_v7 }
 0x215   : > { %v1433_v39 = vadd.f32 %v1366_v1, %v9940_v27 }
 0x216   : > { %v1434_v59 = vadd.f32 %v1191_v33, %v9954_v22 }
 0x217   : > { %1497 = vst [vmem:[#allocation2 + $0x190] sm:$0xff] %v1433_v39 }
 0x218   : > { %1498 = vst [vmem:[#allocation2 + $0x198] sm:$0xff] %v1434_v59  ;;  %v1279_v26 = vpop.f32.mrf.mxu2 }
 0x219   : > { %v1280_v56 = vadd.f32 %v1279_v26, %v9827_v28  ;;  %v1368_v53 = vpop.f32.mrf.mxu3  ;;  %v1103_v54 = vpop.f32.mrf.mxu0 }
 0x21a   : > { %v1104_v36 = vadd.f32 %v1103_v54, %v9814_v19  ;;  %v1192_v47 = vpop.f32.mrf.mxu1 }
 0x21b   : > { %v1369_v21 = vadd.f32 %v1368_v53, %v1280_v56 }
 0x21c   : > { %v1193_v55 = vadd.f32 %v1192_v47, %v1104_v36 }
 0x21d   : > { %v1435_v41 = vadd.f32 %v1369_v21, %v9961_v23 }
 0x21e   : > { %v1436_v34 = vadd.f32 %v1193_v55, %v9957_v62 }
 0x21f   : > { %1499 = vst [vmem:[#allocation2 + $0x38] sm:$0xff] %v1435_v41 }
 0x220   : > { %1500 = vst [vmem:[#allocation2 + $0xc0] sm:$0xff] %v1436_v34  ;;  %v1281_v27 = vpop.f32.mrf.mxu2 }
 0x221   : > { %v1282_v22 = vadd.f32 %v1281_v27, %v9827_v28  ;;  %v1370_v6 = vpop.f32.mrf.mxu3  ;;  %v1106_v12 = vpop.f32.mrf.mxu0 }
 0x222   : > { %v1107_v11 = vadd.f32 %v1106_v12, %v9814_v19  ;;  %v1195_v37 = vpop.f32.mrf.mxu1 }
 0x223   : > { %v1371_v44 = vadd.f32 %v1370_v6, %v1282_v22 }
 0x224   : > { %v1196_v48 = vadd.f32 %v1195_v37, %v1107_v11 }
 0x225   : > { %v1437_v0 = vadd.f32 %v1371_v44, %v9964_v24 }
 0x226   : > { %v1438_v5 = vadd.f32 %v1196_v48, %v9978_v15 }
 0x227   : > { %1501 = vst [vmem:[#allocation2 + $0x1c0] sm:$0xff] %v1437_v0 }
 0x228   : > { %1502 = vst [vmem:[#allocation2 + $0x158] sm:$0xff] %v1438_v5  ;;  %v1284_v23 = vpop.f32.mrf.mxu2 }
 0x229   : > { %v1285_v62 = vadd.f32 %v1284_v23, %v9827_v28  ;;  %v1373_v61 = vpop.f32.mrf.mxu3  ;;  %v1108_v60 = vpop.f32.mrf.mxu0 }
 0x22a   : > { %v1109_v29 = vadd.f32 %v1108_v60, %v9814_v19  ;;  %v1197_v63 = vpop.f32.mrf.mxu1 }
 0x22b   : > { %v1374_v58 = vadd.f32 %v1373_v61, %v1285_v62 }
 0x22c   : > { %v1198_v42 = vadd.f32 %v1197_v63, %v1109_v29 }
 0x22d   : > { %v1439_v31 = vadd.f32 %v1374_v58, %v9985_v16 }
 0x22e   : > { %v1440_v3 = vadd.f32 %v1198_v42, %v9981_v4 }
 0x22f   : > { %1503 = vst [vmem:[#allocation2 + $0x10] sm:$0xff] %v1439_v31 }
 0x230   : > { %1504 = vst [vmem:[#allocation2 + $0x58] sm:$0xff] %v1440_v3  ;;  %v1286_v24 = vpop.f32.mrf.mxu2 }
 0x231   : > { %v1287_v15 = vadd.f32 %v1286_v24, %v9827_v28  ;;  %v1375_v52 = vpop.f32.mrf.mxu3 }
 0x233   : > { %v1376_v13 = vadd.f32 %v1375_v52, %v1287_v15 }
 0x235   : > { %v1441_v17 = vadd.f32 %v1376_v13, %v9988_v30 }
 0x237   : > { %1505 = vst [vmem:[#allocation2 + $0xa0] sm:$0xff] %v1441_v17 }
 0x238 PF: > { %v7494_v19 = vld [vmem:[%s9638_s11 + $0x70] sm:$0xf]  ;;  %v8135_v28 = vld [vmem:[%s9638_s11 + $0x74] sm:$0xf0]  ;;  %v8134_v30 = vld [vmem:[%s9638_s11 + $0x74] sm:$0xf] }
 0x239   : > { %v7558_v4 = vld [vmem:[%s9638_s11 + $0xf0] sm:$0xf]  ;;  %v7495_v16 = vor.u32 %v8135_v28, %v7494_v19  ;;  %v8151_v57 = vld [vmem:[%s9638_s11 + $0xf4] sm:$0xf0]  ;;  %v7496_v2 = vld [vmem:[%s9638_s11 + $0x78] sm:$0xf0] }
 0x23a   : > { %v7559_v43 = vor.u32 %v8151_v57, %v7558_v4  ;;  %v7499_v8 = vor.u32 %v8134_v30, %v7496_v2  ;;  %v8150_v32 = vld [vmem:[%s9638_s11 + $0xf4] sm:$0xf]  ;;  %v7560_v50 = vld [vmem:[%s9638_s11 + $0xf8] sm:$0xf0]  ;;  %v7486_v46 = vld [vmem:[%s9638_s11 + $0x60] sm:$0xf] }
 0x23b   : > { %1800 = vmatpush.bf16.msra.mxu0 %v7495_v16  ;;  %v7563_v51 = vor.u32 %v8150_v32, %v7560_v50  ;;  %v8133_v9 = vld [vmem:[%s9638_s11 + $0x64] sm:$0xf0]  ;;  %v7550_v40 = vld [vmem:[%s9638_s11 + $0xe0] sm:$0xf]  ;;  %v8132_v49 = vld [vmem:[%s9638_s11 + $0x64] sm:$0xf] }
 0x23c   : > { %v8149_v45 = vld [vmem:[%s9638_s11 + $0xe4] sm:$0xf0]  ;;  %1889 = vmatpush.bf16.msra.mxu1 %v7559_v43  ;;  %1978 = vmatpush.bf16.msra.mxu2 %v7499_v8  ;;  %v7487_v14 = vor.u32 %v8133_v9, %v7486_v46  ;;  %v7488_v35 = vld [vmem:[%s9638_s11 + $0x68] sm:$0xf0]  ;;  %v8148_v25 = vld [vmem:[%s9638_s11 + $0xe4] sm:$0xf] }
 0x23d   : > { %v7551_v20 = vor.u32 %v8149_v45, %v7550_v40  ;;  %2067 = vmatpush.bf16.msra.mxu3 %v7563_v51  ;;  %v7491_v38 = vor.u32 %v8132_v49, %v7488_v35  ;;  %v7552_v18 = vld [vmem:[%s9638_s11 + $0xe8] sm:$0xf0]  ;;  %v7478_v7 = vld [vmem:[%s9638_s11 + $0x50] sm:$0xf]  ;;  %v8131_v10 = vld [vmem:[%s9638_s11 + $0x54] sm:$0xf0] }
 0x23e   : > { %v7555_v1 = vor.u32 %v8148_v25, %v7552_v18  ;;  %v7542_v33 = vld [vmem:[%s9638_s11 + $0xd0] sm:$0xf]  ;;  %v8147_v39 = vld [vmem:[%s9638_s11 + $0xd4] sm:$0xf0]  ;;  %v8130_v59 = vld [vmem:[%s9638_s11 + $0x54] sm:$0xf]  ;;  %v7479_v26 = vor.u32 %v8131_v10, %v7478_v7 }
 0x23f   : > { %1801 = vmatpush.bf16.msra.mxu0 %v7487_v14  ;;  %v7480_v56 = vld [vmem:[%s9638_s11 + $0x58] sm:$0xf0]  ;;  %v8146_v53 = vld [vmem:[%s9638_s11 + $0xd4] sm:$0xf]  ;;  %v7543_v36 = vor.u32 %v8147_v39, %v7542_v33  ;;  %v7470_v21 = vld [vmem:[%s9638_s11 + $0x40] sm:$0xf] }
 0x240   : > { %v7544_v54 = vld [vmem:[%s9638_s11 + $0xd8] sm:$0xf0]  ;;  %1890 = vmatpush.bf16.msra.mxu1 %v7551_v20  ;;  %1979 = vmatpush.bf16.msra.mxu2 %v7491_v38  ;;  %v7483_v47 = vor.u32 %v8130_v59, %v7480_v56  ;;  %v8129_v55 = vld [vmem:[%s9638_s11 + $0x44] sm:$0xf0]  ;;  %v7534_v41 = vld [vmem:[%s9638_s11 + $0xc0] sm:$0xf] }
 0x241   : > { %2068 = vmatpush.bf16.msra.mxu3 %v7555_v1  ;;  %v7547_v34 = vor.u32 %v8146_v53, %v7544_v54  ;;  %v8145_v27 = vld [vmem:[%s9638_s11 + $0xc4] sm:$0xf0]  ;;  %v8128_v22 = vld [vmem:[%s9638_s11 + $0x44] sm:$0xf]  ;;  %v7472_v6 = vld [vmem:[%s9638_s11 + $0x48] sm:$0xf0]  ;;  %v7471_v37 = vor.u32 %v8129_v55, %v7470_v21 }
 0x242   : > { %v8144_v12 = vld [vmem:[%s9638_s11 + $0xc4] sm:$0xf]  ;;  %v7536_v11 = vld [vmem:[%s9638_s11 + $0xc8] sm:$0xf0]  ;;  %v7535_v44 = vor.u32 %v8145_v27, %v7534_v41  ;;  %v7475_v48 = vor.u32 %v8128_v22, %v7472_v6  ;;  %v7462_v0 = vld [vmem:[%s9638_s11 + $0x30] sm:$0xf] }
 0x243   : > { %1802 = vmatpush.bf16.msra.mxu0 %v7479_v26  ;;  %v8127_v5 = vld [vmem:[%s9638_s11 + $0x34] sm:$0xf0]  ;;  %v7526_v23 = vld [vmem:[%s9638_s11 + $0xb0] sm:$0xf]  ;;  %v7539_v62 = vor.u32 %v8144_v12, %v7536_v11  ;;  %v8126_v60 = vld [vmem:[%s9638_s11 + $0x34] sm:$0xf] }
 0x244   : > { %1891 = vmatpush.bf16.msra.mxu1 %v7543_v36  ;;  %1980 = vmatpush.bf16.msra.mxu2 %v7483_v47  ;;  %v8143_v61 = vld [vmem:[%s9638_s11 + $0xb4] sm:$0xf0]  ;;  %v7464_v29 = vld [vmem:[%s9638_s11 + $0x38] sm:$0xf0]  ;;  %v8142_v58 = vld [vmem:[%s9638_s11 + $0xb4] sm:$0xf]  ;;  %v7463_v42 = vor.u32 %v8127_v5, %v7462_v0 }
 0x245   : > { %2069 = vmatpush.bf16.msra.mxu3 %v7547_v34  ;;  %v7528_v63 = vld [vmem:[%s9638_s11 + $0xb8] sm:$0xf0]  ;;  %v7527_v31 = vor.u32 %v8143_v61, %v7526_v23  ;;  %v7467_v3 = vor.u32 %v8126_v60, %v7464_v29  ;;  %v7454_v24 = vld [vmem:[%s9638_s11 + $0x20] sm:$0xf]  ;;  %v8125_v15 = vld [vmem:[%s9638_s11 + $0x24] sm:$0xf0] }
 0x246   : > { %v7518_v52 = vld [vmem:[%s9638_s11 + $0xa0] sm:$0xf]  ;;  %v7531_v13 = vor.u32 %v8142_v58, %v7528_v63  ;;  %v8141_v17 = vld [vmem:[%s9638_s11 + $0xa4] sm:$0xf0]  ;;  %v8124_v19 = vld [vmem:[%s9638_s11 + $0x24] sm:$0xf]  ;;  %v7455_v57 = vor.u32 %v8125_v15, %v7454_v24 }
 0x247   : > { %1803 = vmatpush.bf16.msra.mxu0 %v7471_v37  ;;  %v7456_v28 = vld [vmem:[%s9638_s11 + $0x28] sm:$0xf0]  ;;  %v8140_v4 = vld [vmem:[%s9638_s11 + $0xa4] sm:$0xf]  ;;  %v7519_v30 = vor.u32 %v8141_v17, %v7518_v52  ;;  %v7446_v43 = vld [vmem:[%s9638_s11 + $0x10] sm:$0xf] }
 0x248   : > { %1892 = vmatpush.bf16.msra.mxu1 %v7535_v44  ;;  %1981 = vmatpush.bf16.msra.mxu2 %v7475_v48  ;;  %v7520_v16 = vld [vmem:[%s9638_s11 + $0xa8] sm:$0xf0]  ;;  %v7459_v2 = vor.u32 %v8124_v19, %v7456_v28  ;;  %v8123_v8 = vld [vmem:[%s9638_s11 + $0x14] sm:$0xf0]  ;;  %v7510_v32 = vld [vmem:[%s9638_s11 + $0x90] sm:$0xf] }
 0x249   : > { %2070 = vmatpush.bf16.msra.mxu3 %v7539_v62  ;;  %v7523_v50 = vor.u32 %v8140_v4, %v7520_v16  ;;  %v8139_v46 = vld [vmem:[%s9638_s11 + $0x94] sm:$0xf0]  ;;  %v8122_v51 = vld [vmem:[%s9638_s11 + $0x14] sm:$0xf]  ;;  %v7448_v9 = vld [vmem:[%s9638_s11 + $0x18] sm:$0xf0]  ;;  %v7447_v14 = vor.u32 %v8123_v8, %v7446_v43 }
 0x24a   : > { %v8138_v40 = vld [vmem:[%s9638_s11 + $0x94] sm:$0xf]  ;;  %v7512_v45 = vld [vmem:[%s9638_s11 + $0x98] sm:$0xf0]  ;;  %v7511_v20 = vor.u32 %v8139_v46, %v7510_v32  ;;  %v7451_v49 = vor.u32 %v8122_v51, %v7448_v9  ;;  %v7438_v35 = vld [vmem:[%s9638_s11] sm:$0xf] }
 0x24b   : > { %1804 = vmatpush.bf16.msra.mxu0 %v7463_v42  ;;  %v8121_v25 = vld [vmem:[%s9638_s11 + $0x4] sm:$0xf0]  ;;  %v7502_v38 = vld [vmem:[%s9638_s11 + $0x80] sm:$0xf]  ;;  %v7515_v18 = vor.u32 %v8138_v40, %v7512_v45  ;;  %v8120_v10 = vld [vmem:[%s9638_s11 + $0x4] sm:$0xf] }
 0x24c   : > { %1893 = vmatpush.bf16.msra.mxu1 %v7527_v31  ;;  %1982 = vmatpush.bf16.msra.mxu2 %v7467_v3  ;;  %v8137_v7 = vld [vmem:[%s9638_s11 + $0x84] sm:$0xf0]  ;;  %v7440_v1 = vld [vmem:[%s9638_s11 + $0x8] sm:$0xf0]  ;;  %v8136_v33 = vld [vmem:[%s9638_s11 + $0x84] sm:$0xf]  ;;  %v7439_v59 = vor.u32 %v8121_v25, %v7438_v35 }
 0x24d   : > { %2071 = vmatpush.bf16.msra.mxu3 %v7531_v13  ;;  %v7504_v39 = vld [vmem:[%s9638_s11 + $0x88] sm:$0xf0]  ;;  %v1508_v56 = vld [vmem:[#allocation2 + $0xd8] sm:$0xff]  ;;  %v7503_v53 = vor.u32 %v8137_v7, %v7502_v38  ;;  %v7443_v54 = vor.u32 %v8120_v10, %v7440_v1  ;;  %v1514_v37 = vld [vmem:[#allocation2 + $0x180] sm:$0xff]  ;;  %s13578_s8 = scalar_lea.vmem [#allocation11], %s9644_s30 }
 0x24e   : > { %v1506_v26 = vld [vmem:[#allocation2 + $0xb0] sm:$0xff]  ;;  %v1509_v47 = vld [vmem:[#allocation2 + $0x18] sm:$0xff]  ;;  %v7507_v21 = vor.u32 %v8136_v33, %v7504_v39  ;;  %v1511_v22 = vld [vmem:[#allocation2 + $0x168] sm:$0xff] }
 0x24f   : > { %1805 = vmatpush.bf16.msra.mxu0 %v7455_v57  ;;  %v1507_v36 = vld [vmem:[#allocation2 + $0x1b0] sm:$0xff]  ;;  %v10132_v55 = vpack.c.bf16 %v1508_v56, %v1506_v26  ;;  %v1513_v6 = vld [vmem:[#allocation2 + $0x48] sm:$0xff]  ;;  %v1516_v44 = vld [vmem:[#allocation2 + $0x118] sm:$0xff] }
 0x250   : > { %1894 = vmatpush.bf16.msra.mxu1 %v7519_v30  ;;  %1983 = vmatpush.bf16.msra.mxu2 %v7459_v2  ;;  %v10134_v41 = vpack.c.bf16 %v1509_v47, %v1507_v36  ;;  %v1510_v34 = vld [vmem:[#allocation2 + $0x50] sm:$0xff]  ;;  %v10142_v11 = vpack.c.bf16 %v1513_v6, %v1511_v22  ;;  %v1517_v0 = vld [vmem:[#allocation2 + $0x98] sm:$0xff]  ;;  %v10148_v5 = vpack.c.bf16 %v1516_v44, %v1514_v37  ;;  %v1518_v62 = vld [vmem:[#allocation2 + $0x120] sm:$0xff] }
 0x251   : > { %2072 = vmatpush.bf16.msra.mxu3 %v7523_v50  ;;  %v1512_v27 = vld [vmem:[#allocation2 + $0x130] sm:$0xff]  ;;  %v1520_v61 = vld [vmem:[#allocation2 + $0x108] sm:$0xff]  ;;  %v1521_v29 = vld [vmem:[#allocation2 + $0x60] sm:$0xff] }
 0x252   : > { %v10140_v12 = vpack.c.bf16 %v1512_v27, %v1510_v34  ;;  %v1515_v48 = vld [vmem:[#allocation2 + $0x110] sm:$0xff]  ;;  %v10156_v58 = vpack.c.bf16 %v1520_v61, %v1518_v62  ;;  %v1522_v42 = vld [vmem:[#allocation2 + $0xe0] sm:$0xff]  ;;  %v1524_v31 = vld [vmem:[#allocation2 + $0x138] sm:$0xff] }
 0x253   : > { %1806 = vmatpush.bf16.msra.mxu0 %v7447_v14  ;;  %v10150_v23 = vpack.c.bf16 %v1517_v0, %v1515_v48  ;;  %v1519_v60 = vld [vmem:[#allocation2 + $0x150] sm:$0xff]  ;;  %v1523_v3 = vld [vmem:[#allocation2 + $0x188] sm:$0xff]  ;;  %v1525_v24 = vld [vmem:[#allocation2 + $0x140] sm:$0xff]  ;;  %v10164_v15 = vpack.c.bf16 %v1524_v31, %v1522_v42 }
 0x254   : > { %1895 = vmatpush.bf16.msra.mxu1 %v7511_v20  ;;  %1984 = vmatpush.bf16.msra.mxu2 %v7451_v49  ;;  %v10158_v63 = vpack.c.bf16 %v1521_v29, %v1519_v60  ;;  %v10166_v52 = vpack.c.bf16 %v1525_v24, %v1523_v3  ;;  %v1526_v13 = vld [vmem:[#allocation2 + $0x80] sm:$0xff]  ;;  %v1528_v17 = vld [vmem:[#allocation2 + $0x1b8] sm:$0xff]  ;;  %v1527_v19 = vld [vmem:[#allocation2 + $0x1a8] sm:$0xff] }
 0x255   : > { %2073 = vmatpush.bf16.msra.mxu3 %v7515_v18  ;;  %v1529_v28 = vld [vmem:[#allocation2 + $0x28] sm:$0xff]  ;;  %v10172_v4 = vpack.c.bf16 %v1528_v17, %v1526_v13  ;;  %v1532_v30 = vld [vmem:[#allocation2 + $0x160] sm:$0xff]  ;;  %v1531_v2 = vld [vmem:[#allocation2 + $0xf8] sm:$0xff] }
 0x256   : > { %v10174_v16 = vpack.c.bf16 %v1529_v28, %v1527_v19  ;;  %v1530_v57 = vld [vmem:[#allocation2 + $0x1e8] sm:$0xff]  ;;  %v1533_v43 = vld [vmem:[#allocation2 + $0x30] sm:$0xff]  ;;  %v1534_v50 = vld [vmem:[#allocation2 + $0x1e0] sm:$0xff] }
 0x257   : > { %1807 = vmatpush.bf16.msra.mxu0 %v7439_v59  ;;  %v10180_v8 = vpack.c.bf16 %v1532_v30, %v1530_v57  ;;  %v10182_v32 = vpack.c.bf16 %v1533_v43, %v1531_v2  ;;  %v1536_v46 = vld [vmem:[#allocation2 + $0xf0] sm:$0xff]  ;;  %v1535_v51 = vld [vmem:[#allocation2] sm:$0xff]  ;;  %v1537_v9 = vld [vmem:[#allocation2 + $0x8] sm:$0xff] }
 0x258   : > { %1896 = vmatpush.bf16.msra.mxu1 %v7503_v53  ;;  %1985 = vmatpush.bf16.msra.mxu2 %v7443_v54  ;;  %v7622_v40 = vld [vmem:[%s9647_s16 + $0x70] sm:$0xf]  ;;  %v8167_v45 = vld [vmem:[%s9647_s16 + $0x74] sm:$0xf0]  ;;  %v10191_v20 = vpack.c.bf16 %v1536_v46, %v1534_v50  ;;  %v10194_v25 = vpack.c.bf16 %v1537_v9, %v1535_v51  ;;  %v1634_v18 = vld [vmem:[%s13578_s8] sm:$0x3] }
 0x259   : > { %2074 = vmatpush.bf16.msra.mxu3 %v7507_v21  ;;  %v7686_v14 = vld [vmem:[%s9647_s16 + $0xf0] sm:$0xf]  ;;  %v7623_v49 = vor.u32 %v8167_v45, %v7622_v40  ;;  %v8183_v35 = vld [vmem:[%s9647_s16 + $0xf4] sm:$0xf0]  ;;  %v1538_v7 = vld [vmem:[#allocation2 + $0x148] sm:$0xff]  ;;  %v10202_v1 = vperm.slane %v1634_v18, 0 }
 0x25a   : > { %1808 = vmatmul.bf16.vlgmr.msra.gmra.mxu0 %v10132_v55  ;;  %v7687_v38 = vor.u32 %v8183_v35, %v7686_v14  ;;  %v1540_v10 = vld [vmem:[#allocation2 + $0x100] sm:$0xff]  ;;  %v1539_v33 = vld [vmem:[#allocation2 + $0x1d0] sm:$0xff]  ;;  %v1541_v39 = vld [vmem:[#allocation2 + $0xc8] sm:$0xff]  ;;  %v10212_v47 = vperm.slane %v1634_v18, 1 }
 0x25b   : > { %1897 = vmatmul.bf16.vlgmr.msra.gmra.mxu1 %v10134_v41  ;;  %1986 = vmatmul.bf16.vlgmr.msra.gmra.mxu2 %v10132_v55  ;;  %v10204_v59 = vpack.c.bf16 %v1540_v10, %v1538_v7  ;;  %v10206_v56 = vpack.c.bf16 %v1541_v39, %v1539_v33  ;;  %v1542_v62 = vld [vmem:[#allocation2 + $0x40] sm:$0xff]  ;;  %v1543_v60 = vld [vmem:[#allocation2 + $0x1f8] sm:$0xff]  ;;  %v1545_v29 = vld [vmem:[#allocation2 + $0x128] sm:$0xff] }
 0x25c   : > { %2075 = vmatmul.bf16.vlgmr.msra.gmra.mxu3 %v10134_v41  ;;  %2348 = vmatpush.bf16.msrb.mxu0 %v7623_v49  ;;  %v1544_v61 = vld [vmem:[#allocation2 + $0x20] sm:$0xff]  ;;  %v8165_v31 = vld [vmem:[%s9647_s16 + $0x64] sm:$0xf0]  ;;  %v10224_v2 = vpack.c.bf16 %v1545_v29, %v1543_v60 }
 0x25d   : > { %2437 = vmatpush.bf16.msrb.mxu1 %v7687_v38  ;;  %v7614_v42 = vld [vmem:[%s9647_s16 + $0x60] sm:$0xf]  ;;  %v10220_v13 = vpack.c.bf16 %v1544_v61, %v1542_v62  ;;  %v8181_v19 = vld [vmem:[%s9647_s16 + $0xe4] sm:$0xf0] }
 0x25e   : > { %v7678_v3 = vld [vmem:[%s9647_s16 + $0xe0] sm:$0xf]  ;;  %v7615_v17 = vor.u32 %v8165_v31, %v7614_v42  ;;  %13580 = vst [vmem:[#allocation39_spill] sm:$0xff] %v10224_v2 }
 0x25f   : > { %13579 = vst [vmem:[#allocation38_spill] sm:$0xff] %v10220_v13  ;;  %v7679_v43 = vor.u32 %v8181_v19, %v7678_v3 }
 0x260   : > { %2349 = vmatpush.bf16.msrb.mxu0 %v7615_v17 }
 0x261   : > { %2438 = vmatpush.bf16.msrb.mxu1 %v7679_v43  ;;  %v8182_v43 = vld [vmem:[%s9647_s16 + $0xf4] sm:$0xf] }
 0x26a   : > { %1813 = vmatmul.bf16.gmra.mxu0 %v10140_v12 }
 0x26b   : > { %1902 = vmatmul.bf16.gmra.mxu1 %v10142_v11  ;;  %1991 = vmatmul.bf16.gmra.mxu2 %v10140_v12 }
 0x26c   : > { %2080 = vmatmul.bf16.gmra.mxu3 %v10142_v11 }
 0x27a   : > { %1818 = vmatmul.bf16.gmra.mxu0 %v10148_v5 }
 0x27b   : > { %1907 = vmatmul.bf16.gmra.mxu1 %v10150_v23  ;;  %1996 = vmatmul.bf16.gmra.mxu2 %v10148_v5 }
 0x27c   : > { %2085 = vmatmul.bf16.gmra.mxu3 %v10150_v23 }
 0x28a   : > { %1823 = vmatmul.bf16.gmra.mxu0 %v10156_v58 }
 0x28b   : > { %1912 = vmatmul.bf16.gmra.mxu1 %v10158_v63  ;;  %2001 = vmatmul.bf16.gmra.mxu2 %v10156_v58 }
 0x28c   : > { %2090 = vmatmul.bf16.gmra.mxu3 %v10158_v63 }
 0x29a   : > { %1828 = vmatmul.bf16.gmra.mxu0 %v10164_v15 }
 0x29b   : > { %1917 = vmatmul.bf16.gmra.mxu1 %v10166_v52  ;;  %2006 = vmatmul.bf16.gmra.mxu2 %v10164_v15 }
 0x29c   : > { %2095 = vmatmul.bf16.gmra.mxu3 %v10166_v52 }
 0x2aa   : > { %1833 = vmatmul.bf16.gmra.mxu0 %v10172_v4 }
 0x2ab   : > { %1922 = vmatmul.bf16.gmra.mxu1 %v10174_v16  ;;  %2011 = vmatmul.bf16.gmra.mxu2 %v10172_v4 }
 0x2ac   : > { %2100 = vmatmul.bf16.gmra.mxu3 %v10174_v16 }
 0x2ba   : > { %1838 = vmatmul.bf16.gmra.mxu0 %v10180_v8 }
 0x2bb   : > { %1927 = vmatmul.bf16.gmra.mxu1 %v10182_v32  ;;  %2016 = vmatmul.bf16.gmra.mxu2 %v10180_v8 }
 0x2bc   : > { %2105 = vmatmul.bf16.gmra.mxu3 %v10182_v32 }
 0x2ca   : > { %1843 = vmatmul.bf16.gmra.mxu0 %v10191_v20 }
 0x2cb   : > { %1932 = vmatmul.bf16.gmra.mxu1 %v10194_v25  ;;  %2021 = vmatmul.bf16.gmra.mxu2 %v10191_v20 }
 0x2cc   : > { %2110 = vmatmul.bf16.gmra.mxu3 %v10194_v25 }
 0x2d7   : > { %v1809_v26 = vpop.f32.mrf.mxu0 }
 0x2d8   : > { %v1810_v53 = vadd.f32 %v1809_v26, %v10202_v1  ;;  %v1898_v54 = vpop.f32.mrf.mxu1 }
 0x2da   : > { %v1899_v36 = vadd.f32 %v1898_v54, %v1810_v53  ;;  %1848 = vmatmul.bf16.gmra.mxu0 %v10204_v59 }
 0x2db   : > { %1937 = vmatmul.bf16.gmra.mxu1 %v10206_v56  ;;  %2026 = vmatmul.bf16.gmra.mxu2 %v10204_v59 }
 0x2dc   : > { %2115 = vmatmul.bf16.gmra.mxu3 %v10206_v56 }
 0x2de   : > { %v1987_v21 = vpop.f32.mrf.mxu2 }
 0x2df   : > { %v1988_v34 = vadd.f32 %v1987_v21, %v10212_v47  ;;  %v2076_v27 = vpop.f32.mrf.mxu3  ;;  %v1811_v22 = vpop.f32.mrf.mxu0 }
 0x2e0   : > { %v1812_v6 = vadd.f32 %v1811_v22, %v10202_v1  ;;  %v1900_v37 = vpop.f32.mrf.mxu1  ;;  %v1547_v22 = vld [vmem:[#allocation2 + $0x1f0] sm:$0xff] }
 0x2e1   : > { %v2077_v44 = vadd.f32 %v2076_v27, %v1988_v34  ;;  %v1546_v34 = vld [vmem:[#allocation2 + $0x1a0] sm:$0xff]  ;;  %v1548_v27 = vld [vmem:[#allocation2 + $0xe8] sm:$0xff] }
 0x2e2   : > { %v1901_v48 = vadd.f32 %v1900_v37, %v1812_v6  ;;  %v1549_v6 = vld [vmem:[#allocation2 + $0x78] sm:$0xff] }
 0x2e3   : > { %v3258_v0 = vpack.c.bf16 %v2077_v44, %v1899_v36  ;;  %v10237_v44 = vpack.c.bf16 %v1548_v27, %v1546_v34  ;;  %v10240_v61 = vpack.c.bf16 %v1549_v6, %v1547_v22  ;;  %v7606_v34 = vld [vmem:[%s9647_s16 + $0x50] sm:$0xf]  ;;  %v8163_v27 = vld [vmem:[%s9647_s16 + $0x54] sm:$0xf0] }
 0x2e4   : > { %v7670_v22 = vld [vmem:[%s9647_s16 + $0xd0] sm:$0xf] }
 0x2e5   : > { %v3418_v45 = vunpack.c.l.b16 %v3258_v0  ;;  %v4558_v14 = vunpack.c.h.b16 %v3258_v0  ;;  %13583 = vst [vmem:[#allocation42_spill] sm:$0xff] %v10237_v44 }
 0x2e6   : > { %v1989_v24 = vpop.f32.mrf.mxu2  ;;  %13584 = vst [vmem:[#allocation43_spill] sm:$0xff] %v10240_v61 }
 0x2e7   : > { %v1990_v28 = vadd.f32 %v1989_v24, %v10212_v47  ;;  %v2078_v57 = vpop.f32.mrf.mxu3  ;;  %v1814_v30 = vpop.f32.mrf.mxu0 }
 0x2e8   : > { %v1815_v50 = vadd.f32 %v1814_v30, %v10202_v1  ;;  %v1903_v46 = vpop.f32.mrf.mxu1  ;;  %v7624_v30 = vld [vmem:[%s9647_s16 + $0x78] sm:$0xf0] }
 0x2e9   : > { %v2079_v51 = vadd.f32 %v2078_v57, %v1990_v28  ;;  %v8166_v57 = vld [vmem:[%s9647_s16 + $0x74] sm:$0xf] }
 0x2ea   : > { %v1904_v9 = vadd.f32 %v1903_v46, %v1815_v50  ;;  %1853 = vmatmul.bf16.gmra.mxu0 %v10220_v13  ;;  %v7627_v46 = vor.u32 %v8166_v57, %v7624_v30 }
 0x2eb   : > { %v3259_v40 = vpack.c.bf16 %v2079_v51, %v1901_v48  ;;  %1942 = vmatmul.bf16.gmra.mxu1 %v10224_v2  ;;  %2031 = vmatmul.bf16.gmra.mxu2 %v10220_v13  ;;  %v7688_v51 = vld [vmem:[%s9647_s16 + $0xf8] sm:$0xf0] }
 0x2ec   : > { %2120 = vmatmul.bf16.gmra.mxu3 %v10224_v2  ;;  %2526 = vmatpush.bf16.msrb.mxu2 %v7627_v46 }
 0x2ed   : > { %v3419_v49 = vunpack.c.l.b16 %v3259_v40  ;;  %v4559_v35 = vunpack.c.h.b16 %v3259_v40 }
 0x2ee   : > { %v1992_v38 = vpop.f32.mrf.mxu2 }
 0x2ef   : > { %v10231_v18 = vpack.c.b16 %v3419_v49, %v3418_v45  ;;  %v10233_v7 = vpack.c.b16 %v4559_v35, %v4558_v14  ;;  %v1993_v10 = vadd.f32 %v1992_v38, %v10212_v47  ;;  %v2081_v33 = vpop.f32.mrf.mxu3  ;;  %v1816_v39 = vpop.f32.mrf.mxu0  ;;  %v7691_v14 = vor.u32 %v8182_v43, %v7688_v51 }
 0x2f0   : > { %v1817_v26 = vadd.f32 %v1816_v39, %v10202_v1  ;;  %v1905_v53 = vpop.f32.mrf.mxu1 }
 0x2f1   : > { %13581 = vst [vmem:[#allocation40_spill] sm:$0xff] %v10231_v18  ;;  %v2082_v54 = vadd.f32 %v2081_v33, %v1993_v10  ;;  %2615 = vmatpush.bf16.msrb.mxu3 %v7691_v14  ;;  %v8203_v18 = vld [vmem:[%s9653_s29 + $0x94] sm:$0xf0] }
 0x2f2   : > { %13582 = vst [vmem:[#allocation41_spill] sm:$0xff] %v10233_v7  ;;  %v1906_v36 = vadd.f32 %v1905_v53, %v1817_v26  ;;  %v1550_v53 = vld [vmem:[#allocation2 + $0x70] sm:$0xff] }
 0x2f3   : > { %v3260_v21 = vpack.c.bf16 %v2082_v54, %v1904_v9  ;;  %v1552_v54 = vld [vmem:[#allocation2 + $0x1d8] sm:$0xff] }
 0x2f5   : > { %v3420_v24 = vunpack.c.l.b16 %v3260_v21  ;;  %v4560_v17 = vunpack.c.h.b16 %v3260_v21  ;;  %v1553_v21 = vld [vmem:[#allocation2 + $0xd0] sm:$0xff] }
 0x2f6   : > { %v1994_v37 = vpop.f32.mrf.mxu2 }
 0x2f7   : > { %v1995_v48 = vadd.f32 %v1994_v37, %v10212_v47  ;;  %v2083_v0 = vpop.f32.mrf.mxu3  ;;  %v1819_v62 = vpop.f32.mrf.mxu0  ;;  %v10260_v37 = vpack.c.bf16 %v1552_v54, %v1550_v53  ;;  %v1554_v54 = vld [vmem:[#allocation2 + $0xb8] sm:$0xff] }
 0x2f8   : > { %v1820_v60 = vadd.f32 %v1819_v62, %v10202_v1  ;;  %v1908_v29 = vpop.f32.mrf.mxu1 }
 0x2f9   : > { %v2084_v42 = vadd.f32 %v2083_v0, %v1995_v48  ;;  %13587 = vst [vmem:[#allocation46_spill] sm:$0xff] %v10260_v37  ;;  %v7607_v48 = vor.u32 %v8163_v27, %v7606_v34  ;;  %v8179_v0 = vld [vmem:[%s9647_s16 + $0xd4] sm:$0xf0] }
 0x2fa   : > { %v1909_v31 = vadd.f32 %v1908_v29, %v1820_v60  ;;  %1858 = vmatmul.bf16.gmra.mxu0 %v10237_v44 }
 0x2fb   : > { %v3261_v3 = vpack.c.bf16 %v2084_v42, %v1906_v36  ;;  %1947 = vmatmul.bf16.gmra.mxu1 %v10240_v61  ;;  %2036 = vmatmul.bf16.gmra.mxu2 %v10237_v44  ;;  %v1551_v36 = vld [vmem:[#allocation2 + $0x90] sm:$0xff] }
 0x2fc   : > { %2125 = vmatmul.bf16.gmra.mxu3 %v10240_v61  ;;  %v10264_v42 = vpack.c.bf16 %v1553_v21, %v1551_v36  ;;  %2350 = vmatpush.bf16.msrb.mxu0 %v7607_v48  ;;  %v1556_v36 = vld [vmem:[#allocation2 + $0xa8] sm:$0xff] }
 0x2fd   : > { %v3421_v19 = vunpack.c.l.b16 %v3261_v3  ;;  %v4561_v28 = vunpack.c.h.b16 %v3261_v3  ;;  %v7671_v3 = vor.u32 %v8179_v0, %v7670_v22  ;;  %v1557_v21 = vld [vmem:[#allocation2 + $0x1c8] sm:$0xff]  ;;  %v10277_v27 = vpack.c.bf16 %v1556_v36, %v1554_v54 }
 0x2fe   : > { %v1997_v50 = vpop.f32.mrf.mxu2  ;;  %13588 = vst [vmem:[#allocation47_spill] sm:$0xff] %v10264_v42 }
 0x2ff   : > { %v1998_v9 = vadd.f32 %v1997_v50, %v10212_v47  ;;  %v2086_v40 = vpop.f32.mrf.mxu3  ;;  %v1821_v45 = vpop.f32.mrf.mxu0  ;;  %v10252_v49 = vpack.c.b16 %v3421_v19, %v3420_v24  ;;  %v10254_v35 = vpack.c.b16 %v4561_v28, %v4560_v17  ;;  %2439 = vmatpush.bf16.msrb.mxu1 %v7671_v3  ;;  %13591 = vst [vmem:[#allocation50_spill] sm:$0xff] %v10277_v27 }
 0x300   : > { %v1822_v38 = vadd.f32 %v1821_v45, %v10202_v1  ;;  %v1910_v10 = vpop.f32.mrf.mxu1 }
 0x301   : > { %13585 = vst [vmem:[#allocation44_spill] sm:$0xff] %v10252_v49  ;;  %v2087_v33 = vadd.f32 %v2086_v40, %v1998_v9 }
 0x302   : > { %13586 = vst [vmem:[#allocation45_spill] sm:$0xff] %v10254_v35  ;;  %v1911_v39 = vadd.f32 %v1910_v10, %v1822_v38 }
 0x303   : > { %v3262_v26 = vpack.c.bf16 %v2087_v33, %v1909_v31 }
 0x305   : > { %v3422_v57 = vunpack.c.l.b16 %v3262_v26  ;;  %v4562_v30 = vunpack.c.h.b16 %v3262_v26  ;;  %v1555_v26 = vld [vmem:[#allocation2 + $0x88] sm:$0xff] }
 0x306   : > { %v1999_v6 = vpop.f32.mrf.mxu2  ;;  %v10280_v0 = vpack.c.bf16 %v1557_v21, %v1555_v26  ;;  %v8162_v21 = vld [vmem:[%s9647_s16 + $0x54] sm:$0xf] }
 0x307   : > { %v2000_v62 = vadd.f32 %v1999_v6, %v10212_v47  ;;  %v2088_v60 = vpop.f32.mrf.mxu3  ;;  %v1824_v29 = vpop.f32.mrf.mxu0 }
 0x308   : > { %v1825_v31 = vadd.f32 %v1824_v29, %v10202_v1  ;;  %v1913_v24 = vpop.f32.mrf.mxu1  ;;  %13592 = vst [vmem:[#allocation51_spill] sm:$0xff] %v10280_v0 }
 0x309   : > { %v2089_v17 = vadd.f32 %v2088_v60, %v2000_v62 }
 0x30a   : > { %v1914_v19 = vadd.f32 %v1913_v24, %v1825_v31  ;;  %1863 = vmatmul.bf16.gmra.mxu0 %v10260_v37 }
 0x30b   : > { %v3263_v28 = vpack.c.bf16 %v2089_v17, %v1911_v39  ;;  %1952 = vmatmul.bf16.gmra.mxu1 %v10264_v42  ;;  %2041 = vmatmul.bf16.gmra.mxu2 %v10260_v37 }
 0x30c   : > { %2130 = vmatmul.bf16.gmra.mxu3 %v10264_v42 }
 0x30d   : > { %v3423_v43 = vunpack.c.l.b16 %v3263_v28  ;;  %v4563_v50 = vunpack.c.h.b16 %v3263_v28 }
 0x30e   : > { %v2002_v46 = vpop.f32.mrf.mxu2 }
 0x30f   : > { %v2003_v51 = vadd.f32 %v2002_v46, %v10212_v47  ;;  %v2091_v9 = vpop.f32.mrf.mxu3  ;;  %v1826_v40 = vpop.f32.mrf.mxu0  ;;  %v10272_v45 = vpack.c.b16 %v3423_v43, %v3422_v57  ;;  %v10274_v14 = vpack.c.b16 %v4563_v50, %v4562_v30  ;;  %v8164_v57 = vld [vmem:[%s9647_s16 + $0x64] sm:$0xf]  ;;  %v7616_v30 = vld [vmem:[%s9647_s16 + $0x68] sm:$0xf0] }
 0x310   : > { %v1827_v38 = vadd.f32 %v1826_v40, %v10202_v1  ;;  %v1915_v10 = vpop.f32.mrf.mxu1  ;;  %v8180_v43 = vld [vmem:[%s9647_s16 + $0xe4] sm:$0xf]  ;;  %v7619_v46 = vor.u32 %v8164_v57, %v7616_v30  ;;  %v7662_v57 = vld [vmem:[%s9647_s16 + $0xc0] sm:$0xf] }
 0x311   : > { %13589 = vst [vmem:[#allocation48_spill] sm:$0xff] %v10272_v45  ;;  %v2092_v33 = vadd.f32 %v2091_v9, %v2003_v51  ;;  %v7680_v51 = vld [vmem:[%s9647_s16 + $0xe8] sm:$0xf0] }
 0x312   : > { %13590 = vst [vmem:[#allocation49_spill] sm:$0xff] %v10274_v14  ;;  %v1916_v39 = vadd.f32 %v1915_v10, %v1827_v38  ;;  %v7683_v10 = vor.u32 %v8180_v43, %v7680_v51  ;;  %2527 = vmatpush.bf16.msrb.mxu2 %v7619_v46  ;;  %v8160_v46 = vld [vmem:[%s9647_s16 + $0x44] sm:$0xf]  ;;  %v7600_v51 = vld [vmem:[%s9647_s16 + $0x48] sm:$0xf0] }
 0x313   : > { %v3264_v53 = vpack.c.bf16 %v2092_v33, %v1914_v19 }
 0x314   : > { %2616 = vmatpush.bf16.msrb.mxu3 %v7683_v10 }
 0x315   : > { %v3424_v24 = vunpack.c.l.b16 %v3264_v53  ;;  %v4564_v17 = vunpack.c.h.b16 %v3264_v53 }
 0x316   : > { %v2004_v34 = vpop.f32.mrf.mxu2 }
 0x317   : > { %v2005_v22 = vadd.f32 %v2004_v34, %v10212_v47  ;;  %v2093_v6 = vpop.f32.mrf.mxu3  ;;  %v1829_v48 = vpop.f32.mrf.mxu0  ;;  %v7608_v34 = vld [vmem:[%s9647_s16 + $0x58] sm:$0xf0] }
 0x318   : > { %v1830_v62 = vadd.f32 %v1829_v48, %v10202_v1  ;;  %v1918_v60 = vpop.f32.mrf.mxu1  ;;  %v1558_v48 = vld [vmem:[#allocation2 + $0x170] sm:$0xff] }
 0x319   : > { %v2094_v29 = vadd.f32 %v2093_v6, %v2005_v22  ;;  %v8178_v22 = vld [vmem:[%s9647_s16 + $0xd4] sm:$0xf] }
 0x31a   : > { %v1919_v3 = vadd.f32 %v1918_v60, %v1830_v62  ;;  %1868 = vmatmul.bf16.gmra.mxu0 %v10277_v27  ;;  %v1560_v62 = vld [vmem:[#allocation2 + $0x68] sm:$0xff]  ;;  %v7611_v60 = vor.u32 %v8162_v21, %v7608_v34  ;;  %v7664_v21 = vld [vmem:[%s9647_s16 + $0xc8] sm:$0xf0] }
 0x31b   : > { %v3265_v31 = vpack.c.bf16 %v2094_v29, %v1916_v39  ;;  %1957 = vmatmul.bf16.gmra.mxu1 %v10280_v0  ;;  %2046 = vmatmul.bf16.gmra.mxu2 %v10277_v27  ;;  %v7672_v29 = vld [vmem:[%s9647_s16 + $0xd8] sm:$0xf0]  ;;  %v10306_v43 = vpack.c.bf16 %v1560_v62, %v1558_v48 }
 0x31c   : > { %2135 = vmatmul.bf16.gmra.mxu3 %v10280_v0  ;;  %2528 = vmatpush.bf16.msrb.mxu2 %v7611_v60 }
 0x31d   : > { %v3425_v19 = vunpack.c.l.b16 %v3265_v31  ;;  %v4565_v28 = vunpack.c.h.b16 %v3265_v31  ;;  %v1559_v31 = vld [vmem:[#allocation2 + $0x178] sm:$0xff]  ;;  %13595 = vst [vmem:[#allocation54_spill] sm:$0xff] %v10306_v43 }
 0x31e   : > { %v2007_v50 = vpop.f32.mrf.mxu2 }
 0x31f   : > { %v2008_v9 = vadd.f32 %v2007_v50, %v10212_v47  ;;  %v2096_v40 = vpop.f32.mrf.mxu3  ;;  %v1831_v38 = vpop.f32.mrf.mxu0  ;;  %v10292_v33 = vpack.c.b16 %v3425_v19, %v3424_v24  ;;  %v10294_v39 = vpack.c.b16 %v4565_v28, %v4564_v17  ;;  %v1561_v24 = vld [vmem:[#allocation2 + $0x190] sm:$0xff]  ;;  %v7675_v17 = vor.u32 %v8178_v22, %v7672_v29  ;;  %v7598_v19 = vld [vmem:[%s9647_s16 + $0x40] sm:$0xf] }
 0x320   : > { %v1832_v53 = vadd.f32 %v1831_v38, %v10202_v1  ;;  %v1920_v54 = vpop.f32.mrf.mxu1  ;;  %v8161_v28 = vld [vmem:[%s9647_s16 + $0x44] sm:$0xf0]  ;;  %v10312_v10 = vpack.c.bf16 %v1561_v24, %v1559_v31  ;;  %v7590_v29 = vld [vmem:[%s9647_s16 + $0x30] sm:$0xf]  ;;  %v8159_v31 = vld [vmem:[%s9647_s16 + $0x34] sm:$0xf0] }
 0x321   : > { %13593 = vst [vmem:[#allocation52_spill] sm:$0xff] %v10292_v33  ;;  %v2097_v36 = vadd.f32 %v2096_v40, %v2008_v9  ;;  %v8177_v50 = vld [vmem:[%s9647_s16 + $0xc4] sm:$0xf0]  ;;  %2617 = vmatpush.bf16.msrb.mxu3 %v7675_v17  ;;  %v7591_v17 = vor.u32 %v8159_v31, %v7590_v29  ;;  %v7774_v33 = vld [vmem:[%s9653_s29 + $0xa0] sm:$0xf] }
 0x322   : > { %13594 = vst [vmem:[#allocation53_spill] sm:$0xff] %v10294_v39  ;;  %v1921_v26 = vadd.f32 %v1920_v54, %v1832_v53  ;;  %v7663_v53 = vor.u32 %v8177_v50, %v7662_v57  ;;  %v7603_v54 = vor.u32 %v8160_v46, %v7600_v51  ;;  %v8158_v57 = vld [vmem:[%s9647_s16 + $0x34] sm:$0xf]  ;;  %v7592_v50 = vld [vmem:[%s9647_s16 + $0x38] sm:$0xf0] }
 0x323   : > { %v10300_v6 = vpack.c.bf16 %v2097_v36, %v1919_v3  ;;  %v7599_v3 = vor.u32 %v8161_v28, %v7598_v19  ;;  %13596 = vst [vmem:[#allocation55_spill] sm:$0xff] %v10312_v10  ;;  %v8176_v36 = vld [vmem:[%s9647_s16 + $0xc4] sm:$0xf]  ;;  %v7654_v19 = vld [vmem:[%s9647_s16 + $0xb0] sm:$0xf] }
 0x324   : > { %v7667_v48 = vor.u32 %v8176_v36, %v7664_v21  ;;  %2440 = vmatpush.bf16.msrb.mxu1 %v7663_v53  ;;  %2529 = vmatpush.bf16.msrb.mxu2 %v7603_v54  ;;  %v8175_v28 = vld [vmem:[%s9647_s16 + $0xb4] sm:$0xf0]  ;;  %v8174_v46 = vld [vmem:[%s9647_s16 + $0xb4] sm:$0xf]  ;;  %v7656_v51 = vld [vmem:[%s9647_s16 + $0xb8] sm:$0xf0] }
 0x325   : > { %2351 = vmatpush.bf16.msrb.mxu0 %v7599_v3  ;;  %v7655_v3 = vor.u32 %v8175_v28, %v7654_v19  ;;  %v4566_v53 = vunpack.c.h.b16 %v10300_v6  ;;  %v7582_v36 = vld [vmem:[%s9647_s16 + $0x20] sm:$0xf]  ;;  %v8157_v21 = vld [vmem:[%s9647_s16 + $0x24] sm:$0xf0] }
 0x326   : > { %v2009_v30 = vpop.f32.mrf.mxu2  ;;  %2618 = vmatpush.bf16.msrb.mxu3 %v7667_v48  ;;  %v7583_v29 = vor.u32 %v8157_v21, %v7582_v36  ;;  %v8173_v31 = vld [vmem:[%s9647_s16 + $0xa4] sm:$0xf0]  ;;  %v1563_v36 = vld [vmem:[#allocation2 + $0x38] sm:$0xff] }
 0x327   : > { %v2010_v9 = vadd.f32 %v2009_v30, %v10212_v47  ;;  %v2098_v40 = vpop.f32.mrf.mxu3  ;;  %v1834_v38 = vpop.f32.mrf.mxu0  ;;  %v3426_v30 = vunpack.c.l.b16 %v10300_v6  ;;  %v7574_v21 = vld [vmem:[%s9647_s16 + $0x10] sm:$0xf] }
 0x328   : > { %v1835_v34 = vadd.f32 %v1834_v38, %v10202_v1  ;;  %v1923_v22 = vpop.f32.mrf.mxu1  ;;  %v7659_v38 = vor.u32 %v8174_v46, %v7656_v51  ;;  %2441 = vmatpush.bf16.msrb.mxu1 %v7655_v3  ;;  %v7648_v46 = vld [vmem:[%s9647_s16 + $0xa8] sm:$0xf0] }
 0x329   : > { %v2099_v62 = vadd.f32 %v2098_v40, %v2010_v9  ;;  %2352 = vmatpush.bf16.msrb.mxu0 %v7591_v17  ;;  %v7595_v40 = vor.u32 %v8158_v57, %v7592_v50  ;;  %v7584_v17 = vld [vmem:[%s9647_s16 + $0x28] sm:$0xf0]  ;;  %v8172_v50 = vld [vmem:[%s9647_s16 + $0xa4] sm:$0xf] }
 0x32a   : > { %v1924_v60 = vadd.f32 %v1923_v22, %v1835_v34  ;;  %1873 = vmatmul.bf16.gmra.mxu0 %v10306_v43  ;;  %v7646_v34 = vld [vmem:[%s9647_s16 + $0xa0] sm:$0xf]  ;;  %2619 = vmatpush.bf16.msrb.mxu3 %v7659_v38  ;;  %v1562_v38 = vld [vmem:[#allocation2 + $0x198] sm:$0xff] }
 0x32b   : > { %v3267_v24 = vpack.c.bf16 %v2099_v62, %v1921_v26  ;;  %1962 = vmatmul.bf16.gmra.mxu1 %v10312_v10  ;;  %2051 = vmatmul.bf16.gmra.mxu2 %v10306_v43  ;;  %v7647_v57 = vor.u32 %v8173_v31, %v7646_v34  ;;  %v8155_v34 = vld [vmem:[%s9647_s16 + $0x14] sm:$0xf0] }
 0x32c   : > { %2140 = vmatmul.bf16.gmra.mxu3 %v10312_v10  ;;  %2530 = vmatpush.bf16.msrb.mxu2 %v7595_v40 }
 0x32d   : > { %v3427_v26 = vunpack.c.l.b16 %v3267_v24  ;;  %v4567_v9 = vunpack.c.h.b16 %v3267_v24  ;;  %v8156_v24 = vld [vmem:[%s9647_s16 + $0x24] sm:$0xf]  ;;  %2353 = vmatpush.bf16.msrb.mxu0 %v7583_v29  ;;  %2442 = vmatpush.bf16.msrb.mxu1 %v7647_v57  ;;  %v1565_v29 = vld [vmem:[#allocation2 + $0x1c0] sm:$0xff] }
 0x32e   : > { %v2012_v54 = vpop.f32.mrf.mxu2  ;;  %v7587_v3 = vor.u32 %v8156_v24, %v7584_v17 }
 0x32f   : > { %v2013_v22 = vadd.f32 %v2012_v54, %v10212_v47  ;;  %v2101_v48 = vpop.f32.mrf.mxu3  ;;  %v1836_v62 = vpop.f32.mrf.mxu0  ;;  %v10338_v19 = vpack.c.b16 %v3427_v26, %v3426_v30  ;;  %v10343_v51 = vpack.c.b16 %v4567_v9, %v4566_v53  ;;  %v1564_v54 = vld [vmem:[#allocation2 + $0xc0] sm:$0xff]  ;;  %v7651_v30 = vor.u32 %v8172_v50, %v7648_v46  ;;  %v8153_v46 = vld [vmem:[%s9647_s16 + $0x4] sm:$0xf0] }
 0x330   : > { %v1837_v6 = vadd.f32 %v1836_v62, %v10202_v1  ;;  %v1925_v28 = vpop.f32.mrf.mxu1  ;;  %v7638_v62 = vld [vmem:[%s9647_s16 + $0x90] sm:$0xf]  ;;  %2531 = vmatpush.bf16.msrb.mxu2 %v7587_v3  ;;  %v7575_v9 = vor.u32 %v8155_v34, %v7574_v21  ;;  %v8171_v53 = vld [vmem:[%s9647_s16 + $0x94] sm:$0xf0]  ;;  %v10353_v3 = vpack.c.bf16 %v1564_v54, %v1562_v38  ;;  %v7566_v50 = vld [vmem:[%s9647_s16] sm:$0xf] }
 0x331   : > { %13597 = vst [vmem:[#allocation56_spill] sm:$0xff] %v10338_v19  ;;  %v2102_v40 = vadd.f32 %v2101_v48, %v2013_v22  ;;  %2620 = vmatpush.bf16.msrb.mxu3 %v7651_v30  ;;  %v8154_v22 = vld [vmem:[%s9647_s16 + $0x14] sm:$0xf]  ;;  %v7576_v48 = vld [vmem:[%s9647_s16 + $0x18] sm:$0xf0]  ;;  %v7639_v24 = vor.u32 %v8171_v53, %v7638_v62  ;;  %v10359_v62 = vpack.c.bf16 %v1565_v29, %v1563_v36 }
 0x332   : > { %13598 = vst [vmem:[#allocation57_spill] sm:$0xff] %v10343_v51  ;;  %v1926_v26 = vadd.f32 %v1925_v28, %v1837_v6  ;;  %v7579_v17 = vor.u32 %v8154_v22, %v7576_v48  ;;  %v8170_v6 = vld [vmem:[%s9647_s16 + $0x94] sm:$0xf]  ;;  %v7640_v28 = vld [vmem:[%s9647_s16 + $0x98] sm:$0xf0]  ;;  %2354 = vmatpush.bf16.msrb.mxu0 %v7575_v9  ;;  %v7567_v9 = vor.u32 %v8153_v46, %v7566_v50 }
 0x333   : > { %v3268_v31 = vpack.c.bf16 %v2102_v40, %v1924_v60  ;;  %v7643_v57 = vor.u32 %v8170_v6, %v7640_v28  ;;  %13599 = vst [vmem:[#allocation58_spill] sm:$0xff] %v10353_v3  ;;  %2443 = vmatpush.bf16.msrb.mxu1 %v7639_v24  ;;  %v7630_v40 = vld [vmem:[%s9647_s16 + $0x80] sm:$0xf]  ;;  %v8169_v53 = vld [vmem:[%s9647_s16 + $0x84] sm:$0xf0] }
 0x334   : > { %13600 = vst [vmem:[#allocation59_spill] sm:$0xff] %v10359_v62  ;;  %2532 = vmatpush.bf16.msrb.mxu2 %v7579_v17  ;;  %v8152_v22 = vld [vmem:[%s9647_s16 + $0x4] sm:$0xf]  ;;  %v7568_v48 = vld [vmem:[%s9647_s16 + $0x8] sm:$0xf0]  ;;  %v7631_v24 = vor.u32 %v8169_v53, %v7630_v40 }
 0x335   : > { %2621 = vmatpush.bf16.msrb.mxu3 %v7643_v57  ;;  %v7571_v6 = vor.u32 %v8152_v22, %v7568_v48  ;;  %v8168_v28 = vld [vmem:[%s9647_s16 + $0x84] sm:$0xf]  ;;  %v7632_v51 = vld [vmem:[%s9647_s16 + $0x88] sm:$0xf0]  ;;  %v3428_v29 = vunpack.c.l.b16 %v3268_v31  ;;  %v4568_v17 = vunpack.c.h.b16 %v3268_v31  ;;  %v1566_v48 = vld [vmem:[#allocation2 + $0x158] sm:$0xff] }
 0x336   : > { %v2014_v60 = vpop.f32.mrf.mxu2  ;;  %2355 = vmatpush.bf16.msrb.mxu0 %v7567_v9  ;;  %v1568_v31 = vld [vmem:[#allocation2 + $0x58] sm:$0xff]  ;;  %v7800_v19 = vld [vmem:[%s9653_s29 + $0xd8] sm:$0xf0] }
 0x337   : > { %v2015_v30 = vadd.f32 %v2014_v60, %v10212_v47  ;;  %v2103_v21 = vpop.f32.mrf.mxu3  ;;  %v1839_v34 = vpop.f32.mrf.mxu0  ;;  %v7635_v60 = vor.u32 %v8168_v28, %v7632_v51  ;;  %2444 = vmatpush.bf16.msrb.mxu1 %v7631_v24 }
 0x338   : > { %v1840_v38 = vadd.f32 %v1839_v34, %v10202_v1  ;;  %v1928_v54 = vpop.f32.mrf.mxu1  ;;  %2533 = vmatpush.bf16.msrb.mxu2 %v7571_v6  ;;  %v10377_v6 = vpack.c.bf16 %v1568_v31, %v1566_v48 }
 0x339   : > { %v2104_v39 = vadd.f32 %v2103_v21, %v2015_v30  ;;  %2622 = vmatpush.bf16.msrb.mxu3 %v7635_v60 }
 0x33a   : > { %v1929_v14 = vadd.f32 %v1928_v54, %v1840_v38  ;;  %1878 = vmatmul.bf16.gmra.mxu0 %v10353_v3  ;;  %v1567_v38 = vld [vmem:[#allocation2 + $0x10] sm:$0xff]  ;;  %v1569_v54 = vld [vmem:[#allocation2 + $0xa0] sm:$0xff] }
 0x33b   : > { %v3269_v36 = vpack.c.bf16 %v2104_v39, %v1926_v26  ;;  %1967 = vmatmul.bf16.gmra.mxu1 %v10359_v62  ;;  %2056 = vmatmul.bf16.gmra.mxu2 %v10353_v3 }
 0x33c   : > { %2145 = vmatmul.bf16.gmra.mxu3 %v10359_v62 }
 0x33d   : > { %v3429_v57 = vunpack.c.l.b16 %v3269_v36  ;;  %v4569_v50 = vunpack.c.h.b16 %v3269_v36 }
 0x33e   : > { %v2017_v46 = vpop.f32.mrf.mxu2 }
 0x33f   : > { %v2018_v51 = vadd.f32 %v2017_v46, %v10212_v47  ;;  %v2106_v40 = vpop.f32.mrf.mxu3  ;;  %v1841_v30 = vpop.f32.mrf.mxu0  ;;  %v10372_v21 = vpack.c.b16 %v3429_v57, %v3428_v29  ;;  %v10374_v39 = vpack.c.b16 %v4569_v50, %v4568_v17  ;;  %v10380_v29 = vpack.c.bf16 %v1569_v54, %v1567_v38 }
 0x340   : > { %v1842_v26 = vadd.f32 %v1841_v30, %v10202_v1  ;;  %v1930_v34 = vpop.f32.mrf.mxu1 }
 0x341   : > { %13601 = vst [vmem:[#allocation60_spill] sm:$0xff] %v10372_v21  ;;  %v2107_v9 = vadd.f32 %v2106_v40, %v2018_v51  ;;  %v8193_v21 = vld [vmem:[%s9653_s29 + $0x44] sm:$0xf0] }
 0x342   : > { %13602 = vst [vmem:[#allocation61_spill] sm:$0xff] %v10374_v39  ;;  %v1931_v53 = vadd.f32 %v1930_v34, %v1842_v26 }
 0x343   : > { %v3270_v22 = vpack.c.bf16 %v2107_v9, %v1929_v14 }
 0x345   : > { %v3430_v51 = vunpack.c.l.b16 %v3270_v22  ;;  %v4570_v40 = vunpack.c.h.b16 %v3270_v22 }
 0x346   : > { %v2019_v24 = vpop.f32.mrf.mxu2 }
 0x347   : > { %v2020_v28 = vadd.f32 %v2019_v24, %v10212_v47  ;;  %v2108_v60 = vpop.f32.mrf.mxu3  ;;  %v1844_v36 = vpop.f32.mrf.mxu0 }
 0x348   : > { %v1845_v17 = vadd.f32 %v1844_v36, %v10202_v1  ;;  %v1933_v57 = vpop.f32.mrf.mxu1 }
 0x349   : > { %v2109_v50 = vadd.f32 %v2108_v60, %v2020_v28 }
 0x34a   : > { %v1934_v46 = vadd.f32 %v1933_v57, %v1845_v17  ;;  %1883 = vmatmul.bf16.gmra.mxu0 %v10377_v6 }
 0x34b   : > { %v3271_v14 = vpack.c.bf16 %v2109_v50, %v1931_v53  ;;  %1972 = vmatmul.bf16.gmra.mxu1 %v10380_v29  ;;  %2061 = vmatmul.bf16.gmra.mxu2 %v10377_v6 }
 0x34c   : > { %2150 = vmatmul.bf16.gmra.mxu3 %v10380_v29 }
 0x34d   : > { %v3431_v30 = vunpack.c.l.b16 %v3271_v14  ;;  %v4571_v26 = vunpack.c.h.b16 %v3271_v14 }
 0x34e   : > { %v2022_v34 = vpop.f32.mrf.mxu2 }
 0x34f   : > { %v2023_v9 = vadd.f32 %v2022_v34, %v10212_v47  ;;  %v2111_v48 = vpop.f32.mrf.mxu3  ;;  %v1846_v31 = vpop.f32.mrf.mxu0  ;;  %v10388_v38 = vpack.c.b16 %v3431_v30, %v3430_v51  ;;  %v10390_v54 = vpack.c.b16 %v4571_v26, %v4570_v40 }
 0x350   : > { %v1847_v53 = vadd.f32 %v1846_v31, %v10202_v1  ;;  %v1935_v24 = vpop.f32.mrf.mxu1 }
 0x351   : > { %13603 = vst [vmem:[#allocation62_spill] sm:$0xff] %v10388_v38  ;;  %v2112_v28 = vadd.f32 %v2111_v48, %v2023_v9 }
 0x352   : > { %13604 = vst [vmem:[#allocation63_spill] sm:$0xff] %v10390_v54  ;;  %v1936_v60 = vadd.f32 %v1935_v24, %v1847_v53 }
 0x353   : > { %v3272_v36 = vpack.c.bf16 %v2112_v28, %v1934_v46 }
 0x355   : > { %v3432_v46 = vunpack.c.l.b16 %v3272_v36  ;;  %v4572_v40 = vunpack.c.h.b16 %v3272_v36 }
 0x356   : > { %v2024_v17 = vpop.f32.mrf.mxu2 }
 0x357   : > { %v2025_v22 = vadd.f32 %v2024_v17, %v10212_v47  ;;  %v2113_v57 = vpop.f32.mrf.mxu3  ;;  %v1849_v50 = vpop.f32.mrf.mxu0 }
 0x358   : > { %v1850_v14 = vadd.f32 %v1849_v50, %v10202_v1  ;;  %v1938_v34 = vpop.f32.mrf.mxu1 }
 0x359   : > { %v2114_v39 = vadd.f32 %v2113_v57, %v2025_v22 }
 0x35a   : > { %v1939_v35 = vadd.f32 %v1938_v34, %v1850_v14  ;;  %2356 = vmatmul.bf16.vlgmr.msrb.gmra.mxu0 %v10132_v55 }
 0x35b   : > { %v3273_v51 = vpack.c.bf16 %v2114_v39, %v1936_v60  ;;  %2445 = vmatmul.bf16.vlgmr.msrb.gmra.mxu1 %v10134_v41  ;;  %2534 = vmatmul.bf16.vlgmr.msrb.gmra.mxu2 %v10132_v55 }
 0x35c   : > { %2623 = vmatmul.bf16.vlgmr.msrb.gmra.mxu3 %v10134_v41 }
 0x35d   : > { %v3433_v30 = vunpack.c.l.b16 %v3273_v51  ;;  %v4573_v26 = vunpack.c.h.b16 %v3273_v51 }
 0x35e   : > { %v2027_v9 = vpop.f32.mrf.mxu2 }
 0x35f   : > { %v2028_v48 = vadd.f32 %v2027_v9, %v10212_v47  ;;  %v2116_v31 = vpop.f32.mrf.mxu3  ;;  %v1851_v53 = vpop.f32.mrf.mxu0  ;;  %v10400_v24 = vpack.c.b16 %v3433_v30, %v3432_v46  ;;  %v10402_v28 = vpack.c.b16 %v4573_v26, %v4572_v40 }
 0x360   : > { %v1852_v39 = vadd.f32 %v1851_v53, %v10202_v1  ;;  %v1940_v60 = vpop.f32.mrf.mxu1 }
 0x361   : > { %13605 = vst [vmem:[#allocation64_spill] sm:$0xff] %v10400_v24  ;;  %v2117_v17 = vadd.f32 %v2116_v31, %v2028_v48 }
 0x362   : > { %13606 = vst [vmem:[#allocation65_spill] sm:$0xff] %v10402_v28  ;;  %v1941_v22 = vadd.f32 %v1940_v60, %v1852_v39 }
 0x363   : > { %v3274_v57 = vpack.c.bf16 %v2117_v17, %v1939_v35 }
 0x365   : > { %v3434_v35 = vunpack.c.l.b16 %v3274_v57  ;;  %v4574_v40 = vunpack.c.h.b16 %v3274_v57 }
 0x366   : > { %v2029_v50 = vpop.f32.mrf.mxu2 }
 0x367   : > { %v2030_v36 = vadd.f32 %v2029_v50, %v10212_v47  ;;  %v2118_v14 = vpop.f32.mrf.mxu3  ;;  %v1854_v34 = vpop.f32.mrf.mxu0 }
 0x368   : > { %v1855_v51 = vadd.f32 %v1854_v34, %v10202_v1  ;;  %v1943_v9 = vpop.f32.mrf.mxu1 }
 0x369   : > { %v2119_v54 = vadd.f32 %v2118_v14, %v2030_v36 }
 0x36a   : > { %v1944_v7 = vadd.f32 %v1943_v9, %v1855_v51  ;;  %2361 = vmatmul.bf16.gmra.mxu0 %v10140_v12 }
 0x36b   : > { %v3275_v46 = vpack.c.bf16 %v2119_v54, %v1941_v22  ;;  %2450 = vmatmul.bf16.gmra.mxu1 %v10142_v11  ;;  %2539 = vmatmul.bf16.gmra.mxu2 %v10140_v12 }
 0x36c   : > { %2628 = vmatmul.bf16.gmra.mxu3 %v10142_v11 }
 0x36d   : > { %v3435_v30 = vunpack.c.l.b16 %v3275_v46  ;;  %v4575_v26 = vunpack.c.h.b16 %v3275_v46 }
 0x36e   : > { %v2032_v48 = vpop.f32.mrf.mxu2 }
 0x36f   : > { %v2033_v31 = vadd.f32 %v2032_v48, %v10212_v47  ;;  %v2121_v53 = vpop.f32.mrf.mxu3  ;;  %v1856_v39 = vpop.f32.mrf.mxu0  ;;  %v10412_v60 = vpack.c.b16 %v3435_v30, %v3434_v35  ;;  %v10414_v17 = vpack.c.b16 %v4575_v26, %v4574_v40 }
 0x370   : > { %v1857_v54 = vadd.f32 %v1856_v39, %v10202_v1  ;;  %v1945_v22 = vpop.f32.mrf.mxu1 }
 0x371   : > { %13607 = vst [vmem:[#allocation66_spill] sm:$0xff] %v10412_v60  ;;  %v2122_v50 = vadd.f32 %v2121_v53, %v2033_v31 }
 0x372   : > { %13608 = vst [vmem:[#allocation67_spill] sm:$0xff] %v10414_v17  ;;  %v1946_v36 = vadd.f32 %v1945_v22, %v1857_v54 }
 0x373   : > { %v3276_v14 = vpack.c.bf16 %v2122_v50, %v1944_v7 }
 0x375   : > { %v3436_v7 = vunpack.c.l.b16 %v3276_v14  ;;  %v4576_v40 = vunpack.c.h.b16 %v3276_v14 }
 0x376   : > { %v2034_v34 = vpop.f32.mrf.mxu2 }
 0x377   : > { %v2035_v57 = vadd.f32 %v2034_v34, %v10212_v47  ;;  %v2123_v51 = vpop.f32.mrf.mxu3  ;;  %v1859_v9 = vpop.f32.mrf.mxu0 }
 0x378   : > { %v1860_v46 = vadd.f32 %v1859_v9, %v10202_v1  ;;  %v1948_v48 = vpop.f32.mrf.mxu1 }
 0x379   : > { %v2124_v28 = vadd.f32 %v2123_v51, %v2035_v57 }
 0x37a   : > { %v1949_v24 = vadd.f32 %v1948_v48, %v1860_v46  ;;  %2366 = vmatmul.bf16.gmra.mxu0 %v10148_v5 }
 0x37b   : > { %v3277_v35 = vpack.c.bf16 %v2124_v28, %v1946_v36  ;;  %2455 = vmatmul.bf16.gmra.mxu1 %v10150_v23  ;;  %2544 = vmatmul.bf16.gmra.mxu2 %v10148_v5 }
 0x37c   : > { %2633 = vmatmul.bf16.gmra.mxu3 %v10150_v23 }
 0x37d   : > { %v3437_v30 = vunpack.c.l.b16 %v3277_v35  ;;  %v4577_v26 = vunpack.c.h.b16 %v3277_v35 }
 0x37e   : > { %v2037_v31 = vpop.f32.mrf.mxu2 }
 0x37f   : > { %v2038_v53 = vadd.f32 %v2037_v31, %v10212_v47  ;;  %v2126_v39 = vpop.f32.mrf.mxu3  ;;  %v1861_v54 = vpop.f32.mrf.mxu0  ;;  %v10424_v22 = vpack.c.b16 %v3437_v30, %v3436_v7  ;;  %v10426_v50 = vpack.c.b16 %v4577_v26, %v4576_v40 }
 0x380   : > { %v1862_v28 = vadd.f32 %v1861_v54, %v10202_v1  ;;  %v1950_v36 = vpop.f32.mrf.mxu1 }
 0x381   : > { %13609 = vst [vmem:[#allocation68_spill] sm:$0xff] %v10424_v22  ;;  %v2127_v34 = vadd.f32 %v2126_v39, %v2038_v53 }
 0x382   : > { %13610 = vst [vmem:[#allocation69_spill] sm:$0xff] %v10426_v50  ;;  %v1951_v57 = vadd.f32 %v1950_v36, %v1862_v28 }
 0x383   : > { %v3278_v51 = vpack.c.bf16 %v2127_v34, %v1949_v24 }
 0x385   : > { %v3438_v24 = vunpack.c.l.b16 %v3278_v51  ;;  %v4578_v40 = vunpack.c.h.b16 %v3278_v51 }
 0x386   : > { %v2039_v9 = vpop.f32.mrf.mxu2 }
 0x387   : > { %v2040_v14 = vadd.f32 %v2039_v9, %v10212_v47  ;;  %v2128_v46 = vpop.f32.mrf.mxu3  ;;  %v1864_v48 = vpop.f32.mrf.mxu0 }
 0x388   : > { %v1865_v35 = vadd.f32 %v1864_v48, %v10202_v1  ;;  %v1953_v31 = vpop.f32.mrf.mxu1 }
 0x389   : > { %v2129_v17 = vadd.f32 %v2128_v46, %v2040_v14 }
 0x38a   : > { %v1954_v60 = vadd.f32 %v1953_v31, %v1865_v35  ;;  %2371 = vmatmul.bf16.gmra.mxu0 %v10156_v58 }
 0x38b   : > { %v3279_v7 = vpack.c.bf16 %v2129_v17, %v1951_v57  ;;  %2460 = vmatmul.bf16.gmra.mxu1 %v10158_v63  ;;  %2549 = vmatmul.bf16.gmra.mxu2 %v10156_v58 }
 0x38c   : > { %2638 = vmatmul.bf16.gmra.mxu3 %v10158_v63 }
 0x38d   : > { %v3439_v30 = vunpack.c.l.b16 %v3279_v7  ;;  %v4579_v26 = vunpack.c.h.b16 %v3279_v7 }
 0x38e   : > { %v2042_v53 = vpop.f32.mrf.mxu2 }
 0x38f   : > { %v2043_v39 = vadd.f32 %v2042_v53, %v10212_v47  ;;  %v2131_v54 = vpop.f32.mrf.mxu3  ;;  %v1866_v28 = vpop.f32.mrf.mxu0  ;;  %v10436_v36 = vpack.c.b16 %v3439_v30, %v3438_v24  ;;  %v10438_v34 = vpack.c.b16 %v4579_v26, %v4578_v40 }
 0x390   : > { %v1867_v17 = vadd.f32 %v1866_v28, %v10202_v1  ;;  %v1955_v57 = vpop.f32.mrf.mxu1 }
 0x391   : > { %13611 = vst [vmem:[#allocation70_spill] sm:$0xff] %v10436_v36  ;;  %v2132_v9 = vadd.f32 %v2131_v54, %v2043_v39 }
 0x392   : > { %13612 = vst [vmem:[#allocation71_spill] sm:$0xff] %v10438_v34  ;;  %v1956_v14 = vadd.f32 %v1955_v57, %v1867_v17 }
 0x393   : > { %v3280_v46 = vpack.c.bf16 %v2132_v9, %v1954_v60 }
 0x395   : > { %v3440_v60 = vunpack.c.l.b16 %v3280_v46  ;;  %v4580_v40 = vunpack.c.h.b16 %v3280_v46 }
 0x396   : > { %v2044_v48 = vpop.f32.mrf.mxu2 }
 0x397   : > { %v2045_v51 = vadd.f32 %v2044_v48, %v10212_v47  ;;  %v2133_v35 = vpop.f32.mrf.mxu3  ;;  %v1869_v31 = vpop.f32.mrf.mxu0 }
 0x398   : > { %v1870_v7 = vadd.f32 %v1869_v31, %v10202_v1  ;;  %v1958_v53 = vpop.f32.mrf.mxu1 }
 0x399   : > { %v2134_v50 = vadd.f32 %v2133_v35, %v2045_v51 }
 0x39a   : > { %v1959_v22 = vadd.f32 %v1958_v53, %v1870_v7  ;;  %2376 = vmatmul.bf16.gmra.mxu0 %v10164_v15 }
 0x39b   : > { %v3281_v24 = vpack.c.bf16 %v2134_v50, %v1956_v14  ;;  %2465 = vmatmul.bf16.gmra.mxu1 %v10166_v52  ;;  %2554 = vmatmul.bf16.gmra.mxu2 %v10164_v15 }
 0x39c   : > { %2643 = vmatmul.bf16.gmra.mxu3 %v10166_v52 }
 0x39d   : > { %v3441_v30 = vunpack.c.l.b16 %v3281_v24  ;;  %v4581_v26 = vunpack.c.h.b16 %v3281_v24 }
 0x39e   : > { %v2047_v39 = vpop.f32.mrf.mxu2 }
 0x39f   : > { %v2048_v54 = vadd.f32 %v2047_v39, %v10212_v47  ;;  %v2136_v28 = vpop.f32.mrf.mxu3  ;;  %v1871_v17 = vpop.f32.mrf.mxu0  ;;  %v10448_v57 = vpack.c.b16 %v3441_v30, %v3440_v60  ;;  %v10450_v9 = vpack.c.b16 %v4581_v26, %v4580_v40 }
 0x3a0   : > { %v1872_v50 = vadd.f32 %v1871_v17, %v10202_v1  ;;  %v1960_v14 = vpop.f32.mrf.mxu1 }
 0x3a1   : > { %13613 = vst [vmem:[#allocation72_spill] sm:$0xff] %v10448_v57  ;;  %v2137_v48 = vadd.f32 %v2136_v28, %v2048_v54 }
 0x3a2   : > { %13614 = vst [vmem:[#allocation73_spill] sm:$0xff] %v10450_v9  ;;  %v1961_v51 = vadd.f32 %v1960_v14, %v1872_v50 }
 0x3a3   : > { %v3282_v35 = vpack.c.bf16 %v2137_v48, %v1959_v22 }
 0x3a5   : > { %v3442_v22 = vunpack.c.l.b16 %v3282_v35  ;;  %v4582_v40 = vunpack.c.h.b16 %v3282_v35 }
 0x3a6   : > { %v2049_v31 = vpop.f32.mrf.mxu2 }
 0x3a7   : > { %v2050_v46 = vadd.f32 %v2049_v31, %v10212_v47  ;;  %v2138_v7 = vpop.f32.mrf.mxu3  ;;  %v1874_v53 = vpop.f32.mrf.mxu0 }
 0x3a8   : > { %v1875_v24 = vadd.f32 %v1874_v53, %v10202_v1  ;;  %v1963_v39 = vpop.f32.mrf.mxu1 }
 0x3a9   : > { %v2139_v34 = vadd.f32 %v2138_v7, %v2050_v46 }
 0x3aa   : > { %v1964_v36 = vadd.f32 %v1963_v39, %v1875_v24  ;;  %2381 = vmatmul.bf16.gmra.mxu0 %v10172_v4 }
 0x3ab   : > { %v3283_v60 = vpack.c.bf16 %v2139_v34, %v1961_v51  ;;  %2470 = vmatmul.bf16.gmra.mxu1 %v10174_v16  ;;  %2559 = vmatmul.bf16.gmra.mxu2 %v10172_v4 }
 0x3ac   : > { %2648 = vmatmul.bf16.gmra.mxu3 %v10174_v16 }
 0x3ad   : > { %v3443_v30 = vunpack.c.l.b16 %v3283_v60  ;;  %v4583_v26 = vunpack.c.h.b16 %v3283_v60 }
 0x3ae   : > { %v2052_v54 = vpop.f32.mrf.mxu2 }
 0x3af   : > { %v2053_v28 = vadd.f32 %v2052_v54, %v10212_v47  ;;  %v2141_v17 = vpop.f32.mrf.mxu3  ;;  %v1876_v50 = vpop.f32.mrf.mxu0  ;;  %v10460_v14 = vpack.c.b16 %v3443_v30, %v3442_v22  ;;  %v10462_v48 = vpack.c.b16 %v4583_v26, %v4582_v40 }
 0x3b0   : > { %v1877_v34 = vadd.f32 %v1876_v50, %v10202_v1  ;;  %v1965_v51 = vpop.f32.mrf.mxu1 }
 0x3b1   : > { %13615 = vst [vmem:[#allocation74_spill] sm:$0xff] %v10460_v14  ;;  %v2142_v31 = vadd.f32 %v2141_v17, %v2053_v28 }
 0x3b2   : > { %13616 = vst [vmem:[#allocation75_spill] sm:$0xff] %v10462_v48  ;;  %v1966_v46 = vadd.f32 %v1965_v51, %v1877_v34 }
 0x3b3   : > { %v3284_v7 = vpack.c.bf16 %v2142_v31, %v1964_v36 }
 0x3b5   : > { %v3444_v36 = vunpack.c.l.b16 %v3284_v7  ;;  %v4584_v40 = vunpack.c.h.b16 %v3284_v7  ;;  %v7750_v7 = vld [vmem:[%s9653_s29 + $0x70] sm:$0xf] }
 0x3b6   : > { %v2054_v53 = vpop.f32.mrf.mxu2 }
 0x3b7   : > { %v2055_v35 = vadd.f32 %v2054_v53, %v10212_v47  ;;  %v2143_v24 = vpop.f32.mrf.mxu3  ;;  %v1879_v39 = vpop.f32.mrf.mxu0 }
 0x3b8   : > { %v1880_v60 = vadd.f32 %v1879_v39, %v10202_v1  ;;  %v1968_v54 = vpop.f32.mrf.mxu1  ;;  %v8199_v39 = vld [vmem:[%s9653_s29 + $0x74] sm:$0xf0] }
 0x3b9   : > { %v2144_v9 = vadd.f32 %v2143_v24, %v2055_v35 }
 0x3ba   : > { %v1969_v57 = vadd.f32 %v1968_v54, %v1880_v60  ;;  %2386 = vmatmul.bf16.gmra.mxu0 %v10180_v8  ;;  %v7814_v60 = vld [vmem:[%s9653_s29 + $0xf0] sm:$0xf]  ;;  %v7751_v54 = vor.u32 %v8199_v39, %v7750_v7 }
 0x3bb   : > { %v3285_v22 = vpack.c.bf16 %v2144_v9, %v1966_v46  ;;  %2475 = vmatmul.bf16.gmra.mxu1 %v10182_v32  ;;  %2564 = vmatmul.bf16.gmra.mxu2 %v10180_v8 }
 0x3bc   : > { %2653 = vmatmul.bf16.gmra.mxu3 %v10182_v32  ;;  %2902 = vmatpush.bf16.msra.mxu0 %v7751_v54 }
 0x3bd   : > { %v3445_v30 = vunpack.c.l.b16 %v3285_v22  ;;  %v4585_v26 = vunpack.c.h.b16 %v3285_v22  ;;  %v8215_v22 = vld [vmem:[%s9653_s29 + $0xf4] sm:$0xf0] }
 0x3be   : > { %v2057_v28 = vpop.f32.mrf.mxu2  ;;  %v7815_v14 = vor.u32 %v8215_v22, %v7814_v60 }
 0x3bf   : > { %v2058_v17 = vadd.f32 %v2057_v28, %v10212_v47  ;;  %v2146_v50 = vpop.f32.mrf.mxu3  ;;  %v1881_v34 = vpop.f32.mrf.mxu0  ;;  %v10472_v9 = vpack.c.b16 %v3445_v30, %v3444_v36  ;;  %v10474_v51 = vpack.c.b16 %v4585_v26, %v4584_v40 }
 0x3c0   : > { %v1882_v31 = vadd.f32 %v1881_v34, %v10202_v1  ;;  %v1970_v46 = vpop.f32.mrf.mxu1  ;;  %2991 = vmatpush.bf16.msra.mxu1 %v7815_v14 }
 0x3c1   : > { %13617 = vst [vmem:[#allocation76_spill] sm:$0xff] %v10472_v9  ;;  %v2147_v53 = vadd.f32 %v2146_v50, %v2058_v17 }
 0x3c2   : > { %13618 = vst [vmem:[#allocation77_spill] sm:$0xff] %v10474_v51  ;;  %v1971_v35 = vadd.f32 %v1970_v46, %v1882_v31 }
 0x3c3   : > { %v3286_v24 = vpack.c.bf16 %v2147_v53, %v1969_v57 }
 0x3c5   : > { %v3446_v50 = vunpack.c.l.b16 %v3286_v24 }
 0x3c6   : > { %v2059_v48 = vpop.f32.mrf.mxu2 }
 0x3c7   : > { %v2060_v28 = vadd.f32 %v2059_v48, %v10212_v47  ;;  %v2148_v38 = vpop.f32.mrf.mxu3  ;;  %v1884_v36 = vpop.f32.mrf.mxu0  ;;  %v4586_v48 = vunpack.c.h.b16 %v3286_v24 }
 0x3c8   : > { %v1885_v40 = vadd.f32 %v1884_v36, %v10202_v1  ;;  %v1973_v30 = vpop.f32.mrf.mxu1 }
 0x3c9   : > { %v2149_v26 = vadd.f32 %v2148_v38, %v2060_v28 }
 0x3ca   : > { %v1974_v17 = vadd.f32 %v1973_v30, %v1885_v40  ;;  %2391 = vmatmul.bf16.gmra.mxu0 %v10191_v20 }
 0x3cb   : > { %v3287_v57 = vpack.c.bf16 %v2149_v26, %v1971_v35  ;;  %2480 = vmatmul.bf16.gmra.mxu1 %v10194_v25  ;;  %2569 = vmatmul.bf16.gmra.mxu2 %v10191_v20 }
 0x3cc   : > { %2658 = vmatmul.bf16.gmra.mxu3 %v10194_v25 }
 0x3cd   : > { %v3447_v34 = vunpack.c.l.b16 %v3287_v57  ;;  %v4587_v31 = vunpack.c.h.b16 %v3287_v57 }
 0x3ce   : > { %v2062_v46 = vpop.f32.mrf.mxu2 }
 0x3cf   : > { %v2063_v53 = vadd.f32 %v2062_v46, %v10212_v47  ;;  %v2151_v7 = vpop.f32.mrf.mxu3  ;;  %v1886_v14 = vpop.f32.mrf.mxu0  ;;  %v10488_v38 = vpack.c.b16 %v3447_v34, %v3446_v50  ;;  %v10490_v39 = vpack.c.b16 %v4587_v31, %v4586_v48 }
 0x3d0   : > { %v1887_v35 = vadd.f32 %v1886_v14, %v10202_v1  ;;  %v1975_v60 = vpop.f32.mrf.mxu1 }
 0x3d1   : > { %13619 = vst [vmem:[#allocation78_spill] sm:$0xff] %v10488_v38  ;;  %v2152_v54 = vadd.f32 %v2151_v7, %v2063_v53 }
 0x3d2   : > { %13620 = vst [vmem:[#allocation79_spill] sm:$0xff] %v10490_v39  ;;  %v1976_v22 = vadd.f32 %v1975_v60, %v1887_v35 }
 0x3d3   : > { %v3288_v28 = vpack.c.bf16 %v2152_v54, %v1974_v17 }
 0x3d5   : > { %v3448_v1 = vunpack.c.l.b16 %v3288_v28  ;;  %v4588_v17 = vunpack.c.h.b16 %v3288_v28 }
 0x3d6   : > { %v2064_v36 = vpop.f32.mrf.mxu2 }
 0x3d7   : > { %v2065_v24 = vadd.f32 %v2064_v36, %v10212_v47  ;;  %v2153_v40 = vpop.f32.mrf.mxu3  ;;  %v2357_v30 = vpop.f32.mrf.mxu0  ;;  %v7742_v36 = vld [vmem:[%s9653_s29 + $0x60] sm:$0xf] }
 0x3d8   : > { %v2446_v26 = vpop.f32.mrf.mxu1 }
 0x3d9   : > { %v2154_v57 = vadd.f32 %v2153_v40, %v2065_v24  ;;  %v2447_v46 = vadd.f32 %v2446_v26, %v2357_v30  ;;  %v8197_v24 = vld [vmem:[%s9653_s29 + $0x64] sm:$0xf0]  ;;  %v7806_v40 = vld [vmem:[%s9653_s29 + $0xe0] sm:$0xf] }
 0x3da   : > { %2396 = vmatmul.bf16.gmra.mxu0 %v10204_v59  ;;  %v7743_v30 = vor.u32 %v8197_v24, %v7742_v36  ;;  %v8213_v26 = vld [vmem:[%s9653_s29 + $0xe4] sm:$0xf0] }
 0x3db   : > { %v3289_v50 = vpack.c.bf16 %v2154_v57, %v1976_v22  ;;  %2485 = vmatmul.bf16.gmra.mxu1 %v10206_v56  ;;  %2574 = vmatmul.bf16.gmra.mxu2 %v10204_v59  ;;  %v7807_v57 = vor.u32 %v8213_v26, %v7806_v40 }
 0x3dc   : > { %2663 = vmatmul.bf16.gmra.mxu3 %v10206_v56  ;;  %2903 = vmatpush.bf16.msra.mxu0 %v7743_v30 }
 0x3dd   : > { %v3449_v47 = vunpack.c.l.b16 %v3289_v50  ;;  %v4589_v48 = vunpack.c.h.b16 %v3289_v50  ;;  %2992 = vmatpush.bf16.msra.mxu1 %v7807_v57 }
 0x3de   : > { %v2535_v34 = vpop.f32.mrf.mxu2 }
 0x3df   : > { %v2624_v31 = vpop.f32.mrf.mxu3  ;;  %v2359_v53 = vpop.f32.mrf.mxu0  ;;  %v10498_v7 = vpack.c.b16 %v3449_v47, %v3448_v1  ;;  %v10500_v14 = vpack.c.b16 %v4589_v48, %v4588_v17 }
 0x3e0   : > { %v2625_v35 = vadd.f32 %v2624_v31, %v2535_v34  ;;  %v2448_v60 = vpop.f32.mrf.mxu1 }
 0x3e1   : > { %13621 = vst [vmem:[#allocation80_spill] sm:$0xff] %v10498_v7  ;;  %v2449_v54 = vadd.f32 %v2448_v60, %v2359_v53 }
 0x3e2   : > { %13622 = vst [vmem:[#allocation81_spill] sm:$0xff] %v10500_v14  ;;  %v3290_v22 = vpack.c.bf16 %v2625_v35, %v2447_v46 }
 0x3e4   : > { %v3514_v46 = vunpack.c.l.b16 %v3290_v22  ;;  %v4622_v47 = vunpack.c.h.b16 %v3290_v22 }
 0x3e6   : > { %v2537_v28 = vpop.f32.mrf.mxu2 }
 0x3e7   : > { %v2626_v39 = vpop.f32.mrf.mxu3  ;;  %v2362_v50 = vpop.f32.mrf.mxu0 }
 0x3e8   : > { %v2627_v51 = vadd.f32 %v2626_v39, %v2537_v28  ;;  %v2451_v38 = vpop.f32.mrf.mxu1 }
 0x3e9   : > { %v2452_v1 = vadd.f32 %v2451_v38, %v2362_v50 }
 0x3ea   : > { %v3291_v17 = vpack.c.bf16 %v2627_v51, %v2449_v54  ;;  %2401 = vmatmul.bf16.gmra.mxu0 %v10220_v13 }
 0x3eb   : > { %2490 = vmatmul.bf16.gmra.mxu1 %v10224_v2  ;;  %2579 = vmatmul.bf16.gmra.mxu2 %v10220_v13 }
 0x3ec   : > { %v3515_v48 = vunpack.c.l.b16 %v3291_v17  ;;  %v4623_v34 = vunpack.c.h.b16 %v3291_v17  ;;  %2668 = vmatmul.bf16.gmra.mxu3 %v10224_v2 }
 0x3ee   : > { %v2540_v31 = vpop.f32.mrf.mxu2  ;;  %v10510_v53 = vpack.c.b16 %v3515_v48, %v3514_v46  ;;  %v10512_v39 = vpack.c.b16 %v4623_v34, %v4622_v47 }
 0x3ef   : > { %v2629_v35 = vpop.f32.mrf.mxu3  ;;  %v2364_v38 = vpop.f32.mrf.mxu0 }
 0x3f0   : > { %v2630_v51 = vadd.f32 %v2629_v35, %v2540_v31  ;;  %v2453_v60 = vpop.f32.mrf.mxu1 }
 0x3f1   : > { %v2454_v54 = vadd.f32 %v2453_v60, %v2364_v38 }
 0x3f2   : > { %v3292_v36 = vpack.c.bf16 %v2630_v51, %v2452_v1 }
 0x3f4   : > { %v3516_v50 = vunpack.c.l.b16 %v3292_v36  ;;  %v4624_v17 = vunpack.c.h.b16 %v3292_v36 }
 0x3f6   : > { %v2542_v24 = vpop.f32.mrf.mxu2 }
 0x3f7   : > { %v2631_v40 = vpop.f32.mrf.mxu3  ;;  %v2367_v30 = vpop.f32.mrf.mxu0 }
 0x3f8   : > { %v2632_v26 = vadd.f32 %v2631_v40, %v2542_v24  ;;  %v2456_v22 = vpop.f32.mrf.mxu1  ;;  %v7734_v24 = vld [vmem:[%s9653_s29 + $0x50] sm:$0xf]  ;;  %v8195_v40 = vld [vmem:[%s9653_s29 + $0x54] sm:$0xf0] }
 0x3f9   : > { %v2457_v28 = vadd.f32 %v2456_v22, %v2367_v30  ;;  %v7798_v30 = vld [vmem:[%s9653_s29 + $0xd0] sm:$0xf]  ;;  %v7735_v36 = vor.u32 %v8195_v40, %v7734_v24 }
 0x3fa   : > { %v3293_v57 = vpack.c.bf16 %v2632_v26, %v2454_v54  ;;  %2406 = vmatmul.bf16.gmra.mxu0 %v10237_v44  ;;  %v8211_v26 = vld [vmem:[%s9653_s29 + $0xd4] sm:$0xf0] }
 0x3fb   : > { %2495 = vmatmul.bf16.gmra.mxu1 %v10240_v61  ;;  %2584 = vmatmul.bf16.gmra.mxu2 %v10237_v44 }
 0x3fc   : > { %v3517_v46 = vunpack.c.l.b16 %v3293_v57  ;;  %v4625_v1 = vunpack.c.h.b16 %v3293_v57  ;;  %2673 = vmatmul.bf16.gmra.mxu3 %v10240_v61  ;;  %v7799_v57 = vor.u32 %v8211_v26, %v7798_v30  ;;  %2904 = vmatpush.bf16.msra.mxu0 %v7735_v36 }
 0x3fe   : > { %v2545_v47 = vpop.f32.mrf.mxu2  ;;  %v10518_v48 = vpack.c.b16 %v3517_v46, %v3516_v50  ;;  %v10520_v34 = vpack.c.b16 %v4625_v1, %v4624_v17  ;;  %2993 = vmatpush.bf16.msra.mxu1 %v7799_v57 }
 0x3ff   : > { %v2634_v31 = vpop.f32.mrf.mxu3  ;;  %v2369_v35 = vpop.f32.mrf.mxu0 }
 0x400   : > { %v2635_v38 = vadd.f32 %v2634_v31, %v2545_v47  ;;  %v2458_v51 = vpop.f32.mrf.mxu1 }
 0x401   : > { %v2459_v60 = vadd.f32 %v2458_v51, %v2369_v35 }
 0x402   : > { %v3294_v54 = vpack.c.bf16 %v2635_v38, %v2457_v28 }
 0x404   : > { %v3518_v28 = vunpack.c.l.b16 %v3294_v54  ;;  %v4626_v47 = vunpack.c.h.b16 %v3294_v54 }
 0x406   : > { %v2547_v22 = vpop.f32.mrf.mxu2 }
 0x407   : > { %v2636_v14 = vpop.f32.mrf.mxu3  ;;  %v2372_v7 = vpop.f32.mrf.mxu0 }
 0x408   : > { %v2637_v50 = vadd.f32 %v2636_v14, %v2547_v22  ;;  %v2461_v46 = vpop.f32.mrf.mxu1 }
 0x409   : > { %v2462_v17 = vadd.f32 %v2461_v46, %v2372_v7 }
 0x40a   : > { %v3295_v1 = vpack.c.bf16 %v2637_v50, %v2459_v60  ;;  %2411 = vmatmul.bf16.gmra.mxu0 %v10260_v37 }
 0x40b   : > { %2500 = vmatmul.bf16.gmra.mxu1 %v10264_v42  ;;  %2589 = vmatmul.bf16.gmra.mxu2 %v10260_v37 }
 0x40c   : > { %v3519_v31 = vunpack.c.l.b16 %v3295_v1  ;;  %v4627_v35 = vunpack.c.h.b16 %v3295_v1  ;;  %2678 = vmatmul.bf16.gmra.mxu3 %v10264_v42 }
 0x40e   : > { %v2550_v38 = vpop.f32.mrf.mxu2  ;;  %v10530_v51 = vpack.c.b16 %v3519_v31, %v3518_v28  ;;  %v10532_v14 = vpack.c.b16 %v4627_v35, %v4626_v47  ;;  %v8198_v28 = vld [vmem:[%s9653_s29 + $0x74] sm:$0xf]  ;;  %v7752_v47 = vld [vmem:[%s9653_s29 + $0x78] sm:$0xf0] }
 0x40f   : > { %v2639_v7 = vpop.f32.mrf.mxu3  ;;  %v2374_v60 = vpop.f32.mrf.mxu0 }
 0x410   : > { %v2640_v24 = vadd.f32 %v2639_v7, %v2550_v38  ;;  %v2463_v40 = vpop.f32.mrf.mxu1 }
 0x411   : > { %v2464_v30 = vadd.f32 %v2463_v40, %v2374_v60  ;;  %v8214_v60 = vld [vmem:[%s9653_s29 + $0xf4] sm:$0xf] }
 0x412   : > { %v3296_v36 = vpack.c.bf16 %v2640_v24, %v2462_v17  ;;  %v7755_v17 = vor.u32 %v8198_v28, %v7752_v47  ;;  %v7816_v24 = vld [vmem:[%s9653_s29 + $0xf8] sm:$0xf0] }
 0x413   : > { %v7819_v40 = vor.u32 %v8214_v60, %v7816_v24  ;;  %v7808_v60 = vld [vmem:[%s9653_s29 + $0xe8] sm:$0xf0] }
 0x414   : > { %v3520_v31 = vunpack.c.l.b16 %v3296_v36  ;;  %v4628_v35 = vunpack.c.h.b16 %v3296_v36  ;;  %3080 = vmatpush.bf16.msra.mxu2 %v7755_v17  ;;  %v8212_v17 = vld [vmem:[%s9653_s29 + $0xe4] sm:$0xf] }
 0x415   : > { %3169 = vmatpush.bf16.msra.mxu3 %v7819_v40  ;;  %v7726_v40 = vld [vmem:[%s9653_s29 + $0x40] sm:$0xf] }
 0x416   : > { %v2552_v26 = vpop.f32.mrf.mxu2 }
 0x417   : > { %v2641_v22 = vpop.f32.mrf.mxu3  ;;  %v2377_v54 = vpop.f32.mrf.mxu0 }
 0x418   : > { %v2642_v57 = vadd.f32 %v2641_v22, %v2552_v26  ;;  %v2466_v50 = vpop.f32.mrf.mxu1  ;;  %v8196_v26 = vld [vmem:[%s9653_s29 + $0x64] sm:$0xf]  ;;  %v7744_v22 = vld [vmem:[%s9653_s29 + $0x68] sm:$0xf0] }
 0x419   : > { %v2467_v46 = vadd.f32 %v2466_v50, %v2377_v54 }
 0x41a   : > { %v3297_v1 = vpack.c.bf16 %v2642_v57, %v2464_v30  ;;  %2416 = vmatmul.bf16.gmra.mxu0 %v10277_v27 }
 0x41b   : > { %2505 = vmatmul.bf16.gmra.mxu1 %v10280_v0  ;;  %2594 = vmatmul.bf16.gmra.mxu2 %v10277_v27 }
 0x41c   : > { %v3521_v38 = vunpack.c.l.b16 %v3297_v1  ;;  %v4629_v7 = vunpack.c.h.b16 %v3297_v1  ;;  %2683 = vmatmul.bf16.gmra.mxu3 %v10280_v0  ;;  %v7747_v1 = vor.u32 %v8196_v26, %v7744_v22  ;;  %v7790_v26 = vld [vmem:[%s9653_s29 + $0xc0] sm:$0xf]  ;;  %v8209_v22 = vld [vmem:[%s9653_s29 + $0xc4] sm:$0xf0] }
 0x41e   : > { %v2555_v30 = vpop.f32.mrf.mxu2  ;;  %v10544_v54 = vpack.c.b16 %v3521_v38, %v3520_v31  ;;  %v10546_v57 = vpack.c.b16 %v4629_v7, %v4628_v35  ;;  %3081 = vmatpush.bf16.msra.mxu2 %v7747_v1  ;;  %v7811_v31 = vor.u32 %v8212_v17, %v7808_v60  ;;  %v8194_v35 = vld [vmem:[%s9653_s29 + $0x54] sm:$0xf]  ;;  %v7736_v7 = vld [vmem:[%s9653_s29 + $0x58] sm:$0xf0]  ;;  %v7791_v1 = vor.u32 %v8209_v22, %v7790_v26  ;;  %v7718_v26 = vld [vmem:[%s9653_s29 + $0x30] sm:$0xf] }
 0x41f   : > { %v2644_v36 = vpop.f32.mrf.mxu3  ;;  %v2379_v50 = vpop.f32.mrf.mxu0  ;;  %v7739_v9 = vor.u32 %v8194_v35, %v7736_v7  ;;  %v8191_v22 = vld [vmem:[%s9653_s29 + $0x34] sm:$0xf0] }
 0x420   : > { %v2645_v28 = vadd.f32 %v2644_v36, %v2555_v30  ;;  %v2468_v47 = vpop.f32.mrf.mxu1  ;;  %3170 = vmatpush.bf16.msra.mxu3 %v7811_v31  ;;  %v7727_v30 = vor.u32 %v8193_v21, %v7726_v40  ;;  %v8210_v36 = vld [vmem:[%s9653_s29 + $0xd4] sm:$0xf]  ;;  %2994 = vmatpush.bf16.msra.mxu1 %v7791_v1  ;;  %v7719_v1 = vor.u32 %v8191_v22, %v7718_v26  ;;  %v7710_v22 = vld [vmem:[%s9653_s29 + $0x20] sm:$0xf] }
 0x421   : > { %v2469_v24 = vadd.f32 %v2468_v47, %v2379_v50  ;;  %v7803_v47 = vor.u32 %v8210_v36, %v7800_v19  ;;  %v7792_v19 = vld [vmem:[%s9653_s29 + $0xc8] sm:$0xf0] }
 0x422   : > { %v3298_v38 = vpack.c.bf16 %v2645_v28, %v2467_v46  ;;  %3082 = vmatpush.bf16.msra.mxu2 %v7739_v9  ;;  %v8192_v46 = vld [vmem:[%s9653_s29 + $0x44] sm:$0xf]  ;;  %v7728_v28 = vld [vmem:[%s9653_s29 + $0x48] sm:$0xf0]  ;;  %2905 = vmatpush.bf16.msra.mxu0 %v7727_v30  ;;  %v7782_v30 = vld [vmem:[%s9653_s29 + $0xb0] sm:$0xf] }
 0x423   : > { %v7731_v31 = vor.u32 %v8192_v46, %v7728_v28  ;;  %v8208_v9 = vld [vmem:[%s9653_s29 + $0xc4] sm:$0xf]  ;;  %v8190_v46 = vld [vmem:[%s9653_s29 + $0x34] sm:$0xf]  ;;  %v7720_v28 = vld [vmem:[%s9653_s29 + $0x38] sm:$0xf0] }
 0x424   : > { %3171 = vmatpush.bf16.msra.mxu3 %v7803_v47  ;;  %v7795_v7 = vor.u32 %v8208_v9, %v7792_v19  ;;  %v3522_v36 = vunpack.c.l.b16 %v3298_v38  ;;  %v8207_v47 = vld [vmem:[%s9653_s29 + $0xb4] sm:$0xf0]  ;;  %v8206_v9 = vld [vmem:[%s9653_s29 + $0xb4] sm:$0xf] }
 0x426   : > { %v2557_v50 = vpop.f32.mrf.mxu2  ;;  %3083 = vmatpush.bf16.msra.mxu2 %v7731_v31  ;;  %v7783_v31 = vor.u32 %v8207_v47, %v7782_v30  ;;  %2906 = vmatpush.bf16.msra.mxu0 %v7719_v1 }
 0x427   : > { %v2646_v17 = vpop.f32.mrf.mxu3  ;;  %v10560_v60 = vpop.f32.mrf.mxu0 }
 0x428   : > { %v2647_v21 = vadd.f32 %v2646_v17, %v2557_v50  ;;  %v10562_v35 = vpop.f32.mrf.mxu1  ;;  %v4630_v50 = vunpack.c.h.b16 %v3298_v38  ;;  %v7784_v38 = vld [vmem:[%s9653_s29 + $0xb8] sm:$0xf0]  ;;  %3172 = vmatpush.bf16.msra.mxu3 %v7795_v7  ;;  %2995 = vmatpush.bf16.msra.mxu1 %v7783_v31  ;;  %v7712_v31 = vld [vmem:[%s9653_s29 + $0x28] sm:$0xf0] }
 0x429   : > { %v7787_v19 = vor.u32 %v8206_v9, %v7784_v38  ;;  %v7702_v38 = vld [vmem:[%s9653_s29 + $0x10] sm:$0xf] }
 0x42a   : > { %v3299_v40 = vpack.c.bf16 %v2647_v21, %v2469_v24  ;;  %2421 = vmatmul.bf16.gmra.mxu0 %v10306_v43  ;;  %v7723_v21 = vor.u32 %v8190_v46, %v7720_v28  ;;  %v8205_v46 = vld [vmem:[%s9653_s29 + $0xa4] sm:$0xf0]  ;;  %v8188_v28 = vld [vmem:[%s9653_s29 + $0x24] sm:$0xf] }
 0x42b   : > { %2510 = vmatmul.bf16.gmra.mxu1 %v10312_v10  ;;  %2599 = vmatmul.bf16.gmra.mxu2 %v10306_v43 }
 0x42c   : > { %v3523_v24 = vunpack.c.l.b16 %v3299_v40  ;;  %v4631_v17 = vunpack.c.h.b16 %v3299_v40  ;;  %2688 = vmatmul.bf16.gmra.mxu3 %v10312_v10  ;;  %3084 = vmatpush.bf16.msra.mxu2 %v7723_v21  ;;  %v8189_v40 = vld [vmem:[%s9653_s29 + $0x24] sm:$0xf0]  ;;  %v8186_v10 = vld [vmem:[%s9653_s29 + $0x14] sm:$0xf] }
 0x42d   : > { %v7711_v1 = vor.u32 %v8189_v40, %v7710_v22  ;;  %3173 = vmatpush.bf16.msra.mxu3 %v7787_v19  ;;  %v8187_v22 = vld [vmem:[%s9653_s29 + $0x14] sm:$0xf0]  ;;  %v7766_v40 = vld [vmem:[%s9653_s29 + $0x90] sm:$0xf]  ;;  %v7768_v19 = vld [vmem:[%s9653_s29 + $0x98] sm:$0xf0] }
 0x42e   : > { %v10578_v26 = vpop.f32.mrf.mxu2  ;;  %v10583_v45 = vpack.c.b16 %v3523_v24, %v3522_v36  ;;  %v10585_v30 = vpack.c.b16 %v4631_v17, %v4630_v50  ;;  %v7775_v36 = vor.u32 %v8205_v46, %v7774_v33  ;;  %v7715_v24 = vor.u32 %v8188_v28, %v7712_v31  ;;  %v8204_v50 = vld [vmem:[%s9653_s29 + $0xa4] sm:$0xf]  ;;  %v7776_v17 = vld [vmem:[%s9653_s29 + $0xa8] sm:$0xf0]  ;;  %v7704_v33 = vld [vmem:[%s9653_s29 + $0x18] sm:$0xf0] }
 0x42f   : > { %v10587_v47 = vpop.f32.mrf.mxu3  ;;  %v10589_v7 = vpop.f32.mrf.mxu0  ;;  %2907 = vmatpush.bf16.msra.mxu0 %v7711_v1  ;;  %v7779_v9 = vor.u32 %v8204_v50, %v7776_v17  ;;  %v7703_v49 = vor.u32 %v8187_v22, %v7702_v38  ;;  %v7767_v46 = vor.u32 %v8203_v18, %v7766_v40  ;;  %v7707_v28 = vor.u32 %v8186_v10, %v7704_v33  ;;  %v8202_v31 = vld [vmem:[%s9653_s29 + $0x94] sm:$0xf]  ;;  %v8185_v50 = vld [vmem:[%s9653_s29 + $0x4] sm:$0xf0]  ;;  %v7758_v17 = vld [vmem:[%s9653_s29 + $0x80] sm:$0xf] }
 0x430   : > { %v10594_v21 = vpop.f32.mrf.mxu1  ;;  %2996 = vmatpush.bf16.msra.mxu1 %v7775_v36  ;;  %3085 = vmatpush.bf16.msra.mxu2 %v7715_v24  ;;  %v7771_v1 = vor.u32 %v8202_v31, %v7768_v19  ;;  %v7694_v24 = vld [vmem:[%s9653_s29] sm:$0xf]  ;;  %v8201_v22 = vld [vmem:[%s9653_s29 + $0x84] sm:$0xf0]  ;;  %v8184_v40 = vld [vmem:[%s9653_s29 + $0x4] sm:$0xf] }
 0x431   : > { %3174 = vmatpush.bf16.msra.mxu3 %v7779_v9  ;;  %v7695_v10 = vor.u32 %v8185_v50, %v7694_v24  ;;  %v7696_v33 = vld [vmem:[%s9653_s29 + $0x8] sm:$0xf0]  ;;  %v7759_v9 = vor.u32 %v8201_v22, %v7758_v17  ;;  %v8200_v31 = vld [vmem:[%s9653_s29 + $0x84] sm:$0xf] }
 0x432   : > { %v7760_v19 = vld [vmem:[%s9653_s29 + $0x88] sm:$0xf0] }
 0x433   : > { %2908 = vmatpush.bf16.msra.mxu0 %v7703_v49  ;;  %v7699_v49 = vor.u32 %v8184_v40, %v7696_v33  ;;  %v7763_v0 = vor.u32 %v8200_v31, %v7760_v19 }
 0x434   : > { %2997 = vmatpush.bf16.msra.mxu1 %v7767_v46  ;;  %3086 = vmatpush.bf16.msra.mxu2 %v7707_v28 }
 0x435   : > { %3175 = vmatpush.bf16.msra.mxu3 %v7771_v1 }
 0x436   : > { %v10606_v36 = vpop.f32.mrf.mxu2 }
 0x437   : > { %v10611_v38 = vpop.f32.mrf.mxu3  ;;  %v2387_v18 = vpop.f32.mrf.mxu0  ;;  %2909 = vmatpush.bf16.msra.mxu0 %v7695_v10 }
 0x438   : > { %v2476_v43 = vpop.f32.mrf.mxu1  ;;  %2998 = vmatpush.bf16.msra.mxu1 %v7759_v9  ;;  %3087 = vmatpush.bf16.msra.mxu2 %v7699_v49 }
 0x439   : > { %3176 = vmatpush.bf16.msra.mxu3 %v7763_v0 }
 0x43a   : > { %2426 = vmatmul.bf16.gmra.mxu0 %v10353_v3 }
 0x43b   : > { %2515 = vmatmul.bf16.gmra.mxu1 %v10359_v62  ;;  %2604 = vmatmul.bf16.gmra.mxu2 %v10353_v3 }
 0x43c   : > { %2693 = vmatmul.bf16.gmra.mxu3 %v10359_v62 }
 0x43e   : > { %v2565_v46 = vpop.f32.mrf.mxu2 }
 0x43f   : > { %v2654_v28 = vpop.f32.mrf.mxu3  ;;  %v2389_v24 = vpop.f32.mrf.mxu0 }
 0x440   : > { %v2478_v50 = vpop.f32.mrf.mxu1 }
 0x446   : > { %v2567_v17 = vpop.f32.mrf.mxu2 }
 0x447   : > { %v2656_v22 = vpop.f32.mrf.mxu3  ;;  %v2392_v1 = vpop.f32.mrf.mxu0 }
 0x448   : > { %v2481_v10 = vpop.f32.mrf.mxu1  ;;  %v2657_v2 = vadd.f32 %v2656_v22, %v2567_v17 }
 0x449   : > { %v2482_v31 = vadd.f32 %v2481_v10, %v2392_v1  ;;  %v2479_v1 = vadd.f32 %v2478_v50, %v2389_v24 }
 0x44a   : > { %2431 = vmatmul.bf16.gmra.mxu0 %v10377_v6 }
 0x44b   : > { %2520 = vmatmul.bf16.gmra.mxu1 %v10380_v29  ;;  %2609 = vmatmul.bf16.gmra.mxu2 %v10377_v6 }
 0x44c   : > { %2698 = vmatmul.bf16.gmra.mxu3 %v10380_v29 }
 0x44e   : > { %v2570_v40 = vpop.f32.mrf.mxu2 }
 0x44f   : > { %v2659_v33 = vpop.f32.mrf.mxu3  ;;  %v2394_v9 = vpop.f32.mrf.mxu0 }
 0x450   : > { %v2483_v0 = vpop.f32.mrf.mxu1  ;;  %v2660_v49 = vadd.f32 %v2659_v33, %v2570_v40  ;;  %v2655_v40 = vadd.f32 %v2654_v28, %v2565_v46  ;;  %v2652_v28 = vadd.f32 %v10611_v38, %v10606_v36 }
 0x451   : > { %v2484_v42 = vadd.f32 %v2483_v0, %v2394_v9  ;;  %v10636_v9 = vpack.c.bf16 %v2657_v2, %v2479_v1  ;;  %v2474_v2 = vadd.f32 %v10594_v21, %v10589_v7 }
 0x452   : > { %v10626_v27 = vpack.c.bf16 %v2660_v49, %v2482_v31 }
 0x453   : > { %v3527_v24 = vunpack.c.l.b16 %v10636_v9  ;;  %v10650_v0 = vpack.c.bf16 %v2652_v28, %v2474_v2 }
 0x454   : > { %v3528_v10 = vunpack.c.l.b16 %v10626_v27 }
 0x456   : > { %v2572_v19 = vpop.f32.mrf.mxu2 }
 0x457   : > { %v2661_v62 = vpop.f32.mrf.mxu3  ;;  %v2397_v3 = vpop.f32.mrf.mxu0 }
 0x458   : > { %v2662_v37 = vadd.f32 %v2661_v62, %v2572_v19  ;;  %v2486_v61 = vpop.f32.mrf.mxu1  ;;  %v2477_v62 = vadd.f32 %v2476_v43, %v2387_v18  ;;  %v2472_v18 = vadd.f32 %v10562_v35, %v10560_v60 }
 0x459   : > { %v2487_v44 = vadd.f32 %v2486_v61, %v2397_v3 }
 0x45a   : > { %v10628_v13 = vpack.c.bf16 %v2662_v37, %v2484_v42  ;;  %2910 = vmatmul.bf16.vlgmr.msra.gmra.mxu0 %v10132_v55  ;;  %v10638_v17 = vpack.c.bf16 %v2655_v40, %v2477_v62 }
 0x45b   : > { %2999 = vmatmul.bf16.vlgmr.msra.gmra.mxu1 %v10134_v41  ;;  %3088 = vmatmul.bf16.vlgmr.msra.gmra.mxu2 %v10132_v55 }
 0x45c   : > { %v3529_v33 = vunpack.c.l.b16 %v10628_v13  ;;  %3177 = vmatmul.bf16.vlgmr.msra.gmra.mxu3 %v10134_v41  ;;  %v2650_v41 = vadd.f32 %v10587_v47, %v10578_v26  ;;  %v3526_v43 = vunpack.c.l.b16 %v10638_v17  ;;  %v3525_v47 = vunpack.c.l.b16 %v10650_v0 }
 0x45e   : > { %v2575_v61 = vpop.f32.mrf.mxu2  ;;  %v3553_v37 = vpack.c.b16 %v3529_v33, %v3528_v10  ;;  %v3552_v31 = vpack.c.b16 %v3527_v24, %v3526_v43  ;;  %v10652_v19 = vpack.c.bf16 %v2650_v41, %v2472_v18 }
 0x45f   : > { %v2664_v42 = vpop.f32.mrf.mxu3  ;;  %v2399_v3 = vpop.f32.mrf.mxu0 }
 0x460   : > { %v2665_v22 = vadd.f32 %v2664_v42, %v2575_v61  ;;  %3578 = vmatpush.bf16.xpose.msrb.mxu0 %v3553_v37  ;;  %v2488_v55 = vpop.f32.mrf.mxu1  ;;  %v3524_v21 = vunpack.c.l.b16 %v10652_v19 }
 0x461   : > { %v2489_v46 = vadd.f32 %v2488_v55, %v2399_v3 }
 0x462   : > { %v3306_v50 = vpack.c.bf16 %v2665_v22, %v2487_v44  ;;  %v3551_v62 = vpack.c.b16 %v3525_v47, %v3524_v21 }
 0x464   : > { %v3530_v60 = vunpack.c.l.b16 %v3306_v50  ;;  %v4638_v35 = vunpack.c.h.b16 %v3306_v50 }
 0x466   : > { %v2577_v49 = vpop.f32.mrf.mxu2 }
 0x467   : > { %v2666_v36 = vpop.f32.mrf.mxu3  ;;  %v2402_v38 = vpop.f32.mrf.mxu0 }
 0x468   : > { %v2667_v44 = vadd.f32 %v2666_v36, %v2577_v49  ;;  %3579 = vmatpush.bf16.xpose.msrb.mxu0 %v3552_v31  ;;  %v2491_v40 = vpop.f32.mrf.mxu1 }
 0x469   : > { %v2492_v26 = vadd.f32 %v2491_v40, %v2402_v38 }
 0x46a   : > { %v3307_v7 = vpack.c.bf16 %v2667_v44, %v2489_v46  ;;  %2915 = vmatmul.bf16.gmra.mxu0 %v10140_v12 }
 0x46b   : > { %3004 = vmatmul.bf16.gmra.mxu1 %v10142_v11  ;;  %3093 = vmatmul.bf16.gmra.mxu2 %v10140_v12 }
 0x46c   : > { %v3531_v1 = vunpack.c.l.b16 %v3307_v7  ;;  %v4639_v10 = vunpack.c.h.b16 %v3307_v7  ;;  %3182 = vmatmul.bf16.gmra.mxu3 %v10142_v11 }
 0x46e   : > { %v2580_v33 = vpop.f32.mrf.mxu2  ;;  %v10660_v61 = vpack.c.b16 %v3531_v1, %v3530_v60  ;;  %v10662_v37 = vpack.c.b16 %v4639_v10, %v4638_v35 }
 0x46f   : > { %v2669_v42 = vpop.f32.mrf.mxu3  ;;  %v2404_v3 = vpop.f32.mrf.mxu0 }
 0x470   : > { %v2670_v22 = vadd.f32 %v2669_v42, %v2580_v33  ;;  %3580 = vmatpush.bf16.xpose.msrb.mxu0 %v3551_v62  ;;  %v2493_v55 = vpop.f32.mrf.mxu1 }
 0x471   : > { %v2494_v46 = vadd.f32 %v2493_v55, %v2404_v3 }
 0x472   : > { %v3308_v28 = vpack.c.bf16 %v2670_v22, %v2492_v26 }
 0x474   : > { %v3532_v18 = vunpack.c.l.b16 %v3308_v28  ;;  %v4640_v49 = vunpack.c.h.b16 %v3308_v28 }
 0x476   : > { %v2582_v12 = vpop.f32.mrf.mxu2 }
 0x477   : > { %v2671_v24 = vpop.f32.mrf.mxu3  ;;  %v2407_v50 = vpop.f32.mrf.mxu0 }
 0x478   : > { %v2672_v41 = vadd.f32 %v2671_v24, %v2582_v12  ;;  %3581 = vmatpush.bf16.xpose.msrb.mxu0 %v10583_v45  ;;  %v2496_v11 = vpop.f32.mrf.mxu1 }
 0x479   : > { %v2497_v2 = vadd.f32 %v2496_v11, %v2407_v50 }
 0x47a   : > { %v3309_v43 = vpack.c.bf16 %v2672_v41, %v2494_v46  ;;  %2920 = vmatmul.bf16.gmra.mxu0 %v10148_v5 }
 0x47b   : > { %3009 = vmatmul.bf16.gmra.mxu1 %v10150_v23  ;;  %3098 = vmatmul.bf16.gmra.mxu2 %v10148_v5 }
 0x47c   : > { %v3533_v31 = vunpack.c.l.b16 %v3309_v43  ;;  %v4641_v36 = vunpack.c.h.b16 %v3309_v43  ;;  %3187 = vmatmul.bf16.gmra.mxu3 %v10150_v23 }
 0x47e   : > { %v2585_v38 = vpop.f32.mrf.mxu2  ;;  %v10669_v44 = vpack.c.b16 %v3533_v31, %v3532_v18  ;;  %v10671_v40 = vpack.c.b16 %v4641_v36, %v4640_v49 }
 0x47f   : > { %v2674_v45 = vpop.f32.mrf.mxu3  ;;  %v2409_v26 = vpop.f32.mrf.mxu0 }
 0x480   : > { %v2675_v47 = vadd.f32 %v2674_v45, %v2585_v38  ;;  %3582 = vmatpush.bf16.xpose.msrb.mxu0 %v10544_v54  ;;  %v2498_v7 = vpop.f32.mrf.mxu1 }
 0x481   : > { %v2499_v21 = vadd.f32 %v2498_v7, %v2409_v26 }
 0x482   : > { %v3310_v60 = vpack.c.bf16 %v2675_v47, %v2497_v2  ;;  %v4636_v2 = vunpack.c.h.b16 %v10626_v27 }
 0x484   : > { %v3534_v42 = vunpack.c.l.b16 %v3310_v60  ;;  %v4642_v54 = vunpack.c.h.b16 %v3310_v60 }
 0x486   : > { %v2587_v5 = vpop.f32.mrf.mxu2 }
 0x487   : > { %v2676_v35 = vpop.f32.mrf.mxu3  ;;  %v2412_v1 = vpop.f32.mrf.mxu0 }
 0x488   : > { %v2677_v10 = vadd.f32 %v2676_v35, %v2587_v5  ;;  %3583 = vmatpush.bf16.xpose.msrb.mxu0 %v10530_v51  ;;  %v2501_v23 = vpop.f32.mrf.mxu1 }
 0x489   : > { %v2502_v33 = vadd.f32 %v2501_v23, %v2412_v1 }
 0x48a   : > { %v3311_v62 = vpack.c.bf16 %v2677_v10, %v2499_v21  ;;  %2925 = vmatmul.bf16.gmra.mxu0 %v10156_v58 }
 0x48b   : > { %3014 = vmatmul.bf16.gmra.mxu1 %v10158_v63  ;;  %3103 = vmatmul.bf16.gmra.mxu2 %v10156_v58  ;;  %v4637_v58 = vunpack.c.h.b16 %v10628_v13 }
 0x48c   : > { %v3535_v3 = vunpack.c.l.b16 %v3311_v62  ;;  %v4643_v22 = vunpack.c.h.b16 %v3311_v62  ;;  %3192 = vmatmul.bf16.gmra.mxu3 %v10158_v63  ;;  %v4632_v62 = vunpack.c.h.b16 %v10652_v19 }
 0x48d   : > { %v4661_v49 = vpack.c.b16 %v4637_v58, %v4636_v2 }
 0x48e   : > { %v2590_v55 = vpop.f32.mrf.mxu2  ;;  %v10679_v46 = vpack.c.b16 %v3535_v3, %v3534_v42  ;;  %v10681_v28 = vpack.c.b16 %v4643_v22, %v4642_v54 }
 0x48f   : > { %v2679_v51 = vpop.f32.mrf.mxu3  ;;  %v2414_v12 = vpop.f32.mrf.mxu0 }
 0x490   : > { %v2680_v24 = vadd.f32 %v2679_v51, %v2590_v55  ;;  %3584 = vmatpush.bf16.xpose.msrb.mxu0 %v10518_v48  ;;  %v2503_v50 = vpop.f32.mrf.mxu1  ;;  %v4635_v48 = vunpack.c.h.b16 %v10636_v9 }
 0x491   : > { %v2504_v41 = vadd.f32 %v2503_v50, %v2414_v12 }
 0x492   : > { %v3312_v11 = vpack.c.bf16 %v2680_v24, %v2502_v33  ;;  %v4633_v33 = vunpack.c.h.b16 %v10650_v0 }
 0x494   : > { %v3536_v13 = vunpack.c.l.b16 %v3312_v11  ;;  %v4644_v27 = vunpack.c.h.b16 %v3312_v11  ;;  %v4659_v54 = vpack.c.b16 %v4633_v33, %v4632_v62 }
 0x496   : > { %v2592_v43 = vpop.f32.mrf.mxu2 }
 0x497   : > { %v2681_v18 = vpop.f32.mrf.mxu3  ;;  %v2417_v63 = vpop.f32.mrf.mxu0 }
 0x498   : > { %v2682_v31 = vadd.f32 %v2681_v18, %v2592_v43  ;;  %3585 = vmatpush.bf16.xpose.msrb.mxu0 %v10510_v53  ;;  %v2506_v36 = vpop.f32.mrf.mxu1  ;;  %v4634_v53 = vunpack.c.h.b16 %v10638_v17 }
 0x499   : > { %v2507_v38 = vadd.f32 %v2506_v36, %v2417_v63 }
 0x49a   : > { %v3313_v45 = vpack.c.bf16 %v2682_v31, %v2504_v41  ;;  %2930 = vmatmul.bf16.gmra.mxu0 %v10164_v15  ;;  %v4660_v9 = vpack.c.b16 %v4635_v48, %v4634_v53 }
 0x49b   : > { %3019 = vmatmul.bf16.gmra.mxu1 %v10166_v52  ;;  %3108 = vmatmul.bf16.gmra.mxu2 %v10164_v15 }
 0x49c   : > { %v3537_v26 = vunpack.c.l.b16 %v3313_v45  ;;  %v4645_v47 = vunpack.c.h.b16 %v3313_v45  ;;  %3197 = vmatmul.bf16.gmra.mxu3 %v10166_v52 }
 0x49e   : > { %v2595_v7 = vpop.f32.mrf.mxu2  ;;  %v10693_v21 = vpack.c.b16 %v3537_v26, %v3536_v13  ;;  %v10695_v60 = vpack.c.b16 %v4645_v47, %v4644_v27 }
 0x49f   : > { %v2684_v5 = vpop.f32.mrf.mxu3  ;;  %v2419_v35 = vpop.f32.mrf.mxu0 }
 0x4a0   : > { %4686 = vmatpush.bf16.xpose.msra.mxu0 %v4661_v49  ;;  %v2685_v1 = vadd.f32 %v2684_v5, %v2595_v7  ;;  %v2508_v10 = vpop.f32.mrf.mxu1 }
 0x4a1   : > { %v2509_v23 = vadd.f32 %v2508_v10, %v2419_v35 }
 0x4a2   : > { %v3314_v15 = vpack.c.bf16 %v2685_v1, %v2507_v38 }
 0x4a4   : > { %v3538_v51 = vunpack.c.l.b16 %v3314_v15  ;;  %v4646_v0 = vunpack.c.h.b16 %v3314_v15 }
 0x4a6   : > { %v2597_v52 = vpop.f32.mrf.mxu2 }
 0x4a7   : > { %v2686_v42 = vpop.f32.mrf.mxu3  ;;  %v10699_v17 = vpop.f32.mrf.mxu0 }
 0x4a8   : > { %4687 = vmatpush.bf16.xpose.msra.mxu0 %v4660_v9  ;;  %v2687_v3 = vadd.f32 %v2686_v42, %v2597_v52  ;;  %v10701_v22 = vpop.f32.mrf.mxu1 }
 0x4aa   : > { %v3315_v55 = vpack.c.bf16 %v2687_v3, %v2509_v23  ;;  %2935 = vmatmul.bf16.gmra.mxu0 %v10172_v4 }
 0x4ab   : > { %3024 = vmatmul.bf16.gmra.mxu1 %v10174_v16  ;;  %3113 = vmatmul.bf16.gmra.mxu2 %v10172_v4 }
 0x4ac   : > { %v3539_v12 = vunpack.c.l.b16 %v3315_v55  ;;  %v4647_v19 = vunpack.c.h.b16 %v3315_v55  ;;  %3202 = vmatmul.bf16.gmra.mxu3 %v10174_v16 }
 0x4ae   : > { %v10707_v24 = vpop.f32.mrf.mxu2  ;;  %v10709_v50 = vpack.c.b16 %v3539_v12, %v3538_v51  ;;  %v10711_v41 = vpack.c.b16 %v4647_v19, %v4646_v0 }
 0x4af   : > { %v10713_v11 = vpop.f32.mrf.mxu3  ;;  %v10715_v58 = vpop.f32.mrf.mxu0 }
 0x4b0   : > { %4688 = vmatpush.bf16.xpose.msra.mxu0 %v4659_v54  ;;  %v10717_v2 = vpop.f32.mrf.mxu1 }
 0x4b6   : > { %v10720_v4 = vpop.f32.mrf.mxu2 }
 0x4b7   : > { %v10722_v43 = vpop.f32.mrf.mxu3  ;;  %v2427_v18 = vpop.f32.mrf.mxu0 }
 0x4b8   : > { %4689 = vmatpush.bf16.xpose.msra.mxu0 %v10585_v30  ;;  %v2516_v16 = vpop.f32.mrf.mxu1 }
 0x4b9   : > { %v2517_v42 = vadd.f32 %v2516_v16, %v2427_v18 }
 0x4ba   : > { %2940 = vmatmul.bf16.gmra.mxu0 %v10180_v8 }
 0x4bb   : > { %3029 = vmatmul.bf16.gmra.mxu1 %v10182_v32  ;;  %3118 = vmatmul.bf16.gmra.mxu2 %v10180_v8 }
 0x4bc   : > { %3207 = vmatmul.bf16.gmra.mxu3 %v10182_v32 }
 0x4be   : > { %v2605_v63 = vpop.f32.mrf.mxu2 }
 0x4bf   : > { %v2694_v49 = vpop.f32.mrf.mxu3  ;;  %v2429_v31 = vpop.f32.mrf.mxu0 }
 0x4c0   : > { %4690 = vmatpush.bf16.xpose.msra.mxu0 %v10546_v57  ;;  %v2518_v30 = vpop.f32.mrf.mxu1  ;;  %v2695_v15 = vadd.f32 %v2694_v49, %v2605_v63 }
 0x4c1   : > { %v2519_v33 = vadd.f32 %v2518_v30, %v2429_v31  ;;  %v2692_v31 = vadd.f32 %v10722_v43, %v10720_v4  ;;  %v2690_v30 = vadd.f32 %v10713_v11, %v10707_v24 }
 0x4c6   : > { %v2607_v36 = vpop.f32.mrf.mxu2 }
 0x4c7   : > { %v2696_v38 = vpop.f32.mrf.mxu3  ;;  %v2432_v45 = vpop.f32.mrf.mxu0 }
 0x4c8   : > { %4691 = vmatpush.bf16.xpose.msra.mxu0 %v10532_v14  ;;  %v2521_v48 = vpop.f32.mrf.mxu1  ;;  %v2736_v14 = vld [vmem:[%s9666_s26] sm:$0x3]  ;;  %v2697_v1 = vadd.f32 %v2696_v38, %v2607_v36  ;;  %v2514_v36 = vadd.f32 %v10717_v2, %v10715_v58 }
 0x4c9   : > { %v10737_v26 = vperm.slane %v2736_v14, 0  ;;  %v2522_v47 = vadd.f32 %v2521_v48, %v2432_v45  ;;  %v2512_v45 = vadd.f32 %v10701_v22, %v10699_v17  ;;  %v13624_v22 = vld [vmem:[#allocation39_spill] sm:$0xff] }
 0x4ca   : > { %2945 = vmatmul.bf16.gmra.mxu0 %v10191_v20  ;;  %v10752_v54 = vpack.c.bf16 %v2697_v1, %v2519_v33  ;;  %v10768_v48 = vpack.c.bf16 %v2692_v31, %v2514_v36 }
 0x4cb   : > { %3034 = vmatmul.bf16.gmra.mxu1 %v10194_v25  ;;  %3123 = vmatmul.bf16.gmra.mxu2 %v10191_v20 }
 0x4cc   : > { %3212 = vmatmul.bf16.gmra.mxu3 %v10194_v25  ;;  %v3541_v2 = vunpack.c.l.b16 %v10768_v48 }
 0x4ce   : > { %v2610_v8 = vpop.f32.mrf.mxu2 }
 0x4cf   : > { %v2699_v32 = vpop.f32.mrf.mxu3  ;;  %v2434_v57 = vpop.f32.mrf.mxu0 }
 0x4d0   : > { %4692 = vmatpush.bf16.xpose.msra.mxu0 %v10520_v34  ;;  %v2523_v13 = vpop.f32.mrf.mxu1  ;;  %v2700_v27 = vadd.f32 %v2699_v32, %v2610_v8 }
 0x4d1   : > { %v2524_v35 = vadd.f32 %v2523_v13, %v2434_v57  ;;  %v10771_v13 = vpack.c.bf16 %v2690_v30, %v2512_v45  ;;  %v13626_v30 = vld [vmem:[#allocation43_spill] sm:$0xff] }
 0x4d2   : > { %v10739_v5 = vpack.c.bf16 %v2700_v27, %v2522_v47  ;;  %v13623_v27 = vld [vmem:[#allocation38_spill] sm:$0xff] }
 0x4d3   : > { %v3540_v47 = vunpack.c.l.b16 %v10771_v13 }
 0x4d4   : > { %v3544_v62 = vunpack.c.l.b16 %v10739_v5 }
 0x4d6   : > { %v2612_v34 = vpop.f32.mrf.mxu2 }
 0x4d7   : > { %v2701_v53 = vpop.f32.mrf.mxu3  ;;  %v2911_v7 = vpop.f32.mrf.mxu0 }
 0x4d8   : > { %4693 = vmatpush.bf16.xpose.msra.mxu0 %v10512_v39  ;;  %v2702_v20 = vadd.f32 %v2701_v53, %v2612_v34  ;;  %v2912_v25 = vadd.f32 %v2911_v7, %v10737_v26  ;;  %v3000_v9 = vpop.f32.mrf.mxu1  ;;  %v10747_v39 = vperm.slane %v2736_v14, 1 }
 0x4da   : > { %v10742_v10 = vpack.c.bf16 %v2702_v20, %v2524_v35  ;;  %v3001_v23 = vadd.f32 %v3000_v9, %v2912_v25  ;;  %2950 = vmatmul.bf16.gmra.mxu0 %v10204_v59  ;;  %v3559_v25 = vpack.c.b16 %v3541_v2, %v3540_v47 }
 0x4db   : > { %3039 = vmatmul.bf16.gmra.mxu1 %v10206_v56  ;;  %3128 = vmatmul.bf16.gmra.mxu2 %v10204_v59  ;;  %v10755_v59 = vpack.c.bf16 %v2695_v15, %v2517_v42 }
 0x4dc   : > { %v3545_v52 = vunpack.c.l.b16 %v10742_v10  ;;  %3217 = vmatmul.bf16.gmra.mxu3 %v10206_v56  ;;  %v3543_v56 = vunpack.c.l.b16 %v10752_v54 }
 0x4dd   : > { %v3542_v38 = vunpack.c.l.b16 %v10755_v59 }
 0x4de   : > { %v3089_v3 = vpop.f32.mrf.mxu2  ;;  %v3561_v55 = vpack.c.b16 %v3545_v52, %v3544_v62 }
 0x4df   : > { %v3090_v51 = vadd.f32 %v3089_v3, %v10747_v39  ;;  %v2913_v0 = vpop.f32.mrf.mxu0  ;;  %v3178_v12 = vpop.f32.mrf.mxu3  ;;  %v3560_v32 = vpack.c.b16 %v3543_v56, %v3542_v38 }
 0x4e0   : > { %3667 = vmatpush.bf16.xpose.msrb.mxu1 %v3561_v55  ;;  %v2914_v19 = vadd.f32 %v2913_v0, %v10737_v26  ;;  %v3002_v63 = vpop.f32.mrf.mxu1 }
 0x4e1   : > { %v3179_v49 = vadd.f32 %v3178_v12, %v3090_v51 }
 0x4e2   : > { %v3003_v18 = vadd.f32 %v3002_v63, %v2914_v19 }
 0x4e3   : > { %v3322_v16 = vpack.c.bf16 %v3179_v49, %v3001_v23 }
 0x4e5   : > { %v4300_v34 = vunpack.c.l.b16 %v3322_v16  ;;  %v5376_v53 = vunpack.c.h.b16 %v3322_v16 }
 0x4e6   : > { %v3091_v8 = vpop.f32.mrf.mxu2 }
 0x4e7   : > { %v3092_v4 = vadd.f32 %v3091_v8, %v10747_v39  ;;  %v2916_v43 = vpop.f32.mrf.mxu0  ;;  %v3180_v57 = vpop.f32.mrf.mxu3 }
 0x4e8   : > { %3668 = vmatpush.bf16.xpose.msrb.mxu1 %v3560_v32  ;;  %v2917_v24 = vadd.f32 %v2916_v43, %v10737_v26  ;;  %v3005_v11 = vpop.f32.mrf.mxu1 }
 0x4e9   : > { %v3181_v58 = vadd.f32 %v3180_v57, %v3092_v4 }
 0x4ea   : > { %v3006_v14 = vadd.f32 %v3005_v11, %v2917_v24  ;;  %2955 = vmatmul.bf16.gmra.mxu0 %v13623_v27 }
 0x4eb   : > { %v3323_v17 = vpack.c.bf16 %v3181_v58, %v3003_v18  ;;  %3044 = vmatmul.bf16.gmra.mxu1 %v13624_v22  ;;  %3133 = vmatmul.bf16.gmra.mxu2 %v13623_v27  ;;  %v13625_v18 = vld [vmem:[#allocation42_spill] sm:$0xff] }
 0x4ec   : > { %3222 = vmatmul.bf16.gmra.mxu3 %v13624_v22 }
 0x4ed   : > { %v4301_v7 = vunpack.c.l.b16 %v3323_v17  ;;  %v5377_v35 = vunpack.c.h.b16 %v3323_v17 }
 0x4ee   : > { %v3094_v20 = vpop.f32.mrf.mxu2 }
 0x4ef   : > { %v3095_v9 = vadd.f32 %v3094_v20, %v10747_v39  ;;  %v2918_v1 = vpop.f32.mrf.mxu0  ;;  %v3183_v23 = vpop.f32.mrf.mxu3  ;;  %v10781_v15 = vpack.c.b16 %v4301_v7, %v4300_v34  ;;  %v10783_v33 = vpack.c.b16 %v5377_v35, %v5376_v53 }
 0x4f0   : > { %3669 = vmatpush.bf16.xpose.msrb.mxu1 %v3559_v25  ;;  %v2919_v62 = vadd.f32 %v2918_v1, %v10737_v26  ;;  %v3007_v52 = vpop.f32.mrf.mxu1  ;;  %v13627_v25 = vld [vmem:[#allocation46_spill] sm:$0xff] }
 0x4f1   : > { %v3184_v42 = vadd.f32 %v3183_v23, %v3095_v9  ;;  %v13628_v9 = vld [vmem:[#allocation47_spill] sm:$0xff] }
 0x4f2   : > { %v3008_v3 = vadd.f32 %v3007_v52, %v2919_v62 }
 0x4f3   : > { %v3324_v55 = vpack.c.bf16 %v3184_v42, %v3006_v14 }
 0x4f5   : > { %v4302_v36 = vunpack.c.l.b16 %v3324_v55  ;;  %v5378_v38 = vunpack.c.h.b16 %v3324_v55 }
 0x4f6   : > { %v3096_v51 = vpop.f32.mrf.mxu2 }
 0x4f7   : > { %v3097_v0 = vadd.f32 %v3096_v51, %v10747_v39  ;;  %v2921_v12 = vpop.f32.mrf.mxu0  ;;  %v3185_v19 = vpop.f32.mrf.mxu3 }
 0x4f8   : > { %3670 = vmatpush.bf16.xpose.msrb.mxu1 %v10709_v50  ;;  %v2922_v63 = vadd.f32 %v2921_v12, %v10737_v26  ;;  %v3010_v49 = vpop.f32.mrf.mxu1 }
 0x4f9   : > { %v3186_v31 = vadd.f32 %v3185_v19, %v3097_v0 }
 0x4fa   : > { %v3011_v56 = vadd.f32 %v3010_v49, %v2922_v63  ;;  %2960 = vmatmul.bf16.gmra.mxu0 %v13625_v18 }
 0x4fb   : > { %v3325_v16 = vpack.c.bf16 %v3186_v31, %v3008_v3  ;;  %3049 = vmatmul.bf16.gmra.mxu1 %v13626_v30  ;;  %3138 = vmatmul.bf16.gmra.mxu2 %v13625_v18  ;;  %v4653_v31 = vunpack.c.h.b16 %v10742_v10  ;;  %v4652_v18 = vunpack.c.h.b16 %v10739_v5  ;;  %v4651_v10 = vunpack.c.h.b16 %v10752_v54  ;;  %v13630_v5 = vld [vmem:[#allocation51_spill] sm:$0xff] }
 0x4fc   : > { %3227 = vmatmul.bf16.gmra.mxu3 %v13626_v30 }
 0x4fd   : > { %v4303_v45 = vunpack.c.l.b16 %v3325_v16  ;;  %v5379_v8 = vunpack.c.h.b16 %v3325_v16 }
 0x4fe   : > { %v3099_v32 = vpop.f32.mrf.mxu2 }
 0x4ff   : > { %v3100_v50 = vadd.f32 %v3099_v32, %v10747_v39  ;;  %v2923_v4 = vpop.f32.mrf.mxu0  ;;  %v3188_v43 = vpop.f32.mrf.mxu3  ;;  %v10794_v57 = vpack.c.b16 %v4303_v45, %v4302_v36  ;;  %v10796_v24 = vpack.c.b16 %v5379_v8, %v5378_v38  ;;  %v4669_v45 = vpack.c.b16 %v4653_v31, %v4652_v18 }
 0x500   : > { %3671 = vmatpush.bf16.xpose.msrb.mxu1 %v10693_v21  ;;  %v2924_v11 = vadd.f32 %v2923_v4, %v10737_v26  ;;  %v3012_v58 = vpop.f32.mrf.mxu1  ;;  %v13629_v4 = vld [vmem:[#allocation50_spill] sm:$0xff] }
 0x501   : > { %v3189_v2 = vadd.f32 %v3188_v43, %v3100_v50 }
 0x502   : > { %v3013_v14 = vadd.f32 %v3012_v58, %v2924_v11  ;;  %v4650_v11 = vunpack.c.h.b16 %v10755_v59 }
 0x503   : > { %v3326_v27 = vpack.c.bf16 %v3189_v2, %v3011_v56 }
 0x505   : > { %v4304_v1 = vunpack.c.l.b16 %v3326_v27  ;;  %v5380_v23 = vunpack.c.h.b16 %v3326_v27 }
 0x506   : > { %v3101_v17 = vpop.f32.mrf.mxu2 }
 0x507   : > { %v3102_v22 = vadd.f32 %v3101_v17, %v10747_v39  ;;  %v2926_v47 = vpop.f32.mrf.mxu0  ;;  %v3190_v34 = vpop.f32.mrf.mxu3 }
 0x508   : > { %3672 = vmatpush.bf16.xpose.msrb.mxu1 %v10679_v46  ;;  %v2927_v53 = vadd.f32 %v2926_v47, %v10737_v26  ;;  %v3015_v7 = vpop.f32.mrf.mxu1 }
 0x509   : > { %v3191_v35 = vadd.f32 %v3190_v34, %v3102_v22  ;;  %v4668_v34 = vpack.c.b16 %v4651_v10, %v4650_v11 }
 0x50a   : > { %v3016_v20 = vadd.f32 %v3015_v7, %v2927_v53  ;;  %2965 = vmatmul.bf16.gmra.mxu0 %v13627_v25 }
 0x50b   : > { %v3327_v21 = vpack.c.bf16 %v3191_v35, %v3013_v14  ;;  %3054 = vmatmul.bf16.gmra.mxu1 %v13628_v9  ;;  %3143 = vmatmul.bf16.gmra.mxu2 %v13627_v25  ;;  %v4649_v25 = vunpack.c.h.b16 %v10768_v48 }
 0x50c   : > { %3232 = vmatmul.bf16.gmra.mxu3 %v13628_v9  ;;  %v4648_v9 = vunpack.c.h.b16 %v10771_v13 }
 0x50d   : > { %v4305_v62 = vunpack.c.l.b16 %v3327_v21  ;;  %v5381_v52 = vunpack.c.h.b16 %v3327_v21 }
 0x50e   : > { %v3104_v42 = vpop.f32.mrf.mxu2 }
 0x50f   : > { %v3105_v46 = vadd.f32 %v3104_v42, %v10747_v39  ;;  %v2928_v3 = vpop.f32.mrf.mxu0  ;;  %v3193_v55 = vpop.f32.mrf.mxu3  ;;  %v10808_v51 = vpack.c.b16 %v4305_v62, %v4304_v1  ;;  %v10810_v0 = vpack.c.b16 %v5381_v52, %v5380_v23  ;;  %v4667_v42 = vpack.c.b16 %v4649_v25, %v4648_v9 }
 0x510   : > { %3673 = vmatpush.bf16.xpose.msrb.mxu1 %v10669_v44  ;;  %v2929_v12 = vadd.f32 %v2928_v3, %v10737_v26  ;;  %v3017_v19 = vpop.f32.mrf.mxu1 }
 0x511   : > { %v3194_v63 = vadd.f32 %v3193_v55, %v3105_v46  ;;  %v13631_v55 = vld [vmem:[#allocation54_spill] sm:$0xff] }
 0x512   : > { %v3018_v49 = vadd.f32 %v3017_v19, %v2929_v12  ;;  %v13632_v19 = vld [vmem:[#allocation55_spill] sm:$0xff] }
 0x513   : > { %v3328_v56 = vpack.c.bf16 %v3194_v63, %v3016_v20 }
 0x515   : > { %v5382_v58 = vunpack.c.h.b16 %v3328_v56 }
 0x516   : > { %v3106_v16 = vpop.f32.mrf.mxu2 }
 0x517   : > { %v3107_v30 = vadd.f32 %v3106_v16, %v10747_v39  ;;  %v2931_v36 = vpop.f32.mrf.mxu0  ;;  %v3195_v38 = vpop.f32.mrf.mxu3 }
 0x518   : > { %3674 = vmatpush.bf16.xpose.msrb.mxu1 %v10660_v61  ;;  %v2932_v44 = vadd.f32 %v2931_v36, %v10737_v26  ;;  %v3020_v8 = vpop.f32.mrf.mxu1  ;;  %v4306_v61 = vunpack.c.l.b16 %v3328_v56 }
 0x519   : > { %v3196_v32 = vadd.f32 %v3195_v38, %v3107_v30 }
 0x51a   : > { %v3021_v50 = vadd.f32 %v3020_v8, %v2932_v44  ;;  %2970 = vmatmul.bf16.gmra.mxu0 %v13629_v4 }
 0x51b   : > { %v3329_v43 = vpack.c.bf16 %v3196_v32, %v3018_v49  ;;  %3059 = vmatmul.bf16.gmra.mxu1 %v13630_v5  ;;  %3148 = vmatmul.bf16.gmra.mxu2 %v13629_v4  ;;  %v13633_v32 = vld [vmem:[#allocation58_spill] sm:$0xff] }
 0x51c   : > { %3237 = vmatmul.bf16.gmra.mxu3 %v13630_v5 }
 0x51d   : > { %v4307_v2 = vunpack.c.l.b16 %v3329_v43  ;;  %v5383_v14 = vunpack.c.h.b16 %v3329_v43 }
 0x51e   : > { %v3109_v27 = vpop.f32.mrf.mxu2 }
 0x51f   : > { %v3110_v17 = vadd.f32 %v3109_v27, %v10747_v39  ;;  %v2933_v22 = vpop.f32.mrf.mxu0  ;;  %v3198_v47 = vpop.f32.mrf.mxu3  ;;  %v10826_v54 = vpack.c.b16 %v4307_v2, %v4306_v61  ;;  %v10828_v53 = vpack.c.b16 %v5383_v14, %v5382_v58 }
 0x520   : > { %4775 = vmatpush.bf16.xpose.msra.mxu1 %v4669_v45  ;;  %v2934_v7 = vadd.f32 %v2933_v22, %v10737_v26  ;;  %v3022_v35 = vpop.f32.mrf.mxu1 }
 0x521   : > { %v3199_v59 = vadd.f32 %v3198_v47, %v3110_v17 }
 0x522   : > { %v3023_v20 = vadd.f32 %v3022_v35, %v2934_v7 }
 0x523   : > { %v3330_v21 = vpack.c.bf16 %v3199_v59, %v3021_v50  ;;  %v13634_v50 = vld [vmem:[#allocation59_spill] sm:$0xff] }
 0x525   : > { %v4308_v48 = vunpack.c.l.b16 %v3330_v21  ;;  %v5384_v13 = vunpack.c.h.b16 %v3330_v21 }
 0x526   : > { %v3111_v1 = vpop.f32.mrf.mxu2 }
 0x527   : > { %v3112_v23 = vadd.f32 %v3111_v1, %v10747_v39  ;;  %v10834_v62 = vpop.f32.mrf.mxu0  ;;  %v3200_v52 = vpop.f32.mrf.mxu3 }
 0x528   : > { %4776 = vmatpush.bf16.xpose.msra.mxu1 %v4668_v34  ;;  %v10836_v46 = vpop.f32.mrf.mxu1 }
 0x529   : > { %v3201_v3 = vadd.f32 %v3200_v52, %v3112_v23 }
 0x52a   : > { %2975 = vmatmul.bf16.gmra.mxu0 %v13631_v55 }
 0x52b   : > { %v3331_v12 = vpack.c.bf16 %v3201_v3, %v3023_v20  ;;  %3064 = vmatmul.bf16.gmra.mxu1 %v13632_v19  ;;  %3153 = vmatmul.bf16.gmra.mxu2 %v13631_v55 }
 0x52c   : > { %3242 = vmatmul.bf16.gmra.mxu3 %v13632_v19 }
 0x52d   : > { %v4309_v63 = vunpack.c.l.b16 %v3331_v12  ;;  %v5385_v49 = vunpack.c.h.b16 %v3331_v12 }
 0x52e   : > { %v3114_v31 = vpop.f32.mrf.mxu2 }
 0x52f   : > { %v2938_v56 = vpop.f32.mrf.mxu0  ;;  %v10842_v18 = vpop.f32.mrf.mxu3  ;;  %v10844_v16 = vpack.c.b16 %v4309_v63, %v4308_v48  ;;  %v10846_v30 = vpack.c.b16 %v5385_v49, %v5384_v13  ;;  %v3115_v9 = vadd.f32 %v3114_v31, %v10747_v39  ;;  %v2937_v48 = vadd.f32 %v10834_v62, %v10737_v26  ;;  %v13635_v63 = vld [vmem:[#allocation40_spill] sm:$0xff] }
 0x530   : > { %4777 = vmatpush.bf16.xpose.msra.mxu1 %v4667_v42  ;;  %v10848_v36 = vpop.f32.mrf.mxu1  ;;  %v2939_v1 = vadd.f32 %v2938_v56, %v10737_v26 }
 0x536   : > { %v3116_v38 = vpop.f32.mrf.mxu2 }
 0x537   : > { %v2941_v45 = vpop.f32.mrf.mxu0  ;;  %v3205_v44 = vpop.f32.mrf.mxu3 }
 0x538   : > { %4778 = vmatpush.bf16.xpose.msra.mxu1 %v10711_v41  ;;  %v3030_v8 = vpop.f32.mrf.mxu1  ;;  %v2942_v35 = vadd.f32 %v2941_v45, %v10737_v26  ;;  %v3204_v45 = vadd.f32 %v10842_v18, %v3115_v9 }
 0x53a   : > { %2980 = vmatmul.bf16.gmra.mxu0 %v13633_v32  ;;  %v3031_v49 = vadd.f32 %v3030_v8, %v2942_v35 }
 0x53b   : > { %3069 = vmatmul.bf16.gmra.mxu1 %v13634_v50  ;;  %3158 = vmatmul.bf16.gmra.mxu2 %v13633_v32  ;;  %v3028_v32 = vadd.f32 %v10848_v36, %v2939_v1 }
 0x53c   : > { %3247 = vmatmul.bf16.gmra.mxu3 %v13634_v50 }
 0x53e   : > { %v3119_v4 = vpop.f32.mrf.mxu2 }
 0x53f   : > { %v2943_v10 = vpop.f32.mrf.mxu0  ;;  %v3208_v43 = vpop.f32.mrf.mxu3  ;;  %v3120_v22 = vadd.f32 %v3119_v4, %v10747_v39 }
 0x540   : > { %4779 = vmatpush.bf16.xpose.msra.mxu1 %v10695_v60  ;;  %v3032_v5 = vpop.f32.mrf.mxu1  ;;  %v2944_v47 = vadd.f32 %v2943_v10, %v10737_v26  ;;  %v3026_v10 = vadd.f32 %v10836_v46, %v2937_v48 }
 0x541   : > { %v3209_v23 = vadd.f32 %v3208_v43, %v3120_v22 }
 0x542   : > { %v3033_v3 = vadd.f32 %v3032_v5, %v2944_v47 }
 0x543   : > { %v10887_v50 = vpack.c.bf16 %v3209_v23, %v3031_v49 }
 0x546   : > { %v3121_v41 = vpop.f32.mrf.mxu2 }
 0x547   : > { %v2946_v11 = vpop.f32.mrf.mxu0  ;;  %v3210_v61 = vpop.f32.mrf.mxu3  ;;  %v3122_v17 = vadd.f32 %v3121_v41, %v10747_v39 }
 0x548   : > { %4780 = vmatpush.bf16.xpose.msra.mxu1 %v10681_v28  ;;  %v3035_v58 = vpop.f32.mrf.mxu1 }
 0x549   : > { %v3211_v20 = vadd.f32 %v3210_v61, %v3122_v17 }
 0x54a   : > { %2985 = vmatmul.bf16.gmra.mxu0 %v10377_v6 }
 0x54b   : > { %3074 = vmatmul.bf16.gmra.mxu1 %v10380_v29  ;;  %3163 = vmatmul.bf16.gmra.mxu2 %v10377_v6  ;;  %v10880_v31 = vpack.c.bf16 %v3211_v20, %v3033_v3  ;;  %v13636_v20 = vld [vmem:[#allocation44_spill] sm:$0xff] }
 0x54c   : > { %3252 = vmatmul.bf16.gmra.mxu3 %v10380_v29  ;;  %v3117_v29 = vadd.f32 %v3116_v38, %v10747_v39 }
 0x54d   : > { %v4313_v43 = vunpack.c.l.b16 %v10880_v31 }
 0x54e   : > { %v3124_v60 = vpop.f32.mrf.mxu2  ;;  %v3206_v38 = vadd.f32 %v3205_v44, %v3117_v29 }
 0x54f   : > { %v2948_v2 = vpop.f32.mrf.mxu0  ;;  %v3213_v14 = vpop.f32.mrf.mxu3  ;;  %v3125_v28 = vadd.f32 %v3124_v60, %v10747_v39  ;;  %v4312_v60 = vunpack.c.l.b16 %v10887_v50 }
 0x550   : > { %4781 = vmatpush.bf16.xpose.msra.mxu1 %v10671_v40  ;;  %v3037_v27 = vpop.f32.mrf.mxu1  ;;  %v2947_v40 = vadd.f32 %v2946_v11, %v10737_v26  ;;  %v2949_v6 = vadd.f32 %v2948_v2, %v10737_v26  ;;  %v10892_v44 = vpack.c.bf16 %v3206_v38, %v3028_v32 }
 0x551   : > { %v3214_v34 = vadd.f32 %v3213_v14, %v3125_v28  ;;  %v4338_v28 = vpack.c.b16 %v4313_v43, %v4312_v60 }
 0x552   : > { %v3036_v59 = vadd.f32 %v3035_v58, %v2947_v40  ;;  %v3038_v55 = vadd.f32 %v3037_v27, %v2949_v6  ;;  %v10897_v58 = vpack.c.bf16 %v3204_v45, %v3026_v10  ;;  %v4311_v14 = vunpack.c.l.b16 %v10892_v44 }
 0x554   : > { %v10875_v12 = vpack.c.bf16 %v3214_v34, %v3036_v59  ;;  %v4310_v17 = vunpack.c.l.b16 %v10897_v58 }
 0x556   : > { %v3126_v7 = vpop.f32.mrf.mxu2  ;;  %v4314_v4 = vunpack.c.l.b16 %v10875_v12  ;;  %v4337_v34 = vpack.c.b16 %v4311_v14, %v4310_v17 }
 0x557   : > { %v2951_v25 = vpop.f32.mrf.mxu0  ;;  %v3215_v21 = vpop.f32.mrf.mxu3 }
 0x558   : > { %4782 = vmatpush.bf16.xpose.msra.mxu1 %v10662_v37  ;;  %v3127_v37 = vadd.f32 %v3126_v7, %v10747_v39  ;;  %v2952_v52 = vadd.f32 %v2951_v25, %v10737_v26  ;;  %v3040_v42 = vpop.f32.mrf.mxu1 }
 0x55a   : > { %v3216_v19 = vadd.f32 %v3215_v21, %v3127_v37  ;;  %v3041_v13 = vadd.f32 %v3040_v42, %v2952_v52  ;;  %3586 = vmatmul.bf16.vlgmr.msrb.gmra.mxu0 %v13635_v63 }
 0x55b   : > { %3675 = vmatmul.bf16.vlgmr.msrb.gmra.mxu1 %v13635_v63 }
 0x55c   : > { %v10882_v56 = vpack.c.bf16 %v3216_v19, %v3038_v55 }
 0x55e   : > { %v4315_v62 = vunpack.c.l.b16 %v10882_v56  ;;  %v3129_v8 = vpop.f32.mrf.mxu2 }
 0x55f   : > { %v3130_v5 = vadd.f32 %v3129_v8, %v10747_v39  ;;  %v2953_v41 = vpop.f32.mrf.mxu0  ;;  %v3218_v11 = vpop.f32.mrf.mxu3 }
 0x560   : > { %v4339_v18 = vpack.c.b16 %v4315_v62, %v4314_v4  ;;  %v2954_v36 = vadd.f32 %v2953_v41, %v10737_v26  ;;  %v3042_v61 = vpop.f32.mrf.mxu1  ;;  %v5391_v62 = vunpack.c.h.b16 %v10882_v56  ;;  %v13637_v41 = vld [vmem:[#allocation48_spill] sm:$0xff] }
 0x561   : > { %v3219_v2 = vadd.f32 %v3218_v11, %v3130_v5  ;;  %v5390_v5 = vunpack.c.h.b16 %v10875_v12 }
 0x562   : > { %4364 = vmatpush.bf16.msrb.mxu2 %v4339_v18  ;;  %v3043_v46 = vadd.f32 %v3042_v61, %v2954_v36 }
 0x563   : > { %v3338_v27 = vpack.c.bf16 %v3219_v2, %v3041_v13  ;;  %v5415_v18 = vpack.c.b16 %v5391_v62, %v5390_v5  ;;  %v5388_v2 = vunpack.c.h.b16 %v10887_v50 }
 0x565   : > { %v4316_v25 = vunpack.c.l.b16 %v3338_v27  ;;  %v5392_v21 = vunpack.c.h.b16 %v3338_v27 }
 0x566   : > { %4365 = vmatpush.bf16.msrb.mxu2 %v4338_v28  ;;  %v3131_v40 = vpop.f32.mrf.mxu2 }
 0x567   : > { %v3132_v22 = vadd.f32 %v3131_v40, %v10747_v39  ;;  %v2956_v47 = vpop.f32.mrf.mxu0  ;;  %v3220_v6 = vpop.f32.mrf.mxu3 }
 0x568   : > { %v2957_v29 = vadd.f32 %v2956_v47, %v10737_v26  ;;  %v3045_v7 = vpop.f32.mrf.mxu1 }
 0x569   : > { %v3221_v35 = vadd.f32 %v3220_v6, %v3132_v22 }
 0x56a   : > { %4366 = vmatpush.bf16.msrb.mxu2 %v4337_v34  ;;  %v3046_v59 = vadd.f32 %v3045_v7, %v2957_v29  ;;  %3591 = vmatmul.bf16.gmra.mxu0 %v13636_v20 }
 0x56b   : > { %v3339_v37 = vpack.c.bf16 %v3221_v35, %v3043_v46  ;;  %3680 = vmatmul.bf16.gmra.mxu1 %v13636_v20 }
 0x56d   : > { %v4317_v9 = vunpack.c.l.b16 %v3339_v37  ;;  %v5393_v1 = vunpack.c.h.b16 %v3339_v37 }
 0x56e   : > { %4367 = vmatpush.bf16.msrb.mxu2 %v10844_v16  ;;  %v3134_v23 = vpop.f32.mrf.mxu2 }
 0x56f   : > { %v3135_v52 = vadd.f32 %v3134_v23, %v10747_v39  ;;  %v2958_v42 = vpop.f32.mrf.mxu0  ;;  %v3223_v3 = vpop.f32.mrf.mxu3  ;;  %v10908_v55 = vpack.c.b16 %v4317_v9, %v4316_v25  ;;  %v10910_v19 = vpack.c.b16 %v5393_v1, %v5392_v21  ;;  %v13638_v21 = vld [vmem:[#allocation52_spill] sm:$0xff] }
 0x570   : > { %v2959_v48 = vadd.f32 %v2958_v42, %v10737_v26  ;;  %v3047_v13 = vpop.f32.mrf.mxu1 }
 0x571   : > { %v3224_v63 = vadd.f32 %v3223_v3, %v3135_v52 }
 0x572   : > { %4368 = vmatpush.bf16.msrb.mxu2 %v10826_v54  ;;  %v3048_v49 = vadd.f32 %v3047_v13, %v2959_v48 }
 0x573   : > { %v3340_v38 = vpack.c.bf16 %v3224_v63, %v3046_v59 }
 0x575   : > { %v4318_v36 = vunpack.c.l.b16 %v3340_v38  ;;  %v5394_v61 = vunpack.c.h.b16 %v3340_v38 }
 0x576   : > { %4369 = vmatpush.bf16.msrb.mxu2 %v10808_v51  ;;  %v3136_v16 = vpop.f32.mrf.mxu2  ;;  %v5389_v51 = vunpack.c.h.b16 %v10880_v31  ;;  %v5387_v31 = vunpack.c.h.b16 %v10892_v44 }
 0x577   : > { %v3137_v45 = vadd.f32 %v3136_v16, %v10747_v39  ;;  %v2961_v32 = vpop.f32.mrf.mxu0  ;;  %v3225_v4 = vpop.f32.mrf.mxu3 }
 0x578   : > { %v2962_v10 = vadd.f32 %v2961_v32, %v10737_v26  ;;  %v3050_v8 = vpop.f32.mrf.mxu1  ;;  %v5414_v22 = vpack.c.b16 %v5389_v51, %v5388_v2 }
 0x579   : > { %v3226_v43 = vadd.f32 %v3225_v4, %v3137_v45 }
 0x57a   : > { %4370 = vmatpush.bf16.msrb.mxu2 %v10794_v57  ;;  %v3051_v54 = vadd.f32 %v3050_v8, %v2962_v10  ;;  %3596 = vmatmul.bf16.gmra.mxu0 %v13637_v41 }
 0x57b   : > { %v3341_v11 = vpack.c.bf16 %v3226_v43, %v3048_v49  ;;  %3685 = vmatmul.bf16.gmra.mxu1 %v13637_v41  ;;  %v13639_v41 = vld [vmem:[#allocation56_spill] sm:$0xff] }
 0x57d   : > { %v4319_v56 = vunpack.c.l.b16 %v3341_v11  ;;  %v5395_v60 = vunpack.c.h.b16 %v3341_v11 }
 0x57e   : > { %4371 = vmatpush.bf16.msrb.mxu2 %v10781_v15  ;;  %v3139_v57 = vpop.f32.mrf.mxu2  ;;  %v5386_v15 = vunpack.c.h.b16 %v10897_v58 }
 0x57f   : > { %v3140_v12 = vadd.f32 %v3139_v57, %v10747_v39  ;;  %v2963_v46 = vpop.f32.mrf.mxu0  ;;  %v3228_v14 = vpop.f32.mrf.mxu3  ;;  %v10926_v27 = vpack.c.b16 %v4319_v56, %v4318_v36  ;;  %v10928_v28 = vpack.c.b16 %v5395_v60, %v5394_v61 }
 0x580   : > { %v2964_v17 = vadd.f32 %v2963_v46, %v10737_v26  ;;  %v3052_v40 = vpop.f32.mrf.mxu1  ;;  %v5413_v34 = vpack.c.b16 %v5387_v31, %v5386_v15 }
 0x581   : > { %v3229_v47 = vadd.f32 %v3228_v14, %v3140_v12 }
 0x582   : > { %5440 = vmatpush.bf16.msra.mxu2 %v5415_v18  ;;  %v3053_v50 = vadd.f32 %v3052_v40, %v2964_v17 }
 0x583   : > { %v3342_v6 = vpack.c.bf16 %v3229_v47, %v3051_v54 }
 0x585   : > { %v4320_v9 = vunpack.c.l.b16 %v3342_v6  ;;  %v5396_v1 = vunpack.c.h.b16 %v3342_v6  ;;  %v13640_v6 = vld [vmem:[#allocation60_spill] sm:$0xff] }
 0x586   : > { %5441 = vmatpush.bf16.msra.mxu2 %v5414_v22  ;;  %v3141_v29 = vpop.f32.mrf.mxu2 }
 0x587   : > { %v3142_v7 = vadd.f32 %v3141_v29, %v10747_v39  ;;  %v2966_v35 = vpop.f32.mrf.mxu0  ;;  %v3230_v59 = vpop.f32.mrf.mxu3 }
 0x588   : > { %v2967_v20 = vadd.f32 %v2966_v35, %v10737_v26  ;;  %v3055_v44 = vpop.f32.mrf.mxu1 }
 0x589   : > { %v3231_v37 = vadd.f32 %v3230_v59, %v3142_v7 }
 0x58a   : > { %5442 = vmatpush.bf16.msra.mxu2 %v5413_v34  ;;  %v3056_v25 = vadd.f32 %v3055_v44, %v2967_v20  ;;  %3601 = vmatmul.bf16.gmra.mxu0 %v13638_v21 }
 0x58b   : > { %v3343_v58 = vpack.c.bf16 %v3231_v37, %v3053_v50  ;;  %3690 = vmatmul.bf16.gmra.mxu1 %v13638_v21 }
 0x58d   : > { %v4321_v23 = vunpack.c.l.b16 %v3343_v58  ;;  %v5397_v52 = vunpack.c.h.b16 %v3343_v58 }
 0x58e   : > { %5443 = vmatpush.bf16.msra.mxu2 %v10846_v30  ;;  %v3144_v42 = vpop.f32.mrf.mxu2 }
 0x58f   : > { %v3145_v3 = vadd.f32 %v3144_v42, %v10747_v39  ;;  %v2968_v48 = vpop.f32.mrf.mxu0  ;;  %v3233_v13 = vpop.f32.mrf.mxu3  ;;  %v10940_v63 = vpack.c.b16 %v4321_v23, %v4320_v9  ;;  %v10942_v49 = vpack.c.b16 %v5397_v52, %v5396_v1  ;;  %v13641_v42 = vld [vmem:[#allocation62_spill] sm:$0xff] }
 0x590   : > { %v2969_v30 = vadd.f32 %v2968_v48, %v10737_v26  ;;  %v3057_v38 = vpop.f32.mrf.mxu1 }
 0x591   : > { %v3234_v16 = vadd.f32 %v3233_v13, %v3145_v3 }
 0x592   : > { %5444 = vmatpush.bf16.msra.mxu2 %v10828_v53  ;;  %v3058_v45 = vadd.f32 %v3057_v38, %v2969_v30 }
 0x593   : > { %v3344_v32 = vpack.c.bf16 %v3234_v16, %v3056_v25 }
 0x595   : > { %v5398_v51 = vunpack.c.h.b16 %v3344_v32 }
 0x596   : > { %5445 = vmatpush.bf16.msra.mxu2 %v10810_v0  ;;  %v3146_v4 = vpop.f32.mrf.mxu2  ;;  %v4322_v0 = vunpack.c.l.b16 %v3344_v32 }
 0x597   : > { %v3147_v53 = vadd.f32 %v3146_v4, %v10747_v39  ;;  %v2971_v62 = vpop.f32.mrf.mxu0  ;;  %v3235_v10 = vpop.f32.mrf.mxu3  ;;  %v13642_v4 = vld [vmem:[#allocation64_spill] sm:$0xff] }
 0x598   : > { %v2972_v8 = vadd.f32 %v2971_v62, %v10737_v26  ;;  %v3060_v43 = vpop.f32.mrf.mxu1 }
 0x599   : > { %v3236_v5 = vadd.f32 %v3235_v10, %v3147_v53 }
 0x59a   : > { %5446 = vmatpush.bf16.msra.mxu2 %v10796_v24  ;;  %v3061_v54 = vadd.f32 %v3060_v43, %v2972_v8  ;;  %3606 = vmatmul.bf16.gmra.mxu0 %v13639_v41 }
 0x59b   : > { %v3345_v11 = vpack.c.bf16 %v3236_v5, %v3058_v45  ;;  %3695 = vmatmul.bf16.gmra.mxu1 %v13639_v41 }
 0x59d   : > { %v4323_v18 = vunpack.c.l.b16 %v3345_v11  ;;  %v5399_v24 = vunpack.c.h.b16 %v3345_v11 }
 0x59e   : > { %5447 = vmatpush.bf16.msra.mxu2 %v10783_v33  ;;  %v3149_v36 = vpop.f32.mrf.mxu2 }
 0x59f   : > { %v3150_v61 = vadd.f32 %v3149_v36, %v10747_v39  ;;  %v2973_v56 = vpop.f32.mrf.mxu0  ;;  %v3238_v60 = vpop.f32.mrf.mxu3  ;;  %v10953_v2 = vpack.c.b16 %v4323_v18, %v4322_v0  ;;  %v10955_v57 = vpack.c.b16 %v5399_v24, %v5398_v51 }
 0x5a0   : > { %v2974_v33 = vadd.f32 %v2973_v56, %v10737_v26  ;;  %v3062_v12 = vpop.f32.mrf.mxu1 }
 0x5a1   : > { %v3239_v46 = vadd.f32 %v3238_v60, %v3150_v61 }
 0x5a2   : > { %v3063_v14 = vadd.f32 %v3062_v12, %v2974_v33 }
 0x5a3   : > { %v3346_v31 = vpack.c.bf16 %v3239_v46, %v3061_v54 }
 0x5a5   : > { %v4324_v29 = vunpack.c.l.b16 %v3346_v31  ;;  %v5400_v7 = vunpack.c.h.b16 %v3346_v31 }
 0x5a6   : > { %v3151_v17 = vpop.f32.mrf.mxu2 }
 0x5a7   : > { %v3152_v40 = vadd.f32 %v3151_v17, %v10747_v39  ;;  %v2976_v22 = vpop.f32.mrf.mxu0  ;;  %v3240_v47 = vpop.f32.mrf.mxu3 }
 0x5a8   : > { %v10959_v15 = vpop.f32.mrf.mxu1 }
 0x5a9   : > { %v3241_v50 = vadd.f32 %v3240_v47, %v3152_v40 }
 0x5aa   : > { %3611 = vmatmul.bf16.gmra.mxu0 %v13640_v6 }
 0x5ab   : > { %v3347_v34 = vpack.c.bf16 %v3241_v50, %v3063_v14  ;;  %3700 = vmatmul.bf16.gmra.mxu1 %v13640_v6 }
 0x5ad   : > { %v4325_v35 = vunpack.c.l.b16 %v3347_v34  ;;  %v5401_v59 = vunpack.c.h.b16 %v3347_v34 }
 0x5ae   : > { %v3154_v20 = vpop.f32.mrf.mxu2 }
 0x5af   : > { %v2978_v44 = vpop.f32.mrf.mxu0  ;;  %v3243_v37 = vpop.f32.mrf.mxu3  ;;  %v10963_v25 = vpack.c.b16 %v4325_v35, %v4324_v29  ;;  %v10965_v21 = vpack.c.b16 %v5401_v59, %v5400_v7  ;;  %v3155_v46 = vadd.f32 %v3154_v20, %v10747_v39  ;;  %v2977_v29 = vadd.f32 %v2976_v22, %v10737_v26  ;;  %v13643_v35 = vld [vmem:[#allocation66_spill] sm:$0xff] }
 0x5b0   : > { %v3067_v58 = vpop.f32.mrf.mxu1  ;;  %v2979_v14 = vadd.f32 %v2978_v44, %v10737_v26 }
 0x5b1   : > { %v3244_v20 = vadd.f32 %v3243_v37, %v3155_v46 }
 0x5b2   : > { %v3068_v44 = vadd.f32 %v3067_v58, %v2979_v14  ;;  %v13646_v14 = vld [vmem:[#allocation72_spill] sm:$0xff] }
 0x5b6   : > { %v3156_v9 = vpop.f32.mrf.mxu2 }
 0x5b7   : > { %v2981_v1 = vpop.f32.mrf.mxu0  ;;  %v3245_v23 = vpop.f32.mrf.mxu3  ;;  %v3157_v18 = vadd.f32 %v3156_v9, %v10747_v39 }
 0x5b8   : > { %v3070_v52 = vpop.f32.mrf.mxu1  ;;  %v2982_v36 = vadd.f32 %v2981_v1, %v10737_v26 }
 0x5b9   : > { %v3246_v7 = vadd.f32 %v3245_v23, %v3157_v18 }
 0x5ba   : > { %3616 = vmatmul.bf16.gmra.mxu0 %v13641_v42  ;;  %v3071_v59 = vadd.f32 %v3070_v52, %v2982_v36 }
 0x5bb   : > { %3705 = vmatmul.bf16.gmra.mxu1 %v13641_v42 }
 0x5be   : > { %v3159_v3 = vpop.f32.mrf.mxu2 }
 0x5bf   : > { %v2983_v48 = vpop.f32.mrf.mxu0  ;;  %v3248_v13 = vpop.f32.mrf.mxu3  ;;  %v3160_v41 = vadd.f32 %v3159_v3, %v10747_v39 }
 0x5c0   : > { %v3072_v30 = vpop.f32.mrf.mxu1  ;;  %v2984_v11 = vadd.f32 %v2983_v48, %v10737_v26  ;;  %v3066_v48 = vadd.f32 %v10959_v15, %v2977_v29 }
 0x5c1   : > { %v3249_v17 = vadd.f32 %v3248_v13, %v3160_v41  ;;  %v3349_v13 = vpack.c.bf16 %v3246_v7, %v3068_v44  ;;  %v13648_v7 = vld [vmem:[#allocation76_spill] sm:$0xff] }
 0x5c2   : > { %v3073_v31 = vadd.f32 %v3072_v30, %v2984_v11  ;;  %v3348_v23 = vpack.c.bf16 %v3244_v20, %v3066_v48 }
 0x5c3   : > { %v3350_v1 = vpack.c.bf16 %v3249_v17, %v3071_v59  ;;  %v4327_v37 = vunpack.c.l.b16 %v3349_v13  ;;  %v13649_v59 = vld [vmem:[#allocation78_spill] sm:$0xff] }
 0x5c5   : > { %v4328_v52 = vunpack.c.l.b16 %v3350_v1 }
 0x5c6   : > { %v3161_v38 = vpop.f32.mrf.mxu2 }
 0x5c7   : > { %v2986_v16 = vpop.f32.mrf.mxu0  ;;  %v3250_v45 = vpop.f32.mrf.mxu3  ;;  %v3162_v5 = vadd.f32 %v3161_v38, %v10747_v39 }
 0x5c8   : > { %v3075_v32 = vpop.f32.mrf.mxu1  ;;  %v2987_v54 = vadd.f32 %v2986_v16, %v10737_v26 }
 0x5c9   : > { %v3251_v56 = vadd.f32 %v3250_v45, %v3162_v5  ;;  %v4326_v45 = vunpack.c.l.b16 %v3348_v23 }
 0x5ca   : > { %3621 = vmatmul.bf16.gmra.mxu0 %v13642_v4  ;;  %v3076_v61 = vadd.f32 %v3075_v32, %v2987_v54 }
 0x5cb   : > { %3710 = vmatmul.bf16.gmra.mxu1 %v13642_v4  ;;  %v3351_v9 = vpack.c.bf16 %v3251_v56, %v3073_v31  ;;  %v4345_v15 = vpack.c.b16 %v4327_v37, %v4326_v45  ;;  %v5402_v56 = vunpack.c.h.b16 %v3348_v23 }
 0x5cd   : > { %v4329_v30 = vunpack.c.l.b16 %v3351_v9 }
 0x5ce   : > { %v3164_v53 = vpop.f32.mrf.mxu2 }
 0x5cf   : > { %v2988_v62 = vpop.f32.mrf.mxu0  ;;  %v3253_v10 = vpop.f32.mrf.mxu3  ;;  %v3165_v43 = vadd.f32 %v3164_v53, %v10747_v39  ;;  %v4346_v58 = vpack.c.b16 %v4329_v30, %v4328_v52 }
 0x5d0   : > { %v3077_v8 = vpop.f32.mrf.mxu1  ;;  %v2989_v0 = vadd.f32 %v2988_v62, %v10737_v26  ;;  %v13644_v62 = vld [vmem:[#allocation68_spill] sm:$0xff] }
 0x5d1   : > { %v3254_v51 = vadd.f32 %v3253_v10, %v3165_v43 }
 0x5d2   : > { %v3078_v47 = vadd.f32 %v3077_v8, %v2989_v0  ;;  %v13645_v0 = vld [vmem:[#allocation70_spill] sm:$0xff] }
 0x5d3   : > { %v3352_v50 = vpack.c.bf16 %v3254_v51, %v3076_v61 }
 0x5d5   : > { %v4330_v42 = vunpack.c.l.b16 %v3352_v50  ;;  %v5406_v11 = vunpack.c.h.b16 %v3352_v50 }
 0x5d6   : > { %v3166_v24 = vpop.f32.mrf.mxu2 }
 0x5d7   : > { %v3167_v60 = vadd.f32 %v3166_v24, %v10747_v39  ;;  %v3255_v33 = vpop.f32.mrf.mxu3  ;;  %v10980_v12 = vpop.f32.mrf.mxu0  ;;  %v5403_v24 = vunpack.c.h.b16 %v3349_v13 }
 0x5d8   : > { %v10984_v40 = vpop.f32.mrf.mxu1 }
 0x5d9   : > { %v3256_v6 = vadd.f32 %v3255_v33, %v3167_v60  ;;  %v3756_v34 = vmax.f32 %v10980_v12, %v10984_v40  ;;  %v5421_v60 = vpack.c.b16 %v5403_v24, %v5402_v56 }
 0x5da   : > { %3626 = vmatmul.bf16.gmra.mxu0 %v13643_v35 }
 0x5db   : > { %v3353_v39 = vpack.c.bf16 %v3256_v6, %v3078_v47  ;;  %3715 = vmatmul.bf16.gmra.mxu1 %v13643_v35  ;;  %3757 = vmax.xlane.f32.xlu0 %v3756_v34 }
 0x5dd   : > { %v4331_v3 = vunpack.c.l.b16 %v3353_v39  ;;  %v5407_v54 = vunpack.c.h.b16 %v3353_v39 }
 0x5df   : > { %v10992_v38 = vpop.f32.mrf.mxu0  ;;  %v4347_v26 = vpack.c.b16 %v4331_v3, %v4330_v42  ;;  %v5423_v51 = vpack.c.b16 %v5407_v54, %v5406_v11 }
 0x5e0   : > { %v10994_v22 = vpop.f32.mrf.mxu1 }
 0x5e1   : > { %4453 = vmatpush.bf16.msrb.mxu3 %v4347_v26  ;;  %v3759_v16 = vmax.f32 %v10992_v38, %v10994_v22 }
 0x5e3   : > { %3760 = vmax.xlane.f32.xlu0 %v3759_v16 }
 0x5e5   : > { %4454 = vmatpush.bf16.msrb.mxu3 %v4346_v58 }
 0x5e7   : > { %v10998_v32 = vpop.f32.mrf.mxu0 }
 0x5e8   : > { %v11000_v4 = vpop.f32.mrf.mxu1 }
 0x5e9   : > { %4455 = vmatpush.bf16.msrb.mxu3 %v4345_v15  ;;  %v3762_v53 = vmax.f32 %v10998_v32, %v11000_v4 }
 0x5ea   : > { %3631 = vmatmul.bf16.gmra.mxu0 %v13644_v62 }
 0x5eb   : > { %3720 = vmatmul.bf16.gmra.mxu1 %v13644_v62  ;;  %3763 = vmax.xlane.f32.xlu1 %v3762_v53 }
 0x5ed   : > { %4456 = vmatpush.bf16.msrb.mxu3 %v10963_v25 }
 0x5ef   : > { %v11007_v10 = vpop.f32.mrf.mxu0 }
 0x5f0   : > { %v11009_v8 = vpop.f32.mrf.mxu1 }
 0x5f1   : > { %4457 = vmatpush.bf16.msrb.mxu3 %v10953_v2  ;;  %v3765_v43 = vmax.f32 %v11007_v10, %v11009_v8  ;;  %v5405_v2 = vunpack.c.h.b16 %v3351_v9 }
 0x5f3   : > { %3766 = vmax.xlane.f32.xlu1 %v3765_v43 }
 0x5f5   : > { %4458 = vmatpush.bf16.msrb.mxu3 %v10940_v63  ;;  %v5404_v63 = vunpack.c.h.b16 %v3350_v1  ;;  %v13650_v1 = vld [vmem:[#allocation80_spill] sm:$0xff] }
 0x5f7   : > { %v11015_v5 = vpop.f32.mrf.mxu0 }
 0x5f8   : > { %v11017_v41 = vpop.f32.mrf.mxu1 }
 0x5f9   : > { %4459 = vmatpush.bf16.msrb.mxu3 %v10926_v27  ;;  %v3768_v25 = vmax.f32 %v11015_v5, %v11017_v41  ;;  %v5422_v27 = vpack.c.b16 %v5405_v2, %v5404_v63 }
 0x5fa   : > { %3636 = vmatmul.bf16.gmra.mxu0 %v13645_v0 }
 0x5fb   : > { %3725 = vmatmul.bf16.gmra.mxu1 %v13645_v0  ;;  %3769 = vmax.xlane.f32.xlu2 %v3768_v25 }
 0x5fd   : > { %4460 = vmatpush.bf16.msrb.mxu3 %v10908_v55 }
 0x5ff   : > { %v11025_v18 = vpop.f32.mrf.mxu0 }
 0x600   : > { %v11027_v36 = vpop.f32.mrf.mxu1 }
 0x601   : > { %5529 = vmatpush.bf16.msra.mxu3 %v5423_v51  ;;  %v3771_v61 = vmax.f32 %v11025_v18, %v11027_v36 }
 0x603   : > { %3772 = vmax.xlane.f32.xlu2 %v3771_v61 }
 0x605   : > { %5530 = vmatpush.bf16.msra.mxu3 %v5422_v27 }
 0x607   : > { %v11031_v33 = vpop.f32.mrf.mxu0 }
 0x608   : > { %v11033_v46 = vpop.f32.mrf.mxu1 }
 0x609   : > { %5531 = vmatpush.bf16.msra.mxu3 %v5421_v60  ;;  %v3774_v55 = vmax.f32 %v11031_v33, %v11033_v46 }
 0x60a   : > { %3641 = vmatmul.bf16.gmra.mxu0 %v13646_v14 }
 0x60b   : > { %3730 = vmatmul.bf16.gmra.mxu1 %v13646_v14  ;;  %3775 = vmax.xlane.f32.xlu0 %v3774_v55 }
 0x60d   : > { %5532 = vmatpush.bf16.msra.mxu3 %v10965_v21 }
 0x60f   : > { %v11041_v31 = vpop.f32.mrf.mxu0 }
 0x610   : > { %v11043_v17 = vpop.f32.mrf.mxu1 }
 0x611   : > { %5533 = vmatpush.bf16.msra.mxu3 %v10955_v57  ;;  %v3777_v47 = vmax.f32 %v11041_v31, %v11043_v17  ;;  %v13647_v57 = vld [vmem:[#allocation74_spill] sm:$0xff] }
 0x613   : > { %3778 = vmax.xlane.f32.xlu1 %v3777_v47  ;;  %v13652_v47 = vld [vmem:[#allocation45_spill] sm:$0xff] }
 0x615   : > { %5534 = vmatpush.bf16.msra.mxu3 %v10942_v49 }
 0x617   : > { %v11049_v21 = vpop.f32.mrf.mxu0 }
 0x618   : > { %v11051_v50 = vpop.f32.mrf.mxu1 }
 0x619   : > { %5535 = vmatpush.bf16.msra.mxu3 %v10928_v28  ;;  %v3780_v6 = vmax.f32 %v11049_v21, %v11051_v50 }
 0x61a   : > { %3646 = vmatmul.bf16.gmra.mxu0 %v13647_v57 }
 0x61b   : > { %3735 = vmatmul.bf16.gmra.mxu1 %v13647_v57  ;;  %3781 = vmax.xlane.f32.xlu1 %v3780_v6 }
 0x61d   : > { %5536 = vmatpush.bf16.msra.mxu3 %v10910_v19 }
 0x61f   : > { %v11058_v34 = vpop.f32.mrf.mxu0 }
 0x620   : > { %v11060_v49 = vpop.f32.mrf.mxu1 }
 0x621   : > { %v3783_v24 = vmax.f32 %v11058_v34, %v11060_v49 }
 0x627   : > { %v11062_v29 = vpop.f32.mrf.mxu0 }
 0x628   : > { %v11064_v28 = vpop.f32.mrf.mxu1 }
 0x629   : > { %v3786_v57 = vmax.f32 %v11062_v29, %v11064_v28 }
 0x62a   : > { %3651 = vmatmul.bf16.gmra.mxu0 %v13648_v7 }
 0x62b   : > { %3740 = vmatmul.bf16.gmra.mxu1 %v13648_v7 }
 0x62f   : > { %v11068_v35 = vpop.f32.mrf.mxu0 }
 0x630   : > { %v11070_v19 = vpop.f32.mrf.mxu1 }
 0x637   : > { %v11073_v9 = vpop.f32.mrf.mxu0 }
 0x638   : > { %v11076_v39 = vpop.f32.mrf.mxu1 }
 0x63a   : > { %3656 = vmatmul.bf16.gmra.mxu0 %v13649_v59 }
 0x63b   : > { %3745 = vmatmul.bf16.gmra.mxu1 %v13649_v59 }
 0x63f   : > { %v11078_v20 = vpop.f32.mrf.mxu0 }
 0x640   : > { %v11080_v44 = vpop.f32.mrf.mxu1 }
 0x647   : > { %v11084_v3 = vpop.f32.mrf.mxu0 }
 0x648   : > { %v11088_v30 = vpop.f32.mrf.mxu1 }
 0x64a   : > { %3661 = vmatmul.bf16.gmra.mxu0 %v13650_v1 }
 0x64b   : > { %3750 = vmatmul.bf16.gmra.mxu1 %v13650_v1 }
 0x64e   : > { %v3758_v42 = vpop.xlane.xlu0 %3757 }
 0x64f   : > { %v3852_v48 = vsub.f32 %v10980_v12, %v3758_v42  ;;  %v3853_v13 = vsub.f32 %v10984_v40, %v3758_v42  ;;  %v11094_v45 = vpop.f32.mrf.mxu0  ;;  %v13651_v40 = vld [vmem:[#allocation41_spill] sm:$0xff] }
 0x650   : > { %v11099_v62 = vpop.f32.mrf.mxu1 }
 0x651   : > { %v3916_v26 = vmul.f32 1.442695, %v3852_v48  ;;  %v3918_v23 = vmul.f32 1.442695, %v3853_v13 }
 0x653   : > { %8440 = vpow2.f32 %v3916_v26 }
 0x654   : > { %8442 = vpow2.f32 %v3918_v23 }
 0x656   : > { %v3761_v52 = vpop.xlane.xlu0 %3760 }
 0x657   : > { %v3854_v16 = vsub.f32 %v10992_v38, %v3761_v52  ;;  %v3855_v37 = vsub.f32 %v10994_v22, %v3761_v52  ;;  %v11110_v51 = vpop.f32.mrf.mxu0  ;;  %v3789_v52 = vmax.f32 %v11068_v35, %v11070_v19 }
 0x658   : > { %v11116_v27 = vpop.f32.mrf.mxu1 }
 0x659   : > { %v11092_v58 = vpop.eup %8440  ;;  %v3920_v15 = vmul.f32 1.442695, %v3854_v16  ;;  %v3922_v53 = vmul.f32 1.442695, %v3855_v37 }
 0x65a   : > { %v11096_v12 = vpop.eup %8442  ;;  %4694 = vmatmul.bf16.vlgmr.msra.gmra.mxu0 %v13651_v40 }
 0x65b   : > { %8444 = vpow2.f32 %v3920_v15  ;;  %4783 = vmatmul.bf16.vlgmr.msra.gmra.mxu1 %v13651_v40  ;;  %v4044_v38 = vadd.f32 %v11096_v12, %v11092_v58 }
 0x65c   : > { %8446 = vpow2.f32 %v3922_v53 }
 0x65d   : > { %4045 = vadd.xlane.f32.xlu2 %v4044_v38 }
 0x65e   : > { %v3764_v22 = vpop.xlane.xlu1 %3763 }
 0x65f   : > { %v3856_v43 = vsub.f32 %v10998_v32, %v3764_v22  ;;  %v3857_v54 = vsub.f32 %v11000_v4, %v3764_v22 }
 0x660   : > { %v11132_v7 = vpop.f32.mrf.mxu1 }
 0x661   : > { %v11106_v25 = vpop.eup %8444  ;;  %v3924_v11 = vmul.f32 1.442695, %v3856_v43  ;;  %v3926_v0 = vmul.f32 1.442695, %v3857_v54  ;;  %v13653_v43 = vld [vmem:[#allocation49_spill] sm:$0xff] }
 0x662   : > { %v11108_v2 = vpop.eup %8446 }
 0x663   : > { %8448 = vpow2.f32 %v3924_v11  ;;  %v4047_v63 = vadd.f32 %v11108_v2, %v11106_v25 }
 0x664   : > { %8450 = vpow2.f32 %v3926_v0 }
 0x665   : > { %4048 = vadd.xlane.f32.xlu0 %v4047_v63  ;;  %3784 = vmax.xlane.f32.xlu2 %v3783_v24 }
 0x666   : > { %v3767_v32 = vpop.xlane.xlu1 %3766 }
 0x667   : > { %v3858_v4 = vsub.f32 %v11007_v10, %v3767_v32  ;;  %v3859_v61 = vsub.f32 %v11009_v8, %v3767_v32  ;;  %v11130_v10 = vpop.f32.mrf.mxu0 }
 0x668   : > { %v11150_v53 = vpop.f32.mrf.mxu1 }
 0x669   : > { %v11120_v56 = vpop.eup %8448  ;;  %v3928_v60 = vmul.f32 1.442695, %v3858_v4  ;;  %v3930_v55 = vmul.f32 1.442695, %v3859_v61 }
 0x66a   : > { %v11122_v14 = vpop.eup %8450  ;;  %4699 = vmatmul.bf16.gmra.mxu0 %v13652_v47 }
 0x66b   : > { %8452 = vpow2.f32 %v3928_v60  ;;  %4788 = vmatmul.bf16.gmra.mxu1 %v13652_v47  ;;  %v4050_v6 = vadd.f32 %v11122_v14, %v11120_v56  ;;  %v3795_v47 = vmax.f32 %v11078_v20, %v11080_v44 }
 0x66c   : > { %8454 = vpow2.f32 %v3930_v55 }
 0x66d   : > { %4051 = vadd.xlane.f32.xlu0 %v4050_v6  ;;  %3787 = vmax.xlane.f32.xlu2 %v3786_v57 }
 0x66e   : > { %v3770_v8 = vpop.xlane.xlu2 %3769 }
 0x66f   : > { %v3860_v59 = vsub.f32 %v11015_v5, %v3770_v8  ;;  %v3861_v1 = vsub.f32 %v11017_v41, %v3770_v8  ;;  %v11144_v5 = vpop.f32.mrf.mxu0 }
 0x670   : > { %v11168_v60 = vpop.f32.mrf.mxu1 }
 0x671   : > { %v11136_v42 = vpop.eup %8452  ;;  %v3932_v48 = vmul.f32 1.442695, %v3860_v59  ;;  %v3934_v13 = vmul.f32 1.442695, %v3861_v1 }
 0x672   : > { %v11138_v26 = vpop.eup %8454 }
 0x673   : > { %8456 = vpow2.f32 %v3932_v48  ;;  %v4053_v23 = vadd.f32 %v11138_v26, %v11136_v42  ;;  %v13654_v48 = vld [vmem:[#allocation53_spill] sm:$0xff] }
 0x674   : > { %8458 = vpow2.f32 %v3934_v13 }
 0x675   : > { %4054 = vadd.xlane.f32.xlu1 %v4053_v23  ;;  %3790 = vmax.xlane.f32.xlu0 %v3789_v52 }
 0x676   : > { %v3773_v16 = vpop.xlane.xlu2 %3772 }
 0x677   : > { %v3862_v41 = vsub.f32 %v11025_v18, %v3773_v16  ;;  %v3863_v37 = vsub.f32 %v11027_v36, %v3773_v16  ;;  %v3792_v18 = vmax.f32 %v11073_v9, %v11076_v39  ;;  %v11164_v24 = vpop.f32.mrf.mxu0 }
 0x679   : > { %v11148_v15 = vpop.eup %8456  ;;  %v3936_v40 = vmul.f32 1.442695, %v3862_v41  ;;  %v3938_v38 = vmul.f32 1.442695, %v3863_v37 }
 0x67a   : > { %v11152_v22 = vpop.eup %8458  ;;  %4704 = vmatmul.bf16.gmra.mxu0 %v13653_v43 }
 0x67b   : > { %8460 = vpow2.f32 %v3936_v40  ;;  %4793 = vmatmul.bf16.gmra.mxu1 %v13653_v43  ;;  %v4056_v54 = vadd.f32 %v11152_v22, %v11148_v15 }
 0x67c   : > { %8462 = vpow2.f32 %v3938_v38 }
 0x67d   : > { %4057 = vadd.xlane.f32.xlu1 %v4056_v54  ;;  %3793 = vmax.xlane.f32.xlu0 %v3792_v18  ;;  %v3801_v18 = vmax.f32 %v11094_v45, %v11099_v62 }
 0x67e   : > { %v3776_v36 = vpop.xlane.xlu0 %3775 }
 0x67f   : > { %v3864_v11 = vsub.f32 %v11031_v33, %v3776_v36  ;;  %v3865_v0 = vsub.f32 %v11033_v46, %v3776_v36  ;;  %v11181_v13 = vpop.f32.mrf.mxu0 }
 0x681   : > { %v11162_v63 = vpop.eup %8460  ;;  %v3940_v32 = vmul.f32 1.442695, %v3864_v11  ;;  %v3942_v4 = vmul.f32 1.442695, %v3865_v0  ;;  %v13657_v0 = vld [vmem:[#allocation57_spill] sm:$0xff] }
 0x682   : > { %v11166_v61 = vpop.eup %8462 }
 0x683   : > { %8464 = vpow2.f32 %v3940_v32  ;;  %v4059_v55 = vadd.f32 %v11166_v61, %v11162_v63 }
 0x684   : > { %8466 = vpow2.f32 %v3942_v4  ;;  %v3804_v4 = vmax.f32 %v11110_v51, %v11116_v27 }
 0x685   : > { %4060 = vadd.xlane.f32.xlu2 %v4059_v55  ;;  %3796 = vmax.xlane.f32.xlu1 %v3795_v47 }
 0x686   : > { %v3779_v33 = vpop.xlane.xlu1 %3778 }
 0x687   : > { %v3866_v46 = vsub.f32 %v11041_v31, %v3779_v33  ;;  %v3867_v6 = vsub.f32 %v11043_v17, %v3779_v33  ;;  %v3798_v31 = vmax.f32 %v11084_v3, %v11088_v30  ;;  %v11188_v17 = vpop.f32.mrf.mxu1  ;;  %v11200_v36 = vpop.f32.mrf.mxu0  ;;  %v3807_v33 = vmax.f32 %v11130_v10, %v11132_v7 }
 0x689   : > { %v11176_v57 = vpop.eup %8464  ;;  %v3944_v8 = vmul.f32 1.442695, %v3866_v46  ;;  %v3946_v59 = vmul.f32 1.442695, %v3867_v6  ;;  %v13658_v6 = vld [vmem:[#allocation61_spill] sm:$0xff] }
 0x68a   : > { %v11178_v1 = vpop.eup %8466  ;;  %4709 = vmatmul.bf16.gmra.mxu0 %v13654_v48 }
 0x68b   : > { %8468 = vpow2.f32 %v3944_v8  ;;  %4798 = vmatmul.bf16.gmra.mxu1 %v13654_v48  ;;  %v4062_v23 = vadd.f32 %v11178_v1, %v11176_v57 }
 0x68c   : > { %8470 = vpow2.f32 %v3946_v59  ;;  %v3810_v59 = vmax.f32 %v11144_v5, %v11150_v53 }
 0x68d   : > { %4063 = vadd.xlane.f32.xlu2 %v4062_v23  ;;  %3799 = vmax.xlane.f32.xlu1 %v3798_v31  ;;  %v13659_v31 = vld [vmem:[#allocation63_spill] sm:$0xff] }
 0x68e   : > { %v3782_v52 = vpop.xlane.xlu1 %3781 }
 0x68f   : > { %v3868_v16 = vsub.f32 %v11049_v21, %v3782_v52  ;;  %v3869_v41 = vsub.f32 %v11051_v50, %v3782_v52  ;;  %v11202_v21 = vpop.f32.mrf.mxu1  ;;  %v11214_v55 = vpop.f32.mrf.mxu0 }
 0x691   : > { %v11192_v37 = vpop.eup %8468  ;;  %v3948_v40 = vmul.f32 1.442695, %v3868_v16  ;;  %v3950_v38 = vmul.f32 1.442695, %v3869_v41 }
 0x692   : > { %v11194_v43 = vpop.eup %8470 }
 0x693   : > { %8472 = vpow2.f32 %v3948_v40  ;;  %v4065_v54 = vadd.f32 %v11194_v43, %v11192_v37 }
 0x694   : > { %8474 = vpow2.f32 %v3950_v38  ;;  %v13662_v38 = vld [vmem:[#allocation65_spill] sm:$0xff] }
 0x695   : > { %4066 = vadd.xlane.f32.xlu0 %v4065_v54  ;;  %3802 = vmax.xlane.f32.xlu2 %v3801_v18 }
 0x697   : > { %v11216_v47 = vpop.f32.mrf.mxu1  ;;  %v11220_v46 = vpop.f32.mrf.mxu0 }
 0x699   : > { %v11204_v50 = vpop.eup %8472 }
 0x69a   : > { %13655 = vst [vmem:[#allocation38_spill] sm:$0xff] %v11204_v50  ;;  %v11206_v11 = vpop.eup %8474  ;;  %4714 = vmatmul.bf16.gmra.mxu0 %v13657_v0 }
 0x69b   : > { %13656 = vst [vmem:[#allocation39_spill] sm:$0xff] %v11206_v11  ;;  %4803 = vmatmul.bf16.gmra.mxu1 %v13657_v0  ;;  %v4068_v32 = vadd.f32 %v11206_v11, %v11204_v50 }
 0x69d   : > { %4069 = vadd.xlane.f32.xlu0 %v4068_v32  ;;  %3805 = vmax.xlane.f32.xlu2 %v3804_v4 }
 0x69f   : > { %v11223_v8 = vpop.f32.mrf.mxu1  ;;  %v11228_v48 = vpop.f32.mrf.mxu0 }
 0x6a5   : > { %3808 = vmax.xlane.f32.xlu0 %v3807_v33 }
 0x6a7   : > { %v11230_v23 = vpop.f32.mrf.mxu1  ;;  %v11234_v52 = vpop.f32.mrf.mxu0 }
 0x6aa   : > { %4719 = vmatmul.bf16.gmra.mxu0 %v13658_v6 }
 0x6ab   : > { %4808 = vmatmul.bf16.gmra.mxu1 %v13658_v6 }
 0x6ad   : > { %3811 = vmax.xlane.f32.xlu0 %v3810_v59  ;;  %v13665_v59 = vld [vmem:[#allocation67_spill] sm:$0xff] }
 0x6af   : > { %v11236_v16 = vpop.f32.mrf.mxu1  ;;  %v11238_v41 = vpop.f32.mrf.mxu0 }
 0x6b0   : > { %13660 = vst [vmem:[#allocation42_spill] sm:$0xff] %v11238_v41 }
 0x6b7   : > { %v11240_v40 = vpop.f32.mrf.mxu1  ;;  %v11244_v18 = vpop.f32.mrf.mxu0 }
 0x6b8   : > { %13661 = vst [vmem:[#allocation43_spill] sm:$0xff] %v11240_v40 }
 0x6b9   : > { %13663 = vst [vmem:[#allocation46_spill] sm:$0xff] %v11244_v18 }
 0x6ba   : > { %4724 = vmatmul.bf16.gmra.mxu0 %v13659_v31 }
 0x6bb   : > { %4813 = vmatmul.bf16.gmra.mxu1 %v13659_v31 }
 0x6bf   : > { %v11246_v0 = vpop.f32.mrf.mxu1  ;;  %v11251_v31 = vpop.f32.mrf.mxu0 }
 0x6c0   : > { %13664 = vst [vmem:[#allocation47_spill] sm:$0xff] %v11246_v0 }
 0x6c1   : > { %13666 = vst [vmem:[#allocation50_spill] sm:$0xff] %v11251_v31 }
 0x6c7   : > { %v11254_v18 = vpop.f32.mrf.mxu1 }
 0x6c8   : > { %13667 = vst [vmem:[#allocation51_spill] sm:$0xff] %v11254_v18 }
 0x6ca   : > { %4729 = vmatmul.bf16.gmra.mxu0 %v13662_v38 }
 0x6cb   : > { %4818 = vmatmul.bf16.gmra.mxu1 %v13662_v38 }
 0x6d0   : > { %v4046_v54 = vpop.xlane.xlu2 %4045 }
 0x6d1   : > { %8476 = vrcp.f32 %v4046_v54 }
 0x6d7   : > { %v8477_v38 = vpop.eup %8476 }
 0x6d8   : > { %v4049_v32 = vpop.xlane.xlu0 %4048  ;;  %v3785_v4 = vpop.xlane.xlu2 %3784 }
 0x6d9   : > { %8478 = vrcp.f32 %v4049_v32  ;;  %v3870_v33 = vsub.f32 %v11058_v34, %v3785_v4  ;;  %v3871_v6 = vsub.f32 %v11060_v49, %v3785_v4  ;;  %v4172_v32 = vmul.f32 %v8477_v38, %v11092_v58  ;;  %v11266_v58 = vpop.f32.mrf.mxu0 }
 0x6da   : > { %4734 = vmatmul.bf16.gmra.mxu0 %v13665_v59  ;;  %v4173_v34 = vmul.f32 %v8477_v38, %v11096_v12  ;;  %v13668_v38 = vld [vmem:[#allocation69_spill] sm:$0xff] }
 0x6db   : > { %v3952_v11 = vmul.f32 1.442695, %v3870_v33  ;;  %v3954_v50 = vmul.f32 1.442695, %v3871_v6  ;;  %4823 = vmatmul.bf16.gmra.mxu1 %v13665_v59 }
 0x6dd   : > { %8480 = vpow2.f32 %v3952_v11 }
 0x6de   : > { %8482 = vpow2.f32 %v3954_v50 }
 0x6df   : > { %v8479_v54 = vpop.eup %8478 }
 0x6e0   : > { %v4174_v49 = vmul.f32 %v8479_v54, %v11106_v25  ;;  %v4175_v4 = vmul.f32 %v8479_v54, %v11108_v2  ;;  %v4052_v0 = vpop.xlane.xlu0 %4051  ;;  %v3788_v31 = vpop.xlane.xlu2 %3787 }
 0x6e1   : > { %v3872_v33 = vsub.f32 %v11062_v29, %v3788_v31  ;;  %v3873_v6 = vsub.f32 %v11064_v28, %v3788_v31  ;;  %v11270_v29 = vpop.f32.mrf.mxu1 }
 0x6e2   : > { %v4236_v59 = vpack.c.bf16 %v4174_v49, %v4172_v32  ;;  %v4237_v41 = vpack.c.bf16 %v4175_v4, %v4173_v34 }
 0x6e3   : > { %v11262_v18 = vpop.eup %8480  ;;  %v3956_v50 = vmul.f32 1.442695, %v3872_v33  ;;  %v3958_v11 = vmul.f32 1.442695, %v3873_v6 }
 0x6e4   : > { %v11264_v40 = vpop.eup %8482  ;;  %4372 = vmatmul.bf16.vlgmr.msrb.gmra.mxu2 %v4236_v59  ;;  %4461 = vmatmul.bf16.vlgmr.msrb.gmra.mxu3 %v4237_v41 }
 0x6e5   : > { %8484 = vpow2.f32 %v3956_v50  ;;  %v4071_v12 = vadd.f32 %v11264_v40, %v11262_v18 }
 0x6e6   : > { %8486 = vpow2.f32 %v3958_v11 }
 0x6e7   : > { %8488 = vrcp.f32 %v4052_v0  ;;  %4072 = vadd.xlane.f32.xlu1 %v4071_v12 }
 0x6e8   : > { %v4055_v28 = vpop.xlane.xlu1 %4054  ;;  %v3791_v25 = vpop.xlane.xlu0 %3790 }
 0x6e9   : > { %8490 = vrcp.f32 %v4055_v28  ;;  %v3874_v2 = vsub.f32 %v11068_v35, %v3791_v25  ;;  %v3875_v31 = vsub.f32 %v11070_v19, %v3791_v25  ;;  %v11282_v35 = vpop.f32.mrf.mxu0  ;;  %v11288_v12 = vpop.f32.mrf.mxu1 }
 0x6ea   : > { %4739 = vmatmul.bf16.gmra.mxu0 %v13668_v38 }
 0x6eb   : > { %v11275_v41 = vpop.eup %8484  ;;  %v3960_v54 = vmul.f32 1.442695, %v3874_v2  ;;  %v3962_v32 = vmul.f32 1.442695, %v3875_v31  ;;  %4828 = vmatmul.bf16.gmra.mxu1 %v13668_v38 }
 0x6ec   : > { %v11278_v34 = vpop.eup %8486 }
 0x6ed   : > { %v8489_v49 = vpop.eup %8488  ;;  %8492 = vpow2.f32 %v3960_v54  ;;  %v4074_v0 = vadd.f32 %v11278_v34, %v11275_v41 }
 0x6ee   : > { %8494 = vpow2.f32 %v3962_v32  ;;  %v4176_v6 = vmul.f32 %v8489_v49, %v11120_v56  ;;  %v4177_v50 = vmul.f32 %v8489_v49, %v11122_v14  ;;  %v3813_v14 = vmax.f32 %v11164_v24, %v11168_v60 }
 0x6ef   : > { %v8491_v4 = vpop.eup %8490  ;;  %4075 = vadd.xlane.f32.xlu1 %v4074_v0 }
 0x6f0   : > { %v4058_v19 = vpop.xlane.xlu1 %4057  ;;  %v3794_v33 = vpop.xlane.xlu0 %3793  ;;  %v4178_v59 = vmul.f32 %v8491_v4, %v11136_v42  ;;  %v4179_v11 = vmul.f32 %v8491_v4, %v11138_v26  ;;  %v13669_v4 = vld [vmem:[#allocation71_spill] sm:$0xff] }
 0x6f1   : > { %v3876_v28 = vsub.f32 %v11073_v9, %v3794_v33  ;;  %v3877_v25 = vsub.f32 %v11076_v39, %v3794_v33  ;;  %v11302_v49 = vpop.f32.mrf.mxu0 }
 0x6f2   : > { %v4238_v2 = vpack.c.bf16 %v4178_v59, %v4176_v6  ;;  %v4239_v31 = vpack.c.bf16 %v4179_v11, %v4177_v50  ;;  %v11307_v6 = vpop.f32.mrf.mxu1 }
 0x6f3   : > { %v11292_v38 = vpop.eup %8492  ;;  %v3964_v54 = vmul.f32 1.442695, %v3876_v28  ;;  %v3966_v32 = vmul.f32 1.442695, %v3877_v25 }
 0x6f4   : > { %v11294_v0 = vpop.eup %8494  ;;  %4377 = vmatmul.bf16.gmra.mxu2 %v4238_v2  ;;  %4466 = vmatmul.bf16.gmra.mxu3 %v4239_v31 }
 0x6f5   : > { %8496 = vpow2.f32 %v3964_v54  ;;  %v4077_v56 = vadd.f32 %v11294_v0, %v11292_v38 }
 0x6f6   : > { %8498 = vpow2.f32 %v3966_v32 }
 0x6f7   : > { %8500 = vrcp.f32 %v4058_v19  ;;  %4078 = vadd.xlane.f32.xlu2 %v4077_v56  ;;  %3814 = vmax.xlane.f32.xlu1 %v3813_v14 }
 0x6f8   : > { %v4061_v9 = vpop.xlane.xlu2 %4060  ;;  %v3797_v39 = vpop.xlane.xlu1 %3796 }
 0x6f9   : > { %8502 = vrcp.f32 %v4061_v9  ;;  %v3878_v42 = vsub.f32 %v11078_v20, %v3797_v39  ;;  %v3879_v26 = vsub.f32 %v11080_v44, %v3797_v39  ;;  %v3816_v44 = vmax.f32 %v11181_v13, %v11188_v17 }
 0x6fa   : > { %4744 = vmatmul.bf16.gmra.mxu0 %v13669_v4 }
 0x6fb   : > { %v11305_v33 = vpop.eup %8496  ;;  %v3968_v59 = vmul.f32 1.442695, %v3878_v42  ;;  %v3970_v50 = vmul.f32 1.442695, %v3879_v26  ;;  %4833 = vmatmul.bf16.gmra.mxu1 %v13669_v4 }
 0x6fc   : > { %v11310_v19 = vpop.eup %8498 }
 0x6fd   : > { %v8501_v11 = vpop.eup %8500  ;;  %8504 = vpow2.f32 %v3968_v59  ;;  %v4080_v20 = vadd.f32 %v11310_v19, %v11305_v33 }
 0x6fe   : > { %8506 = vpow2.f32 %v3970_v50  ;;  %v4180_v31 = vmul.f32 %v8501_v11, %v11148_v15  ;;  %v4181_v32 = vmul.f32 %v8501_v11, %v11152_v22  ;;  %v11328_v15 = vpop.f32.mrf.mxu1 }
 0x6ff   : > { %v8503_v28 = vpop.eup %8502  ;;  %4081 = vadd.xlane.f32.xlu2 %v4080_v20  ;;  %3817 = vmax.xlane.f32.xlu1 %v3816_v44  ;;  %v11326_v20 = vpop.f32.mrf.mxu0  ;;  %v13670_v44 = vld [vmem:[#allocation73_spill] sm:$0xff] }
 0x700   : > { %v4064_v25 = vpop.xlane.xlu2 %4063  ;;  %v3800_v2 = vpop.xlane.xlu1 %3799  ;;  %v4182_v54 = vmul.f32 %v8503_v28, %v11162_v63  ;;  %v4183_v56 = vmul.f32 %v8503_v28, %v11166_v61 }
 0x701   : > { %v3880_v14 = vsub.f32 %v11084_v3, %v3800_v2  ;;  %v3881_v9 = vsub.f32 %v11088_v30, %v3800_v2  ;;  %v3819_v30 = vmax.f32 %v11200_v36, %v11202_v21 }
 0x702   : > { %v4240_v39 = vpack.c.bf16 %v4182_v54, %v4180_v31  ;;  %v4241_v42 = vpack.c.bf16 %v4183_v56, %v4181_v32 }
 0x703   : > { %v11322_v26 = vpop.eup %8504  ;;  %v3972_v4 = vmul.f32 1.442695, %v3880_v14  ;;  %v3974_v59 = vmul.f32 1.442695, %v3881_v9 }
 0x704   : > { %v11324_v50 = vpop.eup %8506  ;;  %4382 = vmatmul.bf16.gmra.mxu2 %v4240_v39  ;;  %4471 = vmatmul.bf16.gmra.mxu3 %v4241_v42 }
 0x705   : > { %8508 = vpow2.f32 %v3972_v4  ;;  %v4083_v3 = vadd.f32 %v11324_v50, %v11322_v26 }
 0x706   : > { %8510 = vpow2.f32 %v3974_v59  ;;  %v11348_v14 = vpop.f32.mrf.mxu1 }
 0x707   : > { %8512 = vrcp.f32 %v4064_v25  ;;  %4084 = vadd.xlane.f32.xlu0 %v4083_v3  ;;  %3820 = vmax.xlane.f32.xlu2 %v3819_v30  ;;  %v11346_v56 = vpop.f32.mrf.mxu0 }
 0x708   : > { %v4067_v22 = vpop.xlane.xlu0 %4066  ;;  %v3803_v63 = vpop.xlane.xlu2 %3802 }
 0x709   : > { %8514 = vrcp.f32 %v4067_v22  ;;  %v3882_v61 = vsub.f32 %v11094_v45, %v3803_v63  ;;  %v3883_v11 = vsub.f32 %v11099_v62, %v3803_v63  ;;  %v3822_v45 = vmax.f32 %v11214_v55, %v11216_v47 }
 0x70a   : > { %4749 = vmatmul.bf16.gmra.mxu0 %v13670_v44 }
 0x70b   : > { %v11337_v28 = vpop.eup %8508  ;;  %v3976_v2 = vmul.f32 1.442695, %v3882_v61  ;;  %v3978_v31 = vmul.f32 1.442695, %v3883_v11  ;;  %4838 = vmatmul.bf16.gmra.mxu1 %v13670_v44 }
 0x70c   : > { %v11340_v54 = vpop.eup %8510 }
 0x70d   : > { %v8513_v25 = vpop.eup %8512  ;;  %8516 = vpow2.f32 %v3976_v2  ;;  %v4086_v32 = vadd.f32 %v11340_v54, %v11337_v28 }
 0x70e   : > { %8518 = vpow2.f32 %v3978_v31  ;;  %v4184_v42 = vmul.f32 %v8513_v25, %v11176_v57  ;;  %v4185_v59 = vmul.f32 %v8513_v25, %v11178_v1  ;;  %v3825_v1 = vmax.f32 %v11220_v46, %v11223_v8 }
 0x70f   : > { %v8515_v62 = vpop.eup %8514  ;;  %4087 = vadd.xlane.f32.xlu0 %v4086_v32  ;;  %3823 = vmax.xlane.f32.xlu2 %v3822_v45  ;;  %v13672_v32 = vld [vmem:[#allocation75_spill] sm:$0xff] }
 0x710   : > { %v11350_v9 = vpop.xlane.xlu0 %4069  ;;  %v3806_v39 = vpop.xlane.xlu2 %3805  ;;  %v4186_v4 = vmul.f32 %v8515_v62, %v11192_v37  ;;  %v4187_v3 = vmul.f32 %v8515_v62, %v11194_v43 }
 0x711   : > { %v3884_v30 = vsub.f32 %v11110_v51, %v3806_v39  ;;  %v3885_v22 = vsub.f32 %v11116_v27, %v3806_v39  ;;  %v11366_v51 = vpop.f32.mrf.mxu0  ;;  %v11368_v37 = vpop.f32.mrf.mxu1 }
 0x712   : > { %v4242_v63 = vpack.c.bf16 %v4186_v4, %v4184_v42  ;;  %v4243_v61 = vpack.c.bf16 %v4187_v3, %v4185_v59  ;;  %13671 = vst [vmem:[#allocation54_spill] sm:$0xff] %v11366_v51  ;;  %v3828_v59 = vmax.f32 %v11228_v48, %v11230_v23 }
 0x713   : > { %v11358_v11 = vpop.eup %8516  ;;  %v3980_v44 = vmul.f32 1.442695, %v3884_v30  ;;  %v3982_v2 = vmul.f32 1.442695, %v3885_v22 }
 0x714   : > { %v11360_v31 = vpop.eup %8518  ;;  %4387 = vmatmul.bf16.gmra.mxu2 %v4242_v63  ;;  %4476 = vmatmul.bf16.gmra.mxu3 %v4243_v61 }
 0x715   : > { %8520 = vpow2.f32 %v3980_v44  ;;  %v4089_v57 = vadd.f32 %v11360_v31, %v11358_v11 }
 0x716   : > { %8522 = vpow2.f32 %v3982_v2 }
 0x717   : > { %4090 = vadd.xlane.f32.xlu1 %v4089_v57  ;;  %3826 = vmax.xlane.f32.xlu0 %v3825_v1  ;;  %v3831_v1 = vmax.f32 %v11234_v52, %v11236_v16 }
 0x718   : > { %v3809_v27 = vpop.xlane.xlu0 %3808 }
 0x719   : > { %v3886_v43 = vsub.f32 %v11130_v10, %v3809_v27  ;;  %v3887_v25 = vsub.f32 %v11132_v7, %v3809_v27  ;;  %v11384_v30 = vpop.f32.mrf.mxu0  ;;  %v11388_v63 = vpop.f32.mrf.mxu1 }
 0x71a   : > { %4754 = vmatmul.bf16.gmra.mxu0 %v13672_v32  ;;  %13673 = vst [vmem:[#allocation55_spill] sm:$0xff] %v11384_v30 }
 0x71b   : > { %v11373_v45 = vpop.eup %8520  ;;  %v3984_v62 = vmul.f32 1.442695, %v3886_v43  ;;  %v3986_v39 = vmul.f32 1.442695, %v3887_v25  ;;  %4843 = vmatmul.bf16.gmra.mxu1 %v13672_v32  ;;  %13674 = vst [vmem:[#allocation58_spill] sm:$0xff] %v11388_v63 }
 0x71c   : > { %v11376_v42 = vpop.eup %8522 }
 0x71d   : > { %8524 = vpow2.f32 %v3984_v62  ;;  %v4092_v4 = vadd.f32 %v11376_v42, %v11373_v45  ;;  %v13680_v62 = vld [vmem:[#allocation43_spill] sm:$0xff] }
 0x71e   : > { %8526 = vpow2.f32 %v3986_v39  ;;  %v13681_v39 = vld [vmem:[#allocation42_spill] sm:$0xff] }
 0x71f   : > { %4093 = vadd.xlane.f32.xlu1 %v4092_v4  ;;  %3829 = vmax.xlane.f32.xlu0 %v3828_v59  ;;  %v3834_v4 = vmax.f32 %v13681_v39, %v13680_v62  ;;  %v13682_v59 = vld [vmem:[#allocation47_spill] sm:$0xff] }
 0x720   : > { %v3812_v10 = vpop.xlane.xlu0 %3811 }
 0x721   : > { %v3888_v7 = vsub.f32 %v11144_v5, %v3812_v10  ;;  %v3889_v3 = vsub.f32 %v11150_v53, %v3812_v10  ;;  %v13675_v5 = vld [vmem:[#allocation77_spill] sm:$0xff]  ;;  %v11402_v43 = vpop.f32.mrf.mxu0  ;;  %v11404_v25 = vpop.f32.mrf.mxu1  ;;  %v13683_v10 = vld [vmem:[#allocation46_spill] sm:$0xff] }
 0x722   : > { %13678 = vst [vmem:[#allocation44_spill] sm:$0xff] %v11402_v43 }
 0x723   : > { %v11386_v22 = vpop.eup %8524  ;;  %v3988_v61 = vmul.f32 1.442695, %v3888_v7  ;;  %v3990_v44 = vmul.f32 1.442695, %v3889_v3  ;;  %13679 = vst [vmem:[#allocation48_spill] sm:$0xff] %v11404_v25  ;;  %v3837_v7 = vmax.f32 %v13683_v10, %v13682_v59 }
 0x724   : > { %v11390_v2 = vpop.eup %8526 }
 0x725   : > { %8528 = vpow2.f32 %v3988_v61  ;;  %v4095_v57 = vadd.f32 %v11390_v2, %v11386_v22 }
 0x726   : > { %8530 = vpow2.f32 %v3990_v44  ;;  %v13686_v44 = vld [vmem:[#allocation79_spill] sm:$0xff] }
 0x727   : > { %4096 = vadd.xlane.f32.xlu2 %v4095_v57  ;;  %3832 = vmax.xlane.f32.xlu1 %v3831_v1  ;;  %v13687_v57 = vld [vmem:[#allocation51_spill] sm:$0xff]  ;;  %v13688_v1 = vld [vmem:[#allocation50_spill] sm:$0xff]  ;;  %8532 = vrcp.f32 %v11350_v9 }
 0x729   : > { %v11412_v3 = vpop.f32.mrf.mxu0  ;;  %v11414_v61 = vpop.f32.mrf.mxu1 }
 0x72a   : > { %4759 = vmatmul.bf16.gmra.mxu0 %v13675_v5  ;;  %13684 = vst [vmem:[#allocation52_spill] sm:$0xff] %v11412_v3 }
 0x72b   : > { %v11397_v53 = vpop.eup %8528  ;;  %4848 = vmatmul.bf16.gmra.mxu1 %v13675_v5  ;;  %13685 = vst [vmem:[#allocation56_spill] sm:$0xff] %v11414_v61  ;;  %v3840_v5 = vmax.f32 %v13688_v1, %v13687_v57 }
 0x72c   : > { %13676 = vst [vmem:[#allocation59_spill] sm:$0xff] %v11397_v53  ;;  %v11400_v27 = vpop.eup %8530 }
 0x72d   : > { %13677 = vst [vmem:[#allocation40_spill] sm:$0xff] %v11400_v27  ;;  %v4098_v32 = vadd.f32 %v11400_v27, %v11397_v53  ;;  %v13692_v53 = vld [vmem:[#allocation81_spill] sm:$0xff] }
 0x72f   : > { %4099 = vadd.xlane.f32.xlu2 %v4098_v32  ;;  %3835 = vmax.xlane.f32.xlu1 %v3834_v4 }
 0x731   : > { %v11420_v27 = vpop.f32.mrf.mxu0  ;;  %v11422_v32 = vpop.f32.mrf.mxu1 }
 0x732   : > { %13689 = vst [vmem:[#allocation60_spill] sm:$0xff] %v11420_v27 }
 0x733   : > { %13690 = vst [vmem:[#allocation62_spill] sm:$0xff] %v11422_v32  ;;  %v13695_v32 = vld [vmem:[#allocation39_spill] sm:$0xff] }
 0x737   : > { %3838 = vmax.xlane.f32.xlu2 %v3837_v7 }
 0x739   : > { %v11424_v4 = vpop.f32.mrf.mxu0  ;;  %v11427_v3 = vpop.f32.mrf.mxu1 }
 0x73a   : > { %4764 = vmatmul.bf16.gmra.mxu0 %v13686_v44  ;;  %13691 = vst [vmem:[#allocation64_spill] sm:$0xff] %v11424_v4 }
 0x73b   : > { %4853 = vmatmul.bf16.gmra.mxu1 %v13686_v44  ;;  %13693 = vst [vmem:[#allocation66_spill] sm:$0xff] %v11427_v3  ;;  %v8533_v44 = vpop.eup %8532 }
 0x73c   : > { %v4189_v30 = vmul.f32 %v8533_v44, %v13695_v32 }
 0x73f   : > { %3841 = vmax.xlane.f32.xlu2 %v3840_v5  ;;  %v13694_v5 = vld [vmem:[#allocation38_spill] sm:$0xff] }
 0x740   : > { %v4188_v25 = vmul.f32 %v8533_v44, %v13694_v5 }
 0x74a   : > { %4769 = vmatmul.bf16.gmra.mxu0 %v13692_v53 }
 0x74b   : > { %4858 = vmatmul.bf16.gmra.mxu1 %v13692_v53 }
 0x75a   : > { %v4073_v7 = vpop.xlane.xlu1 %4072 }
 0x75b   : > { %8534 = vrcp.f32 %v4073_v7 }
 0x761   : > { %v8535_v61 = vpop.eup %8534 }
 0x762   : > { %v4076_v43 = vpop.xlane.xlu1 %4075  ;;  %v4190_v27 = vmul.f32 %v8535_v61, %v11262_v18  ;;  %v4191_v4 = vmul.f32 %v8535_v61, %v11264_v40 }
 0x763   : > { %8536 = vrcp.f32 %v4076_v43 }
 0x764   : > { %v4244_v63 = vpack.c.bf16 %v4190_v27, %v4188_v25  ;;  %v4245_v57 = vpack.c.bf16 %v4191_v4, %v4189_v30 }
 0x766   : > { %4392 = vmatmul.bf16.gmra.mxu2 %v4244_v63  ;;  %4481 = vmatmul.bf16.gmra.mxu3 %v4245_v57 }
 0x767   : > { %v4373_v53 = vpop.f32.mrf.mxu2  ;;  %v4462_v3 = vpop.f32.mrf.mxu3 }
 0x768   : > { %v11435_v9 = vadd.f32 %v4462_v3, %v4373_v53 }
 0x769   : > { %v8537_v44 = vpop.eup %8536 }
 0x76a   : > { %v4079_v7 = vpop.xlane.xlu2 %4078  ;;  %v3815_v1 = vpop.xlane.xlu1 %3814  ;;  %v4192_v43 = vmul.f32 %v8537_v44, %v11275_v41 }
 0x76b   : > { %8538 = vrcp.f32 %v4079_v7  ;;  %v3890_v5 = vsub.f32 %v11164_v24, %v3815_v1  ;;  %v3891_v18 = vsub.f32 %v11168_v60, %v3815_v1  ;;  %v4193_v24 = vmul.f32 %v8537_v44, %v11278_v34 }
 0x76d   : > { %v3992_v51 = vmul.f32 1.442695, %v3890_v5  ;;  %v3994_v32 = vmul.f32 1.442695, %v3891_v18 }
 0x76f   : > { %8540 = vpow2.f32 %v3992_v51  ;;  %v11439_v40 = vpop.f32.mrf.mxu2  ;;  %v11441_v30 = vpop.f32.mrf.mxu3 }
 0x770   : > { %8542 = vpow2.f32 %v3994_v32 }
 0x771   : > { %v8539_v63 = vpop.eup %8538 }
 0x772   : > { %v4082_v27 = vpop.xlane.xlu2 %4081  ;;  %v3818_v25 = vpop.xlane.xlu1 %3817  ;;  %v4194_v3 = vmul.f32 %v8539_v63, %v11292_v38  ;;  %v4195_v60 = vmul.f32 %v8539_v63, %v11294_v0 }
 0x773   : > { %v3892_v61 = vsub.f32 %v11181_v13, %v3818_v25  ;;  %v3893_v51 = vsub.f32 %v11188_v17, %v3818_v25 }
 0x774   : > { %v4246_v57 = vpack.c.bf16 %v4194_v3, %v4192_v43  ;;  %v4247_v1 = vpack.c.bf16 %v4195_v60, %v4193_v24 }
 0x775   : > { %v11449_v4 = vpop.eup %8540  ;;  %v3996_v53 = vmul.f32 1.442695, %v3892_v61  ;;  %v3998_v7 = vmul.f32 1.442695, %v3893_v51 }
 0x776   : > { %v11451_v5 = vpop.eup %8542  ;;  %4397 = vmatmul.bf16.gmra.mxu2 %v4246_v57  ;;  %4486 = vmatmul.bf16.gmra.mxu3 %v4247_v1 }
 0x777   : > { %8544 = vpow2.f32 %v3996_v53  ;;  %v4378_v41 = vpop.f32.mrf.mxu2  ;;  %v4467_v38 = vpop.f32.mrf.mxu3  ;;  %v4101_v34 = vadd.f32 %v11451_v5, %v11449_v4 }
 0x778   : > { %8546 = vpow2.f32 %v3998_v7  ;;  %v11455_v13 = vadd.f32 %v4467_v38, %v4378_v41 }
 0x779   : > { %8548 = vrcp.f32 %v4082_v27  ;;  %4102 = vadd.xlane.f32.xlu0 %v4101_v34 }
 0x77a   : > { %13696 = vst [vmem:[#allocation68_spill] sm:$0xff] %v11455_v13  ;;  %v4085_v17 = vpop.xlane.xlu0 %4084  ;;  %v3821_v0 = vpop.xlane.xlu2 %3820 }
 0x77b   : > { %8550 = vrcp.f32 %v4085_v17  ;;  %v3894_v18 = vsub.f32 %v11200_v36, %v3821_v0  ;;  %v3895_v32 = vsub.f32 %v11202_v21, %v3821_v0 }
 0x77d   : > { %v11459_v44 = vpop.eup %8544  ;;  %v4000_v63 = vmul.f32 1.442695, %v3894_v18  ;;  %v4002_v25 = vmul.f32 1.442695, %v3895_v32 }
 0x77e   : > { %v11461_v43 = vpop.eup %8546 }
 0x77f   : > { %v8549_v3 = vpop.eup %8548  ;;  %8552 = vpow2.f32 %v4000_v63  ;;  %v11463_v24 = vpop.f32.mrf.mxu2  ;;  %v4104_v27 = vadd.f32 %v11461_v43, %v11459_v44 }
 0x780   : > { %v11465_v60 = vpop.f32.mrf.mxu3  ;;  %8554 = vpow2.f32 %v4002_v25  ;;  %v4196_v51 = vmul.f32 %v8549_v3, %v11305_v33  ;;  %v4197_v1 = vmul.f32 %v8549_v3, %v11310_v19 }
 0x781   : > { %13697 = vst [vmem:[#allocation70_spill] sm:$0xff] %v11465_v60  ;;  %v8551_v61 = vpop.eup %8550  ;;  %4105 = vadd.xlane.f32.xlu0 %v4104_v27 }
 0x782   : > { %v4088_v36 = vpop.xlane.xlu0 %4087  ;;  %v3824_v21 = vpop.xlane.xlu2 %3823  ;;  %v4198_v57 = vmul.f32 %v8551_v61, %v11322_v26  ;;  %v4199_v53 = vmul.f32 %v8551_v61, %v11324_v50 }
 0x783   : > { %v3896_v7 = vsub.f32 %v11214_v55, %v3824_v21  ;;  %v3897_v41 = vsub.f32 %v11216_v47, %v3824_v21  ;;  %v3843_v55 = vmax.f32 %v11266_v58, %v11270_v29 }
 0x784   : > { %v4248_v38 = vpack.c.bf16 %v4198_v57, %v4196_v51  ;;  %v4249_v34 = vpack.c.bf16 %v4199_v53, %v4197_v1 }
 0x785   : > { %v11475_v17 = vpop.eup %8552  ;;  %v4004_v0 = vmul.f32 1.442695, %v3896_v7  ;;  %v4006_v18 = vmul.f32 1.442695, %v3897_v41 }
 0x786   : > { %v11477_v32 = vpop.eup %8554  ;;  %4402 = vmatmul.bf16.gmra.mxu2 %v4248_v38  ;;  %4491 = vmatmul.bf16.gmra.mxu3 %v4249_v34 }
 0x787   : > { %8556 = vpow2.f32 %v4004_v0  ;;  %v4383_v33 = vpop.f32.mrf.mxu2  ;;  %v4107_v19 = vadd.f32 %v11477_v32, %v11475_v17 }
 0x788   : > { %v4472_v26 = vpop.f32.mrf.mxu3  ;;  %8558 = vpow2.f32 %v4006_v18 }
 0x789   : > { %v11483_v47 = vadd.f32 %v4472_v26, %v4383_v33  ;;  %8560 = vrcp.f32 %v4088_v36  ;;  %4108 = vadd.xlane.f32.xlu1 %v4107_v19  ;;  %3844 = vmax.xlane.f32.xlu0 %v3843_v55 }
 0x78a   : > { %v4091_v50 = vpop.xlane.xlu1 %4090  ;;  %v3827_v63 = vpop.xlane.xlu0 %3826 }
 0x78b   : > { %13698 = vst [vmem:[#allocation72_spill] sm:$0xff] %v11483_v47  ;;  %8562 = vrcp.f32 %v4091_v50  ;;  %v3898_v25 = vsub.f32 %v11220_v46, %v3827_v63  ;;  %v3899_v3 = vsub.f32 %v11223_v8, %v3827_v63  ;;  %v3846_v46 = vmax.f32 %v11282_v35, %v11288_v12 }
 0x78d   : > { %v11487_v27 = vpop.eup %8556  ;;  %v4008_v61 = vmul.f32 1.442695, %v3898_v25  ;;  %v4010_v21 = vmul.f32 1.442695, %v3899_v3 }
 0x78e   : > { %v11489_v51 = vpop.eup %8558 }
 0x78f   : > { %v8561_v57 = vpop.eup %8560  ;;  %8564 = vpow2.f32 %v4008_v61  ;;  %v11491_v1 = vpop.f32.mrf.mxu2  ;;  %v4110_v53 = vadd.f32 %v11489_v51, %v11487_v27 }
 0x790   : > { %13699 = vst [vmem:[#allocation74_spill] sm:$0xff] %v11491_v1  ;;  %v11493_v36 = vpop.f32.mrf.mxu3  ;;  %8566 = vpow2.f32 %v4010_v21  ;;  %v4200_v38 = vmul.f32 %v8561_v57, %v11337_v28  ;;  %v4201_v0 = vmul.f32 %v8561_v57, %v11340_v54  ;;  %v7824_v1 = vld [vmem:[%s9655_s2 + $0x88] sm:$0xf0] }
 0x791   : > { %13700 = vst [vmem:[#allocation76_spill] sm:$0xff] %v11493_v36  ;;  %v8563_v8 = vpop.eup %8562  ;;  %4111 = vadd.xlane.f32.xlu1 %v4110_v53  ;;  %3847 = vmax.xlane.f32.xlu0 %v3846_v46 }
 0x792   : > { %v4094_v7 = vpop.xlane.xlu1 %4093  ;;  %v3830_v41 = vpop.xlane.xlu0 %3829  ;;  %v4202_v34 = vmul.f32 %v8563_v8, %v11358_v11  ;;  %v4203_v18 = vmul.f32 %v8563_v8, %v11360_v31 }
 0x793   : > { %v3900_v33 = vsub.f32 %v11228_v48, %v3830_v41  ;;  %v3901_v26 = vsub.f32 %v11230_v23, %v3830_v41  ;;  %v3849_v48 = vmax.f32 %v11302_v49, %v11307_v6 }
 0x794   : > { %v4250_v19 = vpack.c.bf16 %v4202_v34, %v4200_v38  ;;  %v4251_v55 = vpack.c.bf16 %v4203_v18, %v4201_v0  ;;  %v4864_v34 = vmax.f32 %v11326_v20, %v11328_v15 }
 0x795   : > { %v11505_v50 = vpop.eup %8564  ;;  %v4012_v63 = vmul.f32 1.442695, %v3900_v33  ;;  %v4014_v25 = vmul.f32 1.442695, %v3901_v26 }
 0x796   : > { %v11507_v3 = vpop.eup %8566  ;;  %4407 = vmatmul.bf16.gmra.mxu2 %v4250_v19  ;;  %4496 = vmatmul.bf16.gmra.mxu3 %v4251_v55 }
 0x797   : > { %8568 = vpow2.f32 %v4012_v63  ;;  %v4388_v28 = vpop.f32.mrf.mxu2  ;;  %v4113_v54 = vadd.f32 %v11507_v3, %v11505_v50 }
 0x798   : > { %v4477_v11 = vpop.f32.mrf.mxu3  ;;  %8570 = vpow2.f32 %v4014_v25 }
 0x799   : > { %v11513_v23 = vadd.f32 %v4477_v11, %v4388_v28  ;;  %8572 = vrcp.f32 %v4094_v7  ;;  %4114 = vadd.xlane.f32.xlu2 %v4113_v54  ;;  %3850 = vmax.xlane.f32.xlu1 %v3849_v48 }
 0x79a   : > { %v4097_v31 = vpop.xlane.xlu2 %4096  ;;  %v3833_v61 = vpop.xlane.xlu1 %3832 }
 0x79b   : > { %13701 = vst [vmem:[#allocation78_spill] sm:$0xff] %v11513_v23  ;;  %8574 = vrcp.f32 %v4097_v31  ;;  %v3902_v21 = vsub.f32 %v11234_v52, %v3833_v61  ;;  %v3903_v57 = vsub.f32 %v11236_v16, %v3833_v61 }
 0x79d   : > { %v11517_v53 = vpop.eup %8568  ;;  %v4016_v46 = vmul.f32 1.442695, %v3902_v21  ;;  %v4018_v8 = vmul.f32 1.442695, %v3903_v57 }
 0x79e   : > { %v11519_v41 = vpop.eup %8570 }
 0x79f   : > { %v8573_v38 = vpop.eup %8572  ;;  %8576 = vpow2.f32 %v4016_v46  ;;  %v4116_v7 = vadd.f32 %v11519_v41, %v11517_v53 }
 0x7a0   : > { %8578 = vpow2.f32 %v4018_v8  ;;  %v4204_v18 = vmul.f32 %v8573_v38, %v11373_v45  ;;  %v4205_v26 = vmul.f32 %v8573_v38, %v11376_v42  ;;  %v4867_v42 = vmax.f32 %v11346_v56, %v11348_v14  ;;  %v13702_v8 = vld [vmem:[#allocation54_spill] sm:$0xff] }
 0x7a1   : > { %v8575_v0 = vpop.eup %8574  ;;  %4117 = vadd.xlane.f32.xlu2 %v4116_v7  ;;  %4865 = vmax.xlane.f32.xlu1 %v4864_v34  ;;  %v4870_v38 = vmax.f32 %v13702_v8, %v11368_v37 }
 0x7a2   : > { %v11525_v52 = vpop.xlane.xlu2 %4099  ;;  %v3836_v16 = vpop.xlane.xlu1 %3835  ;;  %v4206_v33 = vmul.f32 %v8575_v0, %v11386_v22  ;;  %v4207_v19 = vmul.f32 %v8575_v0, %v11390_v2 }
 0x7a3   : > { %v3904_v55 = vsub.f32 %v13681_v39, %v3836_v16  ;;  %v3905_v63 = vsub.f32 %v13680_v62, %v3836_v16 }
 0x7a4   : > { %v4252_v25 = vpack.c.bf16 %v4206_v33, %v4204_v18  ;;  %v4253_v28 = vpack.c.bf16 %v4207_v19, %v4205_v26  ;;  %v13705_v19 = vld [vmem:[#allocation58_spill] sm:$0xff] }
 0x7a5   : > { %v11533_v11 = vpop.eup %8576  ;;  %v4020_v54 = vmul.f32 1.442695, %v3904_v55  ;;  %v4022_v48 = vmul.f32 1.442695, %v3905_v63  ;;  %v13706_v55 = vld [vmem:[#allocation55_spill] sm:$0xff] }
 0x7a6   : > { %v11535_v31 = vpop.eup %8578  ;;  %4412 = vmatmul.bf16.gmra.mxu2 %v4252_v25  ;;  %4501 = vmatmul.bf16.gmra.mxu3 %v4253_v28  ;;  %v4873_v63 = vmax.f32 %v13706_v55, %v13705_v19 }
 0x7a7   : > { %8580 = vpow2.f32 %v4020_v54  ;;  %v4119_v45 = vadd.f32 %v11535_v31, %v11533_v11 }
 0x7a8   : > { %8582 = vpow2.f32 %v4022_v48  ;;  %v13707_v48 = vld [vmem:[#allocation48_spill] sm:$0xff] }
 0x7a9   : > { %4120 = vadd.xlane.f32.xlu0 %v4119_v45  ;;  %4868 = vmax.xlane.f32.xlu2 %v4867_v42  ;;  %v13708_v45 = vld [vmem:[#allocation44_spill] sm:$0xff] }
 0x7aa   : > { %v3839_v22 = vpop.xlane.xlu2 %3838  ;;  %v4876_v42 = vmax.f32 %v13708_v45, %v13707_v48 }
 0x7ab   : > { %v3906_v2 = vsub.f32 %v13683_v10, %v3839_v22  ;;  %v3907_v62 = vsub.f32 %v13682_v59, %v3839_v22  ;;  %v13703_v10 = vld [vmem:[#allocation50_spill] sm:$0xff]  ;;  %v13704_v59 = vld [vmem:[#allocation51_spill] sm:$0xff] }
 0x7ad   : > { %v11543_v39 = vpop.eup %8580  ;;  %v4024_v61 = vmul.f32 1.442695, %v3906_v2  ;;  %v4026_v21 = vmul.f32 1.442695, %v3907_v62  ;;  %v13709_v2 = vld [vmem:[#allocation56_spill] sm:$0xff] }
 0x7ae   : > { %v11545_v57 = vpop.eup %8582  ;;  %v13710_v62 = vld [vmem:[#allocation52_spill] sm:$0xff] }
 0x7af   : > { %8584 = vpow2.f32 %v4024_v61  ;;  %v4122_v46 = vadd.f32 %v11545_v57, %v11543_v39  ;;  %v4879_v61 = vmax.f32 %v13710_v62, %v13709_v2 }
 0x7b0   : > { %8586 = vpow2.f32 %v4026_v21  ;;  %v13711_v21 = vld [vmem:[#allocation62_spill] sm:$0xff] }
 0x7b1   : > { %4123 = vadd.xlane.f32.xlu0 %v4122_v46  ;;  %4871 = vmax.xlane.f32.xlu2 %v4870_v38  ;;  %v13712_v46 = vld [vmem:[#allocation60_spill] sm:$0xff] }
 0x7b2   : > { %v3842_v7 = vpop.xlane.xlu2 %3841  ;;  %v4882_v38 = vmax.f32 %v13712_v46, %v13711_v21 }
 0x7b3   : > { %v3908_v34 = vsub.f32 %v13703_v10, %v3842_v7  ;;  %v3909_v0 = vsub.f32 %v13704_v59, %v3842_v7  ;;  %v11573_v7 = vpop.f32.mrf.mxu2  ;;  %v11575_v10 = vpop.f32.mrf.mxu3 }
 0x7b4   : > { %13713 = vst [vmem:[#allocation80_spill] sm:$0xff] %v11573_v7 }
 0x7b5   : > { %v11553_v16 = vpop.eup %8584  ;;  %v4028_v18 = vmul.f32 1.442695, %v3908_v34  ;;  %v4030_v33 = vmul.f32 1.442695, %v3909_v0  ;;  %13714 = vst [vmem:[#allocation41_spill] sm:$0xff] %v11575_v10  ;;  %v13719_v10 = vld [vmem:[#allocation40_spill] sm:$0xff] }
 0x7b6   : > { %v11555_v26 = vpop.eup %8586 }
 0x7b7   : > { %8588 = vpow2.f32 %v4028_v18  ;;  %v4125_v25 = vadd.f32 %v11555_v26, %v11553_v16 }
 0x7b8   : > { %8590 = vpow2.f32 %v4030_v33 }
 0x7b9   : > { %4874 = vmax.xlane.f32.xlu0 %v4873_v63  ;;  %4126 = vadd.xlane.f32.xlu1 %v4125_v25  ;;  %8592 = vrcp.f32 %v11525_v52 }
 0x7bd   : > { %v11561_v28 = vpop.eup %8588 }
 0x7be   : > { %v11563_v54 = vpop.eup %8590 }
 0x7bf   : > { %v4128_v22 = vadd.f32 %v11563_v54, %v11561_v28  ;;  %v8593_v33 = vpop.eup %8592 }
 0x7c0   : > { %v4209_v7 = vmul.f32 %v8593_v33, %v13719_v10 }
 0x7c1   : > { %4877 = vmax.xlane.f32.xlu0 %v4876_v42  ;;  %4129 = vadd.xlane.f32.xlu1 %v4128_v22 }
 0x7c9   : > { %4880 = vmax.xlane.f32.xlu1 %v4879_v61  ;;  %v13718_v61 = vld [vmem:[#allocation59_spill] sm:$0xff] }
 0x7d1   : > { %4883 = vmax.xlane.f32.xlu1 %v4882_v38  ;;  %v4208_v38 = vmul.f32 %v8593_v33, %v13718_v61 }
 0x7e9   : > { %v4393_v34 = vpop.f32.mrf.mxu2  ;;  %v4482_v59 = vpop.f32.mrf.mxu3 }
 0x7ea   : > { %v11577_v0 = vadd.f32 %v4482_v59, %v4393_v34 }
 0x7ec   : > { %13715 = vst [vmem:[#allocation45_spill] sm:$0xff] %v11577_v0  ;;  %v4103_v18 = vpop.xlane.xlu0 %4102 }
 0x7ed   : > { %8594 = vrcp.f32 %v4103_v18 }
 0x7f1   : > { %v11580_v63 = vpop.f32.mrf.mxu2  ;;  %v11582_v25 = vpop.f32.mrf.mxu3 }
 0x7f2   : > { %13716 = vst [vmem:[#allocation49_spill] sm:$0xff] %v11580_v63 }
 0x7f3   : > { %13717 = vst [vmem:[#allocation53_spill] sm:$0xff] %v11582_v25  ;;  %v8595_v42 = vpop.eup %8594 }
 0x7f4   : > { %v4106_v22 = vpop.xlane.xlu0 %4105  ;;  %v4210_v23 = vmul.f32 %v8595_v42, %v11449_v4  ;;  %v4211_v34 = vmul.f32 %v8595_v42, %v11451_v5 }
 0x7f5   : > { %8596 = vrcp.f32 %v4106_v22 }
 0x7f6   : > { %v4254_v59 = vpack.c.bf16 %v4210_v23, %v4208_v38  ;;  %v4255_v0 = vpack.c.bf16 %v4211_v34, %v4209_v7 }
 0x7f8   : > { %4417 = vmatmul.bf16.gmra.mxu2 %v4254_v59  ;;  %4506 = vmatmul.bf16.gmra.mxu3 %v4255_v0 }
 0x7f9   : > { %v4398_v52 = vpop.f32.mrf.mxu2  ;;  %v4487_v18 = vpop.f32.mrf.mxu3 }
 0x7fa   : > { %v11588_v47 = vadd.f32 %v4487_v18, %v4398_v52 }
 0x7fb   : > { %v8597_v33 = vpop.eup %8596 }
 0x7fc   : > { %13720 = vst [vmem:[#allocation57_spill] sm:$0xff] %v11588_v47  ;;  %v4109_v25 = vpop.xlane.xlu1 %4108  ;;  %v3845_v63 = vpop.xlane.xlu0 %3844  ;;  %v4212_v22 = vmul.f32 %v8597_v33, %v11459_v44 }
 0x7fd   : > { %8598 = vrcp.f32 %v4109_v25  ;;  %v3910_v61 = vsub.f32 %v11266_v58, %v3845_v63  ;;  %v3911_v4 = vsub.f32 %v11270_v29, %v3845_v63  ;;  %v4213_v58 = vmul.f32 %v8597_v33, %v11461_v43 }
 0x7ff   : > { %v4032_v36 = vmul.f32 1.442695, %v3910_v61  ;;  %v4034_v10 = vmul.f32 1.442695, %v3911_v4 }
 0x801   : > { %8600 = vpow2.f32 %v4032_v36  ;;  %v11592_v5 = vpop.f32.mrf.mxu2  ;;  %v11594_v23 = vpop.f32.mrf.mxu3 }
 0x802   : > { %13721 = vst [vmem:[#allocation61_spill] sm:$0xff] %v11592_v5  ;;  %8602 = vpow2.f32 %v4034_v10 }
 0x803   : > { %13722 = vst [vmem:[#allocation63_spill] sm:$0xff] %v11594_v23  ;;  %v8599_v7 = vpop.eup %8598 }
 0x804   : > { %v4112_v0 = vpop.xlane.xlu1 %4111  ;;  %v3848_v42 = vpop.xlane.xlu0 %3847  ;;  %v4214_v25 = vmul.f32 %v8599_v7, %v11475_v17  ;;  %v4215_v29 = vmul.f32 %v8599_v7, %v11477_v32 }
 0x805   : > { %v3912_v63 = vsub.f32 %v11282_v35, %v3848_v42  ;;  %v3913_v36 = vsub.f32 %v11288_v12, %v3848_v42  ;;  %v11610_v12 = vpop.f32.mrf.mxu0  ;;  %v11612_v32 = vpop.f32.mrf.mxu1 }
 0x806   : > { %v4256_v38 = vpack.c.bf16 %v4214_v25, %v4212_v22  ;;  %v4257_v34 = vpack.c.bf16 %v4215_v29, %v4213_v58 }
 0x807   : > { %v11602_v59 = vpop.eup %8600  ;;  %v4036_v52 = vmul.f32 1.442695, %v3912_v63  ;;  %v4038_v18 = vmul.f32 1.442695, %v3913_v36 }
 0x808   : > { %v11604_v61 = vpop.eup %8602  ;;  %4422 = vmatmul.bf16.gmra.mxu2 %v4256_v38  ;;  %4511 = vmatmul.bf16.gmra.mxu3 %v4257_v34 }
 0x809   : > { %8604 = vpow2.f32 %v4036_v52  ;;  %v4403_v44 = vpop.f32.mrf.mxu2  ;;  %v4492_v17 = vpop.f32.mrf.mxu3  ;;  %v4131_v43 = vadd.f32 %v11604_v61, %v11602_v59 }
 0x80a   : > { %8606 = vpow2.f32 %v4038_v18  ;;  %v11608_v35 = vadd.f32 %v4492_v17, %v4403_v44 }
 0x80b   : > { %8608 = vrcp.f32 %v4112_v0  ;;  %4132 = vadd.xlane.f32.xlu2 %v4131_v43 }
 0x80c   : > { %13723 = vst [vmem:[#allocation65_spill] sm:$0xff] %v11608_v35  ;;  %v4115_v4 = vpop.xlane.xlu2 %4114  ;;  %v3851_v10 = vpop.xlane.xlu1 %3850 }
 0x80d   : > { %8610 = vrcp.f32 %v4115_v4  ;;  %v3914_v33 = vsub.f32 %v11302_v49, %v3851_v10  ;;  %v3915_v7 = vsub.f32 %v11307_v6, %v3851_v10  ;;  %v11632_v4 = vpop.f32.mrf.mxu0  ;;  %v11634_v10 = vpop.f32.mrf.mxu1 }
 0x80f   : > { %v11616_v42 = vpop.eup %8604  ;;  %v4040_v22 = vmul.f32 1.442695, %v3914_v33  ;;  %v4042_v25 = vmul.f32 1.442695, %v3915_v7 }
 0x810   : > { %v11618_v58 = vpop.eup %8606 }
 0x811   : > { %v8609_v29 = vpop.eup %8608  ;;  %8612 = vpow2.f32 %v4040_v22  ;;  %v11620_v63 = vpop.f32.mrf.mxu2  ;;  %v4134_v0 = vadd.f32 %v11618_v58, %v11616_v42 }
 0x812   : > { %13724 = vst [vmem:[#allocation67_spill] sm:$0xff] %v11620_v63  ;;  %v11622_v36 = vpop.f32.mrf.mxu3  ;;  %8614 = vpow2.f32 %v4042_v25  ;;  %v4216_v34 = vmul.f32 %v8609_v29, %v11487_v27  ;;  %v4217_v18 = vmul.f32 %v8609_v29, %v11489_v51 }
 0x813   : > { %13725 = vst [vmem:[#allocation69_spill] sm:$0xff] %v11622_v36  ;;  %v8611_v38 = vpop.eup %8610  ;;  %4135 = vadd.xlane.f32.xlu2 %v4134_v0 }
 0x814   : > { %v4118_v49 = vpop.xlane.xlu2 %4117  ;;  %v4866_v6 = vpop.xlane.xlu1 %4865  ;;  %v4218_v52 = vmul.f32 %v8611_v38, %v11505_v50  ;;  %v4219_v44 = vmul.f32 %v8611_v38, %v11507_v3  ;;  %v13727_v3 = vld [vmem:[#allocation64_spill] sm:$0xff] }
 0x815   : > { %v4960_v17 = vsub.f32 %v11326_v20, %v4866_v6  ;;  %v4961_v43 = vsub.f32 %v11328_v15, %v4866_v6  ;;  %v13726_v20 = vld [vmem:[#allocation66_spill] sm:$0xff] }
 0x816   : > { %v4258_v33 = vpack.c.bf16 %v4218_v52, %v4216_v34  ;;  %v4259_v7 = vpack.c.bf16 %v4219_v44, %v4217_v18  ;;  %v4885_v15 = vmax.f32 %v13727_v3, %v13726_v20 }
 0x817   : > { %v11636_v22 = vpop.eup %8612  ;;  %v5024_v25 = vmul.f32 1.442695, %v4960_v17  ;;  %v5026_v27 = vmul.f32 1.442695, %v4961_v43 }
 0x818   : > { %v11638_v0 = vpop.eup %8614  ;;  %4427 = vmatmul.bf16.gmra.mxu2 %v4258_v33  ;;  %4516 = vmatmul.bf16.gmra.mxu3 %v4259_v7  ;;  %v11652_v7 = vpop.f32.mrf.mxu0 }
 0x819   : > { %8616 = vpow2.f32 %v5024_v25  ;;  %v4408_v51 = vpop.f32.mrf.mxu2  ;;  %v4137_v29 = vadd.f32 %v11638_v0, %v11636_v22  ;;  %v11654_v25 = vpop.f32.mrf.mxu1 }
 0x81a   : > { %v4497_v50 = vpop.f32.mrf.mxu3  ;;  %8618 = vpow2.f32 %v5026_v27 }
 0x81b   : > { %v11644_v38 = vadd.f32 %v4497_v50, %v4408_v51  ;;  %8620 = vrcp.f32 %v4118_v49  ;;  %4886 = vmax.xlane.f32.xlu2 %v4885_v15  ;;  %4138 = vadd.xlane.f32.xlu0 %v4137_v29 }
 0x81c   : > { %v4121_v6 = vpop.xlane.xlu0 %4120  ;;  %v4869_v34 = vpop.xlane.xlu2 %4868 }
 0x81d   : > { %13728 = vst [vmem:[#allocation71_spill] sm:$0xff] %v11644_v38  ;;  %8622 = vrcp.f32 %v4121_v6  ;;  %v4962_v52 = vsub.f32 %v11346_v56, %v4869_v34  ;;  %v4963_v18 = vsub.f32 %v11348_v14, %v4869_v34  ;;  %v4888_v56 = vmax.f32 %v11610_v12, %v11612_v32 }
 0x81f   : > { %v11648_v44 = vpop.eup %8616  ;;  %v5028_v17 = vmul.f32 1.442695, %v4962_v52  ;;  %v5030_v43 = vmul.f32 1.442695, %v4963_v18 }
 0x820   : > { %v11650_v33 = vpop.eup %8618 }
 0x821   : > { %v8621_v49 = vpop.eup %8620  ;;  %8624 = vpow2.f32 %v5028_v17  ;;  %v11656_v27 = vpop.f32.mrf.mxu2  ;;  %v5152_v14 = vadd.f32 %v11650_v33, %v11648_v44 }
 0x822   : > { %13729 = vst [vmem:[#allocation73_spill] sm:$0xff] %v11656_v27  ;;  %v11658_v51 = vpop.f32.mrf.mxu3  ;;  %8626 = vpow2.f32 %v5030_v43  ;;  %v4220_v6 = vmul.f32 %v8621_v49, %v11517_v53  ;;  %v4221_v52 = vmul.f32 %v8621_v49, %v11519_v41  ;;  %v11682_v49 = vpop.f32.mrf.mxu1 }
 0x823   : > { %13730 = vst [vmem:[#allocation75_spill] sm:$0xff] %v11658_v51  ;;  %v8623_v50 = vpop.eup %8622  ;;  %4889 = vmax.xlane.f32.xlu2 %v4888_v56  ;;  %5153 = vadd.xlane.f32.xlu0 %v5152_v14 }
 0x824   : > { %v4124_v15 = vpop.xlane.xlu0 %4123  ;;  %v4872_v29 = vpop.xlane.xlu2 %4871  ;;  %v4222_v34 = vmul.f32 %v8623_v50, %v11533_v11  ;;  %v4223_v18 = vmul.f32 %v8623_v50, %v11535_v31  ;;  %v4891_v31 = vmax.f32 %v11632_v4, %v11634_v10 }
 0x825   : > { %v4964_v17 = vsub.f32 %v13702_v8, %v4872_v29  ;;  %v4965_v38 = vsub.f32 %v11368_v37, %v4872_v29  ;;  %v11680_v8 = vpop.f32.mrf.mxu0 }
 0x826   : > { %v4260_v51 = vpack.c.bf16 %v4222_v34, %v4220_v6  ;;  %v4261_v27 = vpack.c.bf16 %v4223_v18, %v4221_v52 }
 0x827   : > { %v11670_v43 = vpop.eup %8624  ;;  %v5032_v56 = vmul.f32 1.442695, %v4964_v17  ;;  %v5034_v14 = vmul.f32 1.442695, %v4965_v38  ;;  %v4894_v17 = vmax.f32 %v11652_v7, %v11654_v25 }
 0x828   : > { %v11672_v35 = vpop.eup %8626  ;;  %4432 = vmatmul.bf16.gmra.mxu2 %v4260_v51  ;;  %4521 = vmatmul.bf16.gmra.mxu3 %v4261_v27 }
 0x829   : > { %8628 = vpow2.f32 %v5032_v56  ;;  %v4413_v53 = vpop.f32.mrf.mxu2  ;;  %v5155_v41 = vadd.f32 %v11672_v35, %v11670_v43 }
 0x82a   : > { %v4502_v11 = vpop.f32.mrf.mxu3  ;;  %8630 = vpow2.f32 %v5034_v14 }
 0x82b   : > { %v11678_v37 = vadd.f32 %v4502_v11, %v4413_v53  ;;  %8632 = vrcp.f32 %v4124_v15  ;;  %5156 = vadd.xlane.f32.xlu1 %v5155_v41  ;;  %4892 = vmax.xlane.f32.xlu0 %v4891_v31 }
 0x82c   : > { %v4875_v38 = vpop.xlane.xlu0 %4874  ;;  %v4127_v27 = vpop.xlane.xlu1 %4126 }
 0x82d   : > { %13731 = vst [vmem:[#allocation77_spill] sm:$0xff] %v11678_v37  ;;  %v4966_v51 = vsub.f32 %v13706_v55, %v4875_v38  ;;  %v4967_v50 = vsub.f32 %v13705_v19, %v4875_v38  ;;  %8634 = vrcp.f32 %v4127_v27  ;;  %v11702_v27 = vpop.f32.mrf.mxu0 }
 0x82f   : > { %v11686_v29 = vpop.eup %8628  ;;  %v5036_v6 = vmul.f32 1.442695, %v4966_v51  ;;  %v5038_v34 = vmul.f32 1.442695, %v4967_v50  ;;  %v11704_v51 = vpop.f32.mrf.mxu1 }
 0x830   : > { %v11688_v52 = vpop.eup %8630 }
 0x831   : > { %v8633_v18 = vpop.eup %8632  ;;  %8636 = vpow2.f32 %v5036_v6  ;;  %v5158_v15 = vadd.f32 %v11688_v52, %v11686_v29 }
 0x832   : > { %8638 = vpow2.f32 %v5038_v34  ;;  %v4224_v14 = vmul.f32 %v8633_v18, %v11543_v39  ;;  %v4225_v11 = vmul.f32 %v8633_v18, %v11545_v57 }
 0x833   : > { %v8635_v56 = vpop.eup %8634  ;;  %5159 = vadd.xlane.f32.xlu1 %v5158_v15  ;;  %4895 = vmax.xlane.f32.xlu0 %v4894_v17 }
 0x834   : > { %v4878_v19 = vpop.xlane.xlu0 %4877  ;;  %v11694_v55 = vpop.xlane.xlu1 %4129  ;;  %v4226_v53 = vmul.f32 %v8635_v56, %v11553_v16  ;;  %v4227_v41 = vmul.f32 %v8635_v56, %v11555_v26  ;;  %v4897_v16 = vmax.f32 %v11680_v8, %v11682_v49 }
 0x835   : > { %v4968_v31 = vsub.f32 %v13708_v45, %v4878_v19  ;;  %v4969_v38 = vsub.f32 %v13707_v48, %v4878_v19 }
 0x836   : > { %v4262_v50 = vpack.c.bf16 %v4226_v53, %v4224_v14  ;;  %v4263_v6 = vpack.c.bf16 %v4227_v41, %v4225_v11  ;;  %v11720_v53 = vpop.f32.mrf.mxu0 }
 0x837   : > { %v11706_v34 = vpop.eup %8636  ;;  %v5040_v15 = vmul.f32 1.442695, %v4968_v31  ;;  %v5042_v39 = vmul.f32 1.442695, %v4969_v38  ;;  %v11722_v11 = vpop.f32.mrf.mxu1  ;;  %v4900_v31 = vmax.f32 %v11702_v27, %v11704_v51 }
 0x838   : > { %v11708_v17 = vpop.eup %8638  ;;  %4437 = vmatmul.bf16.gmra.mxu2 %v4262_v50  ;;  %4526 = vmatmul.bf16.gmra.mxu3 %v4263_v6 }
 0x839   : > { %8640 = vpow2.f32 %v5040_v15  ;;  %v5161_v57 = vadd.f32 %v11708_v17, %v11706_v34 }
 0x83a   : > { %8642 = vpow2.f32 %v5042_v39 }
 0x83b   : > { %5162 = vadd.xlane.f32.xlu2 %v5161_v57  ;;  %4898 = vmax.xlane.f32.xlu1 %v4897_v16  ;;  %v4903_v57 = vmax.f32 %v11720_v53, %v11722_v11 }
 0x83c   : > { %v4881_v26 = vpop.xlane.xlu1 %4880 }
 0x83d   : > { %v4970_v48 = vsub.f32 %v13710_v62, %v4881_v26  ;;  %v4971_v45 = vsub.f32 %v13709_v2, %v4881_v26 }
 0x83e   : > { %v11738_v26 = vpop.f32.mrf.mxu0 }
 0x83f   : > { %v11716_v18 = vpop.eup %8640  ;;  %v5044_v56 = vmul.f32 1.442695, %v4970_v48  ;;  %v5046_v19 = vmul.f32 1.442695, %v4971_v45  ;;  %v11740_v48 = vpop.f32.mrf.mxu1 }
 0x840   : > { %v11718_v14 = vpop.eup %8642  ;;  %v4906_v45 = vmax.f32 %v11738_v26, %v11740_v48 }
 0x841   : > { %8644 = vpow2.f32 %v5044_v56  ;;  %v5164_v41 = vadd.f32 %v11718_v14, %v11716_v18 }
 0x842   : > { %8646 = vpow2.f32 %v5046_v19 }
 0x843   : > { %5165 = vadd.xlane.f32.xlu2 %v5164_v41  ;;  %4901 = vmax.xlane.f32.xlu1 %v4900_v31 }
 0x844   : > { %v4884_v2 = vpop.xlane.xlu1 %4883 }
 0x845   : > { %v4972_v62 = vsub.f32 %v13712_v46, %v4884_v2  ;;  %v4973_v38 = vsub.f32 %v13711_v21, %v4884_v2 }
 0x846   : > { %v11750_v19 = vpop.f32.mrf.mxu0 }
 0x847   : > { %v11730_v50 = vpop.eup %8644  ;;  %v5048_v6 = vmul.f32 1.442695, %v4972_v62  ;;  %v5050_v15 = vmul.f32 1.442695, %v4973_v38  ;;  %v11752_v41 = vpop.f32.mrf.mxu1 }
 0x848   : > { %v11732_v39 = vpop.eup %8646  ;;  %v4909_v31 = vmax.f32 %v11750_v19, %v11752_v41 }
 0x849   : > { %8648 = vpow2.f32 %v5048_v6  ;;  %v5167_v16 = vadd.f32 %v11732_v39, %v11730_v50  ;;  %v11762_v6 = vpop.f32.mrf.mxu2 }
 0x84a   : > { %8650 = vpow2.f32 %v5050_v15  ;;  %13732 = vst [vmem:[#allocation43_spill] sm:$0xff] %v11762_v6  ;;  %v11764_v15 = vpop.f32.mrf.mxu3 }
 0x84b   : > { %4904 = vmax.xlane.f32.xlu2 %v4903_v57  ;;  %5168 = vadd.xlane.f32.xlu0 %v5167_v16  ;;  %13733 = vst [vmem:[#allocation42_spill] sm:$0xff] %v11764_v15  ;;  %8652 = vrcp.f32 %v11694_v55 }
 0x84e   : > { %v11758_v62 = vpop.f32.mrf.mxu0 }
 0x84f   : > { %v11742_v21 = vpop.eup %8648  ;;  %v11756_v2 = vpop.f32.mrf.mxu1 }
 0x850   : > { %v11744_v46 = vpop.eup %8650  ;;  %v4912_v38 = vmax.f32 %v11758_v62, %v11756_v2 }
 0x851   : > { %v5170_v56 = vadd.f32 %v11744_v46, %v11742_v21 }
 0x853   : > { %4907 = vmax.xlane.f32.xlu2 %v4906_v45  ;;  %5171 = vadd.xlane.f32.xlu0 %v5170_v56 }
 0x85b   : > { %4910 = vmax.xlane.f32.xlu0 %v4909_v31  ;;  %v8653_v31 = vpop.eup %8652 }
 0x85c   : > { %v4229_v15 = vmul.f32 %v8653_v31, %v11563_v54 }
 0x863   : > { %4913 = vmax.xlane.f32.xlu0 %v4912_v38  ;;  %v4228_v38 = vmul.f32 %v8653_v31, %v11561_v28  ;;  %v11781_v31 = vpop.f32.mrf.mxu1 }
 0x87b   : > { %v4418_v57 = vpop.f32.mrf.mxu2  ;;  %v4507_v16 = vpop.f32.mrf.mxu3 }
 0x87c   : > { %v11766_v45 = vadd.f32 %v4507_v16, %v4418_v57 }
 0x87e   : > { %13734 = vst [vmem:[#allocation47_spill] sm:$0xff] %v11766_v45  ;;  %v4133_v56 = vpop.xlane.xlu2 %4132 }
 0x87f   : > { %8654 = vrcp.f32 %v4133_v56 }
 0x883   : > { %v11769_v37 = vpop.f32.mrf.mxu2  ;;  %v11771_v36 = vpop.f32.mrf.mxu3 }
 0x884   : > { %13735 = vst [vmem:[#allocation46_spill] sm:$0xff] %v11769_v37 }
 0x885   : > { %13736 = vst [vmem:[#allocation79_spill] sm:$0xff] %v11771_v36  ;;  %v8655_v63 = vpop.eup %8654 }
 0x886   : > { %v4136_v47 = vpop.xlane.xlu2 %4135  ;;  %v4230_v6 = vmul.f32 %v8655_v63, %v11602_v59  ;;  %v4231_v57 = vmul.f32 %v8655_v63, %v11604_v61  ;;  %v11783_v61 = vpop.f32.mrf.mxu0 }
 0x887   : > { %8656 = vrcp.f32 %v4136_v47 }
 0x888   : > { %v4264_v16 = vpack.c.bf16 %v4230_v6, %v4228_v38  ;;  %v4265_v45 = vpack.c.bf16 %v4231_v57, %v4229_v15 }
 0x88a   : > { %4442 = vmatmul.bf16.gmra.mxu2 %v4264_v16  ;;  %4531 = vmatmul.bf16.gmra.mxu3 %v4265_v45 }
 0x88b   : > { %v4423_v55 = vpop.f32.mrf.mxu2  ;;  %v4512_v56 = vpop.f32.mrf.mxu3 }
 0x88c   : > { %v11777_v23 = vadd.f32 %v4512_v56, %v4423_v55 }
 0x88d   : > { %v8657_v63 = vpop.eup %8656 }
 0x88e   : > { %13737 = vst [vmem:[#allocation81_spill] sm:$0xff] %v11777_v23  ;;  %v4887_v36 = vpop.xlane.xlu2 %4886  ;;  %v4139_v37 = vpop.xlane.xlu0 %4138  ;;  %v7872_v23 = vld [vmem:[%s9655_s2 + $0xe8] sm:$0xf0] }
 0x88f   : > { %v4974_v5 = vsub.f32 %v13727_v3, %v4887_v36  ;;  %v4975_v28 = vsub.f32 %v13726_v20, %v4887_v36  ;;  %8658 = vrcp.f32 %v4139_v37  ;;  %v4232_v3 = vmul.f32 %v8657_v63, %v11616_v42 }
 0x891   : > { %v5052_v59 = vmul.f32 1.442695, %v4974_v5  ;;  %v5054_v54 = vmul.f32 1.442695, %v4975_v28  ;;  %v4233_v5 = vmul.f32 %v8657_v63, %v11618_v58 }
 0x893   : > { %8660 = vpow2.f32 %v5052_v59  ;;  %v11785_v6 = vpop.f32.mrf.mxu2  ;;  %v11787_v15 = vpop.f32.mrf.mxu3 }
 0x894   : > { %13738 = vst [vmem:[#allocation38_spill] sm:$0xff] %v11785_v6  ;;  %8662 = vpow2.f32 %v5054_v54  ;;  %v8243_v6 = vld [vmem:[%s9655_s2 + $0xd4] sm:$0xf0] }
 0x895   : > { %13739 = vst [vmem:[#allocation39_spill] sm:$0xff] %v11787_v15  ;;  %v8659_v47 = vpop.eup %8658  ;;  %v7862_v15 = vld [vmem:[%s9655_s2 + $0xd0] sm:$0xf] }
 0x896   : > { %v4890_v45 = vpop.xlane.xlu2 %4889  ;;  %v5154_v38 = vpop.xlane.xlu0 %5153  ;;  %v4234_v36 = vmul.f32 %v8659_v47, %v11636_v22  ;;  %v4235_v20 = vmul.f32 %v8659_v47, %v11638_v0 }
 0x897   : > { %v4976_v37 = vsub.f32 %v11610_v12, %v4890_v45  ;;  %v4977_v57 = vsub.f32 %v11612_v32, %v4890_v45  ;;  %v11803_v32 = vpop.f32.mrf.mxu1  ;;  %v11805_v0 = vpop.f32.mrf.mxu0 }
 0x898   : > { %v4266_v16 = vpack.c.bf16 %v4234_v36, %v4232_v3  ;;  %v4267_v55 = vpack.c.bf16 %v4235_v20, %v4233_v5 }
 0x899   : > { %v11795_v56 = vpop.eup %8660  ;;  %v5056_v28 = vmul.f32 1.442695, %v4976_v37  ;;  %v5058_v59 = vmul.f32 1.442695, %v4977_v57 }
 0x89a   : > { %v11797_v54 = vpop.eup %8662  ;;  %4447 = vmatmul.bf16.gmra.mxu2 %v4266_v16  ;;  %4536 = vmatmul.bf16.gmra.mxu3 %v4267_v55 }
 0x89b   : > { %8664 = vpow2.f32 %v5056_v28  ;;  %v4428_v42 = vpop.f32.mrf.mxu2  ;;  %v4517_v22 = vpop.f32.mrf.mxu3  ;;  %v5173_v58 = vadd.f32 %v11797_v54, %v11795_v56 }
 0x89c   : > { %8666 = vpow2.f32 %v5058_v59  ;;  %v11801_v12 = vadd.f32 %v4517_v22, %v4428_v42 }
 0x89d   : > { %8668 = vrcp.f32 %v5154_v38  ;;  %5174 = vadd.xlane.f32.xlu1 %v5173_v58 }
 0x89e   : > { %13740 = vst [vmem:[#allocation54_spill] sm:$0xff] %v11801_v12  ;;  %v4893_v63 = vpop.xlane.xlu0 %4892  ;;  %v5157_v47 = vpop.xlane.xlu1 %5156 }
 0x89f   : > { %v4978_v45 = vsub.f32 %v11632_v4, %v4893_v63  ;;  %v4979_v3 = vsub.f32 %v11634_v10, %v4893_v63  ;;  %8670 = vrcp.f32 %v5157_v47 }
 0x8a1   : > { %v11809_v36 = vpop.eup %8664  ;;  %v5060_v5 = vmul.f32 1.442695, %v4978_v45  ;;  %v5062_v20 = vmul.f32 1.442695, %v4979_v3  ;;  %v11825_v45 = vpop.f32.mrf.mxu1 }
 0x8a2   : > { %v11811_v37 = vpop.eup %8666  ;;  %v11827_v3 = vpop.f32.mrf.mxu0 }
 0x8a3   : > { %v8669_v57 = vpop.eup %8668  ;;  %8672 = vpow2.f32 %v5060_v5  ;;  %v11813_v16 = vpop.f32.mrf.mxu2  ;;  %v5176_v38 = vadd.f32 %v11811_v37, %v11809_v36 }
 0x8a4   : > { %13741 = vst [vmem:[#allocation50_spill] sm:$0xff] %v11813_v16  ;;  %v11815_v55 = vpop.f32.mrf.mxu3  ;;  %8674 = vpow2.f32 %v5062_v20  ;;  %v5280_v10 = vmul.f32 %v8669_v57, %v11648_v44  ;;  %v5281_v28 = vmul.f32 %v8669_v57, %v11650_v33 }
 0x8a5   : > { %13742 = vst [vmem:[#allocation51_spill] sm:$0xff] %v11815_v55  ;;  %v8671_v4 = vpop.eup %8670  ;;  %5177 = vadd.xlane.f32.xlu1 %v5176_v38  ;;  %v8244_v55 = vld [vmem:[%s9655_s2 + $0xe4] sm:$0xf] }
 0x8a6   : > { %v5282_v59 = vmul.f32 %v8671_v4, %v11670_v43  ;;  %v5283_v42 = vmul.f32 %v8671_v4, %v11672_v35  ;;  %v4896_v22 = vpop.xlane.xlu0 %4895  ;;  %v5160_v58 = vpop.xlane.xlu1 %5159 }
 0x8a7   : > { %v4980_v63 = vsub.f32 %v11652_v7, %v4896_v22  ;;  %v4981_v47 = vsub.f32 %v11654_v25, %v4896_v22  ;;  %v4915_v7 = vmax.f32 %v11783_v61, %v11781_v31 }
 0x8a8   : > { %v5344_v5 = vpack.c.bf16 %v5282_v59, %v5280_v10  ;;  %v5345_v20 = vpack.c.bf16 %v5283_v42, %v5281_v28 }
 0x8a9   : > { %v11829_v38 = vpop.eup %8672  ;;  %v5064_v44 = vmul.f32 1.442695, %v4980_v63  ;;  %v5066_v33 = vmul.f32 1.442695, %v4981_v47 }
 0x8aa   : > { %v11831_v57 = vpop.eup %8674  ;;  %5448 = vmatmul.bf16.vlgmr.msra.gmra.mxu2 %v5344_v5  ;;  %5537 = vmatmul.bf16.vlgmr.msra.gmra.mxu3 %v5345_v20  ;;  %v11845_v20 = vpop.f32.mrf.mxu1 }
 0x8ab   : > { %8676 = vpow2.f32 %v5064_v44  ;;  %v4433_v35 = vpop.f32.mrf.mxu2  ;;  %v5179_v25 = vadd.f32 %v11831_v57, %v11829_v38  ;;  %v11847_v44 = vpop.f32.mrf.mxu0 }
 0x8ac   : > { %v4522_v43 = vpop.f32.mrf.mxu3  ;;  %8678 = vpow2.f32 %v5066_v33 }
 0x8ad   : > { %v11837_v4 = vadd.f32 %v4522_v43, %v4433_v35  ;;  %8680 = vrcp.f32 %v5160_v58  ;;  %4916 = vmax.xlane.f32.xlu1 %v4915_v7  ;;  %5180 = vadd.xlane.f32.xlu2 %v5179_v25 }
 0x8ae   : > { %v5163_v10 = vpop.xlane.xlu2 %5162  ;;  %v4899_v28 = vpop.xlane.xlu1 %4898 }
 0x8af   : > { %13743 = vst [vmem:[#allocation58_spill] sm:$0xff] %v11837_v4  ;;  %8682 = vrcp.f32 %v5163_v10  ;;  %v4982_v59 = vsub.f32 %v11680_v8, %v4899_v28  ;;  %v4983_v42 = vsub.f32 %v11682_v49, %v4899_v28  ;;  %v4918_v8 = vmax.f32 %v11805_v0, %v11803_v32 }
 0x8b1   : > { %v11841_v22 = vpop.eup %8676  ;;  %v5068_v63 = vmul.f32 1.442695, %v4982_v59  ;;  %v5070_v47 = vmul.f32 1.442695, %v4983_v42 }
 0x8b2   : > { %v11843_v5 = vpop.eup %8678 }
 0x8b3   : > { %v8681_v58 = vpop.eup %8680  ;;  %8684 = vpow2.f32 %v5068_v63  ;;  %v11849_v33 = vpop.f32.mrf.mxu2  ;;  %v5182_v49 = vadd.f32 %v11843_v5, %v11841_v22 }
 0x8b4   : > { %13744 = vst [vmem:[#allocation55_spill] sm:$0xff] %v11849_v33  ;;  %v11851_v35 = vpop.f32.mrf.mxu3  ;;  %8686 = vpow2.f32 %v5070_v47  ;;  %v5284_v10 = vmul.f32 %v8681_v58, %v11686_v29  ;;  %v5285_v59 = vmul.f32 %v8681_v58, %v11688_v52  ;;  %v4921_v29 = vmax.f32 %v11827_v3, %v11825_v45  ;;  %v11875_v58 = vpop.f32.mrf.mxu0 }
 0x8b5   : > { %13745 = vst [vmem:[#allocation48_spill] sm:$0xff] %v11851_v35  ;;  %v8683_v43 = vpop.eup %8682  ;;  %4919 = vmax.xlane.f32.xlu1 %v4918_v8  ;;  %5183 = vadd.xlane.f32.xlu2 %v5182_v49 }
 0x8b6   : > { %v5166_v7 = vpop.xlane.xlu2 %5165  ;;  %v4902_v25 = vpop.xlane.xlu1 %4901  ;;  %v5286_v28 = vmul.f32 %v8683_v43, %v11706_v34  ;;  %v5287_v42 = vmul.f32 %v8683_v43, %v11708_v17 }
 0x8b7   : > { %v4984_v63 = vsub.f32 %v11702_v27, %v4902_v25  ;;  %v4985_v4 = vsub.f32 %v11704_v51, %v4902_v25  ;;  %v11873_v17 = vpop.f32.mrf.mxu1 }
 0x8b8   : > { %v5346_v35 = vpack.c.bf16 %v5286_v28, %v5284_v10  ;;  %v5347_v33 = vpack.c.bf16 %v5287_v42, %v5285_v59 }
 0x8b9   : > { %v11863_v47 = vpop.eup %8684  ;;  %v5072_v8 = vmul.f32 1.442695, %v4984_v63  ;;  %v5074_v49 = vmul.f32 1.442695, %v4985_v4 }
 0x8ba   : > { %v11865_v12 = vpop.eup %8686  ;;  %5453 = vmatmul.bf16.gmra.mxu2 %v5346_v35  ;;  %5542 = vmatmul.bf16.gmra.mxu3 %v5347_v33 }
 0x8bb   : > { %8688 = vpow2.f32 %v5072_v8  ;;  %v4438_v52 = vpop.f32.mrf.mxu2  ;;  %v5185_v27 = vadd.f32 %v11865_v12, %v11863_v47 }
 0x8bc   : > { %v4527_v34 = vpop.f32.mrf.mxu3  ;;  %8690 = vpow2.f32 %v5074_v49 }
 0x8bd   : > { %v11871_v51 = vadd.f32 %v4527_v34, %v4438_v52  ;;  %8692 = vrcp.f32 %v5166_v7  ;;  %4922 = vmax.xlane.f32.xlu2 %v4921_v29  ;;  %5186 = vadd.xlane.f32.xlu0 %v5185_v27  ;;  %v4924_v7 = vmax.f32 %v11847_v44, %v11845_v20 }
 0x8be   : > { %v4905_v4 = vpop.xlane.xlu2 %4904  ;;  %v5169_v33 = vpop.xlane.xlu0 %5168 }
 0x8bf   : > { %13746 = vst [vmem:[#allocation44_spill] sm:$0xff] %v11871_v51  ;;  %v4986_v35 = vsub.f32 %v11720_v53, %v4905_v4  ;;  %v4987_v43 = vsub.f32 %v11722_v11, %v4905_v4  ;;  %8694 = vrcp.f32 %v5169_v33  ;;  %v11895_v33 = vpop.f32.mrf.mxu1  ;;  %v8245_v51 = vld [vmem:[%s9655_s2 + $0xe4] sm:$0xf0] }
 0x8c1   : > { %v11879_v25 = vpop.eup %8688  ;;  %v5076_v10 = vmul.f32 1.442695, %v4986_v35  ;;  %v5078_v28 = vmul.f32 1.442695, %v4987_v43  ;;  %v11897_v35 = vpop.f32.mrf.mxu0 }
 0x8c2   : > { %v11881_v59 = vpop.eup %8690 }
 0x8c3   : > { %v8693_v42 = vpop.eup %8692  ;;  %8696 = vpow2.f32 %v5076_v10  ;;  %v5188_v63 = vadd.f32 %v11881_v59, %v11879_v25 }
 0x8c4   : > { %8698 = vpow2.f32 %v5078_v28  ;;  %v5288_v49 = vmul.f32 %v8693_v42, %v11716_v18  ;;  %v5289_v52 = vmul.f32 %v8693_v42, %v11718_v14 }
 0x8c5   : > { %v8695_v8 = vpop.eup %8694  ;;  %4925 = vmax.xlane.f32.xlu2 %v4924_v7  ;;  %5189 = vadd.xlane.f32.xlu0 %v5188_v63 }
 0x8c6   : > { %v4908_v53 = vpop.xlane.xlu2 %4907  ;;  %v11887_v11 = vpop.xlane.xlu0 %5171  ;;  %v5290_v29 = vmul.f32 %v8695_v8, %v11730_v50  ;;  %v5291_v34 = vmul.f32 %v8695_v8, %v11732_v39  ;;  %v4927_v50 = vmax.f32 %v11875_v58, %v11873_v17 }
 0x8c7   : > { %v4988_v27 = vsub.f32 %v11738_v26, %v4908_v53  ;;  %v4989_v4 = vsub.f32 %v11740_v48, %v4908_v53 }
 0x8c8   : > { %v5348_v43 = vpack.c.bf16 %v5290_v29, %v5288_v49  ;;  %v5349_v10 = vpack.c.bf16 %v5291_v34, %v5289_v52  ;;  %v11913_v29 = vpop.f32.mrf.mxu1 }
 0x8c9   : > { %v11899_v28 = vpop.eup %8696  ;;  %v5080_v7 = vmul.f32 1.442695, %v4988_v27  ;;  %v5082_v18 = vmul.f32 1.442695, %v4989_v4  ;;  %v11915_v52 = vpop.f32.mrf.mxu0  ;;  %v4930_v27 = vmax.f32 %v11897_v35, %v11895_v33 }
 0x8ca   : > { %v11901_v63 = vpop.eup %8698  ;;  %5458 = vmatmul.bf16.gmra.mxu2 %v5348_v43  ;;  %5547 = vmatmul.bf16.gmra.mxu3 %v5349_v10 }
 0x8cb   : > { %8700 = vpow2.f32 %v5080_v7  ;;  %v5191_v14 = vadd.f32 %v11901_v63, %v11899_v28 }
 0x8cc   : > { %8702 = vpow2.f32 %v5082_v18 }
 0x8cd   : > { %5192 = vadd.xlane.f32.xlu1 %v5191_v14  ;;  %4928 = vmax.xlane.f32.xlu0 %v4927_v50  ;;  %v4933_v14 = vmax.f32 %v11915_v52, %v11913_v29 }
 0x8ce   : > { %v4911_v39 = vpop.xlane.xlu0 %4910 }
 0x8cf   : > { %v4990_v26 = vsub.f32 %v11750_v19, %v4911_v39  ;;  %v4991_v48 = vsub.f32 %v11752_v41, %v4911_v39 }
 0x8d0   : > { %v11931_v39 = vpop.f32.mrf.mxu1 }
 0x8d1   : > { %v11909_v42 = vpop.eup %8700  ;;  %v5084_v8 = vmul.f32 1.442695, %v4990_v26  ;;  %v5086_v53 = vmul.f32 1.442695, %v4991_v48  ;;  %v11933_v26 = vpop.f32.mrf.mxu0 }
 0x8d2   : > { %v11911_v49 = vpop.eup %8702  ;;  %v4936_v48 = vmax.f32 %v11933_v26, %v11931_v39 }
 0x8d3   : > { %8704 = vpow2.f32 %v5084_v8  ;;  %v5194_v34 = vadd.f32 %v11911_v49, %v11909_v42 }
 0x8d4   : > { %8706 = vpow2.f32 %v5086_v53 }
 0x8d5   : > { %5195 = vadd.xlane.f32.xlu1 %v5194_v34  ;;  %4931 = vmax.xlane.f32.xlu0 %v4930_v27 }
 0x8d6   : > { %v4914_v19 = vpop.xlane.xlu0 %4913 }
 0x8d7   : > { %v4992_v41 = vsub.f32 %v11758_v62, %v4914_v19  ;;  %v4993_v4 = vsub.f32 %v11756_v2, %v4914_v19 }
 0x8d8   : > { %v11943_v53 = vpop.f32.mrf.mxu1 }
 0x8d9   : > { %v11923_v43 = vpop.eup %8704  ;;  %v5088_v10 = vmul.f32 1.442695, %v4992_v41  ;;  %v5090_v7 = vmul.f32 1.442695, %v4993_v4  ;;  %v11945_v34 = vpop.f32.mrf.mxu0 }
 0x8da   : > { %v11925_v18 = vpop.eup %8706  ;;  %v4939_v27 = vmax.f32 %v11945_v34, %v11943_v53 }
 0x8db   : > { %8708 = vpow2.f32 %v5088_v10  ;;  %v5197_v50 = vadd.f32 %v11925_v18, %v11923_v43  ;;  %v7878_v10 = vld [vmem:[%s9655_s2 + $0xf0] sm:$0xf] }
 0x8dc   : > { %8710 = vpow2.f32 %v5090_v7  ;;  %v8247_v7 = vld [vmem:[%s9655_s2 + $0xf4] sm:$0xf0] }
 0x8dd   : > { %4934 = vmax.xlane.f32.xlu1 %v4933_v14  ;;  %5198 = vadd.xlane.f32.xlu2 %v5197_v50  ;;  %v8246_v14 = vld [vmem:[%s9655_s2 + $0xf4] sm:$0xf]  ;;  %v7879_v50 = vor.u32 %v8247_v7, %v7878_v10  ;;  %v7863_v7 = vor.u32 %v8243_v6, %v7862_v15  ;;  %v7846_v6 = vld [vmem:[%s9655_s2 + $0xb0] sm:$0xf]  ;;  %v8239_v15 = vld [vmem:[%s9655_s2 + $0xb4] sm:$0xf0]  ;;  %8712 = vrcp.f32 %v11887_v11 }
 0x8de   : > { %v8242_v10 = vld [vmem:[%s9655_s2 + $0xd4] sm:$0xf] }
 0x8df   : > { %5714 = vmatpush.bf16.msrb.mxu0 %v7879_v50  ;;  %v8234_v11 = vld [vmem:[%s9655_s2 + $0x94] sm:$0xf] }
 0x8e0   : > { %v11949_v19 = vpop.f32.mrf.mxu1 }
 0x8e1   : > { %v11935_v2 = vpop.eup %8708  ;;  %v11951_v41 = vpop.f32.mrf.mxu0 }
 0x8e2   : > { %v11937_v62 = vpop.eup %8710  ;;  %v4942_v4 = vmax.f32 %v11951_v41, %v11949_v19 }
 0x8e3   : > { %v5200_v8 = vadd.f32 %v11937_v62, %v11935_v2 }
 0x8e5   : > { %4937 = vmax.xlane.f32.xlu1 %v4936_v48  ;;  %5201 = vadd.xlane.f32.xlu2 %v5200_v8  ;;  %v7880_v48 = vld [vmem:[%s9655_s2 + $0xf8] sm:$0xf0] }
 0x8e6   : > { %v7883_v8 = vor.u32 %v8246_v14, %v7880_v48  ;;  %v7864_v14 = vld [vmem:[%s9655_s2 + $0xd8] sm:$0xf0]  ;;  %v11967_v48 = vpop.f32.mrf.mxu2 }
 0x8e7   : > { %v7867_v50 = vor.u32 %v8242_v10, %v7864_v14  ;;  %13747 = vst [vmem:[#allocation56_spill] sm:$0xff] %v11967_v48  ;;  %v8238_v10 = vld [vmem:[%s9655_s2 + $0xb4] sm:$0xf]  ;;  %v7847_v14 = vor.u32 %v8239_v15, %v7846_v6  ;;  %v7848_v48 = vld [vmem:[%s9655_s2 + $0xb8] sm:$0xf0] }
 0x8e8   : > { %5803 = vmatpush.bf16.msrb.mxu1 %v7883_v8  ;;  %v7830_v15 = vld [vmem:[%s9655_s2 + $0x90] sm:$0xf] }
 0x8ed   : > { %4940 = vmax.xlane.f32.xlu2 %v4939_v27  ;;  %v7870_v27 = vld [vmem:[%s9655_s2 + $0xe0] sm:$0xf] }
 0x8ee   : > { %v7871_v16 = vor.u32 %v8245_v51, %v7870_v27  ;;  %v11969_v51 = vpop.f32.mrf.mxu3  ;;  %v7856_v27 = vld [vmem:[%s9655_s2 + $0xc8] sm:$0xf0] }
 0x8ef   : > { %13748 = vst [vmem:[#allocation52_spill] sm:$0xff] %v11969_v51  ;;  %v7851_v51 = vor.u32 %v8238_v10, %v7848_v48  ;;  %v8235_v10 = vld [vmem:[%s9655_s2 + $0x94] sm:$0xf0] }
 0x8f0   : > { %5715 = vmatpush.bf16.msrb.mxu0 %v7871_v16  ;;  %v8241_v16 = vld [vmem:[%s9655_s2 + $0xc4] sm:$0xf0] }
 0x8f4   : > { %5716 = vmatpush.bf16.msrb.mxu0 %v7863_v7 }
 0x8f5   : > { %4943 = vmax.xlane.f32.xlu2 %v4942_v4  ;;  %v7875_v4 = vor.u32 %v8244_v55, %v7872_v23  ;;  %v7854_v23 = vld [vmem:[%s9655_s2 + $0xc0] sm:$0xf]  ;;  %v8240_v55 = vld [vmem:[%s9655_s2 + $0xc4] sm:$0xf] }
 0x8f6   : > { %v7855_v8 = vor.u32 %v8241_v16, %v7854_v23  ;;  %v7838_v16 = vld [vmem:[%s9655_s2 + $0xa0] sm:$0xf] }
 0x8f7   : > { %5804 = vmatpush.bf16.msrb.mxu1 %v7875_v4  ;;  %v7859_v4 = vor.u32 %v8240_v55, %v7856_v27  ;;  %v8237_v55 = vld [vmem:[%s9655_s2 + $0xa4] sm:$0xf0] }
 0x8f8   : > { %5717 = vmatpush.bf16.msrb.mxu0 %v7855_v8  ;;  %v8236_v8 = vld [vmem:[%s9655_s2 + $0xa4] sm:$0xf]  ;;  %v7839_v27 = vor.u32 %v8237_v55, %v7838_v16  ;;  %v7822_v55 = vld [vmem:[%s9655_s2 + $0x80] sm:$0xf] }
 0x8fb   : > { %5805 = vmatpush.bf16.msrb.mxu1 %v7867_v50 }
 0x8fc   : > { %5718 = vmatpush.bf16.msrb.mxu0 %v7847_v14  ;;  %v7831_v14 = vor.u32 %v8235_v10, %v7830_v15 }
 0x8ff   : > { %5806 = vmatpush.bf16.msrb.mxu1 %v7859_v4  ;;  %v7840_v4 = vld [vmem:[%s9655_s2 + $0xa8] sm:$0xf0] }
 0x900   : > { %v7843_v48 = vor.u32 %v8236_v8, %v7840_v4  ;;  %5719 = vmatpush.bf16.msrb.mxu0 %v7839_v27  ;;  %v8233_v8 = vld [vmem:[%s9655_s2 + $0x84] sm:$0xf0]  ;;  %v8232_v4 = vld [vmem:[%s9655_s2 + $0x84] sm:$0xf] }
 0x903   : > { %5807 = vmatpush.bf16.msrb.mxu1 %v7851_v51  ;;  %v8713_v51 = vpop.eup %8712 }
 0x904   : > { %5720 = vmatpush.bf16.msrb.mxu0 %v7831_v14  ;;  %v5292_v27 = vmul.f32 %v8713_v51, %v11742_v21  ;;  %v5293_v10 = vmul.f32 %v8713_v51, %v11744_v46 }
 0x907   : > { %5808 = vmatpush.bf16.msrb.mxu1 %v7843_v48  ;;  %v7823_v48 = vor.u32 %v8233_v8, %v7822_v55 }
 0x909   : > { %5721 = vmatpush.bf16.msrb.mxu0 %v7823_v48 }
 0x90d   : > { %v4443_v7 = vpop.f32.mrf.mxu2  ;;  %v4532_v50 = vpop.f32.mrf.mxu3 }
 0x90e   : > { %v11980_v23 = vadd.f32 %v4532_v50, %v4443_v7  ;;  %v7832_v7 = vld [vmem:[%s9655_s2 + $0x98] sm:$0xf0] }
 0x90f   : > { %v7835_v50 = vor.u32 %v8234_v11, %v7832_v7  ;;  %v7827_v7 = vor.u32 %v8232_v4, %v7824_v1 }
 0x910   : > { %13749 = vst [vmem:[#allocation62_spill] sm:$0xff] %v11980_v23  ;;  %v5175_v6 = vpop.xlane.xlu1 %5174 }
 0x911   : > { %8714 = vrcp.f32 %v5175_v6  ;;  %5809 = vmatpush.bf16.msrb.mxu1 %v7835_v50 }
 0x915   : > { %v11990_v23 = vpop.f32.mrf.mxu2  ;;  %v11992_v16 = vpop.f32.mrf.mxu3  ;;  %5810 = vmatpush.bf16.msrb.mxu1 %v7827_v7 }
 0x916   : > { %13750 = vst [vmem:[#allocation60_spill] sm:$0xff] %v11990_v23 }
 0x917   : > { %13751 = vst [vmem:[#allocation59_spill] sm:$0xff] %v11992_v16  ;;  %v8715_v6 = vpop.eup %8714 }
 0x918   : > { %v5178_v13 = vpop.xlane.xlu1 %5177  ;;  %v5294_v15 = vmul.f32 %v8715_v6, %v11795_v56  ;;  %v5295_v11 = vmul.f32 %v8715_v6, %v11797_v54 }
 0x919   : > { %8716 = vrcp.f32 %v5178_v13 }
 0x91a   : > { %v5350_v16 = vpack.c.bf16 %v5294_v15, %v5292_v27  ;;  %v5351_v14 = vpack.c.bf16 %v5295_v11, %v5293_v10 }
 0x91c   : > { %5463 = vmatmul.bf16.gmra.mxu2 %v5350_v16  ;;  %5552 = vmatmul.bf16.gmra.mxu3 %v5351_v14 }
 0x91d   : > { %v4448_v50 = vpop.f32.mrf.mxu2  ;;  %v4537_v23 = vpop.f32.mrf.mxu3 }
 0x91e   : > { %v12002_v60 = vadd.f32 %v4537_v23, %v4448_v50 }
 0x91f   : > { %v8717_v51 = vpop.eup %8716 }
 0x920   : > { %v5181_v21 = vpop.xlane.xlu2 %5180  ;;  %v4917_v55 = vpop.xlane.xlu1 %4916  ;;  %v5296_v13 = vmul.f32 %v8717_v51, %v11809_v36 }
 0x921   : > { %8718 = vrcp.f32 %v5181_v21  ;;  %v4994_v56 = vsub.f32 %v11783_v61, %v4917_v55  ;;  %v4995_v46 = vsub.f32 %v11781_v31, %v4917_v55  ;;  %v5297_v61 = vmul.f32 %v8717_v51, %v11811_v37 }
 0x923   : > { %v5092_v54 = vmul.f32 1.442695, %v4994_v56  ;;  %v5094_v1 = vmul.f32 1.442695, %v4995_v46 }
 0x925   : > { %8720 = vpow2.f32 %v5092_v54  ;;  %v12006_v8 = vpop.f32.mrf.mxu2  ;;  %v12008_v16 = vpop.f32.mrf.mxu3 }
 0x926   : > { %8722 = vpow2.f32 %v5094_v1 }
 0x927   : > { %v8719_v4 = vpop.eup %8718 }
 0x928   : > { %v5184_v23 = vpop.xlane.xlu2 %5183  ;;  %v4920_v6 = vpop.xlane.xlu1 %4919  ;;  %v5298_v27 = vmul.f32 %v8719_v4, %v11829_v38  ;;  %v5299_v31 = vmul.f32 %v8719_v4, %v11831_v57 }
 0x929   : > { %v4996_v48 = vsub.f32 %v11805_v0, %v4920_v6  ;;  %v4997_v15 = vsub.f32 %v11803_v32, %v4920_v6  ;;  %8724 = vrcp.f32 %v5184_v23  ;;  %v12022_v0 = vpop.f32.mrf.mxu1  ;;  %v12024_v32 = vpop.f32.mrf.mxu0 }
 0x92a   : > { %v5352_v10 = vpack.c.bf16 %v5298_v27, %v5296_v13  ;;  %v5353_v11 = vpack.c.bf16 %v5299_v31, %v5297_v61 }
 0x92b   : > { %v12016_v7 = vpop.eup %8720  ;;  %v5096_v14 = vmul.f32 1.442695, %v4996_v48  ;;  %v5098_v50 = vmul.f32 1.442695, %v4997_v15 }
 0x92c   : > { %v12018_v21 = vpop.eup %8722  ;;  %5468 = vmatmul.bf16.gmra.mxu2 %v5352_v10  ;;  %5557 = vmatmul.bf16.gmra.mxu3 %v5353_v11 }
 0x92d   : > { %8726 = vpow2.f32 %v5096_v14  ;;  %v5449_v36 = vpop.f32.mrf.mxu2  ;;  %v5538_v37 = vpop.f32.mrf.mxu3  ;;  %v5203_v38 = vadd.f32 %v12018_v21, %v12016_v7 }
 0x92e   : > { %8728 = vpow2.f32 %v5098_v50  ;;  %v5539_v61 = vadd.f32 %v5538_v37, %v5449_v36 }
 0x92f   : > { %5204 = vadd.xlane.f32.xlu0 %v5203_v38  ;;  %v8725_v54 = vpop.eup %8724 }
 0x930   : > { %v4923_v57 = vpop.xlane.xlu2 %4922  ;;  %v5187_v55 = vpop.xlane.xlu0 %5186  ;;  %v5301_v14 = vmul.f32 %v8725_v54, %v11843_v5 }
 0x931   : > { %v4998_v56 = vsub.f32 %v11827_v3, %v4923_v57  ;;  %v4999_v46 = vsub.f32 %v11825_v45, %v4923_v57  ;;  %8730 = vrcp.f32 %v5187_v55  ;;  %v5300_v45 = vmul.f32 %v8725_v54, %v11841_v22  ;;  %v12040_v36 = vpop.f32.mrf.mxu0  ;;  %v12042_v37 = vpop.f32.mrf.mxu1 }
 0x933   : > { %v12028_v1 = vpop.eup %8726  ;;  %v5100_v51 = vmul.f32 1.442695, %v4998_v56  ;;  %v5102_v4 = vmul.f32 1.442695, %v4999_v46 }
 0x934   : > { %v12030_v23 = vpop.eup %8728 }
 0x935   : > { %8732 = vpow2.f32 %v5100_v51  ;;  %v5451_v6 = vpop.f32.mrf.mxu2  ;;  %v5540_v13 = vpop.f32.mrf.mxu3  ;;  %v5206_v27 = vadd.f32 %v12030_v23, %v12028_v1 }
 0x936   : > { %8734 = vpow2.f32 %v5102_v4  ;;  %v5541_v31 = vadd.f32 %v5540_v13, %v5451_v6 }
 0x937   : > { %v8731_v3 = vpop.eup %8730  ;;  %5207 = vadd.xlane.f32.xlu0 %v5206_v27 }
 0x938   : > { %v5618_v48 = vpack.c.bf16 %v5541_v31, %v5539_v61  ;;  %v4926_v15 = vpop.xlane.xlu2 %4925  ;;  %v5190_v10 = vpop.xlane.xlu0 %5189  ;;  %v5302_v11 = vmul.f32 %v8731_v3, %v11863_v47  ;;  %v5303_v50 = vmul.f32 %v8731_v3, %v11865_v12 }
 0x939   : > { %v5000_v38 = vsub.f32 %v11847_v44, %v4926_v15  ;;  %v5001_v57 = vsub.f32 %v11845_v20, %v4926_v15  ;;  %8736 = vrcp.f32 %v5190_v10  ;;  %v4945_v44 = vmax.f32 %v12024_v32, %v12022_v0  ;;  %v12060_v15 = vpop.f32.mrf.mxu1 }
 0x93a   : > { %5722 = vmatmul.bf16.vlgmr.msrb.gmra.mxu0 %v5618_v48  ;;  %5811 = vmatmul.bf16.vlgmr.msrb.gmra.mxu1 %v5618_v48  ;;  %v5354_v22 = vpack.c.bf16 %v5302_v11, %v5300_v45  ;;  %v5355_v55 = vpack.c.bf16 %v5303_v50, %v5301_v14  ;;  %v12058_v48 = vpop.f32.mrf.mxu0 }
 0x93b   : > { %v12044_v56 = vpop.eup %8732  ;;  %v5104_v46 = vmul.f32 1.442695, %v5000_v38  ;;  %v5106_v47 = vmul.f32 1.442695, %v5001_v57 }
 0x93c   : > { %v12046_v51 = vpop.eup %8734  ;;  %5473 = vmatmul.bf16.gmra.mxu2 %v5354_v22  ;;  %5562 = vmatmul.bf16.gmra.mxu3 %v5355_v55 }
 0x93d   : > { %8738 = vpow2.f32 %v5104_v46  ;;  %v5209_v12 = vadd.f32 %v12046_v51, %v12044_v56  ;;  %v5454_v5 = vpop.f32.mrf.mxu2  ;;  %v5543_v20 = vpop.f32.mrf.mxu3 }
 0x93e   : > { %8740 = vpow2.f32 %v5106_v47  ;;  %v5544_v14 = vadd.f32 %v5543_v20, %v5454_v5 }
 0x93f   : > { %5210 = vadd.xlane.f32.xlu1 %v5209_v12  ;;  %4946 = vmax.xlane.f32.xlu0 %v4945_v44  ;;  %v8737_v27 = vpop.eup %8736 }
 0x940   : > { %v4929_v54 = vpop.xlane.xlu0 %4928  ;;  %v5193_v4 = vpop.xlane.xlu1 %5192  ;;  %v5304_v57 = vmul.f32 %v8737_v27, %v11879_v25  ;;  %v5305_v12 = vmul.f32 %v8737_v27, %v11881_v59  ;;  %v4951_v59 = vmax.f32 %v12058_v48, %v12060_v15 }
 0x941   : > { %v5002_v6 = vsub.f32 %v11875_v58, %v4929_v54  ;;  %v5003_v13 = vsub.f32 %v11873_v17, %v4929_v54  ;;  %8742 = vrcp.f32 %v5193_v4  ;;  %v4948_v17 = vmax.f32 %v12040_v36, %v12042_v37  ;;  %v12082_v27 = vpop.f32.mrf.mxu1 }
 0x943   : > { %v12054_v61 = vpop.eup %8738  ;;  %v5108_v31 = vmul.f32 1.442695, %v5002_v6  ;;  %v5110_v3 = vmul.f32 1.442695, %v5003_v13 }
 0x944   : > { %v12056_v45 = vpop.eup %8740 }
 0x945   : > { %8744 = vpow2.f32 %v5108_v31  ;;  %v5212_v10 = vadd.f32 %v12056_v45, %v12054_v61  ;;  %v5456_v11 = vpop.f32.mrf.mxu2  ;;  %v5545_v58 = vpop.f32.mrf.mxu3 }
 0x946   : > { %8746 = vpow2.f32 %v5110_v3  ;;  %v5546_v50 = vadd.f32 %v5545_v58, %v5456_v11 }
 0x947   : > { %v8743_v38 = vpop.eup %8742  ;;  %5213 = vadd.xlane.f32.xlu1 %v5212_v10  ;;  %4949 = vmax.xlane.f32.xlu0 %v4948_v17 }
 0x948   : > { %v5619_v22 = vpack.c.bf16 %v5546_v50, %v5544_v14  ;;  %v4932_v55 = vpop.xlane.xlu0 %4931  ;;  %v5196_v46 = vpop.xlane.xlu1 %5195  ;;  %v5306_v47 = vmul.f32 %v8743_v38, %v11899_v28  ;;  %v5307_v44 = vmul.f32 %v8743_v38, %v11901_v63 }
 0x949   : > { %v5004_v54 = vsub.f32 %v11897_v35, %v4932_v55  ;;  %v5005_v5 = vsub.f32 %v11895_v33, %v4932_v55  ;;  %8748 = vrcp.f32 %v5196_v46  ;;  %v12080_v63 = vpop.f32.mrf.mxu0 }
 0x94a   : > { %5727 = vmatmul.bf16.gmra.mxu0 %v5619_v22  ;;  %5816 = vmatmul.bf16.gmra.mxu1 %v5619_v22  ;;  %v5356_v20 = vpack.c.bf16 %v5306_v47, %v5304_v57  ;;  %v5357_v4 = vpack.c.bf16 %v5307_v44, %v5305_v12  ;;  %v4954_v22 = vmax.f32 %v12080_v63, %v12082_v27 }
 0x94b   : > { %v12072_v6 = vpop.eup %8744  ;;  %v5112_v25 = vmul.f32 1.442695, %v5004_v54  ;;  %v5114_v13 = vmul.f32 1.442695, %v5005_v5 }
 0x94c   : > { %v12074_v31 = vpop.eup %8746  ;;  %5478 = vmatmul.bf16.gmra.mxu2 %v5356_v20  ;;  %5567 = vmatmul.bf16.gmra.mxu3 %v5357_v4 }
 0x94d   : > { %8750 = vpow2.f32 %v5112_v25  ;;  %v5459_v35 = vpop.f32.mrf.mxu2  ;;  %v5548_v28 = vpop.f32.mrf.mxu3  ;;  %v5215_v33 = vadd.f32 %v12074_v31, %v12072_v6 }
 0x94e   : > { %8752 = vpow2.f32 %v5114_v13  ;;  %v5549_v12 = vadd.f32 %v5548_v28, %v5459_v35 }
 0x94f   : > { %4952 = vmax.xlane.f32.xlu1 %v4951_v59  ;;  %5216 = vadd.xlane.f32.xlu2 %v5215_v33  ;;  %v8749_v17 = vpop.eup %8748  ;;  %v12102_v33 = vpop.f32.mrf.mxu1 }
 0x950   : > { %v5199_v3 = vpop.xlane.xlu2 %5198  ;;  %v4935_v10 = vpop.xlane.xlu1 %4934  ;;  %v5308_v44 = vmul.f32 %v8749_v17, %v11909_v42  ;;  %v5309_v25 = vmul.f32 %v8749_v17, %v11911_v49 }
 0x951   : > { %8754 = vrcp.f32 %v5199_v3  ;;  %v5006_v11 = vsub.f32 %v11915_v52, %v4935_v10  ;;  %v5007_v58 = vsub.f32 %v11913_v29, %v4935_v10  ;;  %v12100_v28 = vpop.f32.mrf.mxu0 }
 0x952   : > { %v4957_v49 = vmax.f32 %v12100_v28, %v12102_v33 }
 0x953   : > { %v12086_v14 = vpop.eup %8750  ;;  %v5116_v50 = vmul.f32 1.442695, %v5006_v11  ;;  %v5118_v38 = vmul.f32 1.442695, %v5007_v58 }
 0x954   : > { %v12088_v57 = vpop.eup %8752 }
 0x955   : > { %8756 = vpow2.f32 %v5116_v50  ;;  %v5461_v55 = vpop.f32.mrf.mxu2  ;;  %v5550_v46 = vpop.f32.mrf.mxu3  ;;  %v5218_v47 = vadd.f32 %v12088_v57, %v12086_v14 }
 0x956   : > { %8758 = vpow2.f32 %v5118_v38  ;;  %v5551_v52 = vadd.f32 %v5550_v46, %v5461_v55 }
 0x957   : > { %v8755_v29 = vpop.eup %8754  ;;  %4955 = vmax.xlane.f32.xlu1 %v4954_v22  ;;  %5219 = vadd.xlane.f32.xlu2 %v5218_v47 }
 0x958   : > { %v5620_v54 = vpack.c.bf16 %v5551_v52, %v5549_v12  ;;  %v5202_v5 = vpop.xlane.xlu2 %5201  ;;  %v4938_v20 = vpop.xlane.xlu1 %4937  ;;  %v5310_v4 = vmul.f32 %v8755_v29, %v11923_v43  ;;  %v5311_v13 = vmul.f32 %v8755_v29, %v11925_v18 }
 0x959   : > { %v5008_v59 = vsub.f32 %v11933_v26, %v4938_v20  ;;  %v5009_v35 = vsub.f32 %v11931_v39, %v4938_v20 }
 0x95a   : > { %5732 = vmatmul.bf16.gmra.mxu0 %v5620_v54  ;;  %5821 = vmatmul.bf16.gmra.mxu1 %v5620_v54  ;;  %v5358_v42 = vpack.c.bf16 %v5310_v4, %v5308_v44  ;;  %v5359_v3 = vpack.c.bf16 %v5311_v13, %v5309_v25 }
 0x95b   : > { %v12104_v10 = vpop.eup %8756  ;;  %v5120_v11 = vmul.f32 1.442695, %v5008_v59  ;;  %v5122_v43 = vmul.f32 1.442695, %v5009_v35 }
 0x95c   : > { %v12106_v58 = vpop.eup %8758  ;;  %5483 = vmatmul.bf16.gmra.mxu2 %v5358_v42  ;;  %5572 = vmatmul.bf16.gmra.mxu3 %v5359_v3 }
 0x95d   : > { %8760 = vpow2.f32 %v5120_v11  ;;  %v5221_v18 = vadd.f32 %v12106_v58, %v12104_v10 }
 0x95e   : > { %8762 = vpow2.f32 %v5122_v43 }
 0x95f   : > { %4958 = vmax.xlane.f32.xlu2 %v4957_v49  ;;  %5222 = vadd.xlane.f32.xlu0 %v5221_v18 }
 0x960   : > { %v4941_v39 = vpop.xlane.xlu2 %4940 }
 0x961   : > { %v5010_v26 = vsub.f32 %v11945_v34, %v4941_v39  ;;  %v5011_v17 = vsub.f32 %v11943_v53, %v4941_v39 }
 0x963   : > { %v12114_v50 = vpop.eup %8760  ;;  %v5124_v38 = vmul.f32 1.442695, %v5010_v26  ;;  %v5126_v22 = vmul.f32 1.442695, %v5011_v17 }
 0x964   : > { %v12116_v55 = vpop.eup %8762 }
 0x965   : > { %8764 = vpow2.f32 %v5124_v38  ;;  %v5224_v46 = vadd.f32 %v12116_v55, %v12114_v50 }
 0x966   : > { %8766 = vpow2.f32 %v5126_v22 }
 0x967   : > { %5225 = vadd.xlane.f32.xlu0 %v5224_v46 }
 0x968   : > { %v4944_v47 = vpop.xlane.xlu2 %4943 }
 0x969   : > { %v5012_v12 = vsub.f32 %v11951_v41, %v4944_v47  ;;  %v5013_v52 = vsub.f32 %v11949_v19, %v4944_v47 }
 0x96b   : > { %v12122_v34 = vpop.eup %8764  ;;  %v5128_v53 = vmul.f32 1.442695, %v5012_v12  ;;  %v5130_v29 = vmul.f32 1.442695, %v5013_v52 }
 0x96c   : > { %v12124_v44 = vpop.eup %8766 }
 0x96d   : > { %8768 = vpow2.f32 %v5128_v53  ;;  %v5227_v54 = vadd.f32 %v12124_v44, %v12122_v34 }
 0x96e   : > { %8770 = vpow2.f32 %v5130_v29 }
 0x96f   : > { %5228 = vadd.xlane.f32.xlu1 %v5227_v54  ;;  %8772 = vrcp.f32 %v5202_v5 }
 0x973   : > { %v12128_v20 = vpop.eup %8768 }
 0x974   : > { %v12130_v4 = vpop.eup %8770 }
 0x975   : > { %v5230_v41 = vadd.f32 %v12130_v4, %v12128_v20  ;;  %v8773_v59 = vpop.eup %8772 }
 0x976   : > { %v5312_v49 = vmul.f32 %v8773_v59, %v11935_v2  ;;  %v5313_v17 = vmul.f32 %v8773_v59, %v11937_v62 }
 0x977   : > { %5231 = vadd.xlane.f32.xlu2 %v5230_v41 }
 0x99f   : > { %v5464_v19 = vpop.f32.mrf.mxu2  ;;  %v5553_v25 = vpop.f32.mrf.mxu3 }
 0x9a0   : > { %v5554_v3 = vadd.f32 %v5553_v25, %v5464_v19 }
 0x9a2   : > { %v5205_v13 = vpop.xlane.xlu0 %5204 }
 0x9a3   : > { %8774 = vrcp.f32 %v5205_v13 }
 0x9a7   : > { %v5466_v35 = vpop.f32.mrf.mxu2  ;;  %v5555_v42 = vpop.f32.mrf.mxu3 }
 0x9a8   : > { %v5556_v11 = vadd.f32 %v5555_v42, %v5466_v35 }
 0x9a9   : > { %v8775_v43 = vpop.eup %8774 }
 0x9aa   : > { %v5621_v18 = vpack.c.bf16 %v5556_v11, %v5554_v3  ;;  %v5208_v39 = vpop.xlane.xlu0 %5207  ;;  %v5314_v26 = vmul.f32 %v8775_v43, %v12016_v7  ;;  %v5315_v38 = vmul.f32 %v8775_v43, %v12018_v21 }
 0x9ab   : > { %8776 = vrcp.f32 %v5208_v39 }
 0x9ac   : > { %5737 = vmatmul.bf16.gmra.mxu0 %v5621_v18  ;;  %5826 = vmatmul.bf16.gmra.mxu1 %v5621_v18  ;;  %v5360_v5 = vpack.c.bf16 %v5314_v26, %v5312_v49  ;;  %v5361_v22 = vpack.c.bf16 %v5315_v38, %v5313_v17 }
 0x9ae   : > { %5488 = vmatmul.bf16.gmra.mxu2 %v5360_v5  ;;  %5577 = vmatmul.bf16.gmra.mxu3 %v5361_v22 }
 0x9af   : > { %v5469_v46 = vpop.f32.mrf.mxu2  ;;  %v5558_v47 = vpop.f32.mrf.mxu3 }
 0x9b0   : > { %v5559_v41 = vadd.f32 %v5558_v47, %v5469_v46 }
 0x9b1   : > { %v8777_v29 = vpop.eup %8776 }
 0x9b2   : > { %v4947_v12 = vpop.xlane.xlu0 %4946  ;;  %v5211_v52 = vpop.xlane.xlu1 %5210  ;;  %v5316_v13 = vmul.f32 %v8777_v29, %v12028_v1 }
 0x9b3   : > { %v5014_v2 = vsub.f32 %v12024_v32, %v4947_v12  ;;  %v5015_v53 = vsub.f32 %v12022_v0, %v4947_v12  ;;  %8778 = vrcp.f32 %v5211_v52  ;;  %v5317_v0 = vmul.f32 %v8777_v29, %v12030_v23 }
 0x9b5   : > { %v5132_v7 = vmul.f32 1.442695, %v5014_v2  ;;  %v5134_v62 = vmul.f32 1.442695, %v5015_v53 }
 0x9b7   : > { %8780 = vpow2.f32 %v5132_v7  ;;  %v5471_v21 = vpop.f32.mrf.mxu2  ;;  %v5560_v54 = vpop.f32.mrf.mxu3 }
 0x9b8   : > { %8782 = vpow2.f32 %v5134_v62  ;;  %v5561_v19 = vadd.f32 %v5560_v54, %v5471_v21 }
 0x9b9   : > { %v8779_v25 = vpop.eup %8778 }
 0x9ba   : > { %v5622_v59 = vpack.c.bf16 %v5561_v19, %v5559_v41  ;;  %v4950_v35 = vpop.xlane.xlu0 %4949  ;;  %v5214_v42 = vpop.xlane.xlu1 %5213  ;;  %v5318_v32 = vmul.f32 %v8779_v25, %v12044_v56  ;;  %v5319_v3 = vmul.f32 %v8779_v25, %v12046_v51 }
 0x9bb   : > { %v5016_v11 = vsub.f32 %v12040_v36, %v4950_v35  ;;  %v5017_v43 = vsub.f32 %v12042_v37, %v4950_v35  ;;  %8784 = vrcp.f32 %v5214_v42 }
 0x9bc   : > { %5742 = vmatmul.bf16.gmra.mxu0 %v5622_v59  ;;  %5831 = vmatmul.bf16.gmra.mxu1 %v5622_v59  ;;  %v5362_v49 = vpack.c.bf16 %v5318_v32, %v5316_v13  ;;  %v5363_v18 = vpack.c.bf16 %v5319_v3, %v5317_v0 }
 0x9bd   : > { %v12146_v39 = vpop.eup %8780  ;;  %v5136_v1 = vmul.f32 1.442695, %v5016_v11  ;;  %v5138_v26 = vmul.f32 1.442695, %v5017_v43 }
 0x9be   : > { %v12148_v17 = vpop.eup %8782  ;;  %5493 = vmatmul.bf16.gmra.mxu2 %v5362_v49  ;;  %5582 = vmatmul.bf16.gmra.mxu3 %v5363_v18  ;;  %v7944_v18 = vld [vmem:[%s9655_s2 + $0x78] sm:$0xf0] }
 0x9bf   : > { %8786 = vpow2.f32 %v5136_v1  ;;  %v5474_v23 = vpop.f32.mrf.mxu2  ;;  %v5563_v56 = vpop.f32.mrf.mxu3  ;;  %v5233_v36 = vadd.f32 %v12148_v17, %v12146_v39  ;;  %v7934_v1 = vld [vmem:[%s9655_s2 + $0x60] sm:$0xf] }
 0x9c0   : > { %8788 = vpow2.f32 %v5138_v26  ;;  %v5564_v62 = vadd.f32 %v5563_v56, %v5474_v23  ;;  %v8229_v26 = vld [vmem:[%s9655_s2 + $0x64] sm:$0xf0]  ;;  %v8228_v56 = vld [vmem:[%s9655_s2 + $0x64] sm:$0xf] }
 0x9c1   : > { %5234 = vadd.xlane.f32.xlu0 %v5233_v36  ;;  %v8785_v22 = vpop.eup %8784  ;;  %v7936_v36 = vld [vmem:[%s9655_s2 + $0x68] sm:$0xf0] }
 0x9c2   : > { %v5217_v37 = vpop.xlane.xlu2 %5216  ;;  %v4953_v51 = vpop.xlane.xlu1 %4952  ;;  %v5321_v25 = vmul.f32 %v8785_v22, %v12056_v45 }
 0x9c3   : > { %8790 = vrcp.f32 %v5217_v37  ;;  %v5018_v38 = vsub.f32 %v12058_v48, %v4953_v51  ;;  %v5019_v5 = vsub.f32 %v12060_v15, %v4953_v51  ;;  %v5320_v48 = vmul.f32 %v8785_v22, %v12054_v61 }
 0x9c4   : > { %v7935_v37 = vor.u32 %v8229_v26, %v7934_v1 }
 0x9c5   : > { %v12154_v46 = vpop.eup %8786  ;;  %v5140_v47 = vmul.f32 1.442695, %v5018_v38  ;;  %v5142_v12 = vmul.f32 1.442695, %v5019_v5  ;;  %v7939_v5 = vor.u32 %v8228_v56, %v7936_v36  ;;  %v7926_v36 = vld [vmem:[%s9655_s2 + $0x50] sm:$0xf] }
 0x9c6   : > { %v12156_v52 = vpop.eup %8788 }
 0x9c7   : > { %8792 = vpow2.f32 %v5140_v47  ;;  %v5476_v2 = vpop.f32.mrf.mxu2  ;;  %v5565_v53 = vpop.f32.mrf.mxu3  ;;  %v5236_v7 = vadd.f32 %v12156_v52, %v12154_v46 }
 0x9c8   : > { %8794 = vpow2.f32 %v5142_v12  ;;  %v5566_v29 = vadd.f32 %v5565_v53, %v5476_v2 }
 0x9c9   : > { %v8791_v21 = vpop.eup %8790  ;;  %5237 = vadd.xlane.f32.xlu1 %v5236_v7 }
 0x9ca   : > { %v5623_v15 = vpack.c.bf16 %v5566_v29, %v5564_v62  ;;  %v5220_v54 = vpop.xlane.xlu2 %5219  ;;  %v4956_v41 = vpop.xlane.xlu1 %4955  ;;  %v5322_v19 = vmul.f32 %v8791_v21, %v12072_v6  ;;  %v5323_v13 = vmul.f32 %v8791_v21, %v12074_v31  ;;  %v7942_v31 = vld [vmem:[%s9655_s2 + $0x70] sm:$0xf] }
 0x9cb   : > { %v5020_v59 = vsub.f32 %v12080_v63, %v4956_v41  ;;  %v5021_v35 = vsub.f32 %v12082_v27, %v4956_v41  ;;  %8796 = vrcp.f32 %v5220_v54  ;;  %v8231_v63 = vld [vmem:[%s9655_s2 + $0x74] sm:$0xf0]  ;;  %v8230_v27 = vld [vmem:[%s9655_s2 + $0x74] sm:$0xf] }
 0x9cc   : > { %5747 = vmatmul.bf16.gmra.mxu0 %v5623_v15  ;;  %5836 = vmatmul.bf16.gmra.mxu1 %v5623_v15  ;;  %v5364_v42 = vpack.c.bf16 %v5322_v19, %v5320_v48  ;;  %v5365_v61 = vpack.c.bf16 %v5323_v13, %v5321_v25  ;;  %v7943_v49 = vor.u32 %v8231_v63, %v7942_v31 }
 0x9cd   : > { %v12166_v32 = vpop.eup %8792  ;;  %v5144_v6 = vmul.f32 1.442695, %v5020_v59  ;;  %v5146_v0 = vmul.f32 1.442695, %v5021_v35  ;;  %v7947_v23 = vor.u32 %v8230_v27, %v7944_v18 }
 0x9ce   : > { %v12168_v45 = vpop.eup %8794  ;;  %5498 = vmatmul.bf16.gmra.mxu2 %v5364_v42  ;;  %5587 = vmatmul.bf16.gmra.mxu3 %v5365_v61 }
 0x9cf   : > { %8798 = vpow2.f32 %v5144_v6  ;;  %v5479_v3 = vpop.f32.mrf.mxu2  ;;  %v5568_v11 = vpop.f32.mrf.mxu3  ;;  %v5239_v43 = vadd.f32 %v12168_v45, %v12166_v32  ;;  %5972 = vmatpush.bf16.msrb.mxu2 %v7943_v49  ;;  %6061 = vmatpush.bf16.msrb.mxu3 %v7947_v23 }
 0x9d0   : > { %8800 = vpow2.f32 %v5146_v0  ;;  %v5569_v15 = vadd.f32 %v5568_v11, %v5479_v3 }
 0x9d1   : > { %5240 = vadd.xlane.f32.xlu2 %v5239_v43  ;;  %v8797_v12 = vpop.eup %8796 }
 0x9d2   : > { %v4959_v51 = vpop.xlane.xlu2 %4958  ;;  %v5223_v38 = vpop.xlane.xlu0 %5222  ;;  %v5324_v54 = vmul.f32 %v8797_v12, %v12086_v14  ;;  %v5325_v25 = vmul.f32 %v8797_v12, %v12088_v57 }
 0x9d3   : > { %v5022_v22 = vsub.f32 %v12100_v28, %v4959_v51  ;;  %v5023_v47 = vsub.f32 %v12102_v33, %v4959_v51  ;;  %8802 = vrcp.f32 %v5223_v38  ;;  %5973 = vmatpush.bf16.msrb.mxu2 %v7935_v37  ;;  %6062 = vmatpush.bf16.msrb.mxu3 %v7939_v5  ;;  %v8227_v37 = vld [vmem:[%s9655_s2 + $0x54] sm:$0xf0] }
 0x9d4   : > { %v7927_v51 = vor.u32 %v8227_v37, %v7926_v36 }
 0x9d5   : > { %v12182_v2 = vpop.eup %8798  ;;  %v5148_v53 = vmul.f32 1.442695, %v5022_v22  ;;  %v5150_v7 = vmul.f32 1.442695, %v5023_v47  ;;  %v7918_v22 = vld [vmem:[%s9655_s2 + $0x40] sm:$0xf] }
 0x9d6   : > { %v12184_v62 = vpop.eup %8800  ;;  %v8225_v47 = vld [vmem:[%s9655_s2 + $0x44] sm:$0xf0] }
 0x9d7   : > { %8804 = vpow2.f32 %v5148_v53  ;;  %v5481_v29 = vpop.f32.mrf.mxu2  ;;  %v5570_v21 = vpop.f32.mrf.mxu3  ;;  %v5242_v48 = vadd.f32 %v12184_v62, %v12182_v2  ;;  %5974 = vmatpush.bf16.msrb.mxu2 %v7927_v51  ;;  %v7919_v12 = vor.u32 %v8225_v47, %v7918_v22  ;;  %v8216_v22 = vld [vmem:[%s9655_s2 + $0x4] sm:$0xf] }
 0x9d8   : > { %8806 = vpow2.f32 %v5150_v7  ;;  %v5571_v28 = vadd.f32 %v5570_v21, %v5481_v29  ;;  %v8224_v7 = vld [vmem:[%s9655_s2 + $0x44] sm:$0xf]  ;;  %v7920_v29 = vld [vmem:[%s9655_s2 + $0x48] sm:$0xf0] }
 0x9d9   : > { %v8803_v33 = vpop.eup %8802  ;;  %5243 = vadd.xlane.f32.xlu0 %v5242_v48  ;;  %v7923_v21 = vor.u32 %v8224_v7, %v7920_v29  ;;  %v7888_v29 = vld [vmem:[%s9655_s2 + $0x8] sm:$0xf0] }
 0x9da   : > { %v5624_v41 = vpack.c.bf16 %v5571_v28, %v5569_v15  ;;  %v5326_v19 = vmul.f32 %v8803_v33, %v12104_v10  ;;  %v5327_v13 = vmul.f32 %v8803_v33, %v12106_v58  ;;  %v5226_v61 = vpop.xlane.xlu0 %5225 }
 0x9db   : > { %8808 = vrcp.f32 %v5226_v61  ;;  %5975 = vmatpush.bf16.msrb.mxu2 %v7919_v12 }
 0x9dc   : > { %5752 = vmatmul.bf16.gmra.mxu0 %v5624_v41  ;;  %5841 = vmatmul.bf16.gmra.mxu1 %v5624_v41  ;;  %v5366_v59 = vpack.c.bf16 %v5326_v19, %v5324_v54  ;;  %v5367_v35 = vpack.c.bf16 %v5327_v13, %v5325_v25 }
 0x9dd   : > { %v12192_v42 = vpop.eup %8804 }
 0x9de   : > { %v12194_v6 = vpop.eup %8806  ;;  %5503 = vmatmul.bf16.gmra.mxu2 %v5366_v59  ;;  %5592 = vmatmul.bf16.gmra.mxu3 %v5367_v35 }
 0x9df   : > { %v5245_v14 = vadd.f32 %v12194_v6, %v12192_v42  ;;  %v5484_v0 = vpop.f32.mrf.mxu2  ;;  %v5573_v10 = vpop.f32.mrf.mxu3 }
 0x9e0   : > { %v5574_v27 = vadd.f32 %v5573_v10, %v5484_v0  ;;  %v7910_v0 = vld [vmem:[%s9655_s2 + $0x30] sm:$0xf]  ;;  %v8223_v10 = vld [vmem:[%s9655_s2 + $0x34] sm:$0xf0] }
 0x9e1   : > { %5246 = vadd.xlane.f32.xlu1 %v5245_v14  ;;  %v8809_v58 = vpop.eup %8808 }
 0x9e2   : > { %v5229_v57 = vpop.xlane.xlu1 %5228  ;;  %v5328_v43 = vmul.f32 %v8809_v58, %v12114_v50  ;;  %v5329_v1 = vmul.f32 %v8809_v58, %v12116_v55  ;;  %v8226_v50 = vld [vmem:[%s9655_s2 + $0x54] sm:$0xf] }
 0x9e3   : > { %8810 = vrcp.f32 %v5229_v57  ;;  %v8222_v57 = vld [vmem:[%s9655_s2 + $0x34] sm:$0xf] }
 0x9e7   : > { %v5486_v31 = vpop.f32.mrf.mxu2  ;;  %v5575_v63 = vpop.f32.mrf.mxu3 }
 0x9e8   : > { %v5576_v3 = vadd.f32 %v5575_v63, %v5486_v31  ;;  %v7902_v63 = vld [vmem:[%s9655_s2 + $0x20] sm:$0xf] }
 0x9e9   : > { %v8811_v11 = vpop.eup %8810 }
 0x9ea   : > { %v5625_v49 = vpack.c.bf16 %v5576_v3, %v5574_v27  ;;  %v5330_v18 = vmul.f32 %v8811_v11, %v12122_v34  ;;  %v5331_v26 = vmul.f32 %v8811_v11, %v12124_v44  ;;  %v7928_v34 = vld [vmem:[%s9655_s2 + $0x58] sm:$0xf0]  ;;  %v5232_v55 = vpop.xlane.xlu2 %5231  ;;  %v8221_v27 = vld [vmem:[%s9655_s2 + $0x24] sm:$0xf0]  ;;  %v8220_v3 = vld [vmem:[%s9655_s2 + $0x24] sm:$0xf] }
 0x9eb   : > { %v7931_v38 = vor.u32 %v8226_v50, %v7928_v34  ;;  %8812 = vrcp.f32 %v5232_v55  ;;  %v7903_v11 = vor.u32 %v8221_v27, %v7902_v63 }
 0x9ec   : > { %5757 = vmatmul.bf16.gmra.mxu0 %v5625_v49  ;;  %5846 = vmatmul.bf16.gmra.mxu1 %v5625_v49  ;;  %v5368_v23 = vpack.c.bf16 %v5330_v18, %v5328_v43  ;;  %v5369_v56 = vpack.c.bf16 %v5331_v26, %v5329_v1  ;;  %v7904_v43 = vld [vmem:[%s9655_s2 + $0x28] sm:$0xf0]  ;;  %v7894_v49 = vld [vmem:[%s9655_s2 + $0x10] sm:$0xf]  ;;  %v8219_v18 = vld [vmem:[%s9655_s2 + $0x14] sm:$0xf0] }
 0x9ed   : > { %6063 = vmatpush.bf16.msrb.mxu3 %v7931_v38  ;;  %v7907_v26 = vor.u32 %v8220_v3, %v7904_v43  ;;  %v7895_v36 = vor.u32 %v8219_v18, %v7894_v49 }
 0x9ee   : > { %5508 = vmatmul.bf16.gmra.mxu2 %v5368_v23  ;;  %5597 = vmatmul.bf16.gmra.mxu3 %v5369_v56  ;;  %v8218_v23 = vld [vmem:[%s9655_s2 + $0x14] sm:$0xf]  ;;  %v7896_v56 = vld [vmem:[%s9655_s2 + $0x18] sm:$0xf0] }
 0x9ef   : > { %v7899_v37 = vor.u32 %v8218_v23, %v7896_v56 }
 0x9f1   : > { %v8813_v48 = vpop.eup %8812  ;;  %6064 = vmatpush.bf16.msrb.mxu3 %v7923_v21 }
 0x9f2   : > { %v5332_v19 = vmul.f32 %v8813_v48, %v12128_v20  ;;  %v5333_v59 = vmul.f32 %v8813_v48, %v12130_v4  ;;  %v7911_v20 = vor.u32 %v8223_v10, %v7910_v0 }
 0x9f4   : > { %5976 = vmatpush.bf16.msrb.mxu2 %v7911_v20 }
 0x9f8   : > { %5977 = vmatpush.bf16.msrb.mxu2 %v7903_v11 }
 0x9fc   : > { %5978 = vmatpush.bf16.msrb.mxu2 %v7895_v36 }
 0xa31   : > { %v5489_v44 = vpop.f32.mrf.mxu2  ;;  %v5578_v5 = vpop.f32.mrf.mxu3 }
 0xa32   : > { %v5579_v33 = vadd.f32 %v5578_v5, %v5489_v44  ;;  %v7886_v44 = vld [vmem:[%s9655_s2] sm:$0xf]  ;;  %v8217_v5 = vld [vmem:[%s9655_s2 + $0x4] sm:$0xf0] }
 0xa33   : > { %v7887_v7 = vor.u32 %v8217_v5, %v7886_v44  ;;  %v13753_v44 = vld [vmem:[#allocation68_spill] sm:$0xff] }
 0xa34   : > { %v5235_v53 = vpop.xlane.xlu0 %5234 }
 0xa35   : > { %8814 = vrcp.f32 %v5235_v53  ;;  %5979 = vmatpush.bf16.msrb.mxu2 %v7887_v7  ;;  %v13755_v7 = vld [vmem:[#allocation76_spill] sm:$0xff] }
 0xa39   : > { %v5491_v15 = vpop.f32.mrf.mxu2  ;;  %v5580_v28 = vpop.f32.mrf.mxu3 }
 0xa3a   : > { %v5581_v54 = vadd.f32 %v5580_v28, %v5491_v15  ;;  %v7891_v28 = vor.u32 %v8216_v22, %v7888_v29  ;;  %v13756_v29 = vld [vmem:[#allocation72_spill] sm:$0xff] }
 0xa3b   : > { %v8815_v41 = vpop.eup %8814 }
 0xa3c   : > { %v5626_v25 = vpack.c.bf16 %v5581_v54, %v5579_v33  ;;  %v5334_v13 = vmul.f32 %v8815_v41, %v12146_v39  ;;  %v5335_v35 = vmul.f32 %v8815_v41, %v12148_v17  ;;  %v5238_v58 = vpop.xlane.xlu1 %5237  ;;  %v7912_v39 = vld [vmem:[%s9655_s2 + $0x38] sm:$0xf0]  ;;  %v12234_v33 = vpop.f32.mrf.mxu0 }
 0xa3d   : > { %v7915_v4 = vor.u32 %v8222_v57, %v7912_v39  ;;  %8816 = vrcp.f32 %v5238_v58  ;;  %v12236_v54 = vpop.f32.mrf.mxu1 }
 0xa3e   : > { %5762 = vmatmul.bf16.gmra.mxu0 %v5626_v25  ;;  %5851 = vmatmul.bf16.gmra.mxu1 %v5626_v25  ;;  %v5370_v61 = vpack.c.bf16 %v5334_v13, %v5332_v19  ;;  %v5371_v14 = vpack.c.bf16 %v5335_v35, %v5333_v59 }
 0xa3f   : > { %6065 = vmatpush.bf16.msrb.mxu3 %v7915_v4 }
 0xa40   : > { %5513 = vmatmul.bf16.gmra.mxu2 %v5370_v61  ;;  %5602 = vmatmul.bf16.gmra.mxu3 %v5371_v14 }
 0xa41   : > { %v5494_v17 = vpop.f32.mrf.mxu2  ;;  %v5583_v31 = vpop.f32.mrf.mxu3 }
 0xa42   : > { %v5584_v38 = vadd.f32 %v5583_v31, %v5494_v17 }
 0xa43   : > { %6066 = vmatpush.bf16.msrb.mxu3 %v7907_v26  ;;  %v8817_v51 = vpop.eup %8816 }
 0xa44   : > { %v5241_v1 = vpop.xlane.xlu2 %5240  ;;  %v5336_v12 = vmul.f32 %v8817_v51, %v12154_v46  ;;  %v5337_v53 = vmul.f32 %v8817_v51, %v12156_v52  ;;  %v12238_v13 = vpop.f32.mrf.mxu0  ;;  %v13752_v51 = vld [vmem:[#allocation70_spill] sm:$0xff] }
 0xa45   : > { %8818 = vrcp.f32 %v5241_v1  ;;  %v12240_v59 = vpop.f32.mrf.mxu1 }
 0xa47   : > { %6067 = vmatpush.bf16.msrb.mxu3 %v7899_v37 }
 0xa49   : > { %v5496_v50 = vpop.f32.mrf.mxu2  ;;  %v5585_v34 = vpop.f32.mrf.mxu3 }
 0xa4a   : > { %v5586_v55 = vadd.f32 %v5585_v34, %v5496_v50  ;;  %v4470_v50 = vadd.f32 %v13752_v51, %v11463_v24  ;;  %v8261_v51 = vld [vmem:[%s9673_s9 + $0x64] sm:$0xf0] }
 0xa4b   : > { %v8819_v47 = vpop.eup %8818  ;;  %6068 = vmatpush.bf16.msrb.mxu3 %v7891_v28  ;;  %v13757_v28 = vld [vmem:[#allocation80_spill] sm:$0xff] }
 0xa4c   : > { %v5627_v21 = vpack.c.bf16 %v5586_v55, %v5584_v38  ;;  %v5338_v48 = vmul.f32 %v8819_v47, %v12166_v32  ;;  %v5339_v15 = vmul.f32 %v8819_v47, %v12168_v45  ;;  %v5244_v46 = vpop.xlane.xlu0 %5243  ;;  %v12246_v3 = vpop.f32.mrf.mxu0 }
 0xa4d   : > { %8820 = vrcp.f32 %v5244_v46  ;;  %v12248_v11 = vpop.f32.mrf.mxu1 }
 0xa4e   : > { %5767 = vmatmul.bf16.gmra.mxu0 %v5627_v21  ;;  %5856 = vmatmul.bf16.gmra.mxu1 %v5627_v21  ;;  %v5372_v41 = vpack.c.bf16 %v5338_v48, %v5336_v12  ;;  %v5373_v19 = vpack.c.bf16 %v5339_v15, %v5337_v53  ;;  %v13754_v53 = vld [vmem:[#allocation74_spill] sm:$0xff] }
 0xa4f   : > { %v4475_v24 = vadd.f32 %v13755_v7, %v13754_v53  ;;  %v13767_v53 = vld [vmem:[#allocation69_spill] sm:$0xff] }
 0xa50   : > { %5518 = vmatmul.bf16.gmra.mxu2 %v5372_v41  ;;  %5607 = vmatmul.bf16.gmra.mxu3 %v5373_v19  ;;  %v13758_v41 = vld [vmem:[#allocation41_spill] sm:$0xff] }
 0xa51   : > { %v5499_v52 = vpop.f32.mrf.mxu2  ;;  %v5588_v25 = vpop.f32.mrf.mxu3  ;;  %v4544_v21 = vpack.c.bf16 %v4475_v24, %v13756_v29  ;;  %v4480_v19 = vadd.f32 %v13758_v41, %v13757_v28  ;;  %v8259_v28 = vld [vmem:[%s9673_s9 + $0x54] sm:$0xf0]  ;;  %v8054_v41 = vld [vmem:[%s9673_s9 + $0xd0] sm:$0xf] }
 0xa52   : > { %v5589_v14 = vadd.f32 %v5588_v25, %v5499_v52  ;;  %v13759_v25 = vld [vmem:[#allocation78_spill] sm:$0xff] }
 0xa53   : > { %v8821_v45 = vpop.eup %8820 }
 0xa54   : > { %v5247_v32 = vpop.xlane.xlu1 %5246  ;;  %v5340_v57 = vmul.f32 %v8821_v45, %v12182_v2  ;;  %v5341_v39 = vmul.f32 %v8821_v45, %v12184_v62 }
 0xa55   : > { %8822 = vrcp.f32 %v5247_v32  ;;  %v12254_v18 = vpop.f32.mrf.mxu1  ;;  %v4545_v32 = vpack.c.bf16 %v4480_v19, %v13759_v25 }
 0xa59   : > { %v5501_v35 = vpop.f32.mrf.mxu2  ;;  %v5590_v61 = vpop.f32.mrf.mxu3 }
 0xa5a   : > { %v5591_v0 = vadd.f32 %v5590_v61, %v5501_v35  ;;  %v13760_v61 = vld [vmem:[#allocation49_spill] sm:$0xff] }
 0xa5b   : > { %v8823_v10 = vpop.eup %8822 }
 0xa5c   : > { %v5628_v58 = vpack.c.bf16 %v5591_v0, %v5589_v14  ;;  %v5342_v20 = vmul.f32 %v8823_v10, %v12192_v42  ;;  %v5343_v4 = vmul.f32 %v8823_v10, %v12194_v6  ;;  %v4465_v42 = vadd.f32 %v11441_v30, %v11439_v40  ;;  %v12252_v6 = vpop.f32.mrf.mxu0  ;;  %v13761_v14 = vld [vmem:[#allocation53_spill] sm:$0xff] }
 0xa5d   : > { %v12259_v37 = vpop.f32.mrf.mxu1  ;;  %v4485_v0 = vadd.f32 %v13761_v14, %v13760_v61  ;;  %v13762_v10 = vld [vmem:[#allocation45_spill] sm:$0xff] }
 0xa5e   : > { %5772 = vmatmul.bf16.gmra.mxu0 %v5628_v58  ;;  %5861 = vmatmul.bf16.gmra.mxu1 %v5628_v58  ;;  %v5374_v17 = vpack.c.bf16 %v5342_v20, %v5340_v57  ;;  %v5375_v31 = vpack.c.bf16 %v5343_v4, %v5341_v39  ;;  %v4542_v26 = vpack.c.bf16 %v4465_v42, %v11435_v9  ;;  %v13763_v39 = vld [vmem:[#allocation61_spill] sm:$0xff]  ;;  %v13764_v4 = vld [vmem:[#allocation63_spill] sm:$0xff] }
 0xa5f   : > { %v4543_v9 = vpack.c.bf16 %v4470_v50, %v13753_v44  ;;  %v4546_v57 = vpack.c.bf16 %v4485_v0, %v13762_v10  ;;  %v8275_v61 = vld [vmem:[%s9673_s9 + $0xd4] sm:$0xf0] }
 0xa60   : > { %5523 = vmatmul.bf16.gmra.mxu2 %v5374_v17  ;;  %5612 = vmatmul.bf16.gmra.mxu3 %v5375_v31  ;;  %v4490_v17 = vadd.f32 %v13764_v4, %v13763_v39  ;;  %v8055_v14 = vor.u32 %v8275_v61, %v8054_v41  ;;  %v13768_v39 = vld [vmem:[#allocation65_spill] sm:$0xff] }
 0xa61   : > { %v5504_v63 = vpop.f32.mrf.mxu2  ;;  %v5593_v27 = vpop.f32.mrf.mxu3  ;;  %v8072_v41 = vld [vmem:[%s9673_s9 + $0xf8] sm:$0xf0] }
 0xa62   : > { %v5594_v62 = vadd.f32 %v5593_v27, %v5504_v63  ;;  %v13765_v27 = vld [vmem:[#allocation57_spill] sm:$0xff] }
 0xa63   : > { %v13769_v61 = vld [vmem:[#allocation73_spill] sm:$0xff] }
 0xa64   : > { %v12257_v36 = vpop.f32.mrf.mxu0 }
 0xa65   : > { %v12266_v22 = vpop.f32.mrf.mxu1 }
 0xa69   : > { %v5506_v2 = vpop.f32.mrf.mxu2  ;;  %v5595_v43 = vpop.f32.mrf.mxu3 }
 0xa6a   : > { %v5596_v49 = vadd.f32 %v5595_v43, %v5506_v2  ;;  %v4547_v2 = vpack.c.bf16 %v4490_v17, %v13765_v27  ;;  %v7982_v17 = vld [vmem:[%s9673_s9 + $0x40] sm:$0xf]  ;;  %v8257_v27 = vld [vmem:[%s9673_s9 + $0x44] sm:$0xf0] }
 0xa6c   : > { %v5629_v1 = vpack.c.bf16 %v5596_v49, %v5594_v62  ;;  %v12264_v5 = vpop.f32.mrf.mxu0  ;;  %v8006_v62 = vld [vmem:[%s9673_s9 + $0x70] sm:$0xf]  ;;  %v8263_v49 = vld [vmem:[%s9673_s9 + $0x74] sm:$0xf0] }
 0xa6d   : > { %v12270_v12 = vpop.f32.mrf.mxu1 }
 0xa6e   : > { %5777 = vmatmul.bf16.gmra.mxu0 %v5629_v1  ;;  %5866 = vmatmul.bf16.gmra.mxu1 %v5629_v1  ;;  %v8070_v1 = vld [vmem:[%s9673_s9 + $0xf0] sm:$0xf] }
 0xa70   : > { %5980 = vmatmul.bf16.vlgmr.msrb.gmra.mxu2 %v4542_v26  ;;  %6069 = vmatmul.bf16.vlgmr.msrb.gmra.mxu3 %v4542_v26 }
 0xa71   : > { %v5509_v23 = vpop.f32.mrf.mxu2  ;;  %v5598_v56 = vpop.f32.mrf.mxu3 }
 0xa72   : > { %v5599_v34 = vadd.f32 %v5598_v56, %v5509_v23  ;;  %v8007_v56 = vor.u32 %v8263_v49, %v8006_v62 }
 0xa74   : > { %v12268_v47 = vpop.f32.mrf.mxu0  ;;  %6508 = vmatpush.bf16.msra.mxu0 %v8007_v56  ;;  %v7974_v56 = vld [vmem:[%s9673_s9 + $0x30] sm:$0xf] }
 0xa75   : > { %v12277_v15 = vpop.f32.mrf.mxu1 }
 0xa79   : > { %v5511_v40 = vpop.f32.mrf.mxu2  ;;  %v5600_v30 = vpop.f32.mrf.mxu3 }
 0xa7a   : > { %v5601_v38 = vadd.f32 %v5600_v30, %v5511_v40  ;;  %v8279_v40 = vld [vmem:[%s9673_s9 + $0xf4] sm:$0xf0]  ;;  %v7998_v30 = vld [vmem:[%s9673_s9 + $0x60] sm:$0xf] }
 0xa7b   : > { %v8071_v50 = vor.u32 %v8279_v40, %v8070_v1  ;;  %v8255_v40 = vld [vmem:[%s9673_s9 + $0x34] sm:$0xf0] }
 0xa7c   : > { %v5630_v55 = vpack.c.bf16 %v5601_v38, %v5599_v34  ;;  %v12275_v48 = vpop.f32.mrf.mxu0  ;;  %v8062_v34 = vld [vmem:[%s9673_s9 + $0xe0] sm:$0xf]  ;;  %v8277_v38 = vld [vmem:[%s9673_s9 + $0xe4] sm:$0xf0] }
 0xa7d   : > { %v12283_v52 = vpop.f32.mrf.mxu1  ;;  %6597 = vmatpush.bf16.msra.mxu1 %v8071_v50  ;;  %v8063_v44 = vor.u32 %v8277_v38, %v8062_v34  ;;  %v8271_v50 = vld [vmem:[%s9673_s9 + $0xb4] sm:$0xf0]  ;;  %v7966_v38 = vld [vmem:[%s9673_s9 + $0x20] sm:$0xf] }
 0xa7e   : > { %5782 = vmatmul.bf16.gmra.mxu0 %v5630_v55  ;;  %5871 = vmatmul.bf16.gmra.mxu1 %v5630_v55  ;;  %v7999_v55 = vor.u32 %v8261_v51, %v7998_v30  ;;  %v8038_v30 = vld [vmem:[%s9673_s9 + $0xb0] sm:$0xf]  ;;  %v7975_v51 = vor.u32 %v8255_v40, %v7974_v56  ;;  %v8267_v56 = vld [vmem:[%s9673_s9 + $0x94] sm:$0xf0] }
 0xa7f   : > { %v8039_v34 = vor.u32 %v8271_v50, %v8038_v30 }
 0xa80   : > { %5985 = vmatmul.bf16.gmra.mxu2 %v4543_v9  ;;  %6074 = vmatmul.bf16.gmra.mxu3 %v4543_v9  ;;  %v13766_v9 = vld [vmem:[#allocation67_spill] sm:$0xff] }
 0xa81   : > { %6509 = vmatpush.bf16.msra.mxu0 %v7999_v55  ;;  %v4495_v7 = vadd.f32 %v13767_v53, %v13766_v9  ;;  %6598 = vmatpush.bf16.msra.mxu1 %v8063_v44  ;;  %v8253_v55 = vld [vmem:[%s9673_s9 + $0x24] sm:$0xf0]  ;;  %v8030_v44 = vld [vmem:[%s9673_s9 + $0xa0] sm:$0xf] }
 0xa83   : > { %v4548_v4 = vpack.c.bf16 %v4495_v7, %v13768_v39  ;;  %v8262_v7 = vld [vmem:[%s9673_s9 + $0x74] sm:$0xf] }
 0xa84   : > { %v12281_v46 = vpop.f32.mrf.mxu0 }
 0xa85   : > { %v12288_v35 = vpop.f32.mrf.mxu1  ;;  %6599 = vmatpush.bf16.msra.mxu1 %v8055_v14  ;;  %v13770_v14 = vld [vmem:[#allocation75_spill] sm:$0xff] }
 0xa8c   : > { %v12286_v45 = vpop.f32.mrf.mxu0 }
 0xa8d   : > { %v12295_v20 = vpop.f32.mrf.mxu1 }
 0xa90   : > { %5990 = vmatmul.bf16.gmra.mxu2 %v4544_v21  ;;  %6079 = vmatmul.bf16.gmra.mxu3 %v4544_v21  ;;  %v7990_v21 = vld [vmem:[%s9673_s9 + $0x50] sm:$0xf] }
 0xa94   : > { %v12293_v58 = vpop.f32.mrf.mxu0 }
 0xa95   : > { %v12301_v63 = vpop.f32.mrf.mxu1 }
 0xa9c   : > { %v12299_v31 = vpop.f32.mrf.mxu0 }
 0xa9d   : > { %v12309_v23 = vpop.f32.mrf.mxu1 }
 0xaa0   : > { %5995 = vmatmul.bf16.gmra.mxu2 %v4545_v32  ;;  %6084 = vmatmul.bf16.gmra.mxu3 %v4545_v32  ;;  %v7991_v32 = vor.u32 %v8259_v28, %v7990_v21  ;;  %v7967_v21 = vor.u32 %v8253_v55, %v7966_v38  ;;  %v8249_v38 = vld [vmem:[%s9673_s9 + $0x4] sm:$0xf0]  ;;  %v8014_v55 = vld [vmem:[%s9673_s9 + $0x80] sm:$0xf] }
 0xaa2   : > { %6510 = vmatpush.bf16.msra.mxu0 %v7991_v32 }
 0xaa4   : > { %v12307_v26 = vpop.f32.mrf.mxu0 }
 0xaa5   : > { %v12324_v10 = vpop.f32.mrf.mxu1 }
 0xaac   : > { %v12322_v0 = vpop.f32.mrf.mxu0 }
 0xaad   : > { %v12340_v53 = vpop.f32.mrf.mxu1 }
 0xab0   : > { %6000 = vmatmul.bf16.gmra.mxu2 %v4546_v57  ;;  %6089 = vmatmul.bf16.gmra.mxu3 %v4546_v57 }
 0xab4   : > { %v12338_v9 = vpop.f32.mrf.mxu0 }
 0xac0   : > { %6005 = vmatmul.bf16.gmra.mxu2 %v4547_v2  ;;  %6094 = vmatmul.bf16.gmra.mxu3 %v4547_v2  ;;  %v8046_v2 = vld [vmem:[%s9673_s9 + $0xc0] sm:$0xf] }
 0xac3   : > { %v5514_v43 = vpop.f32.mrf.mxu2  ;;  %v5603_v42 = vpop.f32.mrf.mxu3 }
 0xac4   : > { %v5604_v19 = vadd.f32 %v5603_v42, %v5514_v43  ;;  %v7983_v43 = vor.u32 %v8257_v27, %v7982_v17  ;;  %v8273_v42 = vld [vmem:[%s9673_s9 + $0xc4] sm:$0xf0]  ;;  %v7958_v17 = vld [vmem:[%s9673_s9 + $0x10] sm:$0xf]  ;;  %v8251_v27 = vld [vmem:[%s9673_s9 + $0x14] sm:$0xf0] }
 0xac5   : > { %v8047_v62 = vor.u32 %v8273_v42, %v8046_v2  ;;  %v8022_v2 = vld [vmem:[%s9673_s9 + $0x90] sm:$0xf] }
 0xac6   : > { %6511 = vmatpush.bf16.msra.mxu0 %v7983_v43  ;;  %v8023_v30 = vor.u32 %v8267_v56, %v8022_v2  ;;  %v6150_v56 = vld [vmem:[%s9671_s28] sm:$0x3] }
 0xac7   : > { %6600 = vmatpush.bf16.msra.mxu1 %v8047_v62  ;;  %v7959_v62 = vor.u32 %v8251_v27, %v7958_v17  ;;  %v13774_v17 = vld [vmem:[#allocation77_spill] sm:$0xff] }
 0xaca   : > { %6512 = vmatpush.bf16.msra.mxu0 %v7975_v51  ;;  %v13771_v51 = vld [vmem:[#allocation71_spill] sm:$0xff] }
 0xacb   : > { %v5516_v24 = vpop.f32.mrf.mxu2  ;;  %v5605_v29 = vpop.f32.mrf.mxu3  ;;  %6601 = vmatpush.bf16.msra.mxu1 %v8039_v34  ;;  %v7950_v34 = vld [vmem:[%s9673_s9] sm:$0xf] }
 0xacc   : > { %v5606_v25 = vadd.f32 %v5605_v29, %v5516_v24  ;;  %v8008_v24 = vld [vmem:[%s9673_s9 + $0x78] sm:$0xf0]  ;;  %v8278_v29 = vld [vmem:[%s9673_s9 + $0xf4] sm:$0xf] }
 0xacd   : > { %v8011_v28 = vor.u32 %v8262_v7, %v8008_v24  ;;  %v8265_v7 = vld [vmem:[%s9673_s9 + $0x84] sm:$0xf0] }
 0xace   : > { %v5631_v57 = vpack.c.bf16 %v5606_v25, %v5604_v19  ;;  %v8269_v19 = vld [vmem:[%s9673_s9 + $0xa4] sm:$0xf0]  ;;  %v8075_v25 = vor.u32 %v8278_v29, %v8072_v41  ;;  %6513 = vmatpush.bf16.msra.mxu0 %v7967_v21  ;;  %v8015_v24 = vor.u32 %v8265_v7, %v8014_v55  ;;  %v8276_v55 = vld [vmem:[%s9673_s9 + $0xe4] sm:$0xf]  ;;  %v8064_v7 = vld [vmem:[%s9673_s9 + $0xe8] sm:$0xf0] }
 0xacf   : > { %v8031_v32 = vor.u32 %v8269_v19, %v8030_v44  ;;  %6686 = vmatpush.bf16.msra.mxu2 %v8011_v28  ;;  %v7951_v44 = vor.u32 %v8249_v38, %v7950_v34  ;;  %v13772_v19 = vld [vmem:[#allocation43_spill] sm:$0xff]  ;;  %v8260_v34 = vld [vmem:[%s9673_s9 + $0x64] sm:$0xf] }
 0xad0   : > { %5787 = vmatmul.bf16.gmra.mxu0 %v5631_v57  ;;  %5876 = vmatmul.bf16.gmra.mxu1 %v5631_v57  ;;  %v4500_v57 = vadd.f32 %v13770_v14, %v13769_v61  ;;  %v8000_v38 = vld [vmem:[%s9673_s9 + $0x68] sm:$0xf0] }
 0xad1   : > { %6010 = vmatmul.bf16.gmra.mxu2 %v4548_v4  ;;  %6099 = vmatmul.bf16.gmra.mxu3 %v4548_v4 }
 0xad2   : > { %6775 = vmatpush.bf16.msra.mxu3 %v8075_v25  ;;  %6602 = vmatpush.bf16.msra.mxu1 %v8031_v32  ;;  %v4549_v50 = vpack.c.bf16 %v4500_v57, %v13771_v51  ;;  %v13773_v25 = vld [vmem:[#allocation42_spill] sm:$0xff] }
 0xad3   : > { %v5519_v49 = vpop.f32.mrf.mxu2  ;;  %v5608_v1 = vpop.f32.mrf.mxu3  ;;  %6514 = vmatpush.bf16.msra.mxu0 %v7959_v62  ;;  %v4505_v32 = vadd.f32 %v13773_v25, %v13772_v19 }
 0xad4   : > { %v5609_v43 = vadd.f32 %v5608_v1, %v5519_v49  ;;  %v12358_v49 = vpop.f32.mrf.mxu0  ;;  %v12360_v1 = vpop.f32.mrf.mxu1 }
 0xad5   : > { %v4550_v27 = vpack.c.bf16 %v4505_v32, %v13774_v17 }
 0xad6   : > { %6603 = vmatpush.bf16.msra.mxu1 %v8023_v30  ;;  %v12376_v30 = vperm.slane %v6150_v56, 1 }
 0xad7   : > { %6515 = vmatpush.bf16.msra.mxu0 %v7951_v44  ;;  %v8003_v44 = vor.u32 %v8260_v34, %v8000_v38 }
 0xad9   : > { %6687 = vmatpush.bf16.msra.mxu2 %v8003_v44 }
 0xada   : > { %6604 = vmatpush.bf16.msra.mxu1 %v8015_v24  ;;  %v8067_v24 = vor.u32 %v8276_v55, %v8064_v7 }
 0xadb   : > { %v5521_v39 = vpop.f32.mrf.mxu2  ;;  %v5610_v4 = vpop.f32.mrf.mxu3 }
 0xadc   : > { %v5611_v42 = vadd.f32 %v5610_v4, %v5521_v39  ;;  %v12362_v28 = vpop.f32.mrf.mxu0  ;;  %v12364_v41 = vpop.f32.mrf.mxu1  ;;  %6776 = vmatpush.bf16.msra.mxu3 %v8067_v24 }
 0xade   : > { %v5632_v40 = vpack.c.bf16 %v5611_v42, %v5609_v43 }
 0xae0   : > { %5792 = vmatmul.bf16.gmra.mxu0 %v5632_v40  ;;  %5881 = vmatmul.bf16.gmra.mxu1 %v5632_v40  ;;  %v12374_v40 = vperm.slane %v6150_v56, 0 }
 0xae1   : > { %6015 = vmatmul.bf16.gmra.mxu2 %v4549_v50  ;;  %6104 = vmatmul.bf16.gmra.mxu3 %v4549_v50 }
 0xae3   : > { %v5524_v29 = vpop.f32.mrf.mxu2  ;;  %v5613_v21 = vpop.f32.mrf.mxu3 }
 0xae4   : > { %v5614_v57 = vadd.f32 %v5613_v21, %v5524_v29  ;;  %v12369_v42 = vpop.f32.mrf.mxu0  ;;  %v12371_v62 = vpop.f32.mrf.mxu1  ;;  %v13775_v29 = vld [vmem:[#allocation46_spill] sm:$0xff]  ;;  %v13776_v21 = vld [vmem:[#allocation79_spill] sm:$0xff] }
 0xae5   : > { %v4510_v19 = vadd.f32 %v13776_v21, %v13775_v29 }
 0xaeb   : > { %v5526_v61 = vpop.f32.mrf.mxu2  ;;  %v5615_v14 = vpop.f32.mrf.mxu3 }
 0xaec   : > { %v5616_v39 = vadd.f32 %v5615_v14, %v5526_v61 }
 0xaee   : > { %v5633_v4 = vpack.c.bf16 %v5616_v39, %v5614_v57  ;;  %v12390_v57 = vpop.f32.mrf.mxu0  ;;  %v12392_v39 = vpop.f32.mrf.mxu1 }
 0xaf0   : > { %5797 = vmatmul.bf16.gmra.mxu0 %v5633_v4  ;;  %5886 = vmatmul.bf16.gmra.mxu1 %v5633_v4 }
 0xaf1   : > { %6020 = vmatmul.bf16.gmra.mxu2 %v4550_v27  ;;  %6109 = vmatmul.bf16.gmra.mxu3 %v4550_v27  ;;  %v13777_v27 = vld [vmem:[#allocation47_spill] sm:$0xff] }
 0xaf3   : > { %v5981_v2 = vpop.f32.mrf.mxu2  ;;  %v6070_v43 = vpop.f32.mrf.mxu3 }
 0xaf4   : > { %v5982_v51 = vadd.f32 %v5981_v2, %v12234_v33  ;;  %v6071_v50 = vadd.f32 %v6070_v43, %v12236_v54  ;;  %v4551_v2 = vpack.c.bf16 %v4510_v19, %v13777_v27  ;;  %v8824_v43 = vld [vmem:[#allocation2 + $0xb0] sm:$0xff] }
 0xaf6   : > { %v6156_v61 = vadd.f32 %v12374_v40, %v5982_v51  ;;  %v6157_v14 = vadd.f32 %v12376_v30, %v6071_v50  ;;  %v8825_v51 = vld [vmem:[#allocation2 + $0x1b0] sm:$0xff]  ;;  %v12415_v29 = vpop.f32.mrf.mxu0  ;;  %v12417_v21 = vpop.f32.mrf.mxu1 }
 0xaf8   : > { %v12397_v56 = vadd.f32 %v8824_v43, %v6156_v61  ;;  %v12399_v50 = vadd.f32 %v8825_v51, %v6157_v14  ;;  %v13781_v61 = vld [vmem:[#allocation39_spill] sm:$0xff] }
 0xafa   : > { %13778 = vst [vmem:[#allocation40_spill] sm:$0xff] %v12399_v50 }
 0xafb   : > { %v5983_v25 = vpop.f32.mrf.mxu2  ;;  %v6072_v32 = vpop.f32.mrf.mxu3 }
 0xafc   : > { %v5984_v33 = vadd.f32 %v5983_v25, %v12238_v13  ;;  %v6073_v54 = vadd.f32 %v6072_v32, %v12240_v59  ;;  %v8826_v13 = vld [vmem:[#allocation2 + $0xd8] sm:$0xff]  ;;  %v13780_v32 = vld [vmem:[#allocation38_spill] sm:$0xff] }
 0xafd   : > { %v8827_v59 = vld [vmem:[#allocation2 + $0x18] sm:$0xff]  ;;  %v4515_v14 = vadd.f32 %v13781_v61, %v13780_v32  ;;  %v8830_v32 = vld [vmem:[#allocation2 + $0x130] sm:$0xff] }
 0xafe   : > { %v6158_v4 = vadd.f32 %v12374_v40, %v5984_v33  ;;  %v6159_v17 = vadd.f32 %v12376_v30, %v6073_v54  ;;  %v12440_v61 = vpop.f32.mrf.mxu1 }
 0xb00   : > { %v12401_v34 = vadd.f32 %v8826_v13, %v6158_v4  ;;  %v12403_v38 = vadd.f32 %v8827_v59, %v6159_v17 }
 0xb01   : > { %6025 = vmatmul.bf16.gmra.mxu2 %v4551_v2  ;;  %6114 = vmatmul.bf16.gmra.mxu3 %v4551_v2 }
 0xb02   : > { %13779 = vst [vmem:[#allocation66_spill] sm:$0xff] %v12403_v38  ;;  %v12407_v55 = vpack.c.bf16 %v12401_v34, %v12397_v56  ;;  %v12411_v44 = vpack.c.bf16 %v12403_v38, %v12399_v50 }
 0xb03   : > { %v5986_v7 = vpop.f32.mrf.mxu2  ;;  %v6075_v24 = vpop.f32.mrf.mxu3 }
 0xb04   : > { %6516 = vmatmul.bf16.vlgmr.msra.gmra.mxu0 %v12407_v55  ;;  %6605 = vmatmul.bf16.vlgmr.msra.gmra.mxu1 %v12411_v44  ;;  %v5987_v19 = vadd.f32 %v5986_v7, %v12246_v3  ;;  %v6076_v25 = vadd.f32 %v6075_v24, %v12248_v11  ;;  %v13782_v3 = vld [vmem:[#allocation81_spill] sm:$0xff]  ;;  %v8828_v11 = vld [vmem:[#allocation2 + $0x50] sm:$0xff]  ;;  %v8829_v7 = vld [vmem:[#allocation2 + $0x168] sm:$0xff] }
 0xb05   : > { %v4552_v13 = vpack.c.bf16 %v4515_v14, %v13782_v3 }
 0xb06   : > { %v6160_v4 = vadd.f32 %v12374_v40, %v5987_v19  ;;  %v6161_v17 = vadd.f32 %v12376_v30, %v6076_v25  ;;  %v12438_v25 = vpop.f32.mrf.mxu0  ;;  %v12462_v50 = vpop.f32.mrf.mxu1 }
 0xb07   : > { %13788 = vst [vmem:[#allocation74_spill] sm:$0xff] %v12462_v50 }
 0xb08   : > { %v12430_v59 = vadd.f32 %v8828_v11, %v6160_v4  ;;  %v12432_v24 = vadd.f32 %v8829_v7, %v6161_v17  ;;  %v13785_v7 = vld [vmem:[#allocation50_spill] sm:$0xff] }
 0xb0a   : > { %13783 = vst [vmem:[#allocation64_spill] sm:$0xff] %v12432_v24 }
 0xb0b   : > { %v5988_v33 = vpop.f32.mrf.mxu2  ;;  %v6077_v54 = vpop.f32.mrf.mxu3 }
 0xb0c   : > { %v5989_v27 = vadd.f32 %v5988_v33, %v12252_v6  ;;  %v6078_v2 = vadd.f32 %v6077_v54, %v12254_v18  ;;  %v8831_v6 = vld [vmem:[#allocation2 + $0x48] sm:$0xff] }
 0xb0e   : > { %v6162_v43 = vadd.f32 %v12374_v40, %v5989_v27  ;;  %v6163_v51 = vadd.f32 %v12376_v30, %v6078_v2  ;;  %v8258_v2 = vld [vmem:[%s9673_s9 + $0x54] sm:$0xf]  ;;  %v12460_v38 = vpop.f32.mrf.mxu0 }
 0xb0f   : > { %13787 = vst [vmem:[#allocation68_spill] sm:$0xff] %v12460_v38 }
 0xb10   : > { %v12434_v19 = vadd.f32 %v8830_v32, %v6162_v43  ;;  %v12436_v18 = vadd.f32 %v8831_v6, %v6163_v51  ;;  %v7992_v43 = vld [vmem:[%s9673_s9 + $0x58] sm:$0xf0]  ;;  %v8274_v51 = vld [vmem:[%s9673_s9 + $0xd4] sm:$0xf]  ;;  %v13786_v32 = vld [vmem:[#allocation51_spill] sm:$0xff] }
 0xb11   : > { %6030 = vmatmul.bf16.gmra.mxu2 %v4552_v13  ;;  %6119 = vmatmul.bf16.gmra.mxu3 %v4552_v13  ;;  %v7995_v3 = vor.u32 %v8258_v2, %v7992_v43  ;;  %v8056_v13 = vld [vmem:[%s9673_s9 + $0xd8] sm:$0xf0]  ;;  %v4520_v6 = vadd.f32 %v13786_v32, %v13785_v7  ;;  %v8833_v32 = vld [vmem:[#allocation2 + $0x110] sm:$0xff] }
 0xb12   : > { %13784 = vst [vmem:[#allocation70_spill] sm:$0xff] %v12436_v18  ;;  %v12444_v14 = vpack.c.bf16 %v12434_v19, %v12430_v59  ;;  %v12448_v33 = vpack.c.bf16 %v12436_v18, %v12432_v24  ;;  %v8059_v11 = vor.u32 %v8274_v51, %v8056_v13  ;;  %v13789_v51 = vld [vmem:[#allocation54_spill] sm:$0xff] }
 0xb13   : > { %v5991_v54 = vpop.f32.mrf.mxu2  ;;  %v6080_v4 = vpop.f32.mrf.mxu3  ;;  %6688 = vmatpush.bf16.msra.mxu2 %v7995_v3  ;;  %v4553_v13 = vpack.c.bf16 %v4520_v6, %v13789_v51  ;;  %v8832_v3 = vld [vmem:[#allocation2 + $0x180] sm:$0xff] }
 0xb14   : > { %6521 = vmatmul.bf16.gmra.mxu0 %v12444_v14  ;;  %6610 = vmatmul.bf16.gmra.mxu1 %v12448_v33  ;;  %v5992_v17 = vadd.f32 %v5991_v54, %v12257_v36  ;;  %v6081_v27 = vadd.f32 %v6080_v4, %v12259_v37 }
 0xb15   : > { %6777 = vmatpush.bf16.msra.mxu3 %v8059_v11 }
 0xb16   : > { %v6164_v36 = vadd.f32 %v12374_v40, %v5992_v17  ;;  %v6165_v37 = vadd.f32 %v12376_v30, %v6081_v27  ;;  %v8834_v17 = vld [vmem:[#allocation2 + $0x118] sm:$0xff]  ;;  %v12489_v6 = vpop.f32.mrf.mxu0 }
 0xb17   : > { %v8835_v27 = vld [vmem:[#allocation2 + $0x98] sm:$0xff] }
 0xb18   : > { %v12471_v7 = vadd.f32 %v8832_v3, %v6164_v36  ;;  %v12473_v50 = vadd.f32 %v8833_v32, %v6165_v37  ;;  %v12491_v36 = vpop.f32.mrf.mxu1 }
 0xb1a   : > { %13790 = vst [vmem:[#allocation76_spill] sm:$0xff] %v12473_v50 }
 0xb1b   : > { %v5993_v18 = vpop.f32.mrf.mxu2  ;;  %v6082_v24 = vpop.f32.mrf.mxu3 }
 0xb1c   : > { %v5994_v54 = vadd.f32 %v5993_v18, %v12264_v5  ;;  %v6083_v4 = vadd.f32 %v6082_v24, %v12266_v22 }
 0xb1e   : > { %v6166_v2 = vadd.f32 %v12374_v40, %v5994_v54  ;;  %v6167_v43 = vadd.f32 %v12376_v30, %v6083_v4  ;;  %v13793_v4 = vld [vmem:[#allocation55_spill] sm:$0xff] }
 0xb20   : > { %v12475_v38 = vadd.f32 %v8834_v17, %v6166_v2  ;;  %v12477_v5 = vadd.f32 %v8835_v27, %v6167_v43  ;;  %v13794_v2 = vld [vmem:[#allocation48_spill] sm:$0xff] }
 0xb21   : > { %6035 = vmatmul.bf16.gmra.mxu2 %v4553_v13  ;;  %6124 = vmatmul.bf16.gmra.mxu3 %v4553_v13  ;;  %v4525_v43 = vadd.f32 %v13794_v2, %v13793_v4  ;;  %v8836_v4 = vld [vmem:[#allocation2 + $0x120] sm:$0xff] }
 0xb22   : > { %13791 = vst [vmem:[#allocation72_spill] sm:$0xff] %v12475_v38  ;;  %v12481_v22 = vpack.c.bf16 %v12475_v38, %v12471_v7  ;;  %v12485_v24 = vpack.c.bf16 %v12477_v5, %v12473_v50 }
 0xb23   : > { %13792 = vst [vmem:[#allocation80_spill] sm:$0xff] %v12477_v5  ;;  %v5996_v18 = vpop.f32.mrf.mxu2  ;;  %v6085_v11 = vpop.f32.mrf.mxu3 }
 0xb24   : > { %6526 = vmatmul.bf16.gmra.mxu0 %v12481_v22  ;;  %6615 = vmatmul.bf16.gmra.mxu1 %v12485_v24  ;;  %v5997_v37 = vadd.f32 %v5996_v18, %v12268_v47  ;;  %v6086_v54 = vadd.f32 %v6085_v11, %v12270_v12  ;;  %v13795_v47 = vld [vmem:[#allocation58_spill] sm:$0xff]  ;;  %v12504_v12 = vpop.f32.mrf.mxu0  ;;  %v12506_v11 = vpop.f32.mrf.mxu1 }
 0xb25   : > { %v4554_v18 = vpack.c.bf16 %v4525_v43, %v13795_v47  ;;  %13796 = vst [vmem:[#allocation41_spill] sm:$0xff] %v12504_v12  ;;  %v7984_v47 = vld [vmem:[%s9673_s9 + $0x48] sm:$0xf0]  ;;  %v8254_v12 = vld [vmem:[%s9673_s9 + $0x34] sm:$0xf] }
 0xb26   : > { %v6168_v3 = vadd.f32 %v12374_v40, %v5997_v37  ;;  %v6169_v32 = vadd.f32 %v12376_v30, %v6086_v54  ;;  %13797 = vst [vmem:[#allocation78_spill] sm:$0xff] %v12506_v11  ;;  %v8837_v37 = vld [vmem:[#allocation2 + $0x150] sm:$0xff] }
 0xb28   : > { %v12508_v2 = vadd.f32 %v8836_v4, %v6168_v3  ;;  %v12510_v54 = vadd.f32 %v8837_v37, %v6169_v32 }
 0xb2a   : > { %13798 = vst [vmem:[#allocation49_spill] sm:$0xff] %v12508_v2 }
 0xb2b   : > { %v5998_v51 = vpop.f32.mrf.mxu2  ;;  %v6087_v13 = vpop.f32.mrf.mxu3  ;;  %13799 = vst [vmem:[#allocation53_spill] sm:$0xff] %v12510_v54 }
 0xb2c   : > { %v5999_v17 = vadd.f32 %v5998_v51, %v12275_v48  ;;  %v6088_v27 = vadd.f32 %v6087_v13, %v12277_v15  ;;  %v8838_v48 = vld [vmem:[#allocation2 + $0x108] sm:$0xff]  ;;  %v8839_v51 = vld [vmem:[#allocation2 + $0x60] sm:$0xff]  ;;  %v12531_v4 = vpop.f32.mrf.mxu0  ;;  %v12533_v37 = vpop.f32.mrf.mxu1 }
 0xb2d   : > { %13802 = vst [vmem:[#allocation63_spill] sm:$0xff] %v12531_v4 }
 0xb2e   : > { %v6170_v5 = vadd.f32 %v12374_v40, %v5999_v17  ;;  %v6171_v50 = vadd.f32 %v12376_v30, %v6088_v27  ;;  %v8256_v27 = vld [vmem:[%s9673_s9 + $0x44] sm:$0xf]  ;;  %13803 = vst [vmem:[#allocation57_spill] sm:$0xff] %v12533_v37 }
 0xb30   : > { %v12512_v15 = vadd.f32 %v8838_v48, %v6170_v5  ;;  %v12514_v13 = vadd.f32 %v8839_v51, %v6171_v50  ;;  %v7987_v48 = vor.u32 %v8256_v27, %v7984_v47  ;;  %v8048_v51 = vld [vmem:[%s9673_s9 + $0xc8] sm:$0xf0] }
 0xb31   : > { %6040 = vmatmul.bf16.gmra.mxu2 %v4554_v18  ;;  %6129 = vmatmul.bf16.gmra.mxu3 %v4554_v18  ;;  %v8272_v18 = vld [vmem:[%s9673_s9 + $0xc4] sm:$0xf] }
 0xb32   : > { %13800 = vst [vmem:[#allocation45_spill] sm:$0xff] %v12512_v15  ;;  %v12518_v43 = vpack.c.bf16 %v12512_v15, %v12508_v2  ;;  %v12522_v3 = vpack.c.bf16 %v12514_v13, %v12510_v54  ;;  %v13805_v54 = vld [vmem:[#allocation52_spill] sm:$0xff]  ;;  %6689 = vmatpush.bf16.msra.mxu2 %v7987_v48 }
 0xb33   : > { %13801 = vst [vmem:[#allocation61_spill] sm:$0xff] %v12514_v13  ;;  %v6001_v32 = vpop.f32.mrf.mxu2  ;;  %v6090_v17 = vpop.f32.mrf.mxu3  ;;  %v13804_v13 = vld [vmem:[#allocation56_spill] sm:$0xff] }
 0xb34   : > { %6531 = vmatmul.bf16.gmra.mxu0 %v12518_v43  ;;  %6620 = vmatmul.bf16.gmra.mxu1 %v12522_v3  ;;  %v6002_v50 = vadd.f32 %v6001_v32, %v12281_v46  ;;  %v6091_v5 = vadd.f32 %v6090_v17, %v12283_v52  ;;  %v4530_v15 = vadd.f32 %v13805_v54, %v13804_v13  ;;  %v13806_v13 = vld [vmem:[#allocation44_spill] sm:$0xff] }
 0xb35   : > { %v8051_v52 = vor.u32 %v8272_v18, %v8048_v51  ;;  %v7976_v18 = vld [vmem:[%s9673_s9 + $0x38] sm:$0xf0]  ;;  %v8270_v51 = vld [vmem:[%s9673_s9 + $0xb4] sm:$0xf] }
 0xb36   : > { %v6172_v2 = vadd.f32 %v12374_v40, %v6002_v50  ;;  %v6173_v17 = vadd.f32 %v12376_v30, %v6091_v5  ;;  %v4555_v47 = vpack.c.bf16 %v4530_v15, %v13806_v13  ;;  %v8840_v50 = vld [vmem:[#allocation2 + $0xe0] sm:$0xff]  ;;  %v8841_v5 = vld [vmem:[#allocation2 + $0x188] sm:$0xff] }
 0xb37   : > { %6778 = vmatpush.bf16.msra.mxu3 %v8051_v52  ;;  %v8040_v15 = vld [vmem:[%s9673_s9 + $0xb8] sm:$0xf0] }
 0xb38   : > { %v12545_v37 = vadd.f32 %v8840_v50, %v6172_v2  ;;  %v12550_v38 = vadd.f32 %v8841_v5, %v6173_v17  ;;  %v8043_v2 = vor.u32 %v8270_v51, %v8040_v15  ;;  %v12571_v50 = vpop.f32.mrf.mxu0 }
 0xb3a   : > { %13807 = vst [vmem:[#allocation67_spill] sm:$0xff] %v12545_v37 }
 0xb3b   : > { %v6003_v46 = vpop.f32.mrf.mxu2  ;;  %v6092_v32 = vpop.f32.mrf.mxu3  ;;  %13808 = vst [vmem:[#allocation69_spill] sm:$0xff] %v12550_v38  ;;  %6779 = vmatpush.bf16.msra.mxu3 %v8043_v2 }
 0xb3c   : > { %v6004_v11 = vadd.f32 %v6003_v46, %v12286_v45  ;;  %v6093_v4 = vadd.f32 %v6092_v32, %v12288_v35  ;;  %v8842_v45 = vld [vmem:[#allocation2 + $0x138] sm:$0xff] }
 0xb3e   : > { %v6174_v27 = vadd.f32 %v12374_v40, %v6004_v11  ;;  %v6175_v54 = vadd.f32 %v12376_v30, %v6093_v4  ;;  %v8843_v11 = vld [vmem:[#allocation2 + $0x140] sm:$0xff]  ;;  %v7979_v4 = vor.u32 %v8254_v12, %v7976_v18  ;;  %v8252_v12 = vld [vmem:[%s9673_s9 + $0x24] sm:$0xf]  ;;  %v12573_v18 = vpop.f32.mrf.mxu1 }
 0xb3f   : > { %13811 = vst [vmem:[#allocation75_spill] sm:$0xff] %v12573_v18 }
 0xb40   : > { %v12552_v35 = vadd.f32 %v8842_v45, %v6174_v27  ;;  %v12554_v48 = vadd.f32 %v8843_v11, %v6175_v54  ;;  %6690 = vmatpush.bf16.msra.mxu2 %v7979_v4  ;;  %v7968_v27 = vld [vmem:[%s9673_s9 + $0x28] sm:$0xf0]  ;;  %v8268_v54 = vld [vmem:[%s9673_s9 + $0xa4] sm:$0xf]  ;;  %v8250_v45 = vld [vmem:[%s9673_s9 + $0x14] sm:$0xf] }
 0xb41   : > { %6045 = vmatmul.bf16.gmra.mxu2 %v4555_v47  ;;  %6134 = vmatmul.bf16.gmra.mxu3 %v4555_v47  ;;  %v7971_v13 = vor.u32 %v8252_v12, %v7968_v27  ;;  %v8032_v47 = vld [vmem:[%s9673_s9 + $0xa8] sm:$0xf0]  ;;  %v7960_v11 = vld [vmem:[%s9673_s9 + $0x18] sm:$0xf0]  ;;  %v8266_v4 = vld [vmem:[%s9673_s9 + $0x94] sm:$0xf] }
 0xb42   : > { %13809 = vst [vmem:[#allocation65_spill] sm:$0xff] %v12552_v35  ;;  %v12559_v46 = vpack.c.bf16 %v12552_v35, %v12545_v37  ;;  %v12563_v32 = vpack.c.bf16 %v12554_v48, %v12550_v38  ;;  %v8035_v51 = vor.u32 %v8268_v54, %v8032_v47  ;;  %v7963_v2 = vor.u32 %v8250_v45, %v7960_v11  ;;  %v8024_v12 = vld [vmem:[%s9673_s9 + $0x98] sm:$0xf0]  ;;  %v13813_v38 = vld [vmem:[#allocation59_spill] sm:$0xff]  ;;  %v8264_v35 = vld [vmem:[%s9673_s9 + $0x84] sm:$0xf] }
 0xb43   : > { %13810 = vst [vmem:[#allocation73_spill] sm:$0xff] %v12554_v48  ;;  %v6006_v52 = vpop.f32.mrf.mxu2  ;;  %v6095_v17 = vpop.f32.mrf.mxu3  ;;  %v8027_v27 = vor.u32 %v8266_v4, %v8024_v12  ;;  %v13812_v48 = vld [vmem:[#allocation60_spill] sm:$0xff]  ;;  %v8016_v11 = vld [vmem:[%s9673_s9 + $0x88] sm:$0xf0]  ;;  %v13814_v12 = vld [vmem:[#allocation62_spill] sm:$0xff] }
 0xb44   : > { %6536 = vmatmul.bf16.gmra.mxu0 %v12559_v46  ;;  %6625 = vmatmul.bf16.gmra.mxu1 %v12563_v32  ;;  %v6007_v5 = vadd.f32 %v6006_v52, %v12293_v58  ;;  %v6096_v15 = vadd.f32 %v6095_v17, %v12295_v20  ;;  %v4535_v54 = vadd.f32 %v13813_v38, %v13812_v48  ;;  %v8248_v52 = vld [vmem:[%s9673_s9 + $0x4] sm:$0xf] }
 0xb45   : > { %6691 = vmatpush.bf16.msra.mxu2 %v7971_v13  ;;  %6780 = vmatpush.bf16.msra.mxu3 %v8035_v51  ;;  %v7952_v51 = vld [vmem:[%s9673_s9 + $0x8] sm:$0xf0]  ;;  %v8019_v38 = vor.u32 %v8264_v35, %v8016_v11  ;;  %s13871_s9 = sld [smem:[#allocation26_spill]] }
 0xb46   : > { %v6176_v13 = vadd.f32 %v12374_v40, %v6007_v5  ;;  %v6177_v37 = vadd.f32 %v12376_v30, %v6096_v15  ;;  %v7955_v45 = vor.u32 %v8248_v52, %v7952_v51  ;;  %v8844_v15 = vld [vmem:[#allocation2 + $0x80] sm:$0xff]  ;;  %v8847_v52 = vld [vmem:[#allocation2 + $0x28] sm:$0xff] }
 0xb48   : > { %v12598_v18 = vadd.f32 %v8844_v15, %v6176_v13 }
 0xb49   : > { %6692 = vmatpush.bf16.msra.mxu2 %v7963_v2  ;;  %6781 = vmatpush.bf16.msra.mxu3 %v8027_v27  ;;  %v4556_v27 = vpack.c.bf16 %v4535_v54, %v13814_v12 }
 0xb4b   : > { %v6008_v47 = vpop.f32.mrf.mxu2  ;;  %v6097_v58 = vpop.f32.mrf.mxu3  ;;  %p8076_p7 = scmp.ne.s32.totalorder %s13871_s9, 1 }
 0xb4c   : > { %v6009_v20 = vadd.f32 %v6008_v47, %v12299_v31  ;;  %v6098_v17 = vadd.f32 %v6097_v58, %v12301_v63  ;;  %v8845_v31 = vld [vmem:[#allocation2 + $0x1a8] sm:$0xff]  ;;  %v8846_v47 = vld [vmem:[#allocation2 + $0x1b8] sm:$0xff] }
 0xb4d   : > { %v12591_v4 = vpop.f32.mrf.mxu0  ;;  %v12593_v2 = vpop.f32.mrf.mxu1  ;;  %6693 = vmatpush.bf16.msra.mxu2 %v7955_v45  ;;  %6782 = vmatpush.bf16.msra.mxu3 %v8019_v38  ;;  %v12600_v63 = vadd.f32 %v8845_v31, %v6177_v37  ;;  %v4540_v38 = vadd.f32 %v12008_v16, %v12006_v8  ;;  %v8848_v16 = vld [vmem:[#allocation2 + $0x1e8] sm:$0xff] }
 0xb4e   : > { %v6178_v48 = vadd.f32 %v12374_v40, %v6009_v20  ;;  %v6179_v5 = vadd.f32 %v12376_v30, %v6098_v17 }
 0xb4f   : > { %13815 = vst [vmem:[#allocation71_spill] sm:$0xff] %v12600_v63 }
 0xb50   : > { %v12602_v58 = vadd.f32 %v8846_v47, %v6178_v48  ;;  %v12604_v51 = vadd.f32 %v8847_v52, %v6179_v5 }
 0xb51   : > { %6050 = vmatmul.bf16.gmra.mxu2 %v4556_v27  ;;  %6139 = vmatmul.bf16.gmra.mxu3 %v4556_v27 }
 0xb52   : > { %13816 = vst [vmem:[#allocation43_spill] sm:$0xff] %v12604_v51  ;;  %v12608_v35 = vpack.c.bf16 %v12602_v58, %v12598_v18  ;;  %v12612_v54 = vpack.c.bf16 %v12604_v51, %v12600_v63 }
 0xb54   : > { %v6011_v13 = vpop.f32.mrf.mxu2  ;;  %v6100_v20 = vpop.f32.mrf.mxu3  ;;  %6541 = vmatmul.bf16.gmra.mxu0 %v12608_v35  ;;  %6630 = vmatmul.bf16.gmra.mxu1 %v12612_v54 }
 0xb55   : > { %v12616_v37 = vpop.f32.mrf.mxu0  ;;  %v12618_v17 = vpop.f32.mrf.mxu1  ;;  %v6012_v45 = vadd.f32 %v6011_v13, %v12307_v26  ;;  %v6101_v11 = vadd.f32 %v6100_v20, %v12309_v23  ;;  %v4557_v26 = vpack.c.bf16 %v4540_v38, %v12002_v60  ;;  %v8849_v20 = vld [vmem:[#allocation2 + $0xf8] sm:$0xff] }
 0xb57   : > { %v6180_v48 = vadd.f32 %v12374_v40, %v6012_v45  ;;  %v6181_v27 = vadd.f32 %v12376_v30, %v6101_v11  ;;  %v8850_v11 = vld [vmem:[#allocation2 + $0x160] sm:$0xff] }
 0xb59   : > { %v12635_v13 = vadd.f32 %v8848_v16, %v6180_v48  ;;  %v12637_v45 = vadd.f32 %v8849_v20, %v6181_v27 }
 0xb5b   : > { %13817 = vst [vmem:[#allocation42_spill] sm:$0xff] %v12637_v45 }
 0xb5c   : > { %v6013_v5 = vpop.f32.mrf.mxu2  ;;  %v6102_v12 = vpop.f32.mrf.mxu3 }
 0xb5d   : > { %v6014_v15 = vadd.f32 %v6013_v5, %v12322_v0  ;;  %v6103_v31 = vadd.f32 %v6102_v12, %v12324_v10  ;;  %v12628_v47 = vpop.f32.mrf.mxu0  ;;  %v12630_v52 = vpop.f32.mrf.mxu1  ;;  %v8851_v10 = vld [vmem:[#allocation2 + $0x30] sm:$0xff] }
 0xb5f   : > { %v6182_v23 = vadd.f32 %v12374_v40, %v6014_v15  ;;  %v6183_v8 = vadd.f32 %v12376_v30, %v6103_v31 }
 0xb61   : > { %v12639_v0 = vadd.f32 %v8850_v11, %v6182_v23  ;;  %v12641_v5 = vadd.f32 %v8851_v10, %v6183_v8  ;;  %6055 = vmatmul.bf16.gmra.mxu2 %v4557_v26  ;;  %6144 = vmatmul.bf16.gmra.mxu3 %v4557_v26 }
 0xb63   : > { %13818 = vst [vmem:[#allocation77_spill] sm:$0xff] %v12641_v5  ;;  %v12645_v60 = vpack.c.bf16 %v12639_v0, %v12635_v13  ;;  %v12649_v38 = vpack.c.bf16 %v12641_v5, %v12637_v45 }
 0xb64   : > { %v6016_v48 = vpop.f32.mrf.mxu2  ;;  %v6105_v12 = vpop.f32.mrf.mxu3 }
 0xb65   : > { %6546 = vmatmul.bf16.gmra.mxu0 %v12645_v60  ;;  %6635 = vmatmul.bf16.gmra.mxu1 %v12649_v38  ;;  %v12653_v27 = vpop.f32.mrf.mxu0  ;;  %v12655_v15 = vpop.f32.mrf.mxu1  ;;  %v6017_v31 = vadd.f32 %v6016_v48, %v12338_v9  ;;  %v6106_v26 = vadd.f32 %v6105_v12, %v12340_v53  ;;  %v8852_v9 = vld [vmem:[#allocation2 + $0x1e0] sm:$0xff] }
 0xb66   : > { %v8853_v48 = vld [vmem:[#allocation2] sm:$0xff] }
 0xb67   : > { %v6184_v23 = vadd.f32 %v12374_v40, %v6017_v31  ;;  %v6185_v20 = vadd.f32 %v12376_v30, %v6106_v26  ;;  %v8854_v31 = vld [vmem:[#allocation2 + $0xf0] sm:$0xff] }
 0xb69   : > { %v12669_v53 = vadd.f32 %v8852_v9, %v6184_v23  ;;  %v12671_v12 = vadd.f32 %v8853_v48, %v6185_v20 }
 0xb6b   : > { %13819 = vst [vmem:[#allocation46_spill] sm:$0xff] %v12669_v53 }
 0xb6c   : > { %v6018_v8 = vpop.f32.mrf.mxu2  ;;  %v6107_v16 = vpop.f32.mrf.mxu3  ;;  %13820 = vst [vmem:[#allocation79_spill] sm:$0xff] %v12671_v12 }
 0xb6d   : > { %v6019_v11 = vadd.f32 %v6018_v8, %v12358_v49  ;;  %v6108_v10 = vadd.f32 %v6107_v16, %v12360_v1  ;;  %v12665_v51 = vpop.f32.mrf.mxu0  ;;  %v12667_v63 = vpop.f32.mrf.mxu1  ;;  %v8855_v49 = vld [vmem:[#allocation2 + $0x8] sm:$0xff] }
 0xb6f   : > { %v6186_v5 = vadd.f32 %v12374_v40, %v6019_v11  ;;  %v6187_v45 = vadd.f32 %v12376_v30, %v6108_v10 }
 0xb71   : > { %v12673_v26 = vadd.f32 %v8854_v31, %v6186_v5  ;;  %v12675_v8 = vadd.f32 %v8855_v49, %v6187_v45  ;;  %6694 = vmatmul.bf16.vlgmr.msra.gmra.mxu2 %v12407_v55  ;;  %6783 = vmatmul.bf16.vlgmr.msra.gmra.mxu3 %v12411_v44 }
 0xb73   : > { %13821 = vst [vmem:[#allocation47_spill] sm:$0xff] %v12673_v26  ;;  %v12681_v1 = vpack.c.bf16 %v12673_v26, %v12669_v53  ;;  %v12685_v23 = vpack.c.bf16 %v12675_v8, %v12671_v12  ;;  %v8858_v26 = vld [vmem:[#allocation2 + $0x100] sm:$0xff]  ;;  %v8859_v53 = vld [vmem:[#allocation2 + $0xc8] sm:$0xff] }
 0xb74   : > { %13822 = vst [vmem:[#allocation38_spill] sm:$0xff] %v12675_v8  ;;  %v6021_v16 = vpop.f32.mrf.mxu2  ;;  %v6110_v20 = vpop.f32.mrf.mxu3 }
 0xb75   : > { %6551 = vmatmul.bf16.gmra.mxu0 %v12681_v1  ;;  %6640 = vmatmul.bf16.gmra.mxu1 %v12685_v23  ;;  %v6022_v45 = vadd.f32 %v6021_v16, %v12362_v28  ;;  %v6111_v55 = vadd.f32 %v6110_v20, %v12364_v41  ;;  %v12691_v5 = vpop.f32.mrf.mxu0  ;;  %v12693_v44 = vpop.f32.mrf.mxu1  ;;  %v8856_v16 = vld [vmem:[#allocation2 + $0x148] sm:$0xff]  ;;  %v8857_v20 = vld [vmem:[#allocation2 + $0x1d0] sm:$0xff] }
 0xb76   : > { %13823 = vst [vmem:[#allocation39_spill] sm:$0xff] %v12693_v44 }
 0xb77   : > { %v6188_v11 = vadd.f32 %v12374_v40, %v6022_v45  ;;  %v6189_v48 = vadd.f32 %v12376_v30, %v6111_v55 }
 0xb79   : > { %v12701_v41 = vadd.f32 %v8856_v16, %v6188_v11  ;;  %v12703_v12 = vadd.f32 %v8857_v20, %v6189_v48 }
 0xb7c   : > { %v6023_v10 = vpop.f32.mrf.mxu2  ;;  %v6112_v9 = vpop.f32.mrf.mxu3 }
 0xb7d   : > { %v6024_v31 = vadd.f32 %v6023_v10, %v12369_v42  ;;  %v6113_v49 = vadd.f32 %v6112_v9, %v12371_v62 }
 0xb7f   : > { %v6190_v8 = vadd.f32 %v12374_v40, %v6024_v31  ;;  %v6191_v28 = vadd.f32 %v12376_v30, %v6113_v49 }
 0xb81   : > { %v12705_v45 = vadd.f32 %v8858_v26, %v6190_v8  ;;  %v12707_v44 = vadd.f32 %v8859_v53, %v6191_v28  ;;  %6699 = vmatmul.bf16.gmra.mxu2 %v12444_v14  ;;  %6788 = vmatmul.bf16.gmra.mxu3 %v12448_v33  ;;  %v6517_v42 = vpop.f32.mrf.mxu0  ;;  %v6606_v62 = vpop.f32.mrf.mxu1 }
 0xb82   : > { %v6518_v55 = vadd.f32 %v6517_v42, %v12397_v56 }
 0xb83   : > { %v12714_v11 = vpack.c.bf16 %v12705_v45, %v12701_v41  ;;  %v12718_v10 = vpack.c.bf16 %v12707_v44, %v12703_v12 }
 0xb84   : > { %v12720_v26 = vadd.f32 %v6606_v62, %v6518_v55  ;;  %v6026_v53 = vpop.f32.mrf.mxu2  ;;  %v6115_v8 = vpop.f32.mrf.mxu3  ;;  %v8860_v55 = vld [vmem:[#allocation2 + $0x40] sm:$0xff] }
 0xb85   : > { %6556 = vmatmul.bf16.gmra.mxu0 %v12714_v11  ;;  %6645 = vmatmul.bf16.gmra.mxu1 %v12718_v10  ;;  %v6027_v56 = vadd.f32 %v6026_v53, %v12390_v57  ;;  %v6116_v14 = vadd.f32 %v6115_v8, %v12392_v39  ;;  %v8861_v53 = vld [vmem:[#allocation2 + $0x1f8] sm:$0xff] }
 0xb86   : > { %13824 = vst [vmem:[#allocation81_spill] sm:$0xff] %v12720_v26 }
 0xb87   : > { %6864 = vst [vmem:[#allocation2 + $0xb0] sm:$0xff] %v12720_v26  ;;  %v6192_v31 = vadd.f32 %v12374_v40, %v6027_v56  ;;  %v6193_v20 = vadd.f32 %v12376_v30, %v6116_v14  ;;  %v8862_v56 = vld [vmem:[#allocation2 + $0x20] sm:$0xff]  ;;  %v8863_v14 = vld [vmem:[#allocation2 + $0x128] sm:$0xff] }
 0xb89   : > { %v6519_v33 = vpop.f32.mrf.mxu0  ;;  %v6608_v9 = vpop.f32.mrf.mxu1  ;;  %v12739_v8 = vadd.f32 %v8861_v53, %v6193_v20 }
 0xb8a   : > { %v6520_v48 = vadd.f32 %v6519_v33, %v12401_v34  ;;  %v12737_v34 = vadd.f32 %v8860_v55, %v6192_v31 }
 0xb8c   : > { %v12729_v49 = vadd.f32 %v6608_v9, %v6520_v48  ;;  %v6028_v28 = vpop.f32.mrf.mxu2  ;;  %v6117_v16 = vpop.f32.mrf.mxu3 }
 0xb8d   : > { %v6029_v42 = vadd.f32 %v6028_v28, %v12415_v29  ;;  %v6118_v62 = vadd.f32 %v6117_v16, %v12417_v21 }
 0xb8e   : > { %13825 = vst [vmem:[#allocation50_spill] sm:$0xff] %v12729_v49 }
 0xb8f   : > { %6866 = vst [vmem:[#allocation2 + $0xd8] sm:$0xff] %v12729_v49  ;;  %v6194_v57 = vadd.f32 %v12374_v40, %v6029_v42  ;;  %v6195_v39 = vadd.f32 %v12376_v30, %v6118_v62  ;;  %v13834_v49 = vld [vmem:[#allocation78_spill] sm:$0xff] }
 0xb91   : > { %v12741_v33 = vadd.f32 %v8862_v56, %v6194_v57  ;;  %v12743_v9 = vadd.f32 %v8863_v14, %v6195_v39  ;;  %6704 = vmatmul.bf16.gmra.mxu2 %v12481_v22  ;;  %6793 = vmatmul.bf16.gmra.mxu3 %v12485_v24  ;;  %v6522_v29 = vpop.f32.mrf.mxu0  ;;  %v6611_v21 = vpop.f32.mrf.mxu1 }
 0xb92   : > { %v6523_v48 = vadd.f32 %v6522_v29, %v12430_v59  ;;  %v13828_v29 = vld [vmem:[#allocation68_spill] sm:$0xff] }
 0xb93   : > { %v12750_v31 = vpack.c.bf16 %v12741_v33, %v12737_v34  ;;  %v12754_v28 = vpack.c.bf16 %v12743_v9, %v12739_v8 }
 0xb94   : > { %v12756_v16 = vadd.f32 %v6611_v21, %v6523_v48  ;;  %v6031_v20 = vpop.f32.mrf.mxu2  ;;  %v6120_v42 = vpop.f32.mrf.mxu3  ;;  %v13829_v48 = vld [vmem:[#allocation74_spill] sm:$0xff] }
 0xb95   : > { %6561 = vmatmul.bf16.gmra.mxu0 %v12750_v31  ;;  %6650 = vmatmul.bf16.gmra.mxu1 %v12754_v28  ;;  %v6032_v59 = vadd.f32 %v6031_v20, %v12438_v25  ;;  %v6121_v22 = vadd.f32 %v6120_v42, %v12440_v61  ;;  %v8864_v20 = vld [vmem:[#allocation2 + $0x1a0] sm:$0xff]  ;;  %v8865_v42 = vld [vmem:[#allocation2 + $0x1f0] sm:$0xff] }
 0xb96   : > { %13826 = vst [vmem:[#allocation51_spill] sm:$0xff] %v12756_v16 }
 0xb97   : > { %6868 = vst [vmem:[#allocation2 + $0x50] sm:$0xff] %v12756_v16  ;;  %v6196_v39 = vadd.f32 %v12374_v40, %v6032_v59  ;;  %v6197_v14 = vadd.f32 %v12376_v30, %v6121_v22  ;;  %v8867_v22 = vld [vmem:[#allocation2 + $0x78] sm:$0xff] }
 0xb99   : > { %v6524_v24 = vpop.f32.mrf.mxu0  ;;  %v6613_v62 = vpop.f32.mrf.mxu1  ;;  %v12775_v59 = vadd.f32 %v8865_v42, %v6197_v14 }
 0xb9a   : > { %v6525_v57 = vadd.f32 %v6524_v24, %v12434_v19  ;;  %v12773_v19 = vadd.f32 %v8864_v20, %v6196_v39  ;;  %v8866_v24 = vld [vmem:[#allocation2 + $0xe8] sm:$0xff] }
 0xb9c   : > { %v12765_v55 = vadd.f32 %v6613_v62, %v6525_v57  ;;  %v6033_v53 = vpop.f32.mrf.mxu2  ;;  %v6122_v56 = vpop.f32.mrf.mxu3 }
 0xb9d   : > { %v6034_v21 = vadd.f32 %v6033_v53, %v13828_v29  ;;  %v6123_v16 = vadd.f32 %v6122_v56, %v13829_v48 }
 0xb9e   : > { %13827 = vst [vmem:[#allocation54_spill] sm:$0xff] %v12765_v55 }
 0xb9f   : > { %6870 = vst [vmem:[#allocation2 + $0x130] sm:$0xff] %v12765_v55  ;;  %v6198_v25 = vadd.f32 %v12374_v40, %v6034_v21  ;;  %v6199_v61 = vadd.f32 %v12376_v30, %v6123_v16 }
 0xba1   : > { %v12777_v62 = vadd.f32 %v8866_v24, %v6198_v25  ;;  %v12779_v57 = vadd.f32 %v8867_v22, %v6199_v61  ;;  %6709 = vmatmul.bf16.gmra.mxu2 %v12518_v43  ;;  %6798 = vmatmul.bf16.gmra.mxu3 %v12522_v3  ;;  %v6527_v53 = vpop.f32.mrf.mxu0  ;;  %v6616_v56 = vpop.f32.mrf.mxu1  ;;  %v13831_v61 = vld [vmem:[#allocation72_spill] sm:$0xff] }
 0xba2   : > { %v6528_v16 = vadd.f32 %v6527_v53, %v12471_v7 }
 0xba3   : > { %v12786_v39 = vpack.c.bf16 %v12777_v62, %v12773_v19  ;;  %v12790_v14 = vpack.c.bf16 %v12779_v57, %v12775_v59 }
 0xba4   : > { %v12792_v29 = vadd.f32 %v6616_v56, %v6528_v16  ;;  %v6036_v21 = vpop.f32.mrf.mxu2  ;;  %v6125_v48 = vpop.f32.mrf.mxu3  ;;  %v13833_v16 = vld [vmem:[#allocation41_spill] sm:$0xff] }
 0xba5   : > { %6566 = vmatmul.bf16.gmra.mxu0 %v12786_v39  ;;  %6655 = vmatmul.bf16.gmra.mxu1 %v12790_v14  ;;  %v6037_v7 = vadd.f32 %v6036_v21, %v12489_v6  ;;  %v6126_v43 = vadd.f32 %v6125_v48, %v12491_v36  ;;  %v8868_v21 = vld [vmem:[#allocation2 + $0x70] sm:$0xff] }
 0xba6   : > { %13830 = vst [vmem:[#allocation55_spill] sm:$0xff] %v12792_v29 }
 0xba7   : > { %6872 = vst [vmem:[#allocation2 + $0x180] sm:$0xff] %v12792_v29  ;;  %v6200_v42 = vadd.f32 %v12374_v40, %v6037_v7  ;;  %v6201_v56 = vadd.f32 %v12376_v30, %v6126_v43  ;;  %v8869_v7 = vld [vmem:[#allocation2 + $0x90] sm:$0xff] }
 0xba8   : > { %v8871_v43 = vld [vmem:[#allocation2 + $0xd0] sm:$0xff] }
 0xba9   : > { %v6529_v3 = vpop.f32.mrf.mxu0  ;;  %v6618_v25 = vpop.f32.mrf.mxu1  ;;  %v12809_v48 = vadd.f32 %v8868_v21, %v6200_v42 }
 0xbaa   : > { %v6530_v20 = vadd.f32 %v6529_v3, %v13831_v61  ;;  %v12811_v3 = vadd.f32 %v8869_v7, %v6201_v56 }
 0xbac   : > { %v12801_v24 = vadd.f32 %v6618_v25, %v6530_v20  ;;  %v6038_v22 = vpop.f32.mrf.mxu2  ;;  %v6127_v53 = vpop.f32.mrf.mxu3  ;;  %13835 = vst [vmem:[#allocation58_spill] sm:$0xff] %v12811_v3  ;;  %v8870_v25 = vld [vmem:[#allocation2 + $0x1d8] sm:$0xff] }
 0xbad   : > { %v6039_v55 = vadd.f32 %v6038_v22, %v13833_v16  ;;  %v6128_v29 = vadd.f32 %v6127_v53, %v13834_v49  ;;  %v13837_v22 = vld [vmem:[#allocation49_spill] sm:$0xff] }
 0xbae   : > { %13832 = vst [vmem:[#allocation48_spill] sm:$0xff] %v12801_v24 }
 0xbaf   : > { %6874 = vst [vmem:[#allocation2 + $0x118] sm:$0xff] %v12801_v24  ;;  %v6202_v6 = vadd.f32 %v12374_v40, %v6039_v55  ;;  %v6203_v36 = vadd.f32 %v12376_v30, %v6128_v29 }
 0xbb1   : > { %v12813_v61 = vadd.f32 %v8870_v25, %v6202_v6  ;;  %v12815_v20 = vadd.f32 %v8871_v43, %v6203_v36  ;;  %6714 = vmatmul.bf16.gmra.mxu2 %v12559_v46  ;;  %6803 = vmatmul.bf16.gmra.mxu3 %v12563_v32  ;;  %v6532_v49 = vpop.f32.mrf.mxu0  ;;  %v6621_v55 = vpop.f32.mrf.mxu1  ;;  %v13839_v46 = vld [vmem:[#allocation63_spill] sm:$0xff]  ;;  %v13840_v36 = vld [vmem:[#allocation57_spill] sm:$0xff] }
 0xbb2   : > { %v6533_v29 = vadd.f32 %v6532_v49, %v13837_v22  ;;  %v13841_v43 = vld [vmem:[#allocation45_spill] sm:$0xff] }
 0xbb3   : > { %13836 = vst [vmem:[#allocation56_spill] sm:$0xff] %v12815_v20  ;;  %v12822_v42 = vpack.c.bf16 %v12813_v61, %v12809_v48  ;;  %v12826_v53 = vpack.c.bf16 %v12815_v20, %v12811_v3  ;;  %v13843_v3 = vld [vmem:[#allocation75_spill] sm:$0xff] }
 0xbb4   : > { %v12828_v56 = vadd.f32 %v6621_v55, %v6533_v29  ;;  %v6041_v16 = vpop.f32.mrf.mxu2  ;;  %v6130_v6 = vpop.f32.mrf.mxu3 }
 0xbb5   : > { %6571 = vmatmul.bf16.gmra.mxu0 %v12822_v42  ;;  %6660 = vmatmul.bf16.gmra.mxu1 %v12826_v53  ;;  %v6042_v32 = vadd.f32 %v6041_v16, %v13839_v46  ;;  %v6131_v21 = vadd.f32 %v6130_v6, %v13840_v36  ;;  %v8872_v46 = vld [vmem:[#allocation2 + $0xb8] sm:$0xff] }
 0xbb6   : > { %13838 = vst [vmem:[#allocation52_spill] sm:$0xff] %v12828_v56 }
 0xbb7   : > { %6876 = vst [vmem:[#allocation2 + $0x120] sm:$0xff] %v12828_v56  ;;  %v6204_v22 = vadd.f32 %v12374_v40, %v6042_v32  ;;  %v6205_v26 = vadd.f32 %v12376_v30, %v6131_v21  ;;  %v8873_v32 = vld [vmem:[#allocation2 + $0x88] sm:$0xff] }
 0xbb8   : > { %v8875_v21 = vld [vmem:[#allocation2 + $0x1c8] sm:$0xff] }
 0xbb9   : > { %v6534_v7 = vpop.f32.mrf.mxu0  ;;  %v6623_v25 = vpop.f32.mrf.mxu1  ;;  %v12845_v36 = vadd.f32 %v8872_v46, %v6204_v22 }
 0xbba   : > { %v6535_v49 = vadd.f32 %v6534_v7, %v13841_v43  ;;  %v12847_v7 = vadd.f32 %v8873_v32, %v6205_v26  ;;  %v13846_v32 = vld [vmem:[#allocation65_spill] sm:$0xff] }
 0xbbc   : > { %v12837_v55 = vadd.f32 %v6623_v25, %v6535_v49  ;;  %v6043_v29 = vpop.f32.mrf.mxu2  ;;  %v6132_v24 = vpop.f32.mrf.mxu3  ;;  %v8874_v25 = vld [vmem:[#allocation2 + $0xa8] sm:$0xff] }
 0xbbd   : > { %v6044_v20 = vadd.f32 %v6043_v29, %v12571_v50  ;;  %v6133_v56 = vadd.f32 %v6132_v24, %v13843_v3  ;;  %v13844_v3 = vld [vmem:[#allocation67_spill] sm:$0xff] }
 0xbbe   : > { %13842 = vst [vmem:[#allocation44_spill] sm:$0xff] %v12837_v55 }
 0xbbf   : > { %6878 = vst [vmem:[#allocation2 + $0x108] sm:$0xff] %v12837_v55  ;;  %v6206_v16 = vadd.f32 %v12374_v40, %v6044_v20  ;;  %v6207_v6 = vadd.f32 %v12376_v30, %v6133_v56 }
 0xbc1   : > { %v12849_v43 = vadd.f32 %v8874_v25, %v6206_v16  ;;  %v12851_v49 = vadd.f32 %v8875_v21, %v6207_v6  ;;  %6719 = vmatmul.bf16.gmra.mxu2 %v12608_v35  ;;  %6808 = vmatmul.bf16.gmra.mxu3 %v12612_v54  ;;  %v6537_v50 = vpop.f32.mrf.mxu0  ;;  %v6626_v24 = vpop.f32.mrf.mxu1 }
 0xbc2   : > { %v6538_v20 = vadd.f32 %v6537_v50, %v13844_v3 }
 0xbc3   : > { %v12858_v56 = vpack.c.bf16 %v12849_v43, %v12845_v36  ;;  %v12862_v26 = vpack.c.bf16 %v12851_v49, %v12847_v7 }
 0xbc4   : > { %v12864_v22 = vadd.f32 %v6626_v24, %v6538_v20  ;;  %v6046_v29 = vpop.f32.mrf.mxu2  ;;  %v6135_v16 = vpop.f32.mrf.mxu3 }
 0xbc5   : > { %6576 = vmatmul.bf16.gmra.mxu0 %v12858_v56  ;;  %6665 = vmatmul.bf16.gmra.mxu1 %v12862_v26  ;;  %v6047_v35 = vadd.f32 %v6046_v29, %v12591_v4  ;;  %v6136_v54 = vadd.f32 %v6135_v16, %v12593_v2  ;;  %v8876_v29 = vld [vmem:[#allocation2 + $0x170] sm:$0xff] }
 0xbc6   : > { %13845 = vst [vmem:[#allocation60_spill] sm:$0xff] %v12864_v22 }
 0xbc7   : > { %6880 = vst [vmem:[#allocation2 + $0xe0] sm:$0xff] %v12864_v22  ;;  %v6208_v21 = vadd.f32 %v12374_v40, %v6047_v35  ;;  %v6209_v20 = vadd.f32 %v12376_v30, %v6136_v54  ;;  %v8877_v35 = vld [vmem:[#allocation2 + $0x178] sm:$0xff]  ;;  %v8879_v54 = vld [vmem:[#allocation2 + $0x190] sm:$0xff] }
 0xbc9   : > { %v6539_v6 = vpop.f32.mrf.mxu0  ;;  %v6628_v46 = vpop.f32.mrf.mxu1  ;;  %v12881_v16 = vadd.f32 %v8876_v29, %v6208_v21 }
 0xbca   : > { %v6540_v25 = vadd.f32 %v6539_v6, %v13846_v32  ;;  %v12883_v6 = vadd.f32 %v8877_v35, %v6209_v20 }
 0xbcc   : > { %v12873_v50 = vadd.f32 %v6628_v46, %v6540_v25  ;;  %v6048_v24 = vpop.f32.mrf.mxu2  ;;  %v6137_v3 = vpop.f32.mrf.mxu3  ;;  %v8878_v46 = vld [vmem:[#allocation2 + $0x68] sm:$0xff] }
 0xbcd   : > { %v6049_v55 = vadd.f32 %v6048_v24, %v12616_v37  ;;  %v6138_v22 = vadd.f32 %v6137_v3, %v12618_v17 }
 0xbce   : > { %6882 = vst [vmem:[#allocation2 + $0x138] sm:$0xff] %v12873_v50 }
 0xbcf   : > { %v6210_v4 = vadd.f32 %v12374_v40, %v6049_v55  ;;  %v6211_v2 = vadd.f32 %v12376_v30, %v6138_v22 }
 0xbd1   : > { %v12885_v32 = vadd.f32 %v8878_v46, %v6210_v4  ;;  %v12887_v25 = vadd.f32 %v8879_v54, %v6211_v2  ;;  %6724 = vmatmul.bf16.gmra.mxu2 %v12645_v60  ;;  %6813 = vmatmul.bf16.gmra.mxu3 %v12649_v38  ;;  %v6542_v37 = vpop.f32.mrf.mxu0  ;;  %v6631_v17 = vpop.f32.mrf.mxu1 }
 0xbd2   : > { %v6543_v55 = vadd.f32 %v6542_v37, %v12598_v18 }
 0xbd3   : > { %v12894_v22 = vpack.c.bf16 %v12885_v32, %v12881_v16  ;;  %v12898_v21 = vpack.c.bf16 %v12887_v25, %v12883_v6 }
 0xbd4   : > { %v12900_v24 = vadd.f32 %v6631_v17, %v6543_v55  ;;  %v6051_v3 = vpop.f32.mrf.mxu2  ;;  %v6140_v20 = vpop.f32.mrf.mxu3 }
 0xbd5   : > { %6581 = vmatmul.bf16.gmra.mxu0 %v12894_v22  ;;  %6670 = vmatmul.bf16.gmra.mxu1 %v12898_v21  ;;  %v6052_v18 = vadd.f32 %v6051_v3, %v12628_v47  ;;  %v6141_v60 = vadd.f32 %v6140_v20, %v12630_v52  ;;  %v8880_v3 = vld [vmem:[#allocation2 + $0x198] sm:$0xff] }
 0xbd6   : > { %6884 = vst [vmem:[#allocation2 + $0x80] sm:$0xff] %v12900_v24  ;;  %v8881_v20 = vld [vmem:[#allocation2 + $0x38] sm:$0xff] }
 0xbd7   : > { %v6212_v29 = vadd.f32 %v12374_v40, %v6052_v18  ;;  %v6213_v37 = vadd.f32 %v12376_v30, %v6141_v60  ;;  %v8883_v60 = vld [vmem:[#allocation2 + $0x1c0] sm:$0xff] }
 0xbd9   : > { %v6544_v38 = vpop.f32.mrf.mxu0  ;;  %v6633_v4 = vpop.f32.mrf.mxu1  ;;  %v12919_v18 = vadd.f32 %v8881_v20, %v6213_v37 }
 0xbda   : > { %v6545_v2 = vadd.f32 %v6544_v38, %v12602_v58  ;;  %v12917_v58 = vadd.f32 %v8880_v3, %v6212_v29  ;;  %v8882_v38 = vld [vmem:[#allocation2 + $0xc0] sm:$0xff] }
 0xbdc   : > { %v12909_v35 = vadd.f32 %v6633_v4, %v6545_v2  ;;  %v6053_v46 = vpop.f32.mrf.mxu2  ;;  %v6142_v54 = vpop.f32.mrf.mxu3 }
 0xbdd   : > { %v6054_v17 = vadd.f32 %v6053_v46, %v12653_v27  ;;  %v6143_v55 = vadd.f32 %v6142_v54, %v12655_v15 }
 0xbde   : > { %6886 = vst [vmem:[#allocation2 + $0x1b8] sm:$0xff] %v12909_v35 }
 0xbdf   : > { %v6214_v47 = vadd.f32 %v12374_v40, %v6054_v17  ;;  %v6215_v52 = vadd.f32 %v12376_v30, %v6143_v55 }
 0xbe1   : > { %v12921_v4 = vadd.f32 %v8882_v38, %v6214_v47  ;;  %v12923_v2 = vadd.f32 %v8883_v60, %v6215_v52  ;;  %6729 = vmatmul.bf16.gmra.mxu2 %v12681_v1  ;;  %6818 = vmatmul.bf16.gmra.mxu3 %v12685_v23 }
 0xbe2   : > { %v6547_v27 = vpop.f32.mrf.mxu0  ;;  %v6636_v15 = vpop.f32.mrf.mxu1 }
 0xbe3   : > { %v6548_v46 = vadd.f32 %v6547_v27, %v12635_v13  ;;  %v12930_v29 = vpack.c.bf16 %v12921_v4, %v12917_v58  ;;  %v12934_v54 = vpack.c.bf16 %v12923_v2, %v12919_v18 }
 0xbe4   : > { %v6056_v37 = vpop.f32.mrf.mxu2  ;;  %v6145_v17 = vpop.f32.mrf.mxu3 }
 0xbe5   : > { %v12936_v55 = vadd.f32 %v6636_v15, %v6548_v46  ;;  %6586 = vmatmul.bf16.gmra.mxu0 %v12930_v29  ;;  %6675 = vmatmul.bf16.gmra.mxu1 %v12934_v54  ;;  %v6057_v13 = vadd.f32 %v6056_v37, %v12665_v51  ;;  %v6146_v1 = vadd.f32 %v6145_v17, %v12667_v63  ;;  %v13848_v46 = vld [vmem:[#allocation39_spill] sm:$0xff]  ;;  %v8884_v37 = vld [vmem:[#allocation2 + $0x158] sm:$0xff] }
 0xbe6   : > { %v8885_v17 = vld [vmem:[#allocation2 + $0x10] sm:$0xff] }
 0xbe7   : > { %13847 = vst [vmem:[#allocation59_spill] sm:$0xff] %v12936_v55  ;;  %v6216_v3 = vadd.f32 %v12374_v40, %v6057_v13  ;;  %v6217_v60 = vadd.f32 %v12376_v30, %v6146_v1 }
 0xbe8   : > { %6888 = vst [vmem:[#allocation2 + $0x1e8] sm:$0xff] %v12936_v55 }
 0xbe9   : > { %v12955_v13 = vadd.f32 %v8885_v17, %v6217_v60 }
 0xbea   : > { %v6549_v23 = vpop.f32.mrf.mxu0  ;;  %v6638_v47 = vpop.f32.mrf.mxu1 }
 0xbeb   : > { %v6550_v52 = vadd.f32 %v6549_v23, %v12639_v0  ;;  %v12953_v0 = vadd.f32 %v8884_v37, %v6216_v3  ;;  %v8886_v23 = vld [vmem:[#allocation2 + $0x58] sm:$0xff]  ;;  %v13851_v37 = vld [vmem:[#allocation47_spill] sm:$0xff] }
 0xbec   : > { %v6058_v20 = vpop.f32.mrf.mxu2  ;;  %v6147_v38 = vpop.f32.mrf.mxu3 }
 0xbed   : > { %v12946_v27 = vadd.f32 %v6638_v47, %v6550_v52  ;;  %v6059_v15 = vadd.f32 %v6058_v20, %v12691_v5  ;;  %v6148_v55 = vadd.f32 %v6147_v38, %v13848_v46  ;;  %v8887_v47 = vld [vmem:[#allocation2 + $0xa0] sm:$0xff]  ;;  %v13850_v46 = vld [vmem:[#allocation40_spill] sm:$0xff] }
 0xbee   : > { %v13849_v20 = vld [vmem:[#allocation46_spill] sm:$0xff] }
 0xbef   : > { %6890 = vst [vmem:[#allocation2 + $0x160] sm:$0xff] %v12946_v27  ;;  %v6218_v63 = vadd.f32 %v12374_v40, %v6059_v15  ;;  %v6219_v51 = vadd.f32 %v12376_v30, %v6148_v55 }
 0xbf1   : > { %v12957_v1 = vadd.f32 %v8886_v23, %v6218_v63  ;;  %v12959_v52 = vadd.f32 %v8887_v47, %v6219_v51  ;;  %6734 = vmatmul.bf16.gmra.mxu2 %v12714_v11  ;;  %6823 = vmatmul.bf16.gmra.mxu3 %v12718_v10 }
 0xbf2   : > { %v6552_v5 = vpop.f32.mrf.mxu0  ;;  %v6641_v40 = vpop.f32.mrf.mxu1 }
 0xbf3   : > { %v6553_v30 = vadd.f32 %v6552_v5, %v13849_v20  ;;  %v12966_v55 = vpack.c.bf16 %v12957_v1, %v12953_v0  ;;  %v12970_v3 = vpack.c.bf16 %v12959_v52, %v12955_v13 }
 0xbf4   : > { %v6695_v38 = vpop.f32.mrf.mxu2  ;;  %v6784_v60 = vpop.f32.mrf.mxu3 }
 0xbf5   : > { %v12972_v15 = vadd.f32 %v6641_v40, %v6553_v30  ;;  %v6696_v11 = vadd.f32 %v6695_v38, %v13850_v46  ;;  %6591 = vmatmul.bf16.gmra.mxu0 %v12966_v55  ;;  %6680 = vmatmul.bf16.gmra.mxu1 %v12970_v3  ;;  %v13853_v40 = vld [vmem:[#allocation66_spill] sm:$0xff] }
 0xbf7   : > { %6892 = vst [vmem:[#allocation2 + $0x1e0] sm:$0xff] %v12972_v15  ;;  %v12978_v10 = vadd.f32 %v6784_v60, %v6696_v11 }
 0xbf9   : > { %6865 = vst [vmem:[#allocation2 + $0x1b0] sm:$0xff] %v12978_v10 }
 0xbfa   : > { %v6554_v63 = vpop.f32.mrf.mxu0  ;;  %v6643_v51 = vpop.f32.mrf.mxu1 }
 0xbfb   : > { %v6555_v17 = vadd.f32 %v6554_v63, %v13851_v37  ;;  %v13854_v37 = vld [vmem:[#allocation64_spill] sm:$0xff] }
 0xbfc   : > { %v6697_v23 = vpop.f32.mrf.mxu2  ;;  %v6786_v47 = vpop.f32.mrf.mxu3 }
 0xbfd   : > { %v12982_v5 = vadd.f32 %v6643_v51, %v6555_v17  ;;  %v6698_v20 = vadd.f32 %v6697_v23, %v13853_v40 }
 0xbff   : > { %13852 = vst [vmem:[#allocation62_spill] sm:$0xff] %v12982_v5  ;;  %v12986_v30 = vadd.f32 %v6786_v47, %v6698_v20 }
 0xc00   : > { %6894 = vst [vmem:[#allocation2 + $0xf0] sm:$0xff] %v12982_v5 }
 0xc01   : > { %6867 = vst [vmem:[#allocation2 + $0x18] sm:$0xff] %v12986_v30  ;;  %6739 = vmatmul.bf16.gmra.mxu2 %v12750_v31  ;;  %6828 = vmatmul.bf16.gmra.mxu3 %v12754_v28 }
 0xc02   : > { %v6557_v38 = vpop.f32.mrf.mxu0  ;;  %v6646_v60 = vpop.f32.mrf.mxu1 }
 0xc03   : > { %v6558_v46 = vadd.f32 %v6557_v38, %v12701_v41  ;;  %v13855_v41 = vld [vmem:[#allocation70_spill] sm:$0xff] }
 0xc04   : > { %v6700_v11 = vpop.f32.mrf.mxu2  ;;  %v6789_v63 = vpop.f32.mrf.mxu3 }
 0xc05   : > { %v12992_v51 = vadd.f32 %v6646_v60, %v6558_v46  ;;  %v6701_v17 = vadd.f32 %v6700_v11, %v13854_v37 }
 0xc07   : > { %6896 = vst [vmem:[#allocation2 + $0x148] sm:$0xff] %v12992_v51  ;;  %v12996_v23 = vadd.f32 %v6789_v63, %v6701_v17 }
 0xc09   : > { %6869 = vst [vmem:[#allocation2 + $0x168] sm:$0xff] %v12996_v23 }
 0xc0a   : > { %v6559_v47 = vpop.f32.mrf.mxu0  ;;  %v6648_v31 = vpop.f32.mrf.mxu1 }
 0xc0b   : > { %v6560_v28 = vadd.f32 %v6559_v47, %v12705_v45  ;;  %v13856_v47 = vld [vmem:[#allocation76_spill] sm:$0xff] }
 0xc0c   : > { %v6702_v40 = vpop.f32.mrf.mxu2  ;;  %v6791_v20 = vpop.f32.mrf.mxu3 }
 0xc0d   : > { %v13000_v5 = vadd.f32 %v6648_v31, %v6560_v28  ;;  %v6703_v38 = vadd.f32 %v6702_v40, %v13855_v41 }
 0xc0f   : > { %6898 = vst [vmem:[#allocation2 + $0x100] sm:$0xff] %v13000_v5  ;;  %v13004_v60 = vadd.f32 %v6791_v20, %v6703_v38 }
 0xc11   : > { %6871 = vst [vmem:[#allocation2 + $0x48] sm:$0xff] %v13004_v60  ;;  %6744 = vmatmul.bf16.gmra.mxu2 %v12786_v39  ;;  %6833 = vmatmul.bf16.gmra.mxu3 %v12790_v14 }
 0xc12   : > { %v6562_v46 = vpop.f32.mrf.mxu0  ;;  %v6651_v11 = vpop.f32.mrf.mxu1 }
 0xc13   : > { %v6563_v45 = vadd.f32 %v6562_v46, %v12737_v34  ;;  %v13857_v34 = vld [vmem:[#allocation80_spill] sm:$0xff] }
 0xc14   : > { %v6705_v63 = vpop.f32.mrf.mxu2  ;;  %v6794_v37 = vpop.f32.mrf.mxu3 }
 0xc15   : > { %v13010_v17 = vadd.f32 %v6651_v11, %v6563_v45  ;;  %v6706_v31 = vadd.f32 %v6705_v63, %v13856_v47 }
 0xc17   : > { %6900 = vst [vmem:[#allocation2 + $0x40] sm:$0xff] %v13010_v17  ;;  %v13014_v28 = vadd.f32 %v6794_v37, %v6706_v31 }
 0xc19   : > { %6873 = vst [vmem:[#allocation2 + $0x110] sm:$0xff] %v13014_v28 }
 0xc1a   : > { %v6564_v40 = vpop.f32.mrf.mxu0  ;;  %v6653_v39 = vpop.f32.mrf.mxu1 }
 0xc1b   : > { %v6565_v14 = vadd.f32 %v6564_v40, %v12741_v33  ;;  %v13858_v40 = vld [vmem:[#allocation53_spill] sm:$0xff] }
 0xc1c   : > { %v6707_v20 = vpop.f32.mrf.mxu2  ;;  %v6796_v41 = vpop.f32.mrf.mxu3 }
 0xc1d   : > { %v13018_v38 = vadd.f32 %v6653_v39, %v6565_v14  ;;  %v6708_v46 = vadd.f32 %v6707_v20, %v13857_v34 }
 0xc1f   : > { %6902 = vst [vmem:[#allocation2 + $0x20] sm:$0xff] %v13018_v38  ;;  %v13022_v11 = vadd.f32 %v6796_v41, %v6708_v46 }
 0xc21   : > { %6875 = vst [vmem:[#allocation2 + $0x98] sm:$0xff] %v13022_v11  ;;  %6749 = vmatmul.bf16.gmra.mxu2 %v12822_v42  ;;  %6838 = vmatmul.bf16.gmra.mxu3 %v12826_v53 }
 0xc22   : > { %v6567_v45 = vpop.f32.mrf.mxu0  ;;  %v6656_v63 = vpop.f32.mrf.mxu1 }
 0xc23   : > { %v6568_v33 = vadd.f32 %v6567_v45, %v12773_v19  ;;  %v13859_v19 = vld [vmem:[#allocation61_spill] sm:$0xff] }
 0xc24   : > { %v6710_v37 = vpop.f32.mrf.mxu2  ;;  %v6799_v47 = vpop.f32.mrf.mxu3 }
 0xc25   : > { %v13028_v31 = vadd.f32 %v6656_v63, %v6568_v33  ;;  %v6711_v39 = vadd.f32 %v6710_v37, %v13858_v40 }
 0xc27   : > { %6904 = vst [vmem:[#allocation2 + $0x1a0] sm:$0xff] %v13028_v31  ;;  %v13032_v14 = vadd.f32 %v6799_v47, %v6711_v39 }
 0xc29   : > { %6877 = vst [vmem:[#allocation2 + $0x150] sm:$0xff] %v13032_v14 }
 0xc2a   : > { %v6569_v20 = vpop.f32.mrf.mxu0  ;;  %v6658_v42 = vpop.f32.mrf.mxu1 }
 0xc2b   : > { %v6570_v53 = vadd.f32 %v6569_v20, %v12777_v62  ;;  %v13860_v20 = vld [vmem:[#allocation69_spill] sm:$0xff] }
 0xc2c   : > { %v6712_v41 = vpop.f32.mrf.mxu2  ;;  %v6801_v34 = vpop.f32.mrf.mxu3 }
 0xc2d   : > { %v13036_v46 = vadd.f32 %v6658_v42, %v6570_v53  ;;  %v6713_v45 = vadd.f32 %v6712_v41, %v13859_v19 }
 0xc2f   : > { %6906 = vst [vmem:[#allocation2 + $0xe8] sm:$0xff] %v13036_v46  ;;  %v13040_v63 = vadd.f32 %v6801_v34, %v6713_v45 }
 0xc31   : > { %6879 = vst [vmem:[#allocation2 + $0x60] sm:$0xff] %v13040_v63  ;;  %6754 = vmatmul.bf16.gmra.mxu2 %v12858_v56  ;;  %6843 = vmatmul.bf16.gmra.mxu3 %v12862_v26 }
 0xc32   : > { %v6572_v33 = vpop.f32.mrf.mxu0  ;;  %v6661_v37 = vpop.f32.mrf.mxu1 }
 0xc33   : > { %v6573_v62 = vadd.f32 %v6572_v33, %v12809_v48  ;;  %v13861_v48 = vld [vmem:[#allocation73_spill] sm:$0xff] }
 0xc34   : > { %v6715_v47 = vpop.f32.mrf.mxu2  ;;  %v6804_v40 = vpop.f32.mrf.mxu3 }
 0xc35   : > { %v13046_v39 = vadd.f32 %v6661_v37, %v6573_v62  ;;  %v6716_v42 = vadd.f32 %v6715_v47, %v13860_v20 }
 0xc37   : > { %6908 = vst [vmem:[#allocation2 + $0x70] sm:$0xff] %v13046_v39  ;;  %v13050_v53 = vadd.f32 %v6804_v40, %v6716_v42 }
 0xc39   : > { %6881 = vst [vmem:[#allocation2 + $0x188] sm:$0xff] %v13050_v53 }
 0xc3a   : > { %v6574_v41 = vpop.f32.mrf.mxu0  ;;  %v6663_v56 = vpop.f32.mrf.mxu1 }
 0xc3b   : > { %v6575_v26 = vadd.f32 %v6574_v41, %v12813_v61  ;;  %v13862_v41 = vld [vmem:[#allocation71_spill] sm:$0xff] }
 0xc3c   : > { %v6717_v34 = vpop.f32.mrf.mxu2  ;;  %v6806_v19 = vpop.f32.mrf.mxu3 }
 0xc3d   : > { %v13054_v45 = vadd.f32 %v6663_v56, %v6575_v26  ;;  %v6718_v33 = vadd.f32 %v6717_v34, %v13861_v48 }
 0xc3f   : > { %6910 = vst [vmem:[#allocation2 + $0x1d8] sm:$0xff] %v13054_v45  ;;  %v13058_v37 = vadd.f32 %v6806_v19, %v6718_v33 }
 0xc41   : > { %6883 = vst [vmem:[#allocation2 + $0x140] sm:$0xff] %v13058_v37  ;;  %6759 = vmatmul.bf16.gmra.mxu2 %v12894_v22  ;;  %6848 = vmatmul.bf16.gmra.mxu3 %v12898_v21 }
 0xc42   : > { %v6577_v62 = vpop.f32.mrf.mxu0  ;;  %v6666_v47 = vpop.f32.mrf.mxu1 }
 0xc43   : > { %v6578_v61 = vadd.f32 %v6577_v62, %v12845_v36  ;;  %v13863_v36 = vld [vmem:[#allocation43_spill] sm:$0xff] }
 0xc44   : > { %v6720_v40 = vpop.f32.mrf.mxu2  ;;  %v6809_v20 = vpop.f32.mrf.mxu3 }
 0xc45   : > { %v13064_v42 = vadd.f32 %v6666_v47, %v6578_v61  ;;  %v6721_v56 = vadd.f32 %v6720_v40, %v13862_v41 }
 0xc47   : > { %6912 = vst [vmem:[#allocation2 + $0xb8] sm:$0xff] %v13064_v42  ;;  %v13068_v26 = vadd.f32 %v6809_v20, %v6721_v56 }
 0xc49   : > { %6885 = vst [vmem:[#allocation2 + $0x1a8] sm:$0xff] %v13068_v26 }
 0xc4a   : > { %v6579_v34 = vpop.f32.mrf.mxu0  ;;  %v6668_v22 = vpop.f32.mrf.mxu1 }
 0xc4b   : > { %v6580_v21 = vadd.f32 %v6579_v34, %v12849_v43  ;;  %v13864_v34 = vld [vmem:[#allocation42_spill] sm:$0xff] }
 0xc4c   : > { %v6722_v19 = vpop.f32.mrf.mxu2  ;;  %v6811_v48 = vpop.f32.mrf.mxu3 }
 0xc4d   : > { %v13072_v33 = vadd.f32 %v6668_v22, %v6580_v21  ;;  %v6723_v62 = vadd.f32 %v6722_v19, %v13863_v36 }
 0xc4f   : > { %6914 = vst [vmem:[#allocation2 + $0xa8] sm:$0xff] %v13072_v33  ;;  %v13076_v47 = vadd.f32 %v6811_v48, %v6723_v62 }
 0xc51   : > { %6887 = vst [vmem:[#allocation2 + $0x28] sm:$0xff] %v13076_v47  ;;  %6764 = vmatmul.bf16.gmra.mxu2 %v12930_v29  ;;  %6853 = vmatmul.bf16.gmra.mxu3 %v12934_v54 }
 0xc52   : > { %v6582_v61 = vpop.f32.mrf.mxu0  ;;  %v6671_v40 = vpop.f32.mrf.mxu1 }
 0xc53   : > { %v6583_v43 = vadd.f32 %v6582_v61, %v12881_v16  ;;  %v13865_v16 = vld [vmem:[#allocation77_spill] sm:$0xff] }
 0xc54   : > { %v6725_v20 = vpop.f32.mrf.mxu2  ;;  %v6814_v41 = vpop.f32.mrf.mxu3 }
 0xc55   : > { %v13082_v56 = vadd.f32 %v6671_v40, %v6583_v43  ;;  %v6726_v22 = vadd.f32 %v6725_v20, %v13864_v34 }
 0xc57   : > { %6916 = vst [vmem:[#allocation2 + $0x170] sm:$0xff] %v13082_v56  ;;  %v13086_v21 = vadd.f32 %v6814_v41, %v6726_v22 }
 0xc59   : > { %6889 = vst [vmem:[#allocation2 + $0xf8] sm:$0xff] %v13086_v21 }
 0xc5a   : > { %v6584_v19 = vpop.f32.mrf.mxu0  ;;  %v6673_v29 = vpop.f32.mrf.mxu1 }
 0xc5b   : > { %v6585_v54 = vadd.f32 %v6584_v19, %v12885_v32  ;;  %v13867_v19 = vld [vmem:[#allocation79_spill] sm:$0xff] }
 0xc5c   : > { %v6727_v48 = vpop.f32.mrf.mxu2  ;;  %v6816_v36 = vpop.f32.mrf.mxu3 }
 0xc5d   : > { %v13090_v62 = vadd.f32 %v6673_v29, %v6585_v54  ;;  %v6728_v61 = vadd.f32 %v6727_v48, %v13865_v16 }
 0xc5f   : > { %6918 = vst [vmem:[#allocation2 + $0x68] sm:$0xff] %v13090_v62  ;;  %v13094_v40 = vadd.f32 %v6816_v36, %v6728_v61 }
 0xc61   : > { %6891 = vst [vmem:[#allocation2 + $0x30] sm:$0xff] %v13094_v40  ;;  %6769 = vmatmul.bf16.gmra.mxu2 %v12966_v55  ;;  %6858 = vmatmul.bf16.gmra.mxu3 %v12970_v3 }
 0xc62   : > { %v6587_v43 = vpop.f32.mrf.mxu0  ;;  %v6676_v20 = vpop.f32.mrf.mxu1 }
 0xc63   : > { %v6588_v32 = vadd.f32 %v6587_v43, %v12917_v58  ;;  %v13868_v58 = vld [vmem:[#allocation38_spill] sm:$0xff] }
 0xc64   : > { %v6730_v41 = vpop.f32.mrf.mxu2  ;;  %v6819_v34 = vpop.f32.mrf.mxu3 }
 0xc65   : > { %v13100_v22 = vadd.f32 %v6676_v20, %v6588_v32  ;;  %v6731_v29 = vadd.f32 %v6730_v41, %v13867_v19 }
 0xc67   : > { %13866 = vst [vmem:[#allocation68_spill] sm:$0xff] %v13100_v22  ;;  %v13104_v54 = vadd.f32 %v6819_v34, %v6731_v29 }
 0xc68   : > { %6920 = vst [vmem:[#allocation2 + $0x198] sm:$0xff] %v13100_v22 }
 0xc69   : > { %6893 = vst [vmem:[#allocation2] sm:$0xff] %v13104_v54 }
 0xc6a   : > { %v6589_v48 = vpop.f32.mrf.mxu0  ;;  %v6678_v55 = vpop.f32.mrf.mxu1 }
 0xc6b   : > { %v6590_v3 = vadd.f32 %v6589_v48, %v12921_v4 }
 0xc6c   : > { %v6732_v36 = vpop.f32.mrf.mxu2  ;;  %v6821_v16 = vpop.f32.mrf.mxu3 }
 0xc6d   : > { %v13108_v61 = vadd.f32 %v6678_v55, %v6590_v3  ;;  %v6733_v43 = vadd.f32 %v6732_v36, %v13868_v58 }
 0xc6f   : > { %6922 = vst [vmem:[#allocation2 + $0xc0] sm:$0xff] %v13108_v61  ;;  %v13112_v20 = vadd.f32 %v6821_v16, %v6733_v43 }
 0xc71   : > { %6895 = vst [vmem:[#allocation2 + $0x8] sm:$0xff] %v13112_v20 }
 0xc72   : > { %v6592_v32 = vpop.f32.mrf.mxu0  ;;  %v6681_v41 = vpop.f32.mrf.mxu1 }
 0xc73   : > { %v6593_v34 = vadd.f32 %v6592_v32, %v12953_v0 }
 0xc74   : > { %v6735_v19 = vpop.f32.mrf.mxu2  ;;  %v6824_v29 = vpop.f32.mrf.mxu3 }
 0xc75   : > { %v13116_v22 = vadd.f32 %v6681_v41, %v6593_v34  ;;  %v6736_v4 = vadd.f32 %v6735_v19, %v12703_v12 }
 0xc77   : > { %6924 = vst [vmem:[#allocation2 + $0x158] sm:$0xff] %v13116_v22  ;;  %v13120_v48 = vadd.f32 %v6824_v29, %v6736_v4 }
 0xc79   : > { %6897 = vst [vmem:[#allocation2 + $0x1d0] sm:$0xff] %v13120_v48 }
 0xc7a   : > { %v6594_v55 = vpop.f32.mrf.mxu0  ;;  %v6683_v36 = vpop.f32.mrf.mxu1 }
 0xc7b   : > { %v6595_v3 = vadd.f32 %v6594_v55, %v12957_v1 }
 0xc7c   : > { %v6737_v16 = vpop.f32.mrf.mxu2  ;;  %v6826_v58 = vpop.f32.mrf.mxu3 }
 0xc7d   : > { %v13124_v43 = vadd.f32 %v6683_v36, %v6595_v3  ;;  %v6738_v0 = vadd.f32 %v6737_v16, %v12707_v44 }
 0xc7f   : > { %6926 = vst [vmem:[#allocation2 + $0x58] sm:$0xff] %v13124_v43  ;;  %v13128_v32 = vadd.f32 %v6826_v58, %v6738_v0 }
 0xc81   : > { %6899 = vst [vmem:[#allocation2 + $0xc8] sm:$0xff] %v13128_v32 }
 0xc84   : > { %v6740_v12 = vpop.f32.mrf.mxu2  ;;  %v6829_v41 = vpop.f32.mrf.mxu3 }
 0xc85   : > { %v6741_v34 = vadd.f32 %v6740_v12, %v12739_v8 }
 0xc87   : > { %v13132_v19 = vadd.f32 %v6829_v41, %v6741_v34  ;;  %v13869_v34 = vld [vmem:[#allocation58_spill] sm:$0xff] }
 0xc89   : > { %6901 = vst [vmem:[#allocation2 + $0x1f8] sm:$0xff] %v13132_v19 }
 0xc8c   : > { %v6742_v1 = vpop.f32.mrf.mxu2  ;;  %v6831_v29 = vpop.f32.mrf.mxu3 }
 0xc8d   : > { %v6743_v4 = vadd.f32 %v6742_v1, %v12743_v9 }
 0xc8f   : > { %v13136_v55 = vadd.f32 %v6831_v29, %v6743_v4 }
 0xc91   : > { %6903 = vst [vmem:[#allocation2 + $0x128] sm:$0xff] %v13136_v55 }
 0xc94   : > { %v6745_v44 = vpop.f32.mrf.mxu2  ;;  %v6834_v3 = vpop.f32.mrf.mxu3 }
 0xc95   : > { %v6746_v36 = vadd.f32 %v6745_v44, %v12775_v59  ;;  %v13870_v44 = vld [vmem:[#allocation56_spill] sm:$0xff] }
 0xc97   : > { %v13140_v16 = vadd.f32 %v6834_v3, %v6746_v36 }
 0xc99   : > { %6905 = vst [vmem:[#allocation2 + $0x1f0] sm:$0xff] %v13140_v16 }
 0xc9c   : > { %v6747_v8 = vpop.f32.mrf.mxu2  ;;  %v6836_v58 = vpop.f32.mrf.mxu3 }
 0xc9d   : > { %v6748_v0 = vadd.f32 %v6747_v8, %v12779_v57 }
 0xc9f   : > { %v13144_v12 = vadd.f32 %v6836_v58, %v6748_v0 }
 0xca1   : > { %6907 = vst [vmem:[#allocation2 + $0x78] sm:$0xff] %v13144_v12 }
 0xca4   : > { %v6750_v9 = vpop.f32.mrf.mxu2  ;;  %v6839_v41 = vpop.f32.mrf.mxu3 }
 0xca5   : > { %v6751_v1 = vadd.f32 %v6750_v9, %v13869_v34 }
 0xca7   : > { %v13148_v29 = vadd.f32 %v6839_v41, %v6751_v1 }
 0xca9   : > { %6909 = vst [vmem:[#allocation2 + $0x90] sm:$0xff] %v13148_v29 }
 0xcac   : > { %v6752_v59 = vpop.f32.mrf.mxu2  ;;  %v6841_v4 = vpop.f32.mrf.mxu3 }
 0xcad   : > { %v6753_v3 = vadd.f32 %v6752_v59, %v13870_v44 }
 0xcaf   : > { %v13152_v36 = vadd.f32 %v6841_v4, %v6753_v3 }
 0xcb1   : > { %6911 = vst [vmem:[#allocation2 + $0xd0] sm:$0xff] %v13152_v36 }
 0xcb4   : > { %v6755_v57 = vpop.f32.mrf.mxu2  ;;  %v6844_v8 = vpop.f32.mrf.mxu3 }
 0xcb5   : > { %v6756_v58 = vadd.f32 %v6755_v57, %v12847_v7 }
 0xcb7   : > { %v13156_v0 = vadd.f32 %v6844_v8, %v6756_v58 }
 0xcb9   : > { %6913 = vst [vmem:[#allocation2 + $0x88] sm:$0xff] %v13156_v0 }
 0xcbc   : > { %v6757_v9 = vpop.f32.mrf.mxu2  ;;  %v6846_v41 = vpop.f32.mrf.mxu3 }
 0xcbd   : > { %v6758_v34 = vadd.f32 %v6757_v9, %v12851_v49 }
 0xcbf   : > { %v13160_v1 = vadd.f32 %v6846_v41, %v6758_v34 }
 0xcc1   : > { %6915 = vst [vmem:[#allocation2 + $0x1c8] sm:$0xff] %v13160_v1 }
 0xcc4   : > { %v6760_v59 = vpop.f32.mrf.mxu2  ;;  %v6849_v4 = vpop.f32.mrf.mxu3 }
 0xcc5   : > { %v6761_v44 = vadd.f32 %v6760_v59, %v12883_v6 }
 0xcc7   : > { %v13164_v3 = vadd.f32 %v6849_v4, %v6761_v44 }
 0xcc9   : > { %6917 = vst [vmem:[#allocation2 + $0x178] sm:$0xff] %v13164_v3 }
 0xccc   : > { %v6762_v7 = vpop.f32.mrf.mxu2  ;;  %v6851_v57 = vpop.f32.mrf.mxu3 }
 0xccd   : > { %v6763_v8 = vadd.f32 %v6762_v7, %v12887_v25 }
 0xccf   : > { %v13168_v58 = vadd.f32 %v6851_v57, %v6763_v8 }
 0xcd1   : > { %6919 = vst [vmem:[#allocation2 + $0x190] sm:$0xff] %v13168_v58 }
 0xcd4   : > { %v6765_v49 = vpop.f32.mrf.mxu2  ;;  %v6854_v9 = vpop.f32.mrf.mxu3 }
 0xcd5   : > { %v6766_v41 = vadd.f32 %v6765_v49, %v12919_v18 }
 0xcd7   : > { %v13172_v34 = vadd.f32 %v6854_v9, %v6766_v41 }
 0xcd9   : > { %6921 = vst [vmem:[#allocation2 + $0x38] sm:$0xff] %v13172_v34 }
 0xcdc   : > { %v6767_v6 = vpop.f32.mrf.mxu2  ;;  %v6856_v59 = vpop.f32.mrf.mxu3 }
 0xcdd   : > { %v6768_v4 = vadd.f32 %v6767_v6, %v12923_v2 }
 0xcdf   : > { %v13176_v44 = vadd.f32 %v6856_v59, %v6768_v4 }
 0xce1   : > { %6923 = vst [vmem:[#allocation2 + $0x1c0] sm:$0xff] %v13176_v44 }
 0xce4   : > { %v6770_v25 = vpop.f32.mrf.mxu2  ;;  %v6859_v7 = vpop.f32.mrf.mxu3 }
 0xce5   : > { %v6771_v57 = vadd.f32 %v6770_v25, %v12955_v13 }
 0xce7   : > { %v13180_v8 = vadd.f32 %v6859_v7, %v6771_v57 }
 0xce9   : > { %6925 = vst [vmem:[#allocation2 + $0x10] sm:$0xff] %v13180_v8 }
 0xcec   : > { %v6772_v18 = vpop.f32.mrf.mxu2  ;;  %v6861_v9 = vpop.f32.mrf.mxu3 }
 0xced   : > { %v6773_v49 = vadd.f32 %v6772_v18, %v12959_v52  ;;  %6931 = sbr.rel (%p8076_p7) target bundleno = 3378 (0xd32), region = 108 }
 0xcef   : > { %v13184_v41 = vadd.f32 %v6861_v9, %v6773_v49 }
 0xcf1   : > { %6927 = vst [vmem:[#allocation2 + $0xa0] sm:$0xff] %v13184_v41 }
 0xcf2   : > { %v13872_v2 = vld [vmem:[#allocation81_spill] sm:$0xff]  ;;  %6933 = vst [vmem:[%s9677_s17 + $0x8] sm:$0xff] %v12978_v10  ;;  %v13873_v13 = vld [vmem:[#allocation50_spill] sm:$0xff]  ;;  %v13874_v52 = vld [vmem:[#allocation51_spill] sm:$0xff] }
 0xcf3   : > { %6932 = vst [vmem:[%s9677_s17] sm:$0xff] %v13872_v2  ;;  %v13875_v6 = vld [vmem:[#allocation54_spill] sm:$0xff]  ;;  %v13876_v59 = vld [vmem:[#allocation55_spill] sm:$0xff]  ;;  %v13877_v10 = vld [vmem:[#allocation48_spill] sm:$0xff] }
 0xcf4   : > { %6934 = vst [vmem:[%s9677_s17 + $0x10] sm:$0xff] %v13873_v13 }
 0xcf5   : > { %6935 = vst [vmem:[%s9677_s17 + $0x18] sm:$0xff] %v12986_v30  ;;  %v13878_v30 = vld [vmem:[#allocation52_spill] sm:$0xff] }
 0xcf6   : > { %6936 = vst [vmem:[%s9677_s17 + $0x20] sm:$0xff] %v13874_v52 }
 0xcf7   : > { %6937 = vst [vmem:[%s9677_s17 + $0x28] sm:$0xff] %v12996_v23  ;;  %v13879_v23 = vld [vmem:[#allocation44_spill] sm:$0xff] }
 0xcf8   : > { %6938 = vst [vmem:[%s9677_s17 + $0x30] sm:$0xff] %v13875_v6 }
 0xcf9   : > { %6939 = vst [vmem:[%s9677_s17 + $0x38] sm:$0xff] %v13004_v60  ;;  %v13880_v60 = vld [vmem:[#allocation60_spill] sm:$0xff] }
 0xcfa   : > { %6940 = vst [vmem:[%s9677_s17 + $0x40] sm:$0xff] %v13876_v59 }
 0xcfb   : > { %6941 = vst [vmem:[%s9677_s17 + $0x48] sm:$0xff] %v13014_v28  ;;  %v13881_v28 = vld [vmem:[#allocation59_spill] sm:$0xff] }
 0xcfc   : > { %6942 = vst [vmem:[%s9677_s17 + $0x50] sm:$0xff] %v13877_v10 }
 0xcfd   : > { %6943 = vst [vmem:[%s9677_s17 + $0x58] sm:$0xff] %v13022_v11 }
 0xcfe   : > { %6944 = vst [vmem:[%s9677_s17 + $0x60] sm:$0xff] %v13878_v30 }
 0xcff   : > { %6945 = vst [vmem:[%s9677_s17 + $0x68] sm:$0xff] %v13032_v14 }
 0xd00   : > { %6946 = vst [vmem:[%s9677_s17 + $0x70] sm:$0xff] %v13879_v23 }
 0xd01   : > { %6947 = vst [vmem:[%s9677_s17 + $0x78] sm:$0xff] %v13040_v63 }
 0xd02   : > { %6948 = vst [vmem:[%s9677_s17 + $0x80] sm:$0xff] %v13880_v60 }
 0xd03   : > { %6949 = vst [vmem:[%s9677_s17 + $0x88] sm:$0xff] %v13050_v53 }
 0xd04   : > { %6950 = vst [vmem:[%s9677_s17 + $0x90] sm:$0xff] %v12873_v50  ;;  %v13882_v50 = vld [vmem:[#allocation62_spill] sm:$0xff] }
 0xd05   : > { %6951 = vst [vmem:[%s9677_s17 + $0x98] sm:$0xff] %v13058_v37 }
 0xd06   : > { %6952 = vst [vmem:[%s9677_s17 + $0xa0] sm:$0xff] %v12900_v24  ;;  %v13883_v24 = vld [vmem:[#allocation68_spill] sm:$0xff] }
 0xd07   : > { %6953 = vst [vmem:[%s9677_s17 + $0xa8] sm:$0xff] %v13068_v26 }
 0xd08   : > { %6954 = vst [vmem:[%s9677_s17 + $0xb0] sm:$0xff] %v12909_v35 }
 0xd09   : > { %6955 = vst [vmem:[%s9677_s17 + $0xb8] sm:$0xff] %v13076_v47 }
 0xd0a   : > { %6956 = vst [vmem:[%s9677_s17 + $0xc0] sm:$0xff] %v13881_v28 }
 0xd0b   : > { %6957 = vst [vmem:[%s9677_s17 + $0xc8] sm:$0xff] %v13086_v21 }
 0xd0c   : > { %6958 = vst [vmem:[%s9677_s17 + $0xd0] sm:$0xff] %v12946_v27 }
 0xd0d   : > { %6959 = vst [vmem:[%s9677_s17 + $0xd8] sm:$0xff] %v13094_v40 }
 0xd0e   : > { %6960 = vst [vmem:[%s9677_s17 + $0xe0] sm:$0xff] %v12972_v15 }
 0xd0f   : > { %6961 = vst [vmem:[%s9677_s17 + $0xe8] sm:$0xff] %v13104_v54 }
 0xd10   : > { %6962 = vst [vmem:[%s9677_s17 + $0xf0] sm:$0xff] %v13882_v50 }
 0xd11   : > { %6963 = vst [vmem:[%s9677_s17 + $0xf8] sm:$0xff] %v13112_v20 }
 0xd12   : > { %6964 = vst [vmem:[%s9677_s17 + $0x100] sm:$0xff] %v12992_v51 }
 0xd13   : > { %6965 = vst [vmem:[%s9677_s17 + $0x108] sm:$0xff] %v13120_v48 }
 0xd14   : > { %6966 = vst [vmem:[%s9677_s17 + $0x110] sm:$0xff] %v13000_v5 }
 0xd15   : > { %6967 = vst [vmem:[%s9677_s17 + $0x118] sm:$0xff] %v13128_v32 }
 0xd16   : > { %6968 = vst [vmem:[%s9677_s17 + $0x120] sm:$0xff] %v13010_v17 }
 0xd17   : > { %6969 = vst [vmem:[%s9677_s17 + $0x128] sm:$0xff] %v13132_v19 }
 0xd18   : > { %6970 = vst [vmem:[%s9677_s17 + $0x130] sm:$0xff] %v13018_v38 }
 0xd19   : > { %6971 = vst [vmem:[%s9677_s17 + $0x138] sm:$0xff] %v13136_v55 }
 0xd1a   : > { %6972 = vst [vmem:[%s9677_s17 + $0x140] sm:$0xff] %v13028_v31 }
 0xd1b   : > { %6973 = vst [vmem:[%s9677_s17 + $0x148] sm:$0xff] %v13140_v16 }
 0xd1c   : > { %6974 = vst [vmem:[%s9677_s17 + $0x150] sm:$0xff] %v13036_v46 }
 0xd1d   : > { %6975 = vst [vmem:[%s9677_s17 + $0x158] sm:$0xff] %v13144_v12 }
 0xd1e   : > { %6976 = vst [vmem:[%s9677_s17 + $0x160] sm:$0xff] %v13046_v39 }
 0xd1f   : > { %6977 = vst [vmem:[%s9677_s17 + $0x168] sm:$0xff] %v13148_v29 }
 0xd20   : > { %6978 = vst [vmem:[%s9677_s17 + $0x170] sm:$0xff] %v13054_v45 }
 0xd21   : > { %6979 = vst [vmem:[%s9677_s17 + $0x178] sm:$0xff] %v13152_v36 }
 0xd22   : > { %6980 = vst [vmem:[%s9677_s17 + $0x180] sm:$0xff] %v13064_v42 }
 0xd23   : > { %6981 = vst [vmem:[%s9677_s17 + $0x188] sm:$0xff] %v13156_v0 }
 0xd24   : > { %6982 = vst [vmem:[%s9677_s17 + $0x190] sm:$0xff] %v13072_v33 }
 0xd25   : > { %6983 = vst [vmem:[%s9677_s17 + $0x198] sm:$0xff] %v13160_v1 }
 0xd26   : > { %6984 = vst [vmem:[%s9677_s17 + $0x1a0] sm:$0xff] %v13082_v56 }
 0xd27   : > { %6985 = vst [vmem:[%s9677_s17 + $0x1a8] sm:$0xff] %v13164_v3 }
 0xd28   : > { %6986 = vst [vmem:[%s9677_s17 + $0x1b0] sm:$0xff] %v13090_v62 }
 0xd29   : > { %6987 = vst [vmem:[%s9677_s17 + $0x1b8] sm:$0xff] %v13168_v58 }
 0xd2a   : > { %6988 = vst [vmem:[%s9677_s17 + $0x1c0] sm:$0xff] %v13883_v24 }
 0xd2b   : > { %6989 = vst [vmem:[%s9677_s17 + $0x1c8] sm:$0xff] %v13172_v34 }
 0xd2c   : > { %6990 = vst [vmem:[%s9677_s17 + $0x1d0] sm:$0xff] %v13108_v61 }
 0xd2d   : > { %6991 = vst [vmem:[%s9677_s17 + $0x1d8] sm:$0xff] %v13176_v44 }
 0xd2e   : > { %6992 = vst [vmem:[%s9677_s17 + $0x1e0] sm:$0xff] %v13116_v22 }
 0xd2f   : > { %6993 = vst [vmem:[%s9677_s17 + $0x1e8] sm:$0xff] %v13180_v8 }
 0xd30   : > { %6994 = vst [vmem:[%s9677_s17 + $0x1f0] sm:$0xff] %v13124_v43 }
 0xd31   : > { %6995 = vst [vmem:[%s9677_s17 + $0x1f8] sm:$0xff] %v13184_v41 }
 0xd32 PF: > { %s13884_s13 = sld [smem:[#allocation27_spill]]  ;;  %s7009_s0 = sshll.u32 %s9677_s17, 4  ;;  %s7010_s0 = int_to_ptr.vmem [resolvable:$true] %s7009_s0 }
 0xd33   : > { %s13886_s29 = sld [smem:[#allocation91_spill]]  ;;  %s6997_s14 = scalar_lea.sflag [#allocation5], %s9620_s23 }
 0xd38   : > { %s8280_s30 = sshll.u32 %s13884_s13, 9 }
 0xd39   : > { %s7008_s2 = scalar_lea.hbm %s13886_s29, %s8280_s30  ;;  %s9178_s18 = scalar_lea.hbm %s13886_s29, 1024 }
 0xd3a   : > { %s7011_s7 = sshll.u32 %s7008_s2, 4  ;;  %s7012_s7 = int_to_ptr.hbm [resolvable:$true] %s7011_s7 }
 0xd3b   : > { %s9172_s24 = sshra.s32 %s7012_s7, 4  ;;  %s9173_s24 = int_to_ptr.hbm [resolvable:$true] %s9172_s24 }
 0xd3c   : > { %s9174_s1 = scalar_lea.hbm %s9173_s24, 512  ;;  %p9179_p9 = scmp.lt.s32.totalorder %s9173_s24, %s13886_s29 }
 0xd3d   : > { %p9175_p8 = scmp.ne.s32.totalorder %s9173_s24, %s9174_s1  ;;  %p9180_p0 = scmp.lt.s32.totalorder %s9178_s18, %s9174_s1 }
 0xd3f   : > { %p9176_p10 = pnand %p9175_p8, %p9551_p11  ;;  %p9181_p2 = por %p9180_p0, %p9179_p9 }
 0xd41   : > { %p9177_p12 = pneg %p9176_p10 }
 0xd43   : > { %p9182_p3 = pnand %p9181_p2, %p9177_p12 }
 0xd45   : > { %9185 = shalt.err (!%p9182_p3)
}
 0xd46   : > { %s9304_s23 = smov 256   ;;  %s9305_s15 = smov 16  }
 0xd47   : > { %8303 = dma.vmem_to_hbm [thread:$0]  (%p9551_p11), %s7010_s0, 8192, %s7012_s7, %s6997_s14, %s9304_s23, %s9304_s23, %s9305_s15  }
 0xd48 PF: > { %p8343_p13 = scmp.ge.s32.totalorder %s9296_s27, 2  ;;  %s7026_s17 = sand.u32 1, %s9268_s20  }
 0xd49   : > { %s7027_s8 = scalar_lea.sflag [#allocation5], %s7026_s17 }
 0xd4a   : > { %p8335_p6 = pnand %p8343_p13, %p9568_p1 }
 0xd4c   : > { %p8336_p4 = pneg %p8335_p6 }
 0xd4e   : > { %9251 = dma.done.wait (%p8336_p4), %s7027_s8, 8192  }
 0xd4f   : > { %9253 = vsyncadd (%p8336_p4), %s7027_s8, 4294959104  ;;  %s37_s27 = sadd.s32 1, %s9296_s27   ;;  %s13887_s17 = sld [smem:[#allocation25_spill]] }
 0xd50   : > { %p34_p5 = scmp.ge.s32.totalorder %s37_s27, 6   ;;  %s13888_s9 = sld [smem:[#allocation36_spill]] }
 0xd51   : > { %s13889_s13 = sld [smem:[#allocation37_spill]]  ;;  %s13893_s18 = smov %s9264_s19 }
 0xd52   : > { %s13890_s24 = sld [smem:[#allocation28_spill]]  ;;  %s13895_s20 = smov %s9272_s21 }
 0xd53   : > { %s13891_s11 = sld [smem:[#allocation32_spill]]  ;;  %s13896_s21 = smov %s9276_s22 }
 0xd54   : > { %s13892_s26 = sld [smem:[#allocation35_spill]]  ;;  %s13898_s23 = smov %s9288_s25 }
 0xd55   :  { %36 = sbr.rel (!%p34_p5) target bundleno = 27 (0x1b), region = 203 }
 0xd56   : > { %s13894_s19 = smov %s13888_s9 }
 0xd57   : > { %s13897_s22 = smov %s13889_s13 }
 0xd59   : > { %s13899_s25 = smov %s13891_s11 }
 0xd5a   :  { %7033 = vsyncpa [#allocation4], 1 }
 0xd5b   :  { %7035 = vsyncpa [#allocation4 + $0x1], 1 }
 0xd5c   :  { %7036 = vsyncpa [#allocation7], 1 }
 0xd5d   :  { %7037 = vsyncpa [#allocation10], 1 }
 0xd5e   :  { %7039 = vsyncpa [#allocation10 + $0x1], 1 }
 0xd5f   :  { %7040 = vsyncpa [#allocation13], 1 }
 0xd60   :  { %7042 = vsyncpa [#allocation13 + $0x1], 1 }
 0xd61   :  { %7043 = vsyncpa [#allocation16], 1 }
 0xd62   :  { %7045 = vsyncpa [#allocation16 + $0x1], 1 }
 0xd63   :  { %7046 = vsyncpa [#allocation5], 1 }
 0xd64   :  { %7048 = vsyncpa [#allocation5 + $0x1], 1 }

</bundles_post_ra>
